<compile_context>
chip_gen: v5e
topology: v5e:2x2
jax: 0.10.0
libtpu: 0.0.40
codegen_flags: <defaults>
</compile_context>

<pallas_src>
import functools
import math

import jax
import jax.numpy as jnp
from jax.experimental import pallas as pl
from jax.experimental.pallas import tpu as pltpu


def _round_up(x, m):
    return ((x + m - 1) // m) * m


def _vmem_limit_bytes(needed_bytes):
    """Generous VMEM request, capped safely below physical capacity."""
    try:
        cap = int(getattr(pltpu.get_tpu_info(), "vmem_capacity_bytes", 64 << 20))
    except Exception:
        cap = 64 << 20                      # conservative (v7x per-TC size)
    usable = max(cap - (16 << 20), 32 << 20)  # leave Mosaic scratch headroom
    return int(min(max(2 * needed_bytes, 32 << 20), usable))


def _splitbias_kernel(x_ref, w_ref, b_ref, o_ref, acc_ref, *, tk, x_resident):
    """One (i, j, k) grid step of y = x @ W^T + b (W stored pre-transposed (K, N))."""
    k = pl.program_id(2)

    @pl.when(k == 0)
    def _init():
        acc_ref[...] = jnp.zeros_like(acc_ref)

    if x_resident:
        # x block is the full (tm, Kp) row panel, resident across j and k;
        # slice the current K panel straight out of VMEM (no HBM re-read).
        x_tile = x_ref[:, pl.ds(pl.multiple_of(k * tk, 128), tk)]
    else:
        x_tile = x_ref[...]

    # Standard (m,k)x(k,n) contraction -- weight was transposed once at prep
    # time, so the MXU path needs no per-tile transpose.  With bf16 operands
    # (default) this is the fast single-pass MXU mode on every generation;
    # f32 operands use the slower multi-pass mode.  Accumulation is f32.
    acc_ref[...] += jnp.dot(x_tile, w_ref[...], preferred_element_type=jnp.float32)

    @pl.when(k == pl.num_programs(2) - 1)
    def _finalize():
        # AddBias epilogue: bias added exactly once per output tile, then cast.
        o_ref[...] = (acc_ref[...] + b_ref[...]).astype(o_ref.dtype)


class SplitBiasLinear:
    """SplitBias(nn.Linear) forward: y = x @ weight.T + bias.

    weight: (out_features, in_features)  -- PyTorch Linear layout.
    bias:   (out_features,)
    Construct once (weight cast/transpose/pad happens here), call per batch.
    """

    def __init__(self, weight, bias, *, compute_dtype=jnp.bfloat16,
                 tm_pref=512, tn_pref=1024, tk_pref=512):
        out_f, in_f = weight.shape
        assert bias.shape == (out_f,)
        self.in_features = in_f
        self.out_features = out_f
        self.compute_dtype = compute_dtype
        self._tm_pref = tm_pref

        # Tiny layers: one grid step of launch/DMA overhead with mostly-masked
        # lanes -- let XLA's fused dot+add handle it instead.
        self._fallback = in_f < 128 or out_f < 128
        if self._fallback:
            self._w = weight
            self._b = bias
            return

        w = weight if compute_dtype is None else weight.astype(compute_dtype)

        # Pick MXU-efficient tiles FIRST, then pad dims up to a tile multiple.
        Kp0 = _round_up(in_f, 128)
        Np0 = _round_up(out_f, 128)
        self._tk = min(_round_up(tk_pref, 128), Kp0)
        self._tn = min(_round_up(tn_pref, 128), Np0)
        self._Kp = _round_up(Kp0, self._tk)
        self._Np = _round_up(Np0, self._tn)

        # One-time weight/bias prep (off the per-call hot path): transpose to
        # (in, out) and zero-pad to tile multiples; bias padded + f32.
        self._w = jnp.pad(w.T, ((0, self._Kp - in_f), (0, self._Np - out_f)))
        self._b = jnp.pad(bias.astype(jnp.float32),
                          (0, self._Np - out_f)).reshape(1, self._Np)

    def __call__(self, x):
        B, in_f = x.shape
        assert in_f == self.in_features
        out_dtype = x.dtype

        if self._fallback:
            y = jax.lax.dot_general(
                x, self._w, dimension_numbers=(((1,), (1,)), ((), ())),
                preferred_element_type=jnp.float32)
            return (y + self._b.astype(jnp.float32)[None, :]).astype(out_dtype)

        cd = self.compute_dtype
        tk, tn, Kp, Np = self._tk, self._tn, self._Kp, self._Np
        x_dt = jnp.dtype(cd) if cd is not None else jnp.dtype(x.dtype)
        sub = 16 if x_dt.itemsize < 4 else 8

        # Per-call M tiling.
        Mp0 = _round_up(B, sub)
        tm = min(_round_up(self._tm_pref, sub), Mp0)

        # Keep at least two parallel (i, j) tiles so v7x's two TensorCores
        # both get work; negligible cost on single-TC v5e/v6e (only triggers
        # for single-tile layers where traffic is tiny anyway).
        if (Mp0 // tm) * (Np // tn) < 2 and Mp0 >= 2 * sub:
            tm = _round_up(-(-Mp0 // 2), sub)
        Mp = _round_up(Mp0, tm)

        xp = x if cd is None else x.astype(cd)
        if Mp != B or Kp != in_f:
            xp = jnp.pad(xp, ((0, Mp - B), (0, Kp - in_f)))

        in_bytes = jnp.dtype(xp.dtype).itemsize
        out_bytes = jnp.dtype(out_dtype).itemsize

        # Keep the whole (tm, Kp) row panel of x resident in VMEM when small:
        # x then leaves HBM once instead of once per N tile.
        x_resident = (Kp > tk) and (2 * tm * Kp * in_bytes <= (8 << 20))
        if x_resident:
            x_spec = pl.BlockSpec((tm, Kp), lambda i, j, k: (i, 0))
        else:
            x_spec = pl.BlockSpec((tm, tk), lambda i, j, k: (i, k))

        grid = (Mp // tm, Np // tn, Kp // tk)

        # Double-buffered inputs/outputs + f32 accumulator.
        vmem_needed = (2 * tm * (Kp if x_resident else tk) * in_bytes
                       + 2 * tk * tn * in_bytes
                       + 2 * tn * 4
                       + 2 * tm * tn * out_bytes
                       + tm * tn * 4)

        kernel = functools.partial(_splitbias_kernel, tk=tk, x_resident=x_resident)

        yp = pl.pallas_call(
            kernel,
            out_shape=jax.ShapeDtypeStruct((Mp, Np), out_dtype),
            grid_spec=pltpu.PrefetchScalarGridSpec(
                num_scalar_prefetch=0,
                grid=grid,
                in_specs=[
                    x_spec,                                          # x tile / row panel
                    pl.BlockSpec((tk, tn), lambda i, j, k: (k, j)),  # W^T tile (K, N)
                    pl.BlockSpec((1, tn), lambda i, j, k: (0, j)),   # bias slice
                ],
                out_specs=pl.BlockSpec((tm, tn), lambda i, j, k: (i, j)),
                scratch_shapes=[pltpu.VMEM((tm, tn), jnp.float32)],
            ),
            compiler_params=pltpu.CompilerParams(
                dimension_semantics=("parallel", "parallel", "arbitrary"),
                vmem_limit_bytes=_vmem_limit_bytes(vmem_needed),
            ),
        )(xp, self._w, self._b)

        if Mp != B or Np != self.out_features:
            yp = yp[:B, :self.out_features]
        return yp


def split_bias_linear(x, weight, bias, **kwargs):
    """One-shot convenience wrapper.  For hot loops, construct SplitBiasLinear
    once and reuse it (weight cast/transpose/pad is then amortized)."""
    return SplitBiasLinear(weight, bias, **kwargs)(x)


if __name__ == "__main__":
    B, IN_F, OUT_F = 512, 1024, 768

    key = jax.random.PRNGKey(0)
    kx, kw, kb = jax.random.split(key, 3)
    bound = 1.0 / math.sqrt(IN_F)
    x = jax.random.normal(kx, (B, IN_F), dtype=jnp.float32)
    weight = jax.random.uniform(kw, (OUT_F, IN_F), minval=-bound, maxval=bound,
                                dtype=jnp.float32)
    bias = jax.random.uniform(kb, (OUT_F,), minval=-bound, maxval=bound,
                              dtype=jnp.float32)

    def ref_fn(xx, ww, bb):
        y = jax.lax.dot_general(xx, ww, (((1,), (1,)), ((), ())),
                                precision=jax.lax.Precision.HIGHEST,
                                preferred_element_type=jnp.float32)
        return y + bb[None, :]

    # 1) Default fast path: bf16 operands, f32 accumulate, f32 bias add.
    layer = SplitBiasLinear(weight, bias)          # weight prep hoisted here
    y = jax.block_until_ready(layer(x))
    ref16 = ref_fn(x.astype(jnp.bfloat16).astype(jnp.float32),
                   weight.astype(jnp.bfloat16).astype(jnp.float32), bias)
    assert y.shape == (B, OUT_F) and y.dtype == jnp.float32
    assert jnp.allclose(y, ref16, atol=1e-2, rtol=1e-2), "bf16 default path mismatch"

    # 2) f32-operand path (multi-pass MXU; accuracy close to a true f32 GEMM).
    y32 = jax.block_until_ready(SplitBiasLinear(weight, bias, compute_dtype=None)(x))
    assert y32.dtype == jnp.float32
    assert jnp.allclose(y32, ref_fn(x, weight, bias), atol=2e-2, rtol=2e-2), \
        "f32 path mismatch"

    # 3) Awkward shapes: exercises pad-up tiling, resident-x and the
    #    two-parallel-tile (megacore) split.
    B2, IN2, OUT2 = 200, 1664, 896
    x2 = jax.random.normal(kx, (B2, IN2), dtype=jnp.float32)
    w2 = jax.random.uniform(kw, (OUT2, IN2), minval=-bound, maxval=bound,
                            dtype=jnp.float32)
    b2 = jax.random.uniform(kb, (OUT2,), minval=-bound, maxval=bound,
                            dtype=jnp.float32)
    y2 = jax.block_until_ready(SplitBiasLinear(w2, b2)(x2))
    ref2 = ref_fn(x2.astype(jnp.bfloat16).astype(jnp.float32),
                  w2.astype(jnp.bfloat16).astype(jnp.float32), b2)
    assert y2.shape == (B2, OUT2)
    assert jnp.allclose(y2, ref2, atol=1e-2, rtol=1e-2), "awkward-shape path mismatch"

    # 4) Tiny-layer fallback (launch overhead > work -> plain fused dot+add).
    xs = jax.random.normal(kx, (8, 32), dtype=jnp.float32)
    ws = jax.random.uniform(kw, (32, 32), minval=-bound, maxval=bound, dtype=jnp.float32)
    bs = jax.random.uniform(kb, (32,), minval=-bound, maxval=bound, dtype=jnp.float32)
    ys = jax.block_until_ready(split_bias_linear(xs, ws, bs))
    assert jnp.allclose(ys, ref_fn(xs, ws, bs), atol=2e-2, rtol=2e-2), "fallback mismatch"

    print("KERNEL_OK")
</pallas_src>

<mosaic_0001>
module attributes {stable_mosaic.version = 11 : i64} {
  func.func @_splitbias_kernel(%arg0: i32, %arg1: i32, %arg2: i32, %arg3: memref<256x1024xbf16, #tpu.memory_space<vmem>>, %arg4: memref<512x768xbf16, #tpu.memory_space<vmem>>, %arg5: memref<1x768xf32, #tpu.memory_space<vmem>>, %arg6: memref<256x768xf32, #tpu.memory_space<vmem>>, %arg7: memref<256x768xf32, #tpu.memory_space<vmem>>) attributes {dimension_semantics = [#tpu.dimension_semantics<parallel>, #tpu.dimension_semantics<parallel>, #tpu.dimension_semantics<arbitrary>], iteration_bounds = array<i64: 2, 1, 2>, scalar_prefetch = 0 : i64, scratch_operands = 1 : i64, tpu.core_type = #tpu.core_type<tc>, window_params = [{transform_indices = @transform_0, window_bounds = array<i64: 256, 1024>}, {transform_indices = @transform_1, window_bounds = array<i64: 512, 768>}, {transform_indices = @transform_2, window_bounds = array<i64: 1, 768>}, {transform_indices = @transform_3, window_bounds = array<i64: 256, 768>}]} {
    %c0_i32 = arith.constant 0 : i32
    %0 = arith.cmpi eq, %arg2, %c0_i32 : i32
    %1 = arith.extui %0 : i1 to i32
    %c0_i32_0 = arith.constant 0 : i32
    %2 = arith.cmpi ne, %1, %c0_i32_0 : i32
    scf.if %2 {
      %cst_8 = arith.constant 0.000000e+00 : f32
      %15 = vector.broadcast %cst_8 : f32 to vector<256x768xf32>
      %c0_9 = arith.constant 0 : index
      %c0_10 = arith.constant 0 : index
      %16 = vector.load %arg7[%c0_9, %c0_10] : memref<256x768xf32, #tpu.memory_space<vmem>>, vector<256x768xf32>
      tpu.vector_store %arg7[%c0_9, %c0_10], %15 {strides = array<i32>} : memref<256x768xf32, #tpu.memory_space<vmem>>, vector<256x768xf32>,
    } else {
    }
    %c512_i32 = arith.constant 512 : i32
    %3 = arith.muli %arg2, %c512_i32 : i32
    %4 = tpu.assume_multiple %3, 128 : i32
    %c0 = arith.constant 0 : index
    %5 = arith.index_cast %4 : i32 to index
    %6 = vector.load %arg3[%c0, %5] : memref<256x1024xbf16, #tpu.memory_space<vmem>>, vector<256x512xbf16>
    %c0_1 = arith.constant 0 : index
    %c0_2 = arith.constant 0 : index
    %7 = vector.load %arg7[%c0_1, %c0_2] : memref<256x768xf32, #tpu.memory_space<vmem>>, vector<256x768xf32>
    %c0_3 = arith.constant 0 : index
    %c0_4 = arith.constant 0 : index
    %8 = vector.load %arg4[%c0_3, %c0_4] : memref<512x768xbf16, #tpu.memory_space<vmem>>, vector<512x768xbf16>
    %cst = arith.constant dense<0.000000e+00> : vector<256x768xf32>
    %9 = tpu.matmul %6, %8, %cst {dimension_numbers = #tpu.dot_dimension_numbers<[1], [0], [0], [1], [0, 0, 1, 1], [], []>} : vector<256x512xbf16>, vector<512x768xbf16>, vector<256x768xf32> -> vector<256x768xf32>
    %10 = arith.addf %7, %9 : vector<256x768xf32>
    %c0_5 = arith.constant 0 : index
    %c0_6 = arith.constant 0 : index
    %11 = vector.load %arg7[%c0_5, %c0_6] : memref<256x768xf32, #tpu.memory_space<vmem>>, vector<256x768xf32>
    tpu.vector_store %arg7[%c0_5, %c0_6], %10 {strides = array<i32>} : memref<256x768xf32, #tpu.memory_space<vmem>>, vector<256x768xf32>,
    %c1_i32 = arith.constant 1 : i32
    %12 = arith.cmpi eq, %arg2, %c1_i32 : i32
    %13 = arith.extui %12 : i1 to i32
    %c0_i32_7 = arith.constant 0 : i32
    %14 = arith.cmpi ne, %13, %c0_i32_7 : i32
    scf.if %14 {
      %c0_8 = arith.constant 0 : index
      %c0_9 = arith.constant 0 : index
      %15 = vector.load %arg7[%c0_8, %c0_9] : memref<256x768xf32, #tpu.memory_space<vmem>>, vector<256x768xf32>
      %c0_10 = arith.constant 0 : index
      %c0_11 = arith.constant 0 : index
      %16 = vector.load %arg5[%c0_10, %c0_11] : memref<1x768xf32, #tpu.memory_space<vmem>>, vector<1x768xf32>
      %17 = vector.broadcast %16 : vector<1x768xf32> to vector<256x768xf32>
      %18 = arith.addf %15, %17 : vector<256x768xf32>
      %c0_12 = arith.constant 0 : index
      %c0_13 = arith.constant 0 : index
      %19 = vector.load %arg6[%c0_12, %c0_13] : memref<256x768xf32, #tpu.memory_space<vmem>>, vector<256x768xf32>
      tpu.vector_store %arg6[%c0_12, %c0_13], %18 {strides = array<i32>} : memref<256x768xf32, #tpu.memory_space<vmem>>, vector<256x768xf32>,
    } else {
    }
    return
  }
  func.func @transform_0(%arg0: i32, %arg1: i32, %arg2: i32) -> (i32, i32) {
    %c0_i32 = arith.constant 0 : i32
    %c0_i32_0 = arith.constant 0 : i32
    return %arg0, %c0_i32 : i32, i32
  }
  func.func @transform_1(%arg0: i32, %arg1: i32, %arg2: i32) -> (i32, i32) {
    %c0_i32 = arith.constant 0 : i32
    return %arg2, %arg1 : i32, i32
  }
  func.func @transform_2(%arg0: i32, %arg1: i32, %arg2: i32) -> (i32, i32) {
    %c0_i32 = arith.constant 0 : i32
    %c0_i32_0 = arith.constant 0 : i32
    return %c0_i32, %arg1 : i32, i32
  }
  func.func @transform_3(%arg0: i32, %arg1: i32, %arg2: i32) -> (i32, i32) {
    %c0_i32 = arith.constant 0 : i32
    return %arg0, %arg1 : i32, i32
  }
}

</mosaic_0001>

<bundles_post_ra>
// kernel: tpu_custom_call.1
= control target key start
LH: loop header
LB: loop body
LE: loop exit
PB: predicated region body
PF: predicated region fallthrough
CT: control target
= control target key end

     0   :  { %s9018_s0 = inlined_call_operand.hbm [shape: bf16[512,1024], index: 0, kind: input, shape index: {}]   ;;  %s9019_s1 = inlined_call_operand.hbm [shape: bf16[1024,768], index: 1, kind: input, shape index: {}]   ;;  %s9020_s2 = inlined_call_operand.hbm [shape: f32[1,768], index: 2, kind: input, shape index: {}]   ;;  %s9021_s3 = inlined_call_operand.hbm [shape: f32[512,768], index: 3, kind: output, shape index: {}]  }
   0x1   :  { %9077 = sst [smem:[#allocation43_spill]] %s9018_s0 }
   0x2   :  { %9078 = sst [smem:[#allocation44_spill]] %s9020_s2 }
   0x3   :  { %9079 = sst [smem:[#allocation45_spill]] %s9021_s3 }
   0x4   :  { %8 = vsyncpa [#allocation4], 0 }
   0x5   :  { %10 = vsyncpa [#allocation4 + $0x1], 0 }
   0x6   :  { %11 = vsyncpa [#allocation7], 0 }
   0x7   :  { %13 = vsyncpa [#allocation7 + $0x1], 0 }
   0x8   :  { %14 = vsyncpa [#allocation5], 0 }
   0x9   :  { %16 = vsyncpa [#allocation5 + $0x1], 0  ;;  %s7164_s12 = smov 0   ;;  %s7166_s13 = smov 0  }
   0xa   :  { %s7168_s14 = smov 0   ;;  %s7170_s15 = smov 0  }
   0xb   :  { %s7172_s16 = smov 0   ;;  %s7174_s17 = smov 0  }
   0xc   :  { %s7176_s18 = smov 0   ;;  %s7178_s19 = smov 0  }
   0xd   :  { %s7180_s20 = smov 0   ;;  %s7182_s21 = smov 0  }
   0xe   :  { %s7184_s22 = smov 0  }
   0xf LB: > { %9080 = sst [smem:[#allocation14_spill]] %s7106_s15  ;;  %s7218_s23 = sadd.s32 4294967295, %s7134_s22   ;;  %s7134_s22 = sphi %s7184_s22, %s22_s22   ;;  %s7130_s21 = sphi %s7182_s21, %s9244_s21   ;;  %s7126_s20 = sphi %s7180_s20, %s9236_s20   ;;  %s7122_s19 = sphi %s7178_s19, %s9243_s19   ;;  %s7118_s18 = sphi %s7176_s18, %s9235_s18   ;;  %s7114_s17 = sphi %s7174_s17, %s9242_s17   ;;  %s7110_s16 = sphi %s7172_s16, %s9241_s16   ;;  %s7106_s15 = sphi %s7170_s15, %s9240_s15   ;;  %s7102_s14 = sphi %s7168_s14, %s9239_s14   ;;  %s7098_s13 = sphi %s7166_s13, %s9238_s13   ;;  %s7094_s12 = sphi %s7164_s12, %s9237_s12  }
  0x10   : > { %9081 = sst [smem:[#allocation15_spill]] %s7126_s20  ;;  %s5479_s24 = sadd.s32 4294967294, %s7134_s22  }
  0x11   : > { %9082 = sst [smem:[#allocation16_spill]] %s7134_s22  ;;  %p56_p0 = scmp.eq.s32.totalorder %s7134_s22, 0 }
  0x12   : > { %p61_p1 = scmp.ne.s32.totalorder %s7110_s16, %s7106_s15  ;;  %p62_p2 = scmp.eq.s32.totalorder %s7218_s23, 0 }
  0x13   : > { %p83_p3 = scmp.ne.s32.totalorder %s7102_s14, %s7098_s13  ;;  %p89_p4 = scmp.ne.s32.totalorder %s7098_s13, %s7094_s12 }
  0x14   : > { %p141_p5 = scmp.eq.s32.totalorder %s7218_s23, 3  ;;  %p7231_p6 = por %p62_p2, %p61_p1 }
  0x15   : > { %p7237_p7 = por %p83_p3, %p56_p0  ;;  %p7243_p8 = por %p89_p4, %p62_p2 }
  0x16   : > { %p147_p9 = scmp.eq.s32.totalorder %s5479_s24, 3  ;;  %p5480_p10 = scmp.ge.s32.totalorder %s7134_s22, 1 }
  0x17   : > { %p154_p11 = scmp.lt.s32.totalorder %s7134_s22, 5  ;;  %s9089_s2 = sld [smem:[#allocation44_spill]] }
  0x18   : > { %p7249_p12 = por %p147_p9, %p61_p1  ;;  %s7136_s6 = smov [#allocation8]  }
  0x19   : > { %p7253_p13 = pnand %p5480_p10, %p154_p11  ;;  %s170_s7 = sshll.u32 %s7136_s6, 4  ;;  %s171_s7 = int_to_ptr.vmem [resolvable:$true] %s170_s7 }
  0x1a   : > { %s9086_s28 = scalar_select %p7249_p12, 1, 0 }
  0x1b   : > { %p6799_p3 = pneg %p7253_p13  ;;  %s41_s8 = sadd.s32 1, %s7130_s21 }
  0x1c   : > { %9087 = sst [smem:[#allocation17_spill]] %s9086_s28  ;;  %p55_p4 = scmp.ne.s32.totalorder %s7114_s17, %s7110_s16 }
  0x1d   : > { %s168_s5 = sshll.u32 %s9089_s2, 4  ;;  %p6800_p1 = pnand %p6799_p3, %p62_p2  ;;  %s169_s5 = int_to_ptr.hbm [resolvable:$true] %s168_s5 }
  0x1e   : > { %p6815_p9 = scmp.lt.s32.totalorder %s7134_s22, 4  ;;  %s181_s10 = sand.u32 1, %s7114_s17  }
  0x1f   : > { %6802 = dma.hbm_to_vmem [thread:$0]  (!%p6800_p1), %s169_s5, 96, %s171_s7, [#allocation7]  }
  0x20   : > { %s6527_s11 = sshll.u32 %s7130_s21, 10  ;;  %p57_p10 = por %p56_p0, %p55_p4 }
  0x21   : > { %p7275_p11 = por %p141_p5, %p55_p4  ;;  %s5483_s24 = sshll.u32 %s181_s10, 10 }
  0x22   : > { %s9092_s0 = sld [smem:[#allocation43_spill]]  ;;  %s185_s7 = scalar_lea.vmem [#allocation3], %s5483_s24 }
  0x23   : > { %s9090_s12 = scalar_select %p7275_p11, 1, 0 }
  0x24   : > { %s194_s9 = sshll.u32 %s185_s7, 4  ;;  %p6804_p0 = pnand %p6815_p9, %p57_p10  ;;  %s195_s9 = int_to_ptr.vmem [resolvable:$true] %s194_s9 }
  0x25   : > { %9091 = sst [smem:[#allocation18_spill]] %s9090_s12  ;;  %p7288_p5 = pnand %p6815_p9, %p7237_p7 }
  0x26   : > { %s182_s30 = scalar_lea.sflag [#allocation4], %s181_s10  ;;  %s7137_s4 = smov 512  }
  0x27   : > { %s34_s24 = sadd.s32 1, %s7126_s20  ;;  %s204_s7 = sand.u32 1, %s7134_s22  }
  0x28   : > { %s191_s5 = scalar_lea.hbm %s9092_s0, %s6527_s11  ;;  %s7138_s11 = smov 32  }
  0x29   : > { %s192_s6 = sshll.u32 %s191_s5, 4  ;;  %s76_s5 = sadd.s32 1, %s7102_s14  ;;  %s193_s6 = int_to_ptr.hbm [resolvable:$true] %s192_s6 }
  0x2a   : > { %6806 = dma.hbm_to_vmem [thread:$0]  (!%p6804_p0), %s193_s6, 16384, %s195_s9, %s182_s30, %s7137_s4, %s7137_s4, %s7138_s11  }
  0x2b   : > { %p35_p3 = scmp.ge.s32.totalorder %s34_s24, 2  ;;  %s206_s0 = sand.u32 1, %s7102_s14  }
  0x2c   : > { %s6784_s28 = smul.u32 1536, %s206_s0  ;;  %s9095_s0 = sadd.s32 1, %s7114_s17 }
  0x2d   : > { %s9246_s24 = smov (%p35_p3, %s34_s24), 0  ;;  %s9248_s8 = smov (!%p35_p3, %s41_s8), %s7130_s21 }
  0x2e   : > { %9094 = sst [smem:[#allocation19_spill]] %s9246_s24  ;;  %s71_s26 = ssub.s32 %s7126_s20, %s9246_s24 }
  0x2f   : > { %p43_p7 = scmp.ge.s32.totalorder %s9248_s8, 2  ;;  %p74_p1 = scmp.eq.s32.totalorder %s71_s26, 0 }
  0x30   : > { %s6785_s10 = smul.u32 1536, %s7126_s20  ;;  %s208_s22 = scalar_lea.vmem [#allocation6], %s6784_s28 }
  0x31   : > { %s9250_s8 = smov (%p43_p7, %s9248_s8), 0  ;;  %s219_s24 = sshll.u32 %s208_s22, 4  ;;  %s220_s24 = int_to_ptr.vmem [resolvable:$true] %s219_s24 }
  0x32   : > { %s7305_s9 = scalar_select %p74_p1, %s7102_s14, %s76_s5  }
  0x33   : > { %s45_s6 = ssub.s32 %s7130_s21, %s9250_s8  ;;  %s216_s11 = scalar_lea.hbm %s9019_s1, %s6785_s10 }
  0x34   : > { %p46_p4 = scmp.eq.s32.totalorder %s45_s6, 0  ;;  %s217_s15 = sshll.u32 %s216_s11, 4  ;;  %s218_s15 = int_to_ptr.hbm [resolvable:$true] %s217_s15 }
  0x35   : > { %s205_s26 = scalar_lea.sflag [#allocation7], %s204_s7  ;;  %s7139_s20 = smov 384  }
  0x36   : > { %s7315_s3 = scalar_select %p46_p4, %s7114_s17, %s9095_s0  }
  0x37   : > { %s7140_s12 = smov 24   ;;  %231 = sbr.rel (%p7253_p13) target bundleno = 2193 (0x891), region = 32 }
  0x38   : > { %6809 = dma.hbm_to_vmem [thread:$0]  (!%p7288_p5), %s218_s15, 24576, %s220_s24, %s205_s26, %s7139_s20, %s7139_s20, %s7140_s12  }
  0x3c   : > { %s7322_s5 = sand.u32 1, %s7110_s16  }
  0x3d   : > { %s5491_s28 = sshll.u32 %s7322_s5, 10  ;;  %s234_s22 = scalar_lea.sflag [#allocation4], %s7322_s5 }
  0x3e   : > { %s7326_s10 = scalar_lea.vmem [#allocation3], %s5491_s28 }
  0x3f   : > { %7077 = dma.done.wait (%p7231_p6), %s234_s22, 16384  }
  0x40   : > { %7079 = vsyncadd (%p7231_p6), %s234_s22, 4294950912  ;;  %s243_s2 = sand.u32 1, %s7218_s23   ;;  %s245_s15 = sand.u32 1, %s7098_s13  }
  0x41   : > { %s6786_s20 = smul.u32 1536, %s245_s15  ;;  %s244_s29 = scalar_lea.sflag [#allocation7], %s243_s2 }
  0x43   : > { %s7334_s12 = scalar_lea.vmem [#allocation6], %s6786_s20 }
  0x44   : > { %7081 = dma.done.wait (%p7243_p8), %s244_s29, 24576  }
  0x45   : > { %7083 = vsyncadd (%p7243_p8), %s244_s29, 4294942720 }
  0x46   : > { %7085 = dma.done.wait (%p62_p2), [#allocation7], 96  }
  0x47   : > { %7087 = vsyncadd (%p62_p2), [#allocation7], 4294967200  ;;  %s6787_s25 = smul.u32 1536, %s7322_s5  ;;  %p5493_p6 = scmp.ne.s32.totalorder %s7118_s18, 0 }
  0x49   : > { %s7345_s24 = scalar_lea.vmem [#allocation9], %s6787_s25  ;;  %290 = sbr.rel (%p5493_p6) target bundleno = 271 (0x10f), region = 48 }
  0x4e   : > { %v7141_v0 = vmov 0.0  }
  0x4f   : > { %291 = vst [vmem:[#allocation2 + $0x2b0] sm:$0xff] %v7141_v0 }
  0x50   : > { %292 = vst [vmem:[#allocation2 + $0x3b0] sm:$0xff] %v7141_v0 }
  0x51   : > { %293 = vst [vmem:[#allocation2 + $0x4d8] sm:$0xff] %v7141_v0 }
  0x52   : > { %294 = vst [vmem:[#allocation2 + $0x18] sm:$0xff] %v7141_v0 }
  0x53   : > { %295 = vst [vmem:[#allocation2 + $0x450] sm:$0xff] %v7141_v0 }
  0x54   : > { %296 = vst [vmem:[#allocation2 + $0x328] sm:$0xff] %v7141_v0 }
  0x55   : > { %297 = vst [vmem:[#allocation2 + $0x440] sm:$0xff] %v7141_v0 }
  0x56   : > { %298 = vst [vmem:[#allocation2 + $0x378] sm:$0xff] %v7141_v0 }
  0x57   : > { %299 = vst [vmem:[#allocation2 + $0x108] sm:$0xff] %v7141_v0 }
  0x58   : > { %300 = vst [vmem:[#allocation2 + $0x510] sm:$0xff] %v7141_v0 }
  0x59   : > { %301 = vst [vmem:[#allocation2 + $0x490] sm:$0xff] %v7141_v0 }
  0x5a   : > { %302 = vst [vmem:[#allocation2 + $0x318] sm:$0xff] %v7141_v0 }
  0x5b   : > { %303 = vst [vmem:[#allocation2 + $0x548] sm:$0xff] %v7141_v0 }
  0x5c   : > { %304 = vst [vmem:[#allocation2 + $0x500] sm:$0xff] %v7141_v0 }
  0x5d   : > { %305 = vst [vmem:[#allocation2 + $0x58] sm:$0xff] %v7141_v0 }
  0x5e   : > { %306 = vst [vmem:[#allocation2 + $0x2b8] sm:$0xff] %v7141_v0 }
  0x5f   : > { %307 = vst [vmem:[#allocation2 + $0x580] sm:$0xff] %v7141_v0 }
  0x60   : > { %308 = vst [vmem:[#allocation2 + $0x590] sm:$0xff] %v7141_v0 }
  0x61   : > { %309 = vst [vmem:[#allocation2 + $0x540] sm:$0xff] %v7141_v0 }
  0x62   : > { %310 = vst [vmem:[#allocation2 + $0x3c0] sm:$0xff] %v7141_v0 }
  0x63   : > { %311 = vst [vmem:[#allocation2 + $0x330] sm:$0xff] %v7141_v0 }
  0x64   : > { %312 = vst [vmem:[#allocation2 + $0x100] sm:$0xff] %v7141_v0 }
  0x65   : > { %313 = vst [vmem:[#allocation2 + $0x8] sm:$0xff] %v7141_v0 }
  0x66   : > { %314 = vst [vmem:[#allocation2 + $0x188] sm:$0xff] %v7141_v0 }
  0x67   : > { %315 = vst [vmem:[#allocation2 + $0x248] sm:$0xff] %v7141_v0 }
  0x68   : > { %316 = vst [vmem:[#allocation2 + $0xc8] sm:$0xff] %v7141_v0 }
  0x69   : > { %317 = vst [vmem:[#allocation2 + $0x388] sm:$0xff] %v7141_v0 }
  0x6a   : > { %318 = vst [vmem:[#allocation2 + $0x520] sm:$0xff] %v7141_v0 }
  0x6b   : > { %319 = vst [vmem:[#allocation2 + $0x3a8] sm:$0xff] %v7141_v0 }
  0x6c   : > { %320 = vst [vmem:[#allocation2 + $0x5e0] sm:$0xff] %v7141_v0 }
  0x6d   : > { %321 = vst [vmem:[#allocation2 + $0x488] sm:$0xff] %v7141_v0 }
  0x6e   : > { %322 = vst [vmem:[#allocation2 + $0x4d0] sm:$0xff] %v7141_v0 }
  0x6f   : > { %323 = vst [vmem:[#allocation2 + $0x98] sm:$0xff] %v7141_v0 }
  0x70   : > { %324 = vst [vmem:[#allocation2 + $0xb0] sm:$0xff] %v7141_v0 }
  0x71   : > { %325 = vst [vmem:[#allocation2 + $0x2a0] sm:$0xff] %v7141_v0 }
  0x72   : > { %326 = vst [vmem:[#allocation2 + $0x570] sm:$0xff] %v7141_v0 }
  0x73   : > { %327 = vst [vmem:[#allocation2 + $0x598] sm:$0xff] %v7141_v0 }
  0x74   : > { %328 = vst [vmem:[#allocation2 + $0x5a8] sm:$0xff] %v7141_v0 }
  0x75   : > { %329 = vst [vmem:[#allocation2 + $0x4c8] sm:$0xff] %v7141_v0 }
  0x76   : > { %330 = vst [vmem:[#allocation2 + $0x5e8] sm:$0xff] %v7141_v0 }
  0x77   : > { %331 = vst [vmem:[#allocation2 + $0x1f8] sm:$0xff] %v7141_v0 }
  0x78   : > { %332 = vst [vmem:[#allocation2 + $0x2f0] sm:$0xff] %v7141_v0 }
  0x79   : > { %333 = vst [vmem:[#allocation2 + $0x3c8] sm:$0xff] %v7141_v0 }
  0x7a   : > { %334 = vst [vmem:[#allocation2 + $0x5c0] sm:$0xff] %v7141_v0 }
  0x7b   : > { %335 = vst [vmem:[#allocation2 + $0x338] sm:$0xff] %v7141_v0 }
  0x7c   : > { %336 = vst [vmem:[#allocation2 + $0x480] sm:$0xff] %v7141_v0 }
  0x7d   : > { %337 = vst [vmem:[#allocation2 + $0x2a8] sm:$0xff] %v7141_v0 }
  0x7e   : > { %338 = vst [vmem:[#allocation2 + $0x3e0] sm:$0xff] %v7141_v0 }
  0x7f   : > { %339 = vst [vmem:[#allocation2 + $0x3d8] sm:$0xff] %v7141_v0 }
  0x80   : > { %340 = vst [vmem:[#allocation2 + $0x4b0] sm:$0xff] %v7141_v0 }
  0x81   : > { %341 = vst [vmem:[#allocation2 + $0x28] sm:$0xff] %v7141_v0 }
  0x82   : > { %342 = vst [vmem:[#allocation2 + $0xf8] sm:$0xff] %v7141_v0 }
  0x83   : > { %343 = vst [vmem:[#allocation2 + $0x4e8] sm:$0xff] %v7141_v0 }
  0x84   : > { %344 = vst [vmem:[#allocation2 + $0x120] sm:$0xff] %v7141_v0 }
  0x85   : > { %345 = vst [vmem:[#allocation2 + $0x2f8] sm:$0xff] %v7141_v0 }
  0x86   : > { %346 = vst [vmem:[#allocation2 + $0x268] sm:$0xff] %v7141_v0 }
  0x87   : > { %347 = vst [vmem:[#allocation2 + $0x560] sm:$0xff] %v7141_v0 }
  0x88   : > { %348 = vst [vmem:[#allocation2 + $0x4f8] sm:$0xff] %v7141_v0 }
  0x89   : > { %349 = vst [vmem:[#allocation2 + $0x2e8] sm:$0xff] %v7141_v0 }
  0x8a   : > { %350 = vst [vmem:[#allocation2 + $0x370] sm:$0xff] %v7141_v0 }
  0x8b   : > { %351 = vst [vmem:[#allocation2 + $0x138] sm:$0xff] %v7141_v0 }
  0x8c   : > { %352 = vst [vmem:[#allocation2 + $0x308] sm:$0xff] %v7141_v0 }
  0x8d   : > { %353 = vst [vmem:[#allocation2 + $0x528] sm:$0xff] %v7141_v0 }
  0x8e   : > { %354 = vst [vmem:[#allocation2 + $0x1c0] sm:$0xff] %v7141_v0 }
  0x8f   : > { %355 = vst [vmem:[#allocation2 + $0x5d0] sm:$0xff] %v7141_v0 }
  0x90   : > { %356 = vst [vmem:[#allocation2 + $0x260] sm:$0xff] %v7141_v0 }
  0x91   : > { %357 = vst [vmem:[#allocation2 + $0x438] sm:$0xff] %v7141_v0 }
  0x92   : > { %358 = vst [vmem:[#allocation2 + $0xf0] sm:$0xff] %v7141_v0 }
  0x93   : > { %359 = vst [vmem:[#allocation2 + $0x60] sm:$0xff] %v7141_v0 }
  0x94   : > { %360 = vst [vmem:[#allocation2 + $0x200] sm:$0xff] %v7141_v0 }
  0x95   : > { %361 = vst [vmem:[#allocation2 + $0x80] sm:$0xff] %v7141_v0 }
  0x96   : > { %362 = vst [vmem:[#allocation2 + $0x5a0] sm:$0xff] %v7141_v0 }
  0x97   : > { %363 = vst [vmem:[#allocation2 + $0x4b8] sm:$0xff] %v7141_v0 }
  0x98   : > { %364 = vst [vmem:[#allocation2 + $0x310] sm:$0xff] %v7141_v0 }
  0x99   : > { %365 = vst [vmem:[#allocation2 + $0x1e8] sm:$0xff] %v7141_v0 }
  0x9a   : > { %366 = vst [vmem:[#allocation2 + $0x258] sm:$0xff] %v7141_v0 }
  0x9b   : > { %367 = vst [vmem:[#allocation2 + $0x40] sm:$0xff] %v7141_v0 }
  0x9c   : > { %368 = vst [vmem:[#allocation2 + $0x4e0] sm:$0xff] %v7141_v0 }
  0x9d   : > { %369 = vst [vmem:[#allocation2 + $0x198] sm:$0xff] %v7141_v0 }
  0x9e   : > { %370 = vst [vmem:[#allocation2 + $0x550] sm:$0xff] %v7141_v0 }
  0x9f   : > { %371 = vst [vmem:[#allocation2 + $0x418] sm:$0xff] %v7141_v0 }
  0xa0   : > { %372 = vst [vmem:[#allocation2 + $0x5c8] sm:$0xff] %v7141_v0 }
  0xa1   : > { %373 = vst [vmem:[#allocation2 + $0x340] sm:$0xff] %v7141_v0 }
  0xa2   : > { %374 = vst [vmem:[#allocation2 + $0x360] sm:$0xff] %v7141_v0 }
  0xa3   : > { %375 = vst [vmem:[#allocation2 + $0x3b8] sm:$0xff] %v7141_v0 }
  0xa4   : > { %376 = vst [vmem:[#allocation2 + $0x530] sm:$0xff] %v7141_v0 }
  0xa5   : > { %377 = vst [vmem:[#allocation2 + $0x1f0] sm:$0xff] %v7141_v0 }
  0xa6   : > { %378 = vst [vmem:[#allocation2 + $0x3a0] sm:$0xff] %v7141_v0 }
  0xa7   : > { %379 = vst [vmem:[#allocation2 + $0x460] sm:$0xff] %v7141_v0 }
  0xa8   : > { %380 = vst [vmem:[#allocation2 + $0x2c8] sm:$0xff] %v7141_v0 }
  0xa9   : > { %381 = vst [vmem:[#allocation2 + $0x1d0] sm:$0xff] %v7141_v0 }
  0xaa   : > { %382 = vst [vmem:[#allocation2 + $0x4f0] sm:$0xff] %v7141_v0 }
  0xab   : > { %383 = vst [vmem:[#allocation2 + $0x50] sm:$0xff] %v7141_v0 }
  0xac   : > { %384 = vst [vmem:[#allocation2 + $0x4a0] sm:$0xff] %v7141_v0 }
  0xad   : > { %385 = vst [vmem:[#allocation2 + $0x468] sm:$0xff] %v7141_v0 }
  0xae   : > { %386 = vst [vmem:[#allocation2 + $0x278] sm:$0xff] %v7141_v0 }
  0xaf   : > { %387 = vst [vmem:[#allocation2 + $0x458] sm:$0xff] %v7141_v0 }
  0xb0   : > { %388 = vst [vmem:[#allocation2 + $0x498] sm:$0xff] %v7141_v0 }
  0xb1   : > { %389 = vst [vmem:[#allocation2 + $0x400] sm:$0xff] %v7141_v0 }
  0xb2   : > { %390 = vst [vmem:[#allocation2 + $0x5d8] sm:$0xff] %v7141_v0 }
  0xb3   : > { %391 = vst [vmem:[#allocation2 + $0xe8] sm:$0xff] %v7141_v0 }
  0xb4   : > { %392 = vst [vmem:[#allocation2 + $0x160] sm:$0xff] %v7141_v0 }
  0xb5   : > { %393 = vst [vmem:[#allocation2 + $0x178] sm:$0xff] %v7141_v0 }
  0xb6   : > { %394 = vst [vmem:[#allocation2 + $0x538] sm:$0xff] %v7141_v0 }
  0xb7   : > { %395 = vst [vmem:[#allocation2 + $0x1e0] sm:$0xff] %v7141_v0 }
  0xb8   : > { %396 = vst [vmem:[#allocation2 + $0x390] sm:$0xff] %v7141_v0 }
  0xb9   : > { %397 = vst [vmem:[#allocation2 + $0x2c0] sm:$0xff] %v7141_v0 }
  0xba   : > { %398 = vst [vmem:[#allocation2 + $0x228] sm:$0xff] %v7141_v0 }
  0xbb   : > { %399 = vst [vmem:[#allocation2 + $0x5b0] sm:$0xff] %v7141_v0 }
  0xbc   : > { %400 = vst [vmem:[#allocation2 + $0xc0] sm:$0xff] %v7141_v0 }
  0xbd   : > { %401 = vst [vmem:[#allocation2 + $0xd8] sm:$0xff] %v7141_v0 }
  0xbe   : > { %402 = vst [vmem:[#allocation2 + $0x428] sm:$0xff] %v7141_v0 }
  0xbf   : > { %403 = vst [vmem:[#allocation2 + $0x30] sm:$0xff] %v7141_v0 }
  0xc0   : > { %404 = vst [vmem:[#allocation2 + $0x410] sm:$0xff] %v7141_v0 }
  0xc1   : > { %405 = vst [vmem:[#allocation2 + $0x208] sm:$0xff] %v7141_v0 }
  0xc2   : > { %406 = vst [vmem:[#allocation2 + $0x4a8] sm:$0xff] %v7141_v0 }
  0xc3   : > { %407 = vst [vmem:[#allocation2 + $0x5b8] sm:$0xff] %v7141_v0 }
  0xc4   : > { %408 = vst [vmem:[#allocation2 + $0x218] sm:$0xff] %v7141_v0 }
  0xc5   : > { %409 = vst [vmem:[#allocation2 + $0x368] sm:$0xff] %v7141_v0 }
  0xc6   : > { %410 = vst [vmem:[#allocation2 + $0x298] sm:$0xff] %v7141_v0 }
  0xc7   : > { %411 = vst [vmem:[#allocation2 + $0x420] sm:$0xff] %v7141_v0 }
  0xc8   : > { %412 = vst [vmem:[#allocation2 + $0x88] sm:$0xff] %v7141_v0 }
  0xc9   : > { %413 = vst [vmem:[#allocation2 + $0x130] sm:$0xff] %v7141_v0 }
  0xca   : > { %414 = vst [vmem:[#allocation2 + $0x5f0] sm:$0xff] %v7141_v0 }
  0xcb   : > { %415 = vst [vmem:[#allocation2 + $0x230] sm:$0xff] %v7141_v0 }
  0xcc   : > { %416 = vst [vmem:[#allocation2 + $0x2e0] sm:$0xff] %v7141_v0 }
  0xcd   : > { %417 = vst [vmem:[#allocation2 + $0x110] sm:$0xff] %v7141_v0 }
  0xce   : > { %418 = vst [vmem:[#allocation2 + $0xa8] sm:$0xff] %v7141_v0 }
  0xcf   : > { %419 = vst [vmem:[#allocation2 + $0x190] sm:$0xff] %v7141_v0 }
  0xd0   : > { %420 = vst [vmem:[#allocation2 + $0x1a8] sm:$0xff] %v7141_v0 }
  0xd1   : > { %421 = vst [vmem:[#allocation2 + $0x398] sm:$0xff] %v7141_v0 }
  0xd2   : > { %422 = vst [vmem:[#allocation2 + $0x470] sm:$0xff] %v7141_v0 }
  0xd3   : > { %423 = vst [vmem:[#allocation2 + $0xe0] sm:$0xff] %v7141_v0 }
  0xd4   : > { %424 = vst [vmem:[#allocation2 + $0xd0] sm:$0xff] %v7141_v0 }
  0xd5   : > { %425 = vst [vmem:[#allocation2 + $0x38] sm:$0xff] %v7141_v0 }
  0xd6   : > { %426 = vst [vmem:[#allocation2 + $0x240] sm:$0xff] %v7141_v0 }
  0xd7   : > { %427 = vst [vmem:[#allocation2 + $0x280] sm:$0xff] %v7141_v0 }
  0xd8   : > { %428 = vst [vmem:[#allocation2 + $0x518] sm:$0xff] %v7141_v0 }
  0xd9   : > { %429 = vst [vmem:[#allocation2 + $0x148] sm:$0xff] %v7141_v0 }
  0xda   : > { %430 = vst [vmem:[#allocation2 + $0x508] sm:$0xff] %v7141_v0 }
  0xdb   : > { %431 = vst [vmem:[#allocation2 + $0x3d0] sm:$0xff] %v7141_v0 }
  0xdc   : > { %432 = vst [vmem:[#allocation2 + $0x68] sm:$0xff] %v7141_v0 }
  0xdd   : > { %433 = vst [vmem:[#allocation2 + $0x358] sm:$0xff] %v7141_v0 }
  0xde   : > { %434 = vst [vmem:[#allocation2 + $0x70] sm:$0xff] %v7141_v0 }
  0xdf   : > { %435 = vst [vmem:[#allocation2 + $0xb8] sm:$0xff] %v7141_v0 }
  0xe0   : > { %436 = vst [vmem:[#allocation2 + $0x10] sm:$0xff] %v7141_v0 }
  0xe1   : > { %437 = vst [vmem:[#allocation2 + $0x20] sm:$0xff] %v7141_v0 }
  0xe2   : > { %438 = vst [vmem:[#allocation2 + $0x78] sm:$0xff] %v7141_v0 }
  0xe3   : > { %439 = vst [vmem:[#allocation2 + $0x210] sm:$0xff] %v7141_v0 }
  0xe4   : > { %440 = vst [vmem:[#allocation2 + $0x558] sm:$0xff] %v7141_v0 }
  0xe5   : > { %441 = vst [vmem:[#allocation2 + $0x588] sm:$0xff] %v7141_v0 }
  0xe6   : > { %442 = vst [vmem:[#allocation2 + $0x48] sm:$0xff] %v7141_v0 }
  0xe7   : > { %443 = vst [vmem:[#allocation2 + $0x118] sm:$0xff] %v7141_v0 }
  0xe8   : > { %444 = vst [vmem:[#allocation2 + $0x478] sm:$0xff] %v7141_v0 }
  0xe9   : > { %445 = vst [vmem:[#allocation2 + $0x3f8] sm:$0xff] %v7141_v0 }
  0xea   : > { %446 = vst [vmem:[#allocation2 + $0x380] sm:$0xff] %v7141_v0 }
  0xeb   : > { %447 = vst [vmem:[#allocation2 + $0x578] sm:$0xff] %v7141_v0 }
  0xec   : > { %448 = vst [vmem:[#allocation2 + $0x170] sm:$0xff] %v7141_v0 }
  0xed   : > { %449 = vst [vmem:[#allocation2 + $0x1a0] sm:$0xff] %v7141_v0 }
  0xee   : > { %450 = vst [vmem:[#allocation2 + $0x288] sm:$0xff] %v7141_v0 }
  0xef   : > { %451 = vst [vmem:[#allocation2 + $0x140] sm:$0xff] %v7141_v0 }
  0xf0   : > { %452 = vst [vmem:[#allocation2 + $0x300] sm:$0xff] %v7141_v0 }
  0xf1   : > { %453 = vst [vmem:[#allocation2] sm:$0xff] %v7141_v0 }
  0xf2   : > { %454 = vst [vmem:[#allocation2 + $0x320] sm:$0xff] %v7141_v0 }
  0xf3   : > { %455 = vst [vmem:[#allocation2 + $0x158] sm:$0xff] %v7141_v0 }
  0xf4   : > { %456 = vst [vmem:[#allocation2 + $0x348] sm:$0xff] %v7141_v0 }
  0xf5   : > { %457 = vst [vmem:[#allocation2 + $0x2d8] sm:$0xff] %v7141_v0 }
  0xf6   : > { %458 = vst [vmem:[#allocation2 + $0x168] sm:$0xff] %v7141_v0 }
  0xf7   : > { %459 = vst [vmem:[#allocation2 + $0x1c8] sm:$0xff] %v7141_v0 }
  0xf8   : > { %460 = vst [vmem:[#allocation2 + $0xa0] sm:$0xff] %v7141_v0 }
  0xf9   : > { %461 = vst [vmem:[#allocation2 + $0x408] sm:$0xff] %v7141_v0 }
  0xfa   : > { %462 = vst [vmem:[#allocation2 + $0x5f8] sm:$0xff] %v7141_v0 }
  0xfb   : > { %463 = vst [vmem:[#allocation2 + $0x270] sm:$0xff] %v7141_v0 }
  0xfc   : > { %464 = vst [vmem:[#allocation2 + $0x250] sm:$0xff] %v7141_v0 }
  0xfd   : > { %465 = vst [vmem:[#allocation2 + $0x2d0] sm:$0xff] %v7141_v0 }
  0xfe   : > { %466 = vst [vmem:[#allocation2 + $0x1b8] sm:$0xff] %v7141_v0 }
  0xff   : > { %467 = vst [vmem:[#allocation2 + $0x150] sm:$0xff] %v7141_v0 }
 0x100   : > { %468 = vst [vmem:[#allocation2 + $0x1b0] sm:$0xff] %v7141_v0 }
 0x101   : > { %469 = vst [vmem:[#allocation2 + $0x220] sm:$0xff] %v7141_v0 }
 0x102   : > { %470 = vst [vmem:[#allocation2 + $0x1d8] sm:$0xff] %v7141_v0 }
 0x103   : > { %471 = vst [vmem:[#allocation2 + $0x3e8] sm:$0xff] %v7141_v0 }
 0x104   : > { %472 = vst [vmem:[#allocation2 + $0x448] sm:$0xff] %v7141_v0 }
 0x105   : > { %473 = vst [vmem:[#allocation2 + $0x430] sm:$0xff] %v7141_v0 }
 0x106   : > { %474 = vst [vmem:[#allocation2 + $0x180] sm:$0xff] %v7141_v0 }
 0x107   : > { %475 = vst [vmem:[#allocation2 + $0x350] sm:$0xff] %v7141_v0 }
 0x108   : > { %476 = vst [vmem:[#allocation2 + $0x4c0] sm:$0xff] %v7141_v0 }
 0x109   : > { %477 = vst [vmem:[#allocation2 + $0x128] sm:$0xff] %v7141_v0 }
 0x10a   : > { %478 = vst [vmem:[#allocation2 + $0x3f0] sm:$0xff] %v7141_v0 }
 0x10b   : > { %479 = vst [vmem:[#allocation2 + $0x238] sm:$0xff] %v7141_v0 }
 0x10c   : > { %480 = vst [vmem:[#allocation2 + $0x290] sm:$0xff] %v7141_v0 }
 0x10d   : > { %481 = vst [vmem:[#allocation2 + $0x568] sm:$0xff] %v7141_v0 }
 0x10e   : > { %482 = vst [vmem:[#allocation2 + $0x90] sm:$0xff] %v7141_v0 }
 0x10f PF: > { %v5922_v1 = vld [vmem:[%s7334_s12 + $0x150] sm:$0xf]  ;;  %v6637_v2 = vld [vmem:[%s7334_s12 + $0x164] sm:$0xf0]  ;;  %v5898_v12 = vld [vmem:[%s7334_s12 + $0x120] sm:$0xf] }
 0x110   : > { %v6114_v3 = vld [vmem:[%s7334_s12 + $0x2d0] sm:$0xf]  ;;  %v5923_v4 = vor.u32 %v6637_v2, %v5922_v1  ;;  %v6685_v5 = vld [vmem:[%s7334_s12 + $0x2e4] sm:$0xf0]  ;;  %v6631_v14 = vld [vmem:[%s7334_s12 + $0x134] sm:$0xf0] }
 0x111   : > { %v6306_v6 = vld [vmem:[%s7334_s12 + $0x450] sm:$0xf]  ;;  %v6733_v7 = vld [vmem:[%s7334_s12 + $0x464] sm:$0xf0]  ;;  %v6115_v8 = vor.u32 %v6685_v5, %v6114_v3  ;;  %v6090_v15 = vld [vmem:[%s7334_s12 + $0x2a0] sm:$0xf]  ;;  %v5899_v17 = vor.u32 %v6631_v14, %v5898_v12 }
 0x112   : > { %v6307_v9 = vor.u32 %v6733_v7, %v6306_v6  ;;  %v6498_v10 = vld [vmem:[%s7334_s12 + $0x5d0] sm:$0xf]  ;;  %v6781_v11 = vld [vmem:[%s7334_s12 + $0x5e4] sm:$0xf0]  ;;  %2216 = vmatpush.bf16.msra.mxu0 %v5923_v4  ;;  %v6679_v16 = vld [vmem:[%s7334_s12 + $0x2b4] sm:$0xf0] }
 0x113   : > { %v6499_v13 = vor.u32 %v6781_v11, %v6498_v10  ;;  %2305 = vmatpush.bf16.msra.mxu1 %v6115_v8  ;;  %v6091_v18 = vor.u32 %v6679_v16, %v6090_v15  ;;  %v6282_v19 = vld [vmem:[%s7334_s12 + $0x420] sm:$0xf]  ;;  %v6727_v20 = vld [vmem:[%s7334_s12 + $0x434] sm:$0xf0]  ;;  %v5874_v24 = vld [vmem:[%s7334_s12 + $0xf0] sm:$0xf] }
 0x114   : > { %2394 = vmatpush.bf16.msra.mxu2 %v6307_v9  ;;  %v6474_v21 = vld [vmem:[%s7334_s12 + $0x5a0] sm:$0xf]  ;;  %v6283_v22 = vor.u32 %v6727_v20, %v6282_v19  ;;  %v6775_v23 = vld [vmem:[%s7334_s12 + $0x5b4] sm:$0xf0]  ;;  %v6625_v25 = vld [vmem:[%s7334_s12 + $0x104] sm:$0xf0] }
 0x115   : > { %2483 = vmatpush.bf16.msra.mxu3 %v6499_v13  ;;  %v6475_v26 = vor.u32 %v6775_v23, %v6474_v21  ;;  %v6066_v27 = vld [vmem:[%s7334_s12 + $0x270] sm:$0xf]  ;;  %v6673_v28 = vld [vmem:[%s7334_s12 + $0x284] sm:$0xf0]  ;;  %v5875_v30 = vor.u32 %v6625_v25, %v5874_v24  ;;  %v5850_v36 = vld [vmem:[%s7334_s12 + $0xc0] sm:$0xf] }
 0x116   : > { %v6258_v29 = vld [vmem:[%s7334_s12 + $0x3f0] sm:$0xf]  ;;  %2217 = vmatpush.bf16.msra.mxu0 %v5899_v17  ;;  %v6721_v31 = vld [vmem:[%s7334_s12 + $0x404] sm:$0xf0]  ;;  %v6067_v34 = vor.u32 %v6673_v28, %v6066_v27  ;;  %v6619_v37 = vld [vmem:[%s7334_s12 + $0xd4] sm:$0xf0] }
 0x117   : > { %v6450_v32 = vld [vmem:[%s7334_s12 + $0x570] sm:$0xf]  ;;  %v6769_v33 = vld [vmem:[%s7334_s12 + $0x584] sm:$0xf0]  ;;  %2306 = vmatpush.bf16.msra.mxu1 %v6091_v18  ;;  %v6259_v35 = vor.u32 %v6721_v31, %v6258_v29  ;;  %v6042_v38 = vld [vmem:[%s7334_s12 + $0x240] sm:$0xf]  ;;  %v5851_v45 = vor.u32 %v6619_v37, %v5850_v36 }
 0x118   : > { %2395 = vmatpush.bf16.msra.mxu2 %v6283_v22  ;;  %v6451_v39 = vor.u32 %v6769_v33, %v6450_v32  ;;  %v6667_v40 = vld [vmem:[%s7334_s12 + $0x254] sm:$0xf0]  ;;  %v6234_v41 = vld [vmem:[%s7334_s12 + $0x3c0] sm:$0xf]  ;;  %v5826_v48 = vld [vmem:[%s7334_s12 + $0x90] sm:$0xf] }
 0x119   : > { %2484 = vmatpush.bf16.msra.mxu3 %v6475_v26  ;;  %v6715_v42 = vld [vmem:[%s7334_s12 + $0x3d4] sm:$0xf0]  ;;  %v6426_v43 = vld [vmem:[%s7334_s12 + $0x540] sm:$0xf]  ;;  %v6043_v46 = vor.u32 %v6667_v40, %v6042_v38  ;;  %v6613_v49 = vld [vmem:[%s7334_s12 + $0xa4] sm:$0xf0] }
 0x11a   : > { %v6763_v44 = vld [vmem:[%s7334_s12 + $0x554] sm:$0xf0]  ;;  %2218 = vmatpush.bf16.msra.mxu0 %v5875_v30  ;;  %v6235_v47 = vor.u32 %v6715_v42, %v6234_v41  ;;  %v6018_v50 = vld [vmem:[%s7334_s12 + $0x210] sm:$0xf]  ;;  %v6661_v52 = vld [vmem:[%s7334_s12 + $0x224] sm:$0xf0]  ;;  %v5827_v57 = vor.u32 %v6613_v49, %v5826_v48 }
 0x11b   : > { %2307 = vmatpush.bf16.msra.mxu1 %v6067_v34  ;;  %v6427_v51 = vor.u32 %v6763_v44, %v6426_v43  ;;  %v6210_v53 = vld [vmem:[%s7334_s12 + $0x390] sm:$0xf]  ;;  %v6709_v54 = vld [vmem:[%s7334_s12 + $0x3a4] sm:$0xf0]  ;;  %v6019_v58 = vor.u32 %v6661_v52, %v6018_v50  ;;  %v5802_v60 = vld [vmem:[%s7334_s12 + $0x60] sm:$0xf] }
 0x11c   : > { %2396 = vmatpush.bf16.msra.mxu2 %v6259_v35  ;;  %v6402_v55 = vld [vmem:[%s7334_s12 + $0x510] sm:$0xf]  ;;  %v6757_v56 = vld [vmem:[%s7334_s12 + $0x524] sm:$0xf0]  ;;  %v6211_v59 = vor.u32 %v6709_v54, %v6210_v53  ;;  %v6607_v61 = vld [vmem:[%s7334_s12 + $0x74] sm:$0xf0] }
 0x11d   : > { %2485 = vmatpush.bf16.msra.mxu3 %v6451_v39  ;;  %v5994_v62 = vld [vmem:[%s7334_s12 + $0x1e0] sm:$0xf]  ;;  %v6403_v63 = vor.u32 %v6757_v56, %v6402_v55  ;;  %v6655_v0 = vld [vmem:[%s7334_s12 + $0x1f4] sm:$0xf0]  ;;  %v5803_v5 = vor.u32 %v6607_v61, %v5802_v60  ;;  %v5778_v6 = vld [vmem:[%s7334_s12 + $0x30] sm:$0xf] }
 0x11e   : > { %2219 = vmatpush.bf16.msra.mxu0 %v5851_v45  ;;  %v6186_v1 = vld [vmem:[%s7334_s12 + $0x360] sm:$0xf]  ;;  %v6703_v2 = vld [vmem:[%s7334_s12 + $0x374] sm:$0xf0]  ;;  %v6601_v7 = vld [vmem:[%s7334_s12 + $0x44] sm:$0xf0]  ;;  %v5995_v8 = vor.u32 %v6655_v0, %v5994_v62 }
 0x11f   : > { %2308 = vmatpush.bf16.msra.mxu1 %v6043_v46  ;;  %v6378_v3 = vld [vmem:[%s7334_s12 + $0x4e0] sm:$0xf]  ;;  %v6751_v4 = vld [vmem:[%s7334_s12 + $0x4f4] sm:$0xf0]  ;;  %v6187_v9 = vor.u32 %v6703_v2, %v6186_v1  ;;  %v5970_v10 = vld [vmem:[%s7334_s12 + $0x1b0] sm:$0xf]  ;;  %v5779_v18 = vor.u32 %v6601_v7, %v5778_v6 }
 0x120   : > { %2397 = vmatpush.bf16.msra.mxu2 %v6235_v47  ;;  %v6649_v11 = vld [vmem:[%s7334_s12 + $0x1c4] sm:$0xf0]  ;;  %v6162_v12 = vld [vmem:[%s7334_s12 + $0x330] sm:$0xf]  ;;  %v6379_v13 = vor.u32 %v6751_v4, %v6378_v3  ;;  %s5494_s23 = sshll.u32 %s7118_s18, 9  ;;  %p6520_p2 = scmp.ne.s32.totalorder %s7118_s18, 1 }
 0x121   : > { %2486 = vmatpush.bf16.msra.mxu3 %v6427_v51  ;;  %v6697_v14 = vld [vmem:[%s7334_s12 + $0x344] sm:$0xf0]  ;;  %v6354_v15 = vld [vmem:[%s7334_s12 + $0x4b0] sm:$0xf]  ;;  %v5754_v17 = vld [vmem:[%s7334_s12] sm:$0xf]  ;;  %v5971_v21 = vor.u32 %v6649_v11, %v5970_v10 }
 0x122   : > { %2220 = vmatpush.bf16.msra.mxu0 %v5827_v57  ;;  %v6745_v16 = vld [vmem:[%s7334_s12 + $0x4c4] sm:$0xf0]  ;;  %s484_s27 = sshra.s32 %s5494_s23, 7  ;;  %v6595_v19 = vld [vmem:[%s7334_s12 + $0x14] sm:$0xf0]  ;;  %v6163_v22 = vor.u32 %v6697_v14, %v6162_v12 }
 0x123   : > { %2309 = vmatpush.bf16.msra.mxu1 %v6019_v58  ;;  %v5946_v20 = vld [vmem:[%s7334_s12 + $0x180] sm:$0xf]  ;;  %s5495_s7 = sshll.u32 %s484_s27, 2  ;;  %v6643_v23 = vld [vmem:[%s7334_s12 + $0x194] sm:$0xf0]  ;;  %v6355_v26 = vor.u32 %v6745_v16, %v6354_v15  ;;  %v5755_v33 = vor.u32 %v6595_v19, %v5754_v17 }
 0x124   : > { %2398 = vmatpush.bf16.msra.mxu2 %v6211_v59  ;;  %v6138_v24 = vld [vmem:[%s7334_s12 + $0x300] sm:$0xf]  ;;  %v6691_v25 = vld [vmem:[%s7334_s12 + $0x314] sm:$0xf0]  ;;  %s7604_s6 = scalar_lea.vmem %s7326_s10, %s5495_s7 [#allocation3]  ;;  %v6730_v29 = vld [vmem:[%s7334_s12 + $0x454] sm:$0xf]  ;;  %v5947_v38 = vor.u32 %v6643_v23, %v5946_v20 }
 0x125   : > { %2487 = vmatpush.bf16.msra.mxu3 %v6403_v63  ;;  %v6330_v27 = vld [vmem:[%s7334_s12 + $0x480] sm:$0xf]  ;;  %v6739_v28 = vld [vmem:[%s7334_s12 + $0x494] sm:$0xf0]  ;;  %v6308_v30 = vld [vmem:[%s7334_s12 + $0x468] sm:$0xf0]  ;;  %v6139_v39 = vor.u32 %v6691_v25, %v6138_v24 }
 0x126   : > { %2221 = vmatpush.bf16.msra.mxu0 %v5803_v5  ;;  %v6778_v31 = vld [vmem:[%s7334_s12 + $0x5d4] sm:$0xf]  ;;  %v6500_v32 = vld [vmem:[%s7334_s12 + $0x5e8] sm:$0xf0]  ;;  %v5498_v34 = vld [vmem:[%s7604_s6] sm:$0xf]  ;;  %v6331_v43 = vor.u32 %v6739_v28, %v6330_v27  ;;  %v6311_v46 = vor.u32 %v6730_v29, %v6308_v30 }
 0x127   : > { %2310 = vmatpush.bf16.msra.mxu1 %v5995_v8  ;;  %v6530_v35 = vld [vmem:[%s7604_s6 + $0x1c] sm:$0xf0]  ;;  %v6528_v36 = vld [vmem:[%s7604_s6 + $0x4] sm:$0xf]  ;;  %v6634_v37 = vld [vmem:[%s7334_s12 + $0x154] sm:$0xf]  ;;  %v6503_v49 = vor.u32 %v6778_v31, %v6500_v32 }
 0x128   : > { %2399 = vmatpush.bf16.msra.mxu2 %v6187_v9  ;;  %v5500_v40 = vld [vmem:[%s7604_s6 + $0x20] sm:$0xf0]  ;;  %v5506_v41 = vld [vmem:[%s7604_s6 + $0x8] sm:$0xf]  ;;  %v6529_v44 = vld [vmem:[%s7604_s6 + $0xc] sm:$0xf]  ;;  %v7622_v48 = vor.u32 %v6530_v35, %v5498_v34 }
 0x129   : > { %2488 = vmatpush.bf16.msra.mxu3 %v6379_v13  ;;  %v6531_v42 = vld [vmem:[%s7604_s6 + $0x24] sm:$0xf0]  ;;  %v5508_v45 = vld [vmem:[%s7604_s6 + $0x28] sm:$0xf0]  ;;  %v6682_v50 = vld [vmem:[%s7334_s12 + $0x2d4] sm:$0xf]  ;;  %v7626_v52 = vor.u32 %v6528_v36, %v5500_v40 }
 0x12a   : > { %2222 = vmatpush.bf16.msra.mxu0 %v5779_v18  ;;  %v5924_v47 = vld [vmem:[%s7334_s12 + $0x168] sm:$0xf0]  ;;  %v7628_v53 = vor.u32 %v6531_v42, %v5506_v41  ;;  %v7630_v54 = vor.u32 %v6529_v44, %v5508_v45  ;;  %v6724_v57 = vld [vmem:[%s7334_s12 + $0x424] sm:$0xf]  ;;  %v6284_v58 = vld [vmem:[%s7334_s12 + $0x438] sm:$0xf0] }
 0x12b   : > { %2311 = vmatpush.bf16.msra.mxu1 %v5971_v21  ;;  %v6116_v51 = vld [vmem:[%s7334_s12 + $0x2e8] sm:$0xf0]  ;;  %v5927_v55 = vor.u32 %v6634_v37, %v5924_v47  ;;  %v6772_v59 = vld [vmem:[%s7334_s12 + $0x5a4] sm:$0xf]  ;;  %v6287_v60 = vor.u32 %v6724_v57, %v6284_v58  ;;  %v6476_v61 = vld [vmem:[%s7334_s12 + $0x5b8] sm:$0xf0] }
 0x12c   : > { %2400 = vmatpush.bf16.msra.mxu2 %v6163_v22  ;;  %v6119_v56 = vor.u32 %v6682_v50, %v6116_v51  ;;  %v6628_v62 = vld [vmem:[%s7334_s12 + $0x124] sm:$0xf]  ;;  %v5900_v63 = vld [vmem:[%s7334_s12 + $0x138] sm:$0xf0]  ;;  %v6479_v0 = vor.u32 %v6772_v59, %v6476_v61  ;;  %v5514_v5 = vld [vmem:[%s7604_s6 + $0x40] sm:$0xf] }
 0x12d   : > { %2489 = vmatpush.bf16.msra.mxu3 %v6355_v26  ;;  %v5903_v1 = vor.u32 %v6628_v62, %v5900_v63  ;;  %v6676_v2 = vld [vmem:[%s7334_s12 + $0x2a4] sm:$0xf]  ;;  %v6092_v3 = vld [vmem:[%s7334_s12 + $0x2b8] sm:$0xf0]  ;;  %v6534_v6 = vld [vmem:[%s7604_s6 + $0x5c] sm:$0xf0] }
 0x12e   : > { %2223 = vmatpush.bf16.msra.mxu0 %v5755_v33  ;;  %v6095_v4 = vor.u32 %v6676_v2, %v6092_v3  ;;  %v6532_v7 = vld [vmem:[%s7604_s6 + $0x44] sm:$0xf]  ;;  %v5522_v9 = vld [vmem:[%s7604_s6 + $0x48] sm:$0xf]  ;;  %v6533_v11 = vld [vmem:[%s7604_s6 + $0x4c] sm:$0xf]  ;;  %v7652_v13 = vor.u32 %v6534_v6, %v5514_v5 }
 0x12f   : > { %2312 = vmatpush.bf16.msra.mxu1 %v5947_v38  ;;  %v5516_v8 = vld [vmem:[%s7604_s6 + $0x60] sm:$0xf0]  ;;  %v6535_v10 = vld [vmem:[%s7604_s6 + $0x64] sm:$0xf0]  ;;  %v5524_v12 = vld [vmem:[%s7604_s6 + $0x68] sm:$0xf0] }
 0x130   : > { %2401 = vmatpush.bf16.msra.mxu2 %v6139_v39  ;;  %v7654_v14 = vor.u32 %v6532_v7, %v5516_v8  ;;  %v7656_v15 = vor.u32 %v6535_v10, %v5522_v9  ;;  %v7658_v16 = vor.u32 %v6533_v11, %v5524_v12  ;;  %v5530_v17 = vld [vmem:[%s7604_s6 + $0x80] sm:$0xf]  ;;  %v6536_v19 = vld [vmem:[%s7604_s6 + $0x84] sm:$0xf]  ;;  %v5538_v21 = vld [vmem:[%s7604_s6 + $0x88] sm:$0xf] }
 0x131   : > { %2490 = vmatpush.bf16.msra.mxu3 %v6331_v43  ;;  %2224 = vmatmul.bf16.vlgmr.msra.gmra.mxu0 %v7622_v48  ;;  %v6538_v18 = vld [vmem:[%s7604_s6 + $0x9c] sm:$0xf0]  ;;  %v5532_v20 = vld [vmem:[%s7604_s6 + $0xa0] sm:$0xf0]  ;;  %v6539_v22 = vld [vmem:[%s7604_s6 + $0xa4] sm:$0xf0] }
 0x132   : > { %2313 = vmatmul.bf16.vlgmr.msra.gmra.mxu1 %v7626_v52  ;;  %2572 = vmatpush.bf16.msrb.mxu0 %v5927_v55  ;;  %v6537_v23 = vld [vmem:[%s7604_s6 + $0x8c] sm:$0xf]  ;;  %v7672_v25 = vor.u32 %v6538_v18, %v5530_v17  ;;  %v7674_v26 = vor.u32 %v6536_v19, %v5532_v20  ;;  %v7676_v27 = vor.u32 %v6539_v22, %v5538_v21  ;;  %v6718_v29 = vld [vmem:[%s7334_s12 + $0x3f4] sm:$0xf]  ;;  %v5546_v41 = vld [vmem:[%s7604_s6 + $0xc0] sm:$0xf] }
 0x133   : > { %2402 = vmatmul.bf16.vlgmr.msra.gmra.mxu2 %v7628_v53  ;;  %2661 = vmatpush.bf16.msrb.mxu1 %v6119_v56  ;;  %v5540_v24 = vld [vmem:[%s7604_s6 + $0xa8] sm:$0xf0]  ;;  %v6766_v31 = vld [vmem:[%s7334_s12 + $0x574] sm:$0xf]  ;;  %v6542_v42 = vld [vmem:[%s7604_s6 + $0xdc] sm:$0xf0] }
 0x134   : > { %2750 = vmatpush.bf16.msrb.mxu2 %v6311_v46  ;;  %2491 = vmatmul.bf16.vlgmr.msra.gmra.mxu3 %v7630_v54  ;;  %v7678_v28 = vor.u32 %v6537_v23, %v5540_v24  ;;  %v6260_v30 = vld [vmem:[%s7334_s12 + $0x408] sm:$0xf0]  ;;  %v6622_v34 = vld [vmem:[%s7334_s12 + $0xf4] sm:$0xf]  ;;  %v6540_v43 = vld [vmem:[%s7604_s6 + $0xc4] sm:$0xf]  ;;  %v7700_v50 = vor.u32 %v6542_v42, %v5546_v41 }
 0x135   : > { %2839 = vmatpush.bf16.msrb.mxu3 %v6503_v49  ;;  %v6263_v32 = vor.u32 %v6718_v29, %v6260_v30  ;;  %v6452_v33 = vld [vmem:[%s7334_s12 + $0x588] sm:$0xf0]  ;;  %v6670_v38 = vld [vmem:[%s7334_s12 + $0x274] sm:$0xf]  ;;  %v5548_v44 = vld [vmem:[%s7604_s6 + $0xe0] sm:$0xf0] }
 0x136   : > { %2573 = vmatpush.bf16.msrb.mxu0 %v5903_v1  ;;  %v5876_v35 = vld [vmem:[%s7334_s12 + $0x108] sm:$0xf0]  ;;  %v6455_v36 = vor.u32 %v6766_v31, %v6452_v33  ;;  %v5554_v45 = vld [vmem:[%s7604_s6 + $0xc8] sm:$0xf]  ;;  %v7702_v51 = vor.u32 %v6540_v43, %v5548_v44  ;;  %v5562_v57 = vld [vmem:[%s7604_s6 + $0x100] sm:$0xf] }
 0x137   : > { %2662 = vmatpush.bf16.msrb.mxu1 %v6095_v4  ;;  %v5879_v37 = vor.u32 %v6622_v34, %v5876_v35  ;;  %v6068_v39 = vld [vmem:[%s7334_s12 + $0x288] sm:$0xf0]  ;;  %v6543_v46 = vld [vmem:[%s7604_s6 + $0xe4] sm:$0xf0]  ;;  %v6546_v58 = vld [vmem:[%s7604_s6 + $0x11c] sm:$0xf0] }
 0x138   : > { %2751 = vmatpush.bf16.msrb.mxu2 %v6287_v60  ;;  %v6071_v40 = vor.u32 %v6670_v38, %v6068_v39  ;;  %v6541_v47 = vld [vmem:[%s7604_s6 + $0xcc] sm:$0xf]  ;;  %v7704_v55 = vor.u32 %v6543_v46, %v5554_v45  ;;  %v6544_v59 = vld [vmem:[%s7604_s6 + $0x104] sm:$0xf]  ;;  %v5570_v61 = vld [vmem:[%s7604_s6 + $0x108] sm:$0xf]  ;;  %v7720_v1 = vor.u32 %v6546_v58, %v5562_v57 }
 0x139   : > { %2840 = vmatpush.bf16.msrb.mxu3 %v6479_v0  ;;  %v5556_v49 = vld [vmem:[%s7604_s6 + $0xe8] sm:$0xf0]  ;;  %v5564_v60 = vld [vmem:[%s7604_s6 + $0x120] sm:$0xf0]  ;;  %v6547_v62 = vld [vmem:[%s7604_s6 + $0x124] sm:$0xf0] }
 0x13a   : > { %2574 = vmatpush.bf16.msrb.mxu0 %v5879_v37  ;;  %v7706_v56 = vor.u32 %v6541_v47, %v5556_v49  ;;  %v6545_v63 = vld [vmem:[%s7604_s6 + $0x10c] sm:$0xf]  ;;  %v7722_v2 = vor.u32 %v6544_v59, %v5564_v60  ;;  %v7724_v3 = vor.u32 %v6547_v62, %v5570_v61  ;;  %v6712_v5 = vld [vmem:[%s7334_s12 + $0x3c4] sm:$0xf]  ;;  %v6236_v6 = vld [vmem:[%s7334_s12 + $0x3d8] sm:$0xf0] }
 0x13b   : > { %2663 = vmatpush.bf16.msrb.mxu1 %v6071_v40  ;;  %v5572_v0 = vld [vmem:[%s7604_s6 + $0x128] sm:$0xf0]  ;;  %v6760_v7 = vld [vmem:[%s7334_s12 + $0x544] sm:$0xf]  ;;  %v6239_v8 = vor.u32 %v6712_v5, %v6236_v6  ;;  %v6428_v9 = vld [vmem:[%s7334_s12 + $0x558] sm:$0xf0] }
 0x13c   : > { %2752 = vmatpush.bf16.msrb.mxu2 %v6263_v32  ;;  %v7726_v4 = vor.u32 %v6545_v63, %v5572_v0  ;;  %v6616_v10 = vld [vmem:[%s7334_s12 + $0xc4] sm:$0xf]  ;;  %v5852_v11 = vld [vmem:[%s7334_s12 + $0xd8] sm:$0xf0]  ;;  %v6431_v12 = vor.u32 %v6760_v7, %v6428_v9  ;;  %v5578_v21 = vld [vmem:[%s7604_s6 + $0x140] sm:$0xf] }
 0x13d   : > { %2841 = vmatpush.bf16.msrb.mxu3 %v6455_v36  ;;  %v5855_v17 = vor.u32 %v6616_v10, %v5852_v11  ;;  %v6664_v18 = vld [vmem:[%s7334_s12 + $0x244] sm:$0xf]  ;;  %v6044_v19 = vld [vmem:[%s7334_s12 + $0x258] sm:$0xf0]  ;;  %v6550_v22 = vld [vmem:[%s7604_s6 + $0x15c] sm:$0xf0] }
 0x13e   : > { %v6047_v20 = vor.u32 %v6664_v18, %v6044_v19  ;;  %v6548_v23 = vld [vmem:[%s7604_s6 + $0x144] sm:$0xf]  ;;  %v5586_v29 = vld [vmem:[%s7604_s6 + $0x148] sm:$0xf]  ;;  %v6549_v31 = vld [vmem:[%s7604_s6 + $0x14c] sm:$0xf]  ;;  %v7748_v33 = vor.u32 %v6550_v22, %v5578_v21 }
 0x13f   : > { %2575 = vmatpush.bf16.msrb.mxu0 %v5855_v17  ;;  %v5580_v24 = vld [vmem:[%s7604_s6 + $0x160] sm:$0xf0]  ;;  %v6551_v30 = vld [vmem:[%s7604_s6 + $0x164] sm:$0xf0]  ;;  %v5588_v32 = vld [vmem:[%s7604_s6 + $0x168] sm:$0xf0] }
 0x140   : > { %2753 = vmatpush.bf16.msrb.mxu2 %v6239_v8  ;;  %2664 = vmatpush.bf16.msrb.mxu1 %v6047_v20  ;;  %v7750_v34 = vor.u32 %v6548_v23, %v5580_v24  ;;  %v7752_v35 = vor.u32 %v6551_v30, %v5586_v29  ;;  %v7754_v36 = vor.u32 %v6549_v31, %v5588_v32  ;;  %v5594_v37 = vld [vmem:[%s7604_s6 + $0x180] sm:$0xf]  ;;  %v6552_v39 = vld [vmem:[%s7604_s6 + $0x184] sm:$0xf]  ;;  %v5602_v41 = vld [vmem:[%s7604_s6 + $0x188] sm:$0xf] }
 0x141   : > { %2229 = vmatmul.bf16.gmra.mxu0 %v7652_v13  ;;  %2842 = vmatpush.bf16.msrb.mxu3 %v6431_v12  ;;  %v6554_v38 = vld [vmem:[%s7604_s6 + $0x19c] sm:$0xf0]  ;;  %v5596_v40 = vld [vmem:[%s7604_s6 + $0x1a0] sm:$0xf0]  ;;  %v6555_v42 = vld [vmem:[%s7604_s6 + $0x1a4] sm:$0xf0] }
 0x142   : > { %2318 = vmatmul.bf16.gmra.mxu1 %v7654_v14  ;;  %v6553_v43 = vld [vmem:[%s7604_s6 + $0x18c] sm:$0xf]  ;;  %v7768_v45 = vor.u32 %v6554_v38, %v5594_v37  ;;  %v7770_v46 = vor.u32 %v6552_v39, %v5596_v40  ;;  %v7772_v47 = vor.u32 %v6555_v42, %v5602_v41  ;;  %v6706_v57 = vld [vmem:[%s7334_s12 + $0x394] sm:$0xf]  ;;  %v5610_v63 = vld [vmem:[%s7604_s6 + $0x1c0] sm:$0xf] }
 0x143   : > { %2407 = vmatmul.bf16.gmra.mxu2 %v7656_v15  ;;  %v5604_v44 = vld [vmem:[%s7604_s6 + $0x1a8] sm:$0xf0]  ;;  %v6754_v59 = vld [vmem:[%s7334_s12 + $0x514] sm:$0xf]  ;;  %v6558_v0 = vld [vmem:[%s7604_s6 + $0x1dc] sm:$0xf0] }
 0x144   : > { %2496 = vmatmul.bf16.gmra.mxu3 %v7658_v16  ;;  %v7774_v49 = vor.u32 %v6553_v43, %v5604_v44  ;;  %v6212_v58 = vld [vmem:[%s7334_s12 + $0x3a8] sm:$0xf0]  ;;  %v6556_v5 = vld [vmem:[%s7604_s6 + $0x1c4] sm:$0xf]  ;;  %v5618_v7 = vld [vmem:[%s7604_s6 + $0x1c8] sm:$0xf]  ;;  %v7795_v18 = vor.u32 %v6558_v0, %v5610_v63 }
 0x145   : > { %v6215_v60 = vor.u32 %v6706_v57, %v6212_v58  ;;  %v6404_v61 = vld [vmem:[%s7334_s12 + $0x528] sm:$0xf0]  ;;  %v5612_v6 = vld [vmem:[%s7604_s6 + $0x1e0] sm:$0xf0]  ;;  %v6559_v8 = vld [vmem:[%s7604_s6 + $0x1e4] sm:$0xf0] }
 0x146   : > { %v6407_v62 = vor.u32 %v6754_v59, %v6404_v61  ;;  %v6557_v9 = vld [vmem:[%s7604_s6 + $0x1cc] sm:$0xf]  ;;  %v6610_v11 = vld [vmem:[%s7334_s12 + $0x94] sm:$0xf]  ;;  %v7798_v21 = vor.u32 %v6556_v5, %v5612_v6  ;;  %v7800_v22 = vor.u32 %v6559_v8, %v5618_v7  ;;  %v5626_v29 = vld [vmem:[%s7604_s6 + $0x200] sm:$0xf] }
 0x147   : > { %2754 = vmatpush.bf16.msrb.mxu2 %v6215_v60  ;;  %v5620_v10 = vld [vmem:[%s7604_s6 + $0x1e8] sm:$0xf0]  ;;  %v6658_v17 = vld [vmem:[%s7334_s12 + $0x214] sm:$0xf]  ;;  %v6562_v30 = vld [vmem:[%s7604_s6 + $0x21c] sm:$0xf0] }
 0x148   : > { %2843 = vmatpush.bf16.msrb.mxu3 %v6407_v62  ;;  %v5828_v12 = vld [vmem:[%s7334_s12 + $0xa8] sm:$0xf0]  ;;  %v7802_v24 = vor.u32 %v6557_v9, %v5620_v10  ;;  %v6560_v31 = vld [vmem:[%s7604_s6 + $0x204] sm:$0xf]  ;;  %v5634_v37 = vld [vmem:[%s7604_s6 + $0x208] sm:$0xf]  ;;  %v7816_v41 = vor.u32 %v6562_v30, %v5626_v29 }
 0x149   : > { %v5831_v19 = vor.u32 %v6610_v11, %v5828_v12  ;;  %v6020_v20 = vld [vmem:[%s7334_s12 + $0x228] sm:$0xf0]  ;;  %v5628_v32 = vld [vmem:[%s7604_s6 + $0x220] sm:$0xf0]  ;;  %v6563_v38 = vld [vmem:[%s7604_s6 + $0x224] sm:$0xf0] }
 0x14a   : > { %v6023_v23 = vor.u32 %v6658_v17, %v6020_v20  ;;  %v6561_v39 = vld [vmem:[%s7604_s6 + $0x20c] sm:$0xf]  ;;  %v7818_v43 = vor.u32 %v6560_v31, %v5628_v32  ;;  %v7820_v44 = vor.u32 %v6563_v38, %v5634_v37  ;;  %v6700_v60 = vld [vmem:[%s7334_s12 + $0x364] sm:$0xf]  ;;  %v6188_v61 = vld [vmem:[%s7334_s12 + $0x378] sm:$0xf0] }
 0x14b   : > { %2576 = vmatpush.bf16.msrb.mxu0 %v5831_v19  ;;  %v5636_v40 = vld [vmem:[%s7604_s6 + $0x228] sm:$0xf0]  ;;  %v6748_v62 = vld [vmem:[%s7334_s12 + $0x4e4] sm:$0xf]  ;;  %v6191_v0 = vor.u32 %v6700_v60, %v6188_v61  ;;  %v6380_v5 = vld [vmem:[%s7334_s12 + $0x4f8] sm:$0xf0] }
 0x14c   : > { %2665 = vmatpush.bf16.msrb.mxu1 %v6023_v23  ;;  %v7822_v58 = vor.u32 %v6561_v39, %v5636_v40  ;;  %v6383_v9 = vor.u32 %v6748_v62, %v6380_v5  ;;  %v552_v10 = vld [vmem:[#allocation2 + $0x2b0] sm:$0xff]  ;;  %v5642_v17 = vld [vmem:[%s7604_s6 + $0x240] sm:$0xf]  ;;  %v6564_v23 = vld [vmem:[%s7604_s6 + $0x244] sm:$0xf] }
 0x14d   : > { %2755 = vmatpush.bf16.msrb.mxu2 %v6191_v0  ;;  %v6566_v19 = vld [vmem:[%s7604_s6 + $0x25c] sm:$0xf0]  ;;  %v5644_v29 = vld [vmem:[%s7604_s6 + $0x260] sm:$0xf0]  ;;  %v5650_v30 = vld [vmem:[%s7604_s6 + $0x248] sm:$0xf] }
 0x14e   : > { %2844 = vmatpush.bf16.msrb.mxu3 %v6383_v9  ;;  %v6567_v31 = vld [vmem:[%s7604_s6 + $0x264] sm:$0xf0]  ;;  %v6565_v32 = vld [vmem:[%s7604_s6 + $0x24c] sm:$0xf]  ;;  %v6604_v39 = vld [vmem:[%s7334_s12 + $0x64] sm:$0xf]  ;;  %v7846_v5 = vor.u32 %v6564_v23, %v5644_v29 }
 0x14f   : > { %v5652_v37 = vld [vmem:[%s7604_s6 + $0x268] sm:$0xf0]  ;;  %v5804_v40 = vld [vmem:[%s7334_s12 + $0x78] sm:$0xf0]  ;;  %v6652_v60 = vld [vmem:[%s7334_s12 + $0x1e4] sm:$0xf] }
 0x150   : > { %v5996_v61 = vld [vmem:[%s7334_s12 + $0x1f8] sm:$0xf0]  ;;  %9096 = vst [vmem:[#allocation20_spill] sm:$0xff] %v7846_v5  ;;  %v558_v9 = vld [vmem:[#allocation2 + $0x440] sm:$0xff] }
 0x151   : > { %2234 = vmatmul.bf16.gmra.mxu0 %v7672_v25 }
 0x152   : > { %2323 = vmatmul.bf16.gmra.mxu1 %v7674_v26 }
 0x153   : > { %2412 = vmatmul.bf16.gmra.mxu2 %v7676_v27 }
 0x154   : > { %2501 = vmatmul.bf16.gmra.mxu3 %v7678_v28 }
 0x161   : > { %2239 = vmatmul.bf16.gmra.mxu0 %v7700_v50 }
 0x162   : > { %2328 = vmatmul.bf16.gmra.mxu1 %v7702_v51 }
 0x163   : > { %2417 = vmatmul.bf16.gmra.mxu2 %v7704_v55 }
 0x164   : > { %2506 = vmatmul.bf16.gmra.mxu3 %v7706_v56 }
 0x171   : > { %2244 = vmatmul.bf16.gmra.mxu0 %v7720_v1 }
 0x172   : > { %2333 = vmatmul.bf16.gmra.mxu1 %v7722_v2 }
 0x173   : > { %2422 = vmatmul.bf16.gmra.mxu2 %v7724_v3 }
 0x174   : > { %2511 = vmatmul.bf16.gmra.mxu3 %v7726_v4 }
 0x181   : > { %2249 = vmatmul.bf16.gmra.mxu0 %v7748_v33 }
 0x182   : > { %2338 = vmatmul.bf16.gmra.mxu1 %v7750_v34 }
 0x183   : > { %2427 = vmatmul.bf16.gmra.mxu2 %v7752_v35 }
 0x184   : > { %2516 = vmatmul.bf16.gmra.mxu3 %v7754_v36 }
 0x191   : > { %2254 = vmatmul.bf16.gmra.mxu0 %v7768_v45 }
 0x192   : > { %2343 = vmatmul.bf16.gmra.mxu1 %v7770_v46 }
 0x193   : > { %2432 = vmatmul.bf16.gmra.mxu2 %v7772_v47 }
 0x194   : > { %2521 = vmatmul.bf16.gmra.mxu3 %v7774_v49 }
 0x1a1   : > { %2259 = vmatmul.bf16.gmra.mxu0 %v7795_v18 }
 0x1a2   : > { %2348 = vmatmul.bf16.gmra.mxu1 %v7798_v21 }
 0x1a3   : > { %2437 = vmatmul.bf16.gmra.mxu2 %v7800_v22 }
 0x1a4   : > { %2526 = vmatmul.bf16.gmra.mxu3 %v7802_v24 }
 0x1ae   : > { %v2225_v42 = vpop.f32.mrf.mxu0 }
 0x1af   : > { %v2314_v57 = vpop.f32.mrf.mxu1 }
 0x1b0   : > { %v2315_v59 = vadd.f32 %v2314_v57, %v2225_v42  ;;  %v7842_v57 = vor.u32 %v6566_v19, %v5642_v17 }
 0x1b1   : > { %2264 = vmatmul.bf16.gmra.mxu0 %v7816_v41 }
 0x1b2   : > { %2353 = vmatmul.bf16.gmra.mxu1 %v7818_v43 }
 0x1b3   : > { %2442 = vmatmul.bf16.gmra.mxu2 %v7820_v44 }
 0x1b4   : > { %2531 = vmatmul.bf16.gmra.mxu3 %v7822_v58 }
 0x1b6   : > { %v2403_v63 = vpop.f32.mrf.mxu2  ;;  %v2227_v8 = vpop.f32.mrf.mxu0 }
 0x1b7   : > { %v2404_v6 = vadd.f32 %v2403_v63, %v2315_v59  ;;  %v2492_v7 = vpop.f32.mrf.mxu3  ;;  %v2316_v11 = vpop.f32.mrf.mxu1  ;;  %v5807_v59 = vor.u32 %v6604_v39, %v5804_v40  ;;  %v6570_v39 = vld [vmem:[%s7604_s6 + $0x29c] sm:$0xf0]  ;;  %v6568_v40 = vld [vmem:[%s7604_s6 + $0x284] sm:$0xf] }
 0x1b8   : > { %v2317_v38 = vadd.f32 %v2316_v11, %v2227_v8 }
 0x1b9   : > { %v2493_v12 = vadd.f32 %v2492_v7, %v2404_v6  ;;  %v7848_v6 = vor.u32 %v6567_v31, %v5650_v30  ;;  %v5999_v7 = vor.u32 %v6652_v60, %v5996_v61  ;;  %2577 = vmatpush.bf16.msrb.mxu0 %v5807_v59  ;;  %v564_v30 = vld [vmem:[#allocation2 + $0x548] sm:$0xff] }
 0x1ba   : > { %v5666_v59 = vld [vmem:[%s7604_s6 + $0x288] sm:$0xf] }
 0x1bb   : > { %v4352_v20 = vadd.f32 %v2493_v12, %v552_v10  ;;  %9097 = vst [vmem:[#allocation21_spill] sm:$0xff] %v7848_v6  ;;  %v7850_v12 = vor.u32 %v6565_v32, %v5652_v37  ;;  %2666 = vmatpush.bf16.msrb.mxu1 %v5999_v7  ;;  %v6571_v60 = vld [vmem:[%s7604_s6 + $0x2a4] sm:$0xf0] }
 0x1bd   : > { %4544 = vst [vmem:[#allocation2 + $0x2b0] sm:$0xff] %v4352_v20 }
 0x1be   : > { %v2405_v42 = vpop.f32.mrf.mxu2  ;;  %v2230_v0 = vpop.f32.mrf.mxu0  ;;  %9098 = vst [vmem:[#allocation22_spill] sm:$0xff] %v7850_v12 }
 0x1bf   : > { %v2406_v62 = vadd.f32 %v2405_v42, %v2317_v38  ;;  %v2494_v63 = vpop.f32.mrf.mxu3  ;;  %v2319_v10 = vpop.f32.mrf.mxu1  ;;  %v5658_v38 = vld [vmem:[%s7604_s6 + $0x280] sm:$0xf]  ;;  %v5660_v42 = vld [vmem:[%s7604_s6 + $0x2a0] sm:$0xf0] }
 0x1c0   : > { %v2320_v17 = vadd.f32 %v2319_v10, %v2230_v0  ;;  %v7864_v7 = vor.u32 %v6570_v39, %v5658_v38 }
 0x1c1   : > { %v2495_v8 = vadd.f32 %v2494_v63, %v2406_v62  ;;  %2269 = vmatmul.bf16.gmra.mxu0 %v7842_v57  ;;  %v6569_v62 = vld [vmem:[%s7604_s6 + $0x28c] sm:$0xf] }
 0x1c2   : > { %2358 = vmatmul.bf16.gmra.mxu1 %v7846_v5  ;;  %v5668_v63 = vld [vmem:[%s7604_s6 + $0x2a8] sm:$0xf0]  ;;  %9099 = vst [vmem:[#allocation23_spill] sm:$0xff] %v7864_v7 }
 0x1c3   : > { %v4358_v11 = vadd.f32 %v2495_v8, %v558_v9  ;;  %2447 = vmatmul.bf16.gmra.mxu2 %v7848_v6  ;;  %v582_v6 = vld [vmem:[#allocation2 + $0x488] sm:$0xff] }
 0x1c4   : > { %2536 = vmatmul.bf16.gmra.mxu3 %v7850_v12 }
 0x1c5   : > { %4550 = vst [vmem:[#allocation2 + $0x440] sm:$0xff] %v4358_v11  ;;  %v7866_v11 = vor.u32 %v6568_v40, %v5660_v42  ;;  %v6742_v40 = vld [vmem:[%s7334_s12 + $0x4b4] sm:$0xf]  ;;  %v6356_v42 = vld [vmem:[%s7334_s12 + $0x4c8] sm:$0xf0] }
 0x1c6   : > { %v2408_v19 = vpop.f32.mrf.mxu2  ;;  %v2232_v29 = vpop.f32.mrf.mxu0 }
 0x1c7   : > { %v2409_v20 = vadd.f32 %v2408_v19, %v2320_v17  ;;  %v2497_v23 = vpop.f32.mrf.mxu3  ;;  %v2321_v31 = vpop.f32.mrf.mxu1  ;;  %9100 = vst [vmem:[#allocation24_spill] sm:$0xff] %v7866_v11  ;;  %v7868_v17 = vor.u32 %v6571_v60, %v5666_v59  ;;  %v570_v19 = vld [vmem:[#allocation2 + $0x540] sm:$0xff] }
 0x1c8   : > { %v2322_v61 = vadd.f32 %v2321_v31, %v2232_v29 }
 0x1c9   : > { %v2498_v32 = vadd.f32 %v2497_v23, %v2409_v20  ;;  %9101 = vst [vmem:[#allocation25_spill] sm:$0xff] %v7868_v17  ;;  %v7870_v23 = vor.u32 %v6569_v62, %v5668_v63  ;;  %v6359_v62 = vor.u32 %v6742_v40, %v6356_v42  ;;  %v576_v63 = vld [vmem:[#allocation2 + $0x248] sm:$0xff]  ;;  %v6598_v40 = vld [vmem:[%s7334_s12 + $0x34] sm:$0xf] }
 0x1ca   : > { %v5780_v42 = vld [vmem:[%s7334_s12 + $0x48] sm:$0xf0] }
 0x1cb   : > { %v4364_v37 = vadd.f32 %v2498_v32, %v564_v30  ;;  %9102 = vst [vmem:[#allocation26_spill] sm:$0xff] %v7870_v23  ;;  %v6694_v32 = vld [vmem:[%s7334_s12 + $0x334] sm:$0xf]  ;;  %2845 = vmatpush.bf16.msrb.mxu3 %v6359_v62 }
 0x1cd   : > { %4556 = vst [vmem:[#allocation2 + $0x548] sm:$0xff] %v4364_v37  ;;  %v6164_v37 = vld [vmem:[%s7334_s12 + $0x348] sm:$0xf0] }
 0x1ce   : > { %v2410_v0 = vpop.f32.mrf.mxu2  ;;  %v2235_v8 = vpop.f32.mrf.mxu0  ;;  %v6167_v39 = vor.u32 %v6694_v32, %v6164_v37  ;;  %v6573_v32 = vld [vmem:[%s7604_s6 + $0x2cc] sm:$0xf] }
 0x1cf   : > { %v2411_v9 = vadd.f32 %v2410_v0, %v2322_v61  ;;  %v2499_v10 = vpop.f32.mrf.mxu3  ;;  %v2324_v20 = vpop.f32.mrf.mxu1  ;;  %v5684_v37 = vld [vmem:[%s7604_s6 + $0x2e8] sm:$0xf0] }
 0x1d0   : > { %v2325_v31 = vadd.f32 %v2324_v20, %v2235_v8  ;;  %2756 = vmatpush.bf16.msrb.mxu2 %v6167_v39  ;;  %v6574_v8 = vld [vmem:[%s7604_s6 + $0x2dc] sm:$0xf0]  ;;  %v6572_v20 = vld [vmem:[%s7604_s6 + $0x2c4] sm:$0xf]  ;;  %v5783_v39 = vor.u32 %v6598_v40, %v5780_v42  ;;  %v6577_v42 = vld [vmem:[%s7604_s6 + $0x30c] sm:$0xf] }
 0x1d1   : > { %v2500_v29 = vadd.f32 %v2499_v10, %v2411_v9  ;;  %2274 = vmatmul.bf16.gmra.mxu0 %v7864_v7  ;;  %v5674_v10 = vld [vmem:[%s7604_s6 + $0x2c0] sm:$0xf] }
 0x1d2   : > { %2363 = vmatmul.bf16.gmra.mxu1 %v7866_v11  ;;  %2578 = vmatpush.bf16.msrb.mxu0 %v5783_v39  ;;  %v5700_v39 = vld [vmem:[%s7604_s6 + $0x328] sm:$0xf0] }
 0x1d3   : > { %v4370_v30 = vadd.f32 %v2500_v29, %v570_v19  ;;  %2452 = vmatmul.bf16.gmra.mxu2 %v7868_v17  ;;  %v5676_v29 = vld [vmem:[%s7604_s6 + $0x2e0] sm:$0xf0]  ;;  %v7890_v17 = vor.u32 %v6574_v8, %v5674_v10 }
 0x1d4   : > { %2541 = vmatmul.bf16.gmra.mxu3 %v7870_v23 }
 0x1d5   : > { %4562 = vst [vmem:[#allocation2 + $0x540] sm:$0xff] %v4370_v30  ;;  %v5682_v30 = vld [vmem:[%s7604_s6 + $0x2c8] sm:$0xf] }
 0x1d6   : > { %v2413_v38 = vpop.f32.mrf.mxu2  ;;  %v2237_v61 = vpop.f32.mrf.mxu0  ;;  %9103 = vst [vmem:[#allocation27_spill] sm:$0xff] %v7890_v17 }
 0x1d7   : > { %v2414_v59 = vadd.f32 %v2413_v38, %v2325_v31  ;;  %v2502_v60 = vpop.f32.mrf.mxu3  ;;  %v2326_v0 = vpop.f32.mrf.mxu1  ;;  %v6575_v31 = vld [vmem:[%s7604_s6 + $0x2e4] sm:$0xf0] }
 0x1d8   : > { %v2327_v38 = vadd.f32 %v2326_v0, %v2237_v61 }
 0x1d9   : > { %v2503_v9 = vadd.f32 %v2502_v60, %v2414_v59  ;;  %v6646_v59 = vld [vmem:[%s7334_s12 + $0x1b4] sm:$0xf]  ;;  %v5972_v60 = vld [vmem:[%s7334_s12 + $0x1c8] sm:$0xf0] }
 0x1da   : > { %v5975_v12 = vor.u32 %v6646_v59, %v5972_v60 }
 0x1db   : > { %v4376_v19 = vadd.f32 %v2503_v9, %v576_v63  ;;  %v7894_v63 = vor.u32 %v6572_v20, %v5676_v29  ;;  %v7896_v9 = vor.u32 %v6575_v31, %v5682_v30  ;;  %v588_v20 = vld [vmem:[#allocation2 + $0x598] sm:$0xff]  ;;  %v6578_v30 = vld [vmem:[%s7604_s6 + $0x31c] sm:$0xf0]  ;;  %v6576_v31 = vld [vmem:[%s7604_s6 + $0x304] sm:$0xf] }
 0x1dc   : > { %2667 = vmatpush.bf16.msrb.mxu1 %v5975_v12 }
 0x1dd   : > { %4568 = vst [vmem:[#allocation2 + $0x248] sm:$0xff] %v4376_v19  ;;  %v7898_v19 = vor.u32 %v6573_v32, %v5684_v37  ;;  %v5692_v32 = vld [vmem:[%s7604_s6 + $0x320] sm:$0xf0]  ;;  %v5698_v37 = vld [vmem:[%s7604_s6 + $0x308] sm:$0xf] }
 0x1de   : > { %v2415_v23 = vpop.f32.mrf.mxu2  ;;  %v2240_v7 = vpop.f32.mrf.mxu0  ;;  %9104 = vst [vmem:[#allocation28_spill] sm:$0xff] %v7894_v63 }
 0x1df   : > { %v2416_v62 = vadd.f32 %v2415_v23, %v2327_v38  ;;  %v2504_v11 = vpop.f32.mrf.mxu3  ;;  %9105 = vst [vmem:[#allocation29_spill] sm:$0xff] %v7896_v9  ;;  %v2329_v5 = vpop.f32.mrf.mxu1  ;;  %v6579_v38 = vld [vmem:[%s7604_s6 + $0x324] sm:$0xf0] }
 0x1e0   : > { %9106 = vst [vmem:[#allocation30_spill] sm:$0xff] %v7898_v19  ;;  %v2330_v23 = vadd.f32 %v2329_v5, %v2240_v7  ;;  %v5690_v7 = vld [vmem:[%s7604_s6 + $0x300] sm:$0xf] }
 0x1e1   : > { %v2505_v61 = vadd.f32 %v2504_v11, %v2416_v62  ;;  %2279 = vmatmul.bf16.gmra.mxu0 %v7890_v17  ;;  %v7912_v60 = vor.u32 %v6578_v30, %v5690_v7  ;;  %v6140_v7 = vld [vmem:[%s7334_s12 + $0x318] sm:$0xf0] }
 0x1e2   : > { %2368 = vmatmul.bf16.gmra.mxu1 %v7894_v63  ;;  %v606_v63 = vld [vmem:[#allocation2 + $0x2f8] sm:$0xff] }
 0x1e3   : > { %v4382_v0 = vadd.f32 %v2505_v61, %v582_v6  ;;  %2457 = vmatmul.bf16.gmra.mxu2 %v7896_v9  ;;  %9107 = vst [vmem:[#allocation31_spill] sm:$0xff] %v7912_v60 }
 0x1e4   : > { %2546 = vmatmul.bf16.gmra.mxu3 %v7898_v19 }
 0x1e5   : > { %4574 = vst [vmem:[#allocation2 + $0x488] sm:$0xff] %v4382_v0 }
 0x1e6   : > { %v2418_v10 = vpop.f32.mrf.mxu2  ;;  %v2242_v8 = vpop.f32.mrf.mxu0 }
 0x1e7   : > { %v2419_v12 = vadd.f32 %v2418_v10, %v2330_v23  ;;  %v2507_v11 = vpop.f32.mrf.mxu3  ;;  %v2331_v6 = vpop.f32.mrf.mxu1  ;;  %v7914_v23 = vor.u32 %v6576_v31, %v5692_v32  ;;  %v7916_v10 = vor.u32 %v6579_v38, %v5698_v37  ;;  %v6736_v32 = vld [vmem:[%s7334_s12 + $0x484] sm:$0xf]  ;;  %v6332_v37 = vld [vmem:[%s7334_s12 + $0x498] sm:$0xf0] }
 0x1e8   : > { %v2332_v40 = vadd.f32 %v2331_v6, %v2242_v8 }
 0x1e9   : > { %v2508_v29 = vadd.f32 %v2507_v11, %v2419_v12  ;;  %9108 = vst [vmem:[#allocation32_spill] sm:$0xff] %v7914_v23  ;;  %v594_v12 = vld [vmem:[#allocation2 + $0x3c8] sm:$0xff] }
 0x1ea   : > { %9109 = vst [vmem:[#allocation33_spill] sm:$0xff] %v7916_v10 }
 0x1eb   : > { %v4388_v5 = vadd.f32 %v2508_v29, %v588_v20  ;;  %v7918_v20 = vor.u32 %v6577_v42, %v5700_v39  ;;  %v6335_v39 = vor.u32 %v6736_v32, %v6332_v37  ;;  %v6592_v37 = vld [vmem:[%s7334_s12 + $0x4] sm:$0xf] }
 0x1ed   : > { %4580 = vst [vmem:[#allocation2 + $0x598] sm:$0xff] %v4388_v5  ;;  %v6688_v5 = vld [vmem:[%s7334_s12 + $0x304] sm:$0xf]  ;;  %2846 = vmatpush.bf16.msrb.mxu3 %v6335_v39 }
 0x1ee   : > { %v2420_v59 = vpop.f32.mrf.mxu2  ;;  %v2245_v0 = vpop.f32.mrf.mxu0  ;;  %9110 = vst [vmem:[#allocation34_spill] sm:$0xff] %v7918_v20  ;;  %v6143_v31 = vor.u32 %v6688_v5, %v6140_v7  ;;  %v6583_v5 = vld [vmem:[%s7604_s6 + $0x364] sm:$0xf0]  ;;  %v6581_v7 = vld [vmem:[%s7604_s6 + $0x34c] sm:$0xf] }
 0x1ef   : > { %v2421_v62 = vadd.f32 %v2420_v59, %v2332_v40  ;;  %v2509_v61 = vpop.f32.mrf.mxu3  ;;  %v2334_v11 = vpop.f32.mrf.mxu1  ;;  %v600_v59 = vld [vmem:[#allocation2 + $0x3d8] sm:$0xff] }
 0x1f0   : > { %v2335_v29 = vadd.f32 %v2334_v11, %v2245_v0  ;;  %2757 = vmatpush.bf16.msrb.mxu2 %v6143_v31  ;;  %v5706_v0 = vld [vmem:[%s7604_s6 + $0x340] sm:$0xf] }
 0x1f1   : > { %v2510_v8 = vadd.f32 %v2509_v61, %v2421_v62  ;;  %2284 = vmatmul.bf16.gmra.mxu0 %v7912_v60 }
 0x1f2   : > { %2373 = vmatmul.bf16.gmra.mxu1 %v7914_v23 }
 0x1f3   : > { %v4394_v6 = vadd.f32 %v2510_v8, %v594_v12  ;;  %2462 = vmatmul.bf16.gmra.mxu2 %v7916_v10  ;;  %v6582_v12 = vld [vmem:[%s7604_s6 + $0x35c] sm:$0xf0]  ;;  %v6580_v8 = vld [vmem:[%s7604_s6 + $0x344] sm:$0xf] }
 0x1f4   : > { %2551 = vmatmul.bf16.gmra.mxu3 %v7918_v20  ;;  %v5756_v20 = vld [vmem:[%s7334_s12 + $0x18] sm:$0xf0]  ;;  %v7938_v23 = vor.u32 %v6582_v12, %v5706_v0 }
 0x1f5   : > { %4586 = vst [vmem:[#allocation2 + $0x3c8] sm:$0xff] %v4394_v6  ;;  %v5708_v6 = vld [vmem:[%s7604_s6 + $0x360] sm:$0xf0]  ;;  %v5759_v31 = vor.u32 %v6592_v37, %v5756_v20  ;;  %v612_v12 = vld [vmem:[#allocation2 + $0x138] sm:$0xff]  ;;  %v6585_v37 = vld [vmem:[%s7604_s6 + $0x38c] sm:$0xf] }
 0x1f6   : > { %v2423_v30 = vpop.f32.mrf.mxu2  ;;  %v2247_v42 = vpop.f32.mrf.mxu0  ;;  %9111 = vst [vmem:[#allocation35_spill] sm:$0xff] %v7938_v23 }
 0x1f7   : > { %v2424_v38 = vadd.f32 %v2423_v30, %v2335_v29  ;;  %v2512_v40 = vpop.f32.mrf.mxu3  ;;  %v2336_v62 = vpop.f32.mrf.mxu1  ;;  %v5714_v29 = vld [vmem:[%s7604_s6 + $0x348] sm:$0xf]  ;;  %v5716_v30 = vld [vmem:[%s7604_s6 + $0x368] sm:$0xf0]  ;;  %2579 = vmatpush.bf16.msrb.mxu0 %v5759_v31 }
 0x1f8   : > { %v2337_v32 = vadd.f32 %v2336_v62, %v2247_v42  ;;  %v5732_v31 = vld [vmem:[%s7604_s6 + $0x3a8] sm:$0xf0] }
 0x1f9   : > { %v2513_v61 = vadd.f32 %v2512_v40, %v2424_v38  ;;  %v6640_v38 = vld [vmem:[%s7334_s12 + $0x184] sm:$0xf]  ;;  %v5948_v40 = vld [vmem:[%s7334_s12 + $0x198] sm:$0xf0] }
 0x1fa   : > { %v5951_v9 = vor.u32 %v6640_v38, %v5948_v40 }
 0x1fb   : > { %v4400_v11 = vadd.f32 %v2513_v61, %v600_v59  ;;  %v7942_v59 = vor.u32 %v6580_v8, %v5708_v6  ;;  %v7944_v61 = vor.u32 %v6583_v5, %v5714_v29  ;;  %v6586_v6 = vld [vmem:[%s7604_s6 + $0x39c] sm:$0xf0]  ;;  %v6584_v29 = vld [vmem:[%s7604_s6 + $0x384] sm:$0xf] }
 0x1fc   : > { %2668 = vmatpush.bf16.msrb.mxu1 %v5951_v9  ;;  %v5724_v5 = vld [vmem:[%s7604_s6 + $0x3a0] sm:$0xf0] }
 0x1fd   : > { %4592 = vst [vmem:[#allocation2 + $0x3d8] sm:$0xff] %v4400_v11  ;;  %v7946_v11 = vor.u32 %v6581_v7, %v5716_v30  ;;  %v5730_v7 = vld [vmem:[%s7604_s6 + $0x388] sm:$0xf] }
 0x1fe   : > { %v2425_v10 = vpop.f32.mrf.mxu2  ;;  %v2250_v19 = vpop.f32.mrf.mxu0  ;;  %9112 = vst [vmem:[#allocation36_spill] sm:$0xff] %v7942_v59  ;;  %v6587_v30 = vld [vmem:[%s7604_s6 + $0x3a4] sm:$0xf0] }
 0x1ff   : > { %v2426_v39 = vadd.f32 %v2425_v10, %v2337_v32  ;;  %v2514_v60 = vpop.f32.mrf.mxu3  ;;  %9113 = vst [vmem:[#allocation37_spill] sm:$0xff] %v7944_v61  ;;  %v2339_v17 = vpop.f32.mrf.mxu1 }
 0x200   : > { %9114 = vst [vmem:[#allocation38_spill] sm:$0xff] %v7946_v11  ;;  %v2340_v10 = vadd.f32 %v2339_v17, %v2250_v19  ;;  %v5722_v19 = vld [vmem:[%s7604_s6 + $0x380] sm:$0xf] }
 0x201   : > { %v2515_v42 = vadd.f32 %v2514_v60, %v2426_v39  ;;  %2289 = vmatmul.bf16.gmra.mxu0 %v7938_v23  ;;  %v7960_v40 = vor.u32 %v6586_v6, %v5722_v19  ;;  %v6734_v19 = vld [vmem:[%s7334_s12 + $0x46c] sm:$0xf0] }
 0x202   : > { %2378 = vmatmul.bf16.gmra.mxu1 %v7942_v59  ;;  %v630_v59 = vld [vmem:[#allocation2 + $0x198] sm:$0xff] }
 0x203   : > { %v4406_v20 = vadd.f32 %v2515_v42, %v606_v63  ;;  %2467 = vmatmul.bf16.gmra.mxu2 %v7944_v61  ;;  %9115 = vst [vmem:[#allocation39_spill] sm:$0xff] %v7960_v40 }
 0x204   : > { %2556 = vmatmul.bf16.gmra.mxu3 %v7946_v11 }
 0x205   : > { %4598 = vst [vmem:[#allocation2 + $0x2f8] sm:$0xff] %v4406_v20 }
 0x206   : > { %v2428_v62 = vpop.f32.mrf.mxu2  ;;  %v2252_v0 = vpop.f32.mrf.mxu0 }
 0x207   : > { %v2429_v9 = vadd.f32 %v2428_v62, %v2340_v10  ;;  %v2517_v60 = vpop.f32.mrf.mxu3  ;;  %v2341_v63 = vpop.f32.mrf.mxu1  ;;  %v7962_v10 = vor.u32 %v6584_v29, %v5724_v5  ;;  %v7964_v62 = vor.u32 %v6587_v30, %v5730_v7  ;;  %v6506_v5 = vld [vmem:[%s7334_s12 + $0x5d8] sm:$0xf]  ;;  %v6782_v7 = vld [vmem:[%s7334_s12 + $0x5ec] sm:$0xf0] }
 0x208   : > { %v2342_v32 = vadd.f32 %v2341_v63, %v2252_v0 }
 0x209   : > { %v2518_v8 = vadd.f32 %v2517_v60, %v2429_v9  ;;  %9116 = vst [vmem:[#allocation40_spill] sm:$0xff] %v7962_v10  ;;  %v618_v9 = vld [vmem:[#allocation2 + $0x438] sm:$0xff] }
 0x20a   : > { %9117 = vst [vmem:[#allocation41_spill] sm:$0xff] %v7964_v62 }
 0x20b   : > { %v4412_v17 = vadd.f32 %v2518_v8, %v612_v12  ;;  %v7966_v12 = vor.u32 %v6585_v37, %v5732_v31  ;;  %v6507_v31 = vor.u32 %v6782_v7, %v6506_v5  ;;  %v5930_v7 = vld [vmem:[%s7334_s12 + $0x158] sm:$0xf] }
 0x20d   : > { %4604 = vst [vmem:[#allocation2 + $0x138] sm:$0xff] %v4412_v17  ;;  %v6314_v17 = vld [vmem:[%s7334_s12 + $0x458] sm:$0xf]  ;;  %3195 = vmatpush.bf16.msra.mxu3 %v6507_v31 }
 0x20e   : > { %v2430_v38 = vpop.f32.mrf.mxu2  ;;  %v2255_v20 = vpop.f32.mrf.mxu0  ;;  %9118 = vst [vmem:[#allocation42_spill] sm:$0xff] %v7966_v12  ;;  %v6315_v29 = vor.u32 %v6734_v19, %v6314_v17  ;;  %v6591_v17 = vld [vmem:[%s7604_s6 + $0x3e4] sm:$0xf0]  ;;  %v6589_v19 = vld [vmem:[%s7604_s6 + $0x3cc] sm:$0xf] }
 0x20f   : > { %v2431_v39 = vadd.f32 %v2430_v38, %v2342_v32  ;;  %v2519_v42 = vpop.f32.mrf.mxu3  ;;  %v2344_v60 = vpop.f32.mrf.mxu1  ;;  %v624_v38 = vld [vmem:[#allocation2 + $0x4b8] sm:$0xff] }
 0x210   : > { %v2345_v8 = vadd.f32 %v2344_v60, %v2255_v20  ;;  %3106 = vmatpush.bf16.msra.mxu2 %v6315_v29  ;;  %v5738_v20 = vld [vmem:[%s7604_s6 + $0x3c0] sm:$0xf] }
 0x211   : > { %v2520_v0 = vadd.f32 %v2519_v42, %v2431_v39  ;;  %2294 = vmatmul.bf16.gmra.mxu0 %v7960_v40 }
 0x212   : > { %2383 = vmatmul.bf16.gmra.mxu1 %v7962_v10 }
 0x213   : > { %v4418_v63 = vadd.f32 %v2520_v0, %v618_v9  ;;  %2472 = vmatmul.bf16.gmra.mxu2 %v7964_v62  ;;  %v6590_v9 = vld [vmem:[%s7604_s6 + $0x3dc] sm:$0xf0]  ;;  %v6588_v0 = vld [vmem:[%s7604_s6 + $0x3c4] sm:$0xf] }
 0x214   : > { %2561 = vmatmul.bf16.gmra.mxu3 %v7966_v12  ;;  %v6638_v12 = vld [vmem:[%s7334_s12 + $0x16c] sm:$0xf0]  ;;  %v7986_v10 = vor.u32 %v6590_v9, %v5738_v20 }
 0x215   : > { %4610 = vst [vmem:[#allocation2 + $0x438] sm:$0xff] %v4418_v63  ;;  %v5740_v63 = vld [vmem:[%s7604_s6 + $0x3e0] sm:$0xf0]  ;;  %v5931_v29 = vor.u32 %v6638_v12, %v5930_v7 }
 0x216   : > { %v2433_v6 = vpop.f32.mrf.mxu2  ;;  %v2257_v37 = vpop.f32.mrf.mxu0 }
 0x217   : > { %v2434_v30 = vadd.f32 %v2433_v6, %v2345_v8  ;;  %v2522_v32 = vpop.f32.mrf.mxu3  ;;  %v2346_v39 = vpop.f32.mrf.mxu1  ;;  %v5746_v8 = vld [vmem:[%s7604_s6 + $0x3c8] sm:$0xf]  ;;  %v5748_v6 = vld [vmem:[%s7604_s6 + $0x3e8] sm:$0xf0]  ;;  %2928 = vmatpush.bf16.msra.mxu0 %v5931_v29 }
 0x218   : > { %v2347_v5 = vadd.f32 %v2346_v39, %v2257_v37 }
 0x219   : > { %v2523_v42 = vadd.f32 %v2522_v32, %v2434_v30  ;;  %v6122_v30 = vld [vmem:[%s7334_s12 + $0x2d8] sm:$0xf]  ;;  %v6686_v32 = vld [vmem:[%s7334_s12 + $0x2ec] sm:$0xf0] }
 0x21a   : > { %v6123_v61 = vor.u32 %v6686_v32, %v6122_v30  ;;  %v6290_v32 = vld [vmem:[%s7334_s12 + $0x428] sm:$0xf] }
 0x21b   : > { %v4424_v60 = vadd.f32 %v2523_v42, %v624_v38  ;;  %v7990_v38 = vor.u32 %v6588_v0, %v5740_v63  ;;  %v7992_v42 = vor.u32 %v6591_v17, %v5746_v8  ;;  %v636_v63 = vld [vmem:[#allocation2 + $0x3b8] sm:$0xff] }
 0x21c   : > { %3017 = vmatpush.bf16.msra.mxu1 %v6123_v61 }
 0x21d   : > { %4616 = vst [vmem:[#allocation2 + $0x4b8] sm:$0xff] %v4424_v60  ;;  %v7994_v60 = vor.u32 %v6589_v19, %v5748_v6  ;;  %v642_v6 = vld [vmem:[#allocation2 + $0x1d0] sm:$0xff] }
 0x21e   : > { %v2435_v62 = vpop.f32.mrf.mxu2  ;;  %v2260_v11 = vpop.f32.mrf.mxu0 }
 0x21f   : > { %v2436_v31 = vadd.f32 %v2435_v62, %v2347_v5  ;;  %v2524_v40 = vpop.f32.mrf.mxu3  ;;  %v2349_v23 = vpop.f32.mrf.mxu1 }
 0x220   : > { %v2350_v39 = vadd.f32 %v2349_v23, %v2260_v11 }
 0x221   : > { %v2525_v37 = vadd.f32 %v2524_v40, %v2436_v31  ;;  %2299 = vmatmul.bf16.gmra.mxu0 %v7986_v10  ;;  %v6728_v31 = vld [vmem:[%s7334_s12 + $0x43c] sm:$0xf0] }
 0x222   : > { %2388 = vmatmul.bf16.gmra.mxu1 %v7990_v38 }
 0x223   : > { %v4430_v12 = vadd.f32 %v2525_v37, %v630_v59  ;;  %2477 = vmatmul.bf16.gmra.mxu2 %v7992_v42 }
 0x224   : > { %2566 = vmatmul.bf16.gmra.mxu3 %v7994_v60 }
 0x225   : > { %4622 = vst [vmem:[#allocation2 + $0x198] sm:$0xff] %v4430_v12  ;;  %v6291_v12 = vor.u32 %v6728_v31, %v6290_v32 }
 0x226   : > { %v2438_v62 = vpop.f32.mrf.mxu2  ;;  %v2262_v0 = vpop.f32.mrf.mxu0 }
 0x227   : > { %v2439_v20 = vadd.f32 %v2438_v62, %v2350_v39  ;;  %v2527_v9 = vpop.f32.mrf.mxu3  ;;  %v2351_v8 = vpop.f32.mrf.mxu1  ;;  %v6482_v39 = vld [vmem:[%s7334_s12 + $0x5a8] sm:$0xf]  ;;  %v6776_v62 = vld [vmem:[%s7334_s12 + $0x5bc] sm:$0xf0]  ;;  %3107 = vmatpush.bf16.msra.mxu2 %v6291_v12 }
 0x228   : > { %v2352_v61 = vadd.f32 %v2351_v8, %v2262_v0  ;;  %v648_v8 = vld [vmem:[#allocation2 + $0x458] sm:$0xff] }
 0x229   : > { %v2528_v17 = vadd.f32 %v2527_v9, %v2439_v20 }
 0x22b   : > { %v4436_v40 = vadd.f32 %v2528_v17, %v636_v63  ;;  %v6483_v63 = vor.u32 %v6776_v62, %v6482_v39 }
 0x22d   : > { %4628 = vst [vmem:[#allocation2 + $0x3b8] sm:$0xff] %v4436_v40  ;;  %3196 = vmatpush.bf16.msra.mxu3 %v6483_v63 }
 0x22e   : > { %v2440_v23 = vpop.f32.mrf.mxu2  ;;  %v2265_v19 = vpop.f32.mrf.mxu0 }
 0x22f   : > { %v2441_v59 = vadd.f32 %v2440_v23, %v2352_v61  ;;  %v2529_v11 = vpop.f32.mrf.mxu3  ;;  %v2354_v5 = vpop.f32.mrf.mxu1 }
 0x230   : > { %v2355_v30 = vadd.f32 %v2354_v5, %v2265_v19  ;;  %v6098_v5 = vld [vmem:[%s7334_s12 + $0x2a8] sm:$0xf] }
 0x231   : > { %v2530_v7 = vadd.f32 %v2529_v11, %v2441_v59  ;;  %2580 = vmatmul.bf16.vlgmr.msrb.gmra.mxu0 %v7622_v48  ;;  %v5906_v59 = vld [vmem:[%s7334_s12 + $0x128] sm:$0xf]  ;;  %v6632_v11 = vld [vmem:[%s7334_s12 + $0x13c] sm:$0xf0] }
 0x232   : > { %2669 = vmatmul.bf16.vlgmr.msrb.gmra.mxu1 %v7626_v52 }
 0x233   : > { %v4442_v29 = vadd.f32 %v2530_v7, %v642_v6  ;;  %2758 = vmatmul.bf16.vlgmr.msrb.gmra.mxu2 %v7628_v53  ;;  %v5907_v6 = vor.u32 %v6632_v11, %v5906_v59  ;;  %v6680_v7 = vld [vmem:[%s7334_s12 + $0x2bc] sm:$0xf0] }
 0x234   : > { %2847 = vmatmul.bf16.vlgmr.msrb.gmra.mxu3 %v7630_v54  ;;  %v6099_v31 = vor.u32 %v6680_v7, %v6098_v5  ;;  %v666_v7 = vld [vmem:[#allocation2 + $0x208] sm:$0xff] }
 0x235   : > { %4634 = vst [vmem:[#allocation2 + $0x1d0] sm:$0xff] %v4442_v29  ;;  %2929 = vmatpush.bf16.msra.mxu0 %v5907_v6 }
 0x236   : > { %v2443_v37 = vpop.f32.mrf.mxu2  ;;  %v2267_v0 = vpop.f32.mrf.mxu0  ;;  %3018 = vmatpush.bf16.msra.mxu1 %v6099_v31 }
 0x237   : > { %v2444_v20 = vadd.f32 %v2443_v37, %v2355_v30  ;;  %v2532_v9 = vpop.f32.mrf.mxu3  ;;  %v2356_v17 = vpop.f32.mrf.mxu1  ;;  %v654_v37 = vld [vmem:[#allocation2 + $0x178] sm:$0xff] }
 0x238   : > { %v2357_v23 = vadd.f32 %v2356_v17, %v2267_v0  ;;  %v660_v17 = vld [vmem:[#allocation2 + $0x5b0] sm:$0xff] }
 0x239   : > { %v2533_v40 = vadd.f32 %v2532_v9, %v2444_v20 }
 0x23b   : > { %v4448_v61 = vadd.f32 %v2533_v40, %v648_v8 }
 0x23d   : > { %4640 = vst [vmem:[#allocation2 + $0x458] sm:$0xff] %v4448_v61 }
 0x23e   : > { %v2445_v19 = vpop.f32.mrf.mxu2  ;;  %v2270_v32 = vpop.f32.mrf.mxu0 }
 0x23f   : > { %v2446_v29 = vadd.f32 %v2445_v19, %v2357_v23  ;;  %v2534_v30 = vpop.f32.mrf.mxu3  ;;  %v2359_v39 = vpop.f32.mrf.mxu1 }
 0x240   : > { %v2360_v20 = vadd.f32 %v2359_v39, %v2270_v32  ;;  %v6722_v39 = vld [vmem:[%s7334_s12 + $0x40c] sm:$0xf0] }
 0x241   : > { %v2535_v62 = vadd.f32 %v2534_v30, %v2446_v29  ;;  %2585 = vmatmul.bf16.gmra.mxu0 %v7652_v13 }
 0x242   : > { %2674 = vmatmul.bf16.gmra.mxu1 %v7654_v14 }
 0x243   : > { %v4454_v12 = vadd.f32 %v2535_v62, %v654_v37  ;;  %2763 = vmatmul.bf16.gmra.mxu2 %v7656_v15  ;;  %v6266_v37 = vld [vmem:[%s7334_s12 + $0x3f8] sm:$0xf] }
 0x244   : > { %2852 = vmatmul.bf16.gmra.mxu3 %v7658_v16 }
 0x245   : > { %4646 = vst [vmem:[#allocation2 + $0x178] sm:$0xff] %v4454_v12  ;;  %v6267_v12 = vor.u32 %v6722_v39, %v6266_v37 }
 0x246   : > { %v2448_v9 = vpop.f32.mrf.mxu2  ;;  %v2272_v8 = vpop.f32.mrf.mxu0 }
 0x247   : > { %v2449_v0 = vadd.f32 %v2448_v9, %v2360_v20  ;;  %v2537_v63 = vpop.f32.mrf.mxu3  ;;  %v2361_v40 = vpop.f32.mrf.mxu1  ;;  %v6458_v20 = vld [vmem:[%s7334_s12 + $0x578] sm:$0xf]  ;;  %v6770_v9 = vld [vmem:[%s7334_s12 + $0x58c] sm:$0xf0]  ;;  %3108 = vmatpush.bf16.msra.mxu2 %v6267_v12 }
 0x248   : > { %v2362_v59 = vadd.f32 %v2361_v40, %v2272_v8  ;;  %v672_v40 = vld [vmem:[#allocation2 + $0x420] sm:$0xff] }
 0x249   : > { %v2538_v61 = vadd.f32 %v2537_v63, %v2449_v0 }
 0x24b   : > { %v4460_v23 = vadd.f32 %v2538_v61, %v660_v17  ;;  %v6459_v17 = vor.u32 %v6770_v9, %v6458_v20 }
 0x24d   : > { %4652 = vst [vmem:[#allocation2 + $0x5b0] sm:$0xff] %v4460_v23  ;;  %3197 = vmatpush.bf16.msra.mxu3 %v6459_v17 }
 0x24e   : > { %v2450_v11 = vpop.f32.mrf.mxu2  ;;  %v2275_v5 = vpop.f32.mrf.mxu0 }
 0x24f   : > { %v2451_v19 = vadd.f32 %v2450_v11, %v2362_v59  ;;  %v2539_v6 = vpop.f32.mrf.mxu3  ;;  %v2364_v29 = vpop.f32.mrf.mxu1 }
 0x250   : > { %v2365_v31 = vadd.f32 %v2364_v29, %v2275_v5  ;;  %v6074_v29 = vld [vmem:[%s7334_s12 + $0x278] sm:$0xf] }
 0x251   : > { %v2540_v30 = vadd.f32 %v2539_v6, %v2451_v19  ;;  %2590 = vmatmul.bf16.gmra.mxu0 %v7672_v25  ;;  %v5882_v19 = vld [vmem:[%s7334_s12 + $0xf8] sm:$0xf]  ;;  %v6626_v6 = vld [vmem:[%s7334_s12 + $0x10c] sm:$0xf0] }
 0x252   : > { %2679 = vmatmul.bf16.gmra.mxu1 %v7674_v26 }
 0x253   : > { %v4466_v32 = vadd.f32 %v2540_v30, %v666_v7  ;;  %2768 = vmatmul.bf16.gmra.mxu2 %v7676_v27  ;;  %v5883_v7 = vor.u32 %v6626_v6, %v5882_v19  ;;  %v6674_v30 = vld [vmem:[%s7334_s12 + $0x28c] sm:$0xf0] }
 0x254   : > { %2857 = vmatmul.bf16.gmra.mxu3 %v7678_v28  ;;  %v6075_v39 = vor.u32 %v6674_v30, %v6074_v29  ;;  %v690_v30 = vld [vmem:[#allocation2 + $0x148] sm:$0xff] }
 0x255   : > { %4658 = vst [vmem:[#allocation2 + $0x208] sm:$0xff] %v4466_v32  ;;  %2930 = vmatpush.bf16.msra.mxu0 %v5883_v7 }
 0x256   : > { %v2453_v62 = vpop.f32.mrf.mxu2  ;;  %v2277_v8 = vpop.f32.mrf.mxu0  ;;  %3019 = vmatpush.bf16.msra.mxu1 %v6075_v39 }
 0x257   : > { %v2454_v0 = vadd.f32 %v2453_v62, %v2365_v31  ;;  %v2542_v63 = vpop.f32.mrf.mxu3  ;;  %v2366_v61 = vpop.f32.mrf.mxu1  ;;  %v678_v62 = vld [vmem:[#allocation2 + $0x110] sm:$0xff] }
 0x258   : > { %v2367_v11 = vadd.f32 %v2366_v61, %v2277_v8  ;;  %v684_v61 = vld [vmem:[#allocation2 + $0xe0] sm:$0xff] }
 0x259   : > { %v2543_v23 = vadd.f32 %v2542_v63, %v2454_v0 }
 0x25b   : > { %v4472_v59 = vadd.f32 %v2543_v23, %v672_v40 }
 0x25d   : > { %4664 = vst [vmem:[#allocation2 + $0x420] sm:$0xff] %v4472_v59 }
 0x25e   : > { %v2455_v5 = vpop.f32.mrf.mxu2  ;;  %v2280_v37 = vpop.f32.mrf.mxu0 }
 0x25f   : > { %v2456_v32 = vadd.f32 %v2455_v5, %v2367_v11  ;;  %v2544_v31 = vpop.f32.mrf.mxu3  ;;  %v2369_v20 = vpop.f32.mrf.mxu1 }
 0x260   : > { %v2370_v0 = vadd.f32 %v2369_v20, %v2280_v37  ;;  %v6716_v20 = vld [vmem:[%s7334_s12 + $0x3dc] sm:$0xf0] }
 0x261   : > { %v2545_v9 = vadd.f32 %v2544_v31, %v2456_v32  ;;  %2595 = vmatmul.bf16.gmra.mxu0 %v7700_v50 }
 0x262   : > { %2684 = vmatmul.bf16.gmra.mxu1 %v7702_v51 }
 0x263   : > { %v4478_v12 = vadd.f32 %v2545_v9, %v678_v62  ;;  %2773 = vmatmul.bf16.gmra.mxu2 %v7704_v55  ;;  %v6242_v62 = vld [vmem:[%s7334_s12 + $0x3c8] sm:$0xf] }
 0x264   : > { %2862 = vmatmul.bf16.gmra.mxu3 %v7706_v56 }
 0x265   : > { %4670 = vst [vmem:[#allocation2 + $0x110] sm:$0xff] %v4478_v12  ;;  %v6243_v12 = vor.u32 %v6716_v20, %v6242_v62 }
 0x266   : > { %v2458_v63 = vpop.f32.mrf.mxu2  ;;  %v2282_v40 = vpop.f32.mrf.mxu0 }
 0x267   : > { %v2459_v8 = vadd.f32 %v2458_v63, %v2370_v0  ;;  %v2547_v17 = vpop.f32.mrf.mxu3  ;;  %v2371_v23 = vpop.f32.mrf.mxu1  ;;  %v6434_v0 = vld [vmem:[%s7334_s12 + $0x548] sm:$0xf]  ;;  %v6764_v63 = vld [vmem:[%s7334_s12 + $0x55c] sm:$0xf0]  ;;  %3109 = vmatpush.bf16.msra.mxu2 %v6243_v12 }
 0x268   : > { %v2372_v19 = vadd.f32 %v2371_v23, %v2282_v40  ;;  %v696_v23 = vld [vmem:[#allocation2 + $0xb8] sm:$0xff] }
 0x269   : > { %v2548_v59 = vadd.f32 %v2547_v17, %v2459_v8 }
 0x26b   : > { %v4484_v11 = vadd.f32 %v2548_v59, %v684_v61  ;;  %v6435_v61 = vor.u32 %v6764_v63, %v6434_v0 }
 0x26d   : > { %4676 = vst [vmem:[#allocation2 + $0xe0] sm:$0xff] %v4484_v11  ;;  %3198 = vmatpush.bf16.msra.mxu3 %v6435_v61 }
 0x26e   : > { %v2460_v6 = vpop.f32.mrf.mxu2  ;;  %v2285_v29 = vpop.f32.mrf.mxu0 }
 0x26f   : > { %v2461_v5 = vadd.f32 %v2460_v6, %v2372_v19  ;;  %v2549_v7 = vpop.f32.mrf.mxu3  ;;  %v2374_v32 = vpop.f32.mrf.mxu1 }
 0x270   : > { %v2375_v39 = vadd.f32 %v2374_v32, %v2285_v29  ;;  %v6050_v32 = vld [vmem:[%s7334_s12 + $0x248] sm:$0xf] }
 0x271   : > { %v2550_v31 = vadd.f32 %v2549_v7, %v2461_v5  ;;  %2600 = vmatmul.bf16.gmra.mxu0 %v7720_v1  ;;  %v5858_v5 = vld [vmem:[%s7334_s12 + $0xc8] sm:$0xf]  ;;  %v6620_v7 = vld [vmem:[%s7334_s12 + $0xdc] sm:$0xf0] }
 0x272   : > { %2689 = vmatmul.bf16.gmra.mxu1 %v7722_v2 }
 0x273   : > { %v4490_v37 = vadd.f32 %v2550_v31, %v690_v30  ;;  %2778 = vmatmul.bf16.gmra.mxu2 %v7724_v3  ;;  %v5859_v30 = vor.u32 %v6620_v7, %v5858_v5  ;;  %v6668_v31 = vld [vmem:[%s7334_s12 + $0x25c] sm:$0xf0] }
 0x274   : > { %2867 = vmatmul.bf16.gmra.mxu3 %v7726_v4  ;;  %v6051_v20 = vor.u32 %v6668_v31, %v6050_v32  ;;  %v714_v31 = vld [vmem:[#allocation2] sm:$0xff] }
 0x275   : > { %4682 = vst [vmem:[#allocation2 + $0x148] sm:$0xff] %v4490_v37  ;;  %2931 = vmatpush.bf16.msra.mxu0 %v5859_v30 }
 0x276   : > { %v2463_v9 = vpop.f32.mrf.mxu2  ;;  %v2287_v40 = vpop.f32.mrf.mxu0  ;;  %3020 = vmatpush.bf16.msra.mxu1 %v6051_v20 }
 0x277   : > { %v2464_v8 = vadd.f32 %v2463_v9, %v2375_v39  ;;  %v2552_v17 = vpop.f32.mrf.mxu3  ;;  %v2376_v59 = vpop.f32.mrf.mxu1  ;;  %v702_v9 = vld [vmem:[#allocation2 + $0x588] sm:$0xff] }
 0x278   : > { %v2377_v6 = vadd.f32 %v2376_v59, %v2287_v40  ;;  %v708_v59 = vld [vmem:[#allocation2 + $0x578] sm:$0xff] }
 0x279   : > { %v2553_v11 = vadd.f32 %v2552_v17, %v2464_v8 }
 0x27b   : > { %v4496_v19 = vadd.f32 %v2553_v11, %v696_v23 }
 0x27d   : > { %4688 = vst [vmem:[#allocation2 + $0xb8] sm:$0xff] %v4496_v19 }
 0x27e   : > { %v2465_v29 = vpop.f32.mrf.mxu2  ;;  %v2290_v62 = vpop.f32.mrf.mxu0 }
 0x27f   : > { %v2466_v37 = vadd.f32 %v2465_v29, %v2377_v6  ;;  %v2554_v39 = vpop.f32.mrf.mxu3  ;;  %v2379_v0 = vpop.f32.mrf.mxu1 }
 0x280   : > { %v2380_v8 = vadd.f32 %v2379_v0, %v2290_v62  ;;  %v6710_v0 = vld [vmem:[%s7334_s12 + $0x3ac] sm:$0xf0] }
 0x281   : > { %v2555_v63 = vadd.f32 %v2554_v39, %v2466_v37  ;;  %2605 = vmatmul.bf16.gmra.mxu0 %v7748_v33 }
 0x282   : > { %2694 = vmatmul.bf16.gmra.mxu1 %v7750_v34 }
 0x283   : > { %v4502_v12 = vadd.f32 %v2555_v63, %v702_v9  ;;  %2783 = vmatmul.bf16.gmra.mxu2 %v7752_v35  ;;  %v6218_v9 = vld [vmem:[%s7334_s12 + $0x398] sm:$0xf] }
 0x284   : > { %2872 = vmatmul.bf16.gmra.mxu3 %v7754_v36 }
 0x285   : > { %4694 = vst [vmem:[#allocation2 + $0x588] sm:$0xff] %v4502_v12  ;;  %v6219_v12 = vor.u32 %v6710_v0, %v6218_v9 }
 0x286   : > { %v2468_v17 = vpop.f32.mrf.mxu2  ;;  %v2292_v23 = vpop.f32.mrf.mxu0 }
 0x287   : > { %v2469_v40 = vadd.f32 %v2468_v17, %v2380_v8  ;;  %v2557_v61 = vpop.f32.mrf.mxu3  ;;  %v2381_v11 = vpop.f32.mrf.mxu1  ;;  %v6410_v8 = vld [vmem:[%s7334_s12 + $0x518] sm:$0xf]  ;;  %v6758_v17 = vld [vmem:[%s7334_s12 + $0x52c] sm:$0xf0]  ;;  %3110 = vmatpush.bf16.msra.mxu2 %v6219_v12 }
 0x288   : > { %v2382_v5 = vadd.f32 %v2381_v11, %v2292_v23  ;;  %v720_v11 = vld [vmem:[#allocation2 + $0x1c8] sm:$0xff] }
 0x289   : > { %v2558_v19 = vadd.f32 %v2557_v61, %v2469_v40 }
 0x28b   : > { %v4508_v6 = vadd.f32 %v2558_v19, %v708_v59  ;;  %v6411_v59 = vor.u32 %v6758_v17, %v6410_v8 }
 0x28d   : > { %4700 = vst [vmem:[#allocation2 + $0x578] sm:$0xff] %v4508_v6  ;;  %3199 = vmatpush.bf16.msra.mxu3 %v6411_v59 }
 0x28e   : > { %v2470_v7 = vpop.f32.mrf.mxu2  ;;  %v2295_v32 = vpop.f32.mrf.mxu0 }
 0x28f   : > { %v2471_v29 = vadd.f32 %v2470_v7, %v2382_v5  ;;  %v2559_v30 = vpop.f32.mrf.mxu3  ;;  %v2384_v37 = vpop.f32.mrf.mxu1 }
 0x290   : > { %v2385_v20 = vadd.f32 %v2384_v37, %v2295_v32  ;;  %v6026_v37 = vld [vmem:[%s7334_s12 + $0x218] sm:$0xf] }
 0x291   : > { %v2560_v39 = vadd.f32 %v2559_v30, %v2471_v29  ;;  %2610 = vmatmul.bf16.gmra.mxu0 %v7768_v45  ;;  %v5834_v29 = vld [vmem:[%s7334_s12 + $0x98] sm:$0xf]  ;;  %v6614_v30 = vld [vmem:[%s7334_s12 + $0xac] sm:$0xf0] }
 0x292   : > { %2699 = vmatmul.bf16.gmra.mxu1 %v7770_v46 }
 0x293   : > { %v4514_v62 = vadd.f32 %v2560_v39, %v714_v31  ;;  %2788 = vmatmul.bf16.gmra.mxu2 %v7772_v47  ;;  %v5835_v31 = vor.u32 %v6614_v30, %v5834_v29  ;;  %v6662_v39 = vld [vmem:[%s7334_s12 + $0x22c] sm:$0xf0] }
 0x294   : > { %2877 = vmatmul.bf16.gmra.mxu3 %v7774_v49  ;;  %v6027_v0 = vor.u32 %v6662_v39, %v6026_v37  ;;  %v738_v39 = vld [vmem:[#allocation2 + $0x128] sm:$0xff] }
 0x295   : > { %4706 = vst [vmem:[#allocation2] sm:$0xff] %v4514_v62  ;;  %2932 = vmatpush.bf16.msra.mxu0 %v5835_v31 }
 0x296   : > { %v2473_v63 = vpop.f32.mrf.mxu2  ;;  %v2297_v23 = vpop.f32.mrf.mxu0  ;;  %3021 = vmatpush.bf16.msra.mxu1 %v6027_v0 }
 0x297   : > { %v2474_v40 = vadd.f32 %v2473_v63, %v2385_v20  ;;  %v2562_v61 = vpop.f32.mrf.mxu3  ;;  %v2386_v19 = vpop.f32.mrf.mxu1  ;;  %v726_v63 = vld [vmem:[#allocation2 + $0x2d0] sm:$0xff] }
 0x298   : > { %v2387_v7 = vadd.f32 %v2386_v19, %v2297_v23  ;;  %v732_v19 = vld [vmem:[#allocation2 + $0x3e8] sm:$0xff] }
 0x299   : > { %v2563_v6 = vadd.f32 %v2562_v61, %v2474_v40 }
 0x29b   : > { %v4520_v5 = vadd.f32 %v2563_v6, %v720_v11 }
 0x29d   : > { %4712 = vst [vmem:[#allocation2 + $0x1c8] sm:$0xff] %v4520_v5 }
 0x29e   : > { %v2475_v32 = vpop.f32.mrf.mxu2  ;;  %v2300_v9 = vpop.f32.mrf.mxu0 }
 0x29f   : > { %v2476_v62 = vadd.f32 %v2475_v32, %v2387_v7  ;;  %v2564_v20 = vpop.f32.mrf.mxu3  ;;  %v2389_v8 = vpop.f32.mrf.mxu1 }
 0x2a0   : > { %v2390_v40 = vadd.f32 %v2389_v8, %v2300_v9  ;;  %v6704_v8 = vld [vmem:[%s7334_s12 + $0x37c] sm:$0xf0] }
 0x2a1   : > { %v2565_v17 = vadd.f32 %v2564_v20, %v2476_v62  ;;  %2615 = vmatmul.bf16.gmra.mxu0 %v7795_v18 }
 0x2a2   : > { %2704 = vmatmul.bf16.gmra.mxu1 %v7798_v21 }
 0x2a3   : > { %v4526_v12 = vadd.f32 %v2565_v17, %v726_v63  ;;  %2793 = vmatmul.bf16.gmra.mxu2 %v7800_v22  ;;  %v6194_v63 = vld [vmem:[%s7334_s12 + $0x368] sm:$0xf] }
 0x2a4   : > { %2882 = vmatmul.bf16.gmra.mxu3 %v7802_v24 }
 0x2a5   : > { %4718 = vst [vmem:[#allocation2 + $0x2d0] sm:$0xff] %v4526_v12  ;;  %v6195_v12 = vor.u32 %v6704_v8, %v6194_v63 }
 0x2a6   : > { %v2478_v61 = vpop.f32.mrf.mxu2  ;;  %v2302_v11 = vpop.f32.mrf.mxu0 }
 0x2a7   : > { %v2479_v23 = vadd.f32 %v2478_v61, %v2390_v40  ;;  %v2567_v59 = vpop.f32.mrf.mxu3  ;;  %v2391_v6 = vpop.f32.mrf.mxu1  ;;  %v6386_v40 = vld [vmem:[%s7334_s12 + $0x4e8] sm:$0xf]  ;;  %v6752_v61 = vld [vmem:[%s7334_s12 + $0x4fc] sm:$0xf0]  ;;  %3111 = vmatpush.bf16.msra.mxu2 %v6195_v12 }
 0x2a8   : > { %v2392_v29 = vadd.f32 %v2391_v6, %v2302_v11  ;;  %v553_v6 = vld [vmem:[#allocation2 + $0x3b0] sm:$0xff] }
 0x2a9   : > { %v2568_v5 = vadd.f32 %v2567_v59, %v2479_v23 }
 0x2ab   : > { %v4532_v7 = vadd.f32 %v2568_v5, %v732_v19  ;;  %v6387_v19 = vor.u32 %v6752_v61, %v6386_v40 }
 0x2ad   : > { %4724 = vst [vmem:[#allocation2 + $0x3e8] sm:$0xff] %v4532_v7  ;;  %3200 = vmatpush.bf16.msra.mxu3 %v6387_v19  ;;  %v9121_v19 = vld [vmem:[#allocation22_spill] sm:$0xff] }
 0x2ae   : > { %v2480_v30 = vpop.f32.mrf.mxu2  ;;  %v2581_v37 = vpop.f32.mrf.mxu0 }
 0x2af   : > { %v2481_v32 = vadd.f32 %v2480_v30, %v2392_v29  ;;  %v2569_v31 = vpop.f32.mrf.mxu3  ;;  %v2670_v62 = vpop.f32.mrf.mxu1 }
 0x2b0   : > { %v2671_v0 = vadd.f32 %v2670_v62, %v2581_v37  ;;  %v6002_v62 = vld [vmem:[%s7334_s12 + $0x1e8] sm:$0xf] }
 0x2b1   : > { %v2570_v20 = vadd.f32 %v2569_v31, %v2481_v32  ;;  %2620 = vmatmul.bf16.gmra.mxu0 %v7816_v41  ;;  %v5810_v32 = vld [vmem:[%s7334_s12 + $0x68] sm:$0xf]  ;;  %v6608_v31 = vld [vmem:[%s7334_s12 + $0x7c] sm:$0xf0] }
 0x2b2   : > { %2709 = vmatmul.bf16.gmra.mxu1 %v7818_v43 }
 0x2b3   : > { %v4538_v9 = vadd.f32 %v2570_v20, %v738_v39  ;;  %2798 = vmatmul.bf16.gmra.mxu2 %v7820_v44  ;;  %v5811_v39 = vor.u32 %v6608_v31, %v5810_v32  ;;  %v6656_v20 = vld [vmem:[%s7334_s12 + $0x1fc] sm:$0xf0] }
 0x2b4   : > { %2887 = vmatmul.bf16.gmra.mxu3 %v7822_v58  ;;  %v6003_v8 = vor.u32 %v6656_v20, %v6002_v62 }
 0x2b5   : > { %4730 = vst [vmem:[#allocation2 + $0x128] sm:$0xff] %v4538_v9  ;;  %2933 = vmatpush.bf16.msra.mxu0 %v5811_v39 }
 0x2b6   : > { %v2759_v17 = vpop.f32.mrf.mxu2  ;;  %v2583_v11 = vpop.f32.mrf.mxu0  ;;  %3022 = vmatpush.bf16.msra.mxu1 %v6003_v8 }
 0x2b7   : > { %v2760_v23 = vadd.f32 %v2759_v17, %v2671_v0  ;;  %v2848_v59 = vpop.f32.mrf.mxu3  ;;  %v2672_v5 = vpop.f32.mrf.mxu1  ;;  %v559_v17 = vld [vmem:[#allocation2 + $0x378] sm:$0xff] }
 0x2b8   : > { %v2673_v30 = vadd.f32 %v2672_v5, %v2583_v11  ;;  %v9120_v11 = vld [vmem:[#allocation21_spill] sm:$0xff] }
 0x2b9   : > { %v2849_v7 = vadd.f32 %v2848_v59, %v2760_v23  ;;  %v9119_v59 = vld [vmem:[#allocation20_spill] sm:$0xff] }
 0x2bb   : > { %v4353_v29 = vadd.f32 %v2849_v7, %v553_v6 }
 0x2bd   : > { %4545 = vst [vmem:[#allocation2 + $0x3b0] sm:$0xff] %v4353_v29 }
 0x2be   : > { %v2761_v37 = vpop.f32.mrf.mxu2  ;;  %v2586_v63 = vpop.f32.mrf.mxu0 }
 0x2bf   : > { %v2762_v9 = vadd.f32 %v2761_v37, %v2673_v30  ;;  %v2850_v0 = vpop.f32.mrf.mxu3  ;;  %v2675_v40 = vpop.f32.mrf.mxu1  ;;  %v565_v30 = vld [vmem:[#allocation2 + $0x500] sm:$0xff] }
 0x2c0   : > { %v2676_v23 = vadd.f32 %v2675_v40, %v2586_v63  ;;  %v571_v63 = vld [vmem:[#allocation2 + $0x3c0] sm:$0xff] }
 0x2c1   : > { %v2851_v61 = vadd.f32 %v2850_v0, %v2762_v9  ;;  %2625 = vmatmul.bf16.gmra.mxu0 %v7842_v57  ;;  %v9122_v40 = vld [vmem:[#allocation23_spill] sm:$0xff] }
 0x2c2   : > { %2714 = vmatmul.bf16.gmra.mxu1 %v9119_v59  ;;  %v583_v59 = vld [vmem:[#allocation2 + $0x4d0] sm:$0xff] }
 0x2c3   : > { %v4359_v12 = vadd.f32 %v2851_v61, %v559_v17  ;;  %2803 = vmatmul.bf16.gmra.mxu2 %v9120_v11 }
 0x2c4   : > { %2892 = vmatmul.bf16.gmra.mxu3 %v9121_v19 }
 0x2c5   : > { %4551 = vst [vmem:[#allocation2 + $0x378] sm:$0xff] %v4359_v12 }
 0x2c6   : > { %v2764_v6 = vpop.f32.mrf.mxu2  ;;  %v2588_v29 = vpop.f32.mrf.mxu0 }
 0x2c7   : > { %v2765_v5 = vadd.f32 %v2764_v6, %v2676_v23  ;;  %v2853_v7 = vpop.f32.mrf.mxu3  ;;  %v2677_v32 = vpop.f32.mrf.mxu1  ;;  %v9123_v23 = vld [vmem:[#allocation24_spill] sm:$0xff]  ;;  %v9124_v6 = vld [vmem:[#allocation25_spill] sm:$0xff] }
 0x2c8   : > { %v2678_v39 = vadd.f32 %v2677_v32, %v2588_v29  ;;  %v6698_v29 = vld [vmem:[%s7334_s12 + $0x34c] sm:$0xf0] }
 0x2c9   : > { %v2854_v31 = vadd.f32 %v2853_v7, %v2765_v5  ;;  %v9125_v5 = vld [vmem:[#allocation26_spill] sm:$0xff] }
 0x2ca   : > { %v6170_v7 = vld [vmem:[%s7334_s12 + $0x338] sm:$0xf] }
 0x2cb   : > { %v4365_v37 = vadd.f32 %v2854_v31, %v565_v30  ;;  %v6171_v32 = vor.u32 %v6698_v29, %v6170_v7  ;;  %v6362_v31 = vld [vmem:[%s7334_s12 + $0x4b8] sm:$0xf] }
 0x2cd   : > { %4557 = vst [vmem:[#allocation2 + $0x500] sm:$0xff] %v4365_v37  ;;  %v6746_v37 = vld [vmem:[%s7334_s12 + $0x4cc] sm:$0xf0]  ;;  %3112 = vmatpush.bf16.msra.mxu2 %v6171_v32  ;;  %v9126_v32 = vld [vmem:[#allocation27_spill] sm:$0xff] }
 0x2ce   : > { %v2766_v62 = vpop.f32.mrf.mxu2  ;;  %v2591_v0 = vpop.f32.mrf.mxu0 }
 0x2cf   : > { %v2767_v20 = vadd.f32 %v2766_v62, %v2678_v39  ;;  %v2855_v9 = vpop.f32.mrf.mxu3  ;;  %v2680_v8 = vpop.f32.mrf.mxu1 }
 0x2d0   : > { %v2681_v12 = vadd.f32 %v2680_v8, %v2591_v0  ;;  %v577_v0 = vld [vmem:[#allocation2 + $0xc8] sm:$0xff] }
 0x2d1   : > { %v2856_v17 = vadd.f32 %v2855_v9, %v2767_v20  ;;  %2630 = vmatmul.bf16.gmra.mxu0 %v9122_v40  ;;  %v6363_v9 = vor.u32 %v6746_v37, %v6362_v31  ;;  %v6650_v40 = vld [vmem:[%s7334_s12 + $0x1cc] sm:$0xf0] }
 0x2d2   : > { %2719 = vmatmul.bf16.gmra.mxu1 %v9123_v23  ;;  %v5978_v23 = vld [vmem:[%s7334_s12 + $0x1b8] sm:$0xf] }
 0x2d3   : > { %v4371_v61 = vadd.f32 %v2856_v17, %v571_v63  ;;  %2808 = vmatmul.bf16.gmra.mxu2 %v9124_v6  ;;  %3201 = vmatpush.bf16.msra.mxu3 %v6363_v9  ;;  %v6602_v6 = vld [vmem:[%s7334_s12 + $0x4c] sm:$0xf0]  ;;  %v5979_v11 = vor.u32 %v6650_v40, %v5978_v23  ;;  %v589_v23 = vld [vmem:[#allocation2 + $0x5a8] sm:$0xff] }
 0x2d4   : > { %2897 = vmatmul.bf16.gmra.mxu3 %v9125_v5  ;;  %v5786_v5 = vld [vmem:[%s7334_s12 + $0x38] sm:$0xf]  ;;  %v9128_v9 = vld [vmem:[#allocation29_spill] sm:$0xff] }
 0x2d5   : > { %4563 = vst [vmem:[#allocation2 + $0x3c0] sm:$0xff] %v4371_v61  ;;  %v5787_v29 = vor.u32 %v6602_v6, %v5786_v5  ;;  %3023 = vmatpush.bf16.msra.mxu1 %v5979_v11  ;;  %v9129_v6 = vld [vmem:[#allocation30_spill] sm:$0xff] }
 0x2d6   : > { %v2769_v30 = vpop.f32.mrf.mxu2  ;;  %v2593_v20 = vpop.f32.mrf.mxu0 }
 0x2d7   : > { %v2770_v39 = vadd.f32 %v2769_v30, %v2681_v12  ;;  %v2858_v62 = vpop.f32.mrf.mxu3  ;;  %v2682_v63 = vpop.f32.mrf.mxu1  ;;  %2934 = vmatpush.bf16.msra.mxu0 %v5787_v29 }
 0x2d8   : > { %v2683_v61 = vadd.f32 %v2682_v63, %v2593_v20  ;;  %v9127_v20 = vld [vmem:[#allocation28_spill] sm:$0xff] }
 0x2d9   : > { %v2859_v8 = vadd.f32 %v2858_v62, %v2770_v39 }
 0x2db   : > { %v4377_v17 = vadd.f32 %v2859_v8, %v577_v0 }
 0x2dd   : > { %4569 = vst [vmem:[#allocation2 + $0xc8] sm:$0xff] %v4377_v17 }
 0x2de   : > { %v2771_v7 = vpop.f32.mrf.mxu2  ;;  %v2596_v19 = vpop.f32.mrf.mxu0 }
 0x2df   : > { %v2772_v12 = vadd.f32 %v2771_v7, %v2683_v61  ;;  %v2860_v30 = vpop.f32.mrf.mxu3  ;;  %v2685_v31 = vpop.f32.mrf.mxu1 }
 0x2e0   : > { %v2686_v62 = vadd.f32 %v2685_v31, %v2596_v19 }
 0x2e1   : > { %v2861_v37 = vadd.f32 %v2860_v30, %v2772_v12  ;;  %2635 = vmatmul.bf16.gmra.mxu0 %v9126_v32  ;;  %v595_v12 = vld [vmem:[#allocation2 + $0x5c0] sm:$0xff]  ;;  %v607_v32 = vld [vmem:[#allocation2 + $0x268] sm:$0xff] }
 0x2e2   : > { %2724 = vmatmul.bf16.gmra.mxu1 %v9127_v20 }
 0x2e3   : > { %v4383_v39 = vadd.f32 %v2861_v37, %v583_v59  ;;  %2813 = vmatmul.bf16.gmra.mxu2 %v9128_v9  ;;  %v9130_v37 = vld [vmem:[#allocation31_spill] sm:$0xff] }
 0x2e4   : > { %2902 = vmatmul.bf16.gmra.mxu3 %v9129_v6  ;;  %v6644_v6 = vld [vmem:[%s7334_s12 + $0x19c] sm:$0xf0] }
 0x2e5   : > { %4575 = vst [vmem:[#allocation2 + $0x4d0] sm:$0xff] %v4383_v39 }
 0x2e6   : > { %v2774_v5 = vpop.f32.mrf.mxu2  ;;  %v2598_v40 = vpop.f32.mrf.mxu0 }
 0x2e7   : > { %v2775_v0 = vadd.f32 %v2774_v5, %v2686_v62  ;;  %v2863_v63 = vpop.f32.mrf.mxu3  ;;  %v2687_v8 = vpop.f32.mrf.mxu1  ;;  %v9131_v5 = vld [vmem:[#allocation32_spill] sm:$0xff] }
 0x2e8   : > { %v2688_v11 = vadd.f32 %v2687_v8, %v2598_v40  ;;  %v6146_v40 = vld [vmem:[%s7334_s12 + $0x308] sm:$0xf] }
 0x2e9   : > { %v2864_v17 = vadd.f32 %v2863_v63, %v2775_v0  ;;  %v9132_v0 = vld [vmem:[#allocation33_spill] sm:$0xff]  ;;  %v9133_v63 = vld [vmem:[#allocation34_spill] sm:$0xff] }
 0x2eb   : > { %v4389_v61 = vadd.f32 %v2864_v17, %v589_v23  ;;  %v6692_v23 = vld [vmem:[%s7334_s12 + $0x31c] sm:$0xf0] }
 0x2ec   : > { %v6147_v17 = vor.u32 %v6692_v23, %v6146_v40 }
 0x2ed   : > { %4581 = vst [vmem:[#allocation2 + $0x5a8] sm:$0xff] %v4389_v61  ;;  %v6338_v61 = vld [vmem:[%s7334_s12 + $0x488] sm:$0xf] }
 0x2ee   : > { %v2776_v59 = vpop.f32.mrf.mxu2  ;;  %v2601_v29 = vpop.f32.mrf.mxu0  ;;  %3113 = vmatpush.bf16.msra.mxu2 %v6147_v17  ;;  %v9134_v17 = vld [vmem:[#allocation35_spill] sm:$0xff] }
 0x2ef   : > { %v2777_v19 = vadd.f32 %v2776_v59, %v2688_v11  ;;  %v2865_v7 = vpop.f32.mrf.mxu3  ;;  %v2690_v30 = vpop.f32.mrf.mxu1  ;;  %v6740_v11 = vld [vmem:[%s7334_s12 + $0x49c] sm:$0xf0] }
 0x2f0   : > { %v2691_v62 = vadd.f32 %v2690_v30, %v2601_v29  ;;  %v6339_v29 = vor.u32 %v6740_v11, %v6338_v61 }
 0x2f1   : > { %v2866_v31 = vadd.f32 %v2865_v7, %v2777_v19  ;;  %2640 = vmatmul.bf16.gmra.mxu0 %v9130_v37  ;;  %v5954_v37 = vld [vmem:[%s7334_s12 + $0x188] sm:$0xf] }
 0x2f2   : > { %2729 = vmatmul.bf16.gmra.mxu1 %v9131_v5  ;;  %3202 = vmatpush.bf16.msra.mxu3 %v6339_v29  ;;  %v6596_v5 = vld [vmem:[%s7334_s12 + $0x1c] sm:$0xf0]  ;;  %v5955_v20 = vor.u32 %v6644_v6, %v5954_v37  ;;  %v9136_v29 = vld [vmem:[#allocation37_spill] sm:$0xff] }
 0x2f3   : > { %v4395_v39 = vadd.f32 %v2866_v31, %v595_v12  ;;  %2818 = vmatmul.bf16.gmra.mxu2 %v9132_v0  ;;  %v601_v12 = vld [vmem:[#allocation2 + $0x4b0] sm:$0xff]  ;;  %v5762_v0 = vld [vmem:[%s7334_s12 + $0x8] sm:$0xf] }
 0x2f4   : > { %2907 = vmatmul.bf16.gmra.mxu3 %v9133_v63  ;;  %v5763_v23 = vor.u32 %v6596_v5, %v5762_v0  ;;  %3024 = vmatpush.bf16.msra.mxu1 %v5955_v20  ;;  %v9137_v5 = vld [vmem:[#allocation38_spill] sm:$0xff]  ;;  %v613_v37 = vld [vmem:[#allocation2 + $0x308] sm:$0xff] }
 0x2f5   : > { %4587 = vst [vmem:[#allocation2 + $0x5c0] sm:$0xff] %v4395_v39 }
 0x2f6   : > { %v2779_v8 = vpop.f32.mrf.mxu2  ;;  %v2603_v7 = vpop.f32.mrf.mxu0  ;;  %2935 = vmatpush.bf16.msra.mxu0 %v5763_v23 }
 0x2f7   : > { %v2780_v59 = vadd.f32 %v2779_v8, %v2691_v62  ;;  %v2868_v19 = vpop.f32.mrf.mxu3  ;;  %v2692_v30 = vpop.f32.mrf.mxu1 }
 0x2f8   : > { %v2693_v63 = vadd.f32 %v2692_v30, %v2603_v7  ;;  %v9135_v7 = vld [vmem:[#allocation36_spill] sm:$0xff] }
 0x2f9   : > { %v2869_v31 = vadd.f32 %v2868_v19, %v2780_v59 }
 0x2fb   : > { %v4401_v39 = vadd.f32 %v2869_v31, %v601_v12 }
 0x2fd   : > { %4593 = vst [vmem:[#allocation2 + $0x4b0] sm:$0xff] %v4401_v39 }
 0x2fe   : > { %v2781_v40 = vpop.f32.mrf.mxu2  ;;  %v2606_v9 = vpop.f32.mrf.mxu0 }
 0x2ff   : > { %v2782_v62 = vadd.f32 %v2781_v40, %v2693_v63  ;;  %v2870_v8 = vpop.f32.mrf.mxu3  ;;  %v2695_v61 = vpop.f32.mrf.mxu1 }
 0x300   : > { %v2696_v19 = vadd.f32 %v2695_v61, %v2606_v9 }
 0x301   : > { %v2871_v11 = vadd.f32 %v2870_v8, %v2782_v62  ;;  %2645 = vmatmul.bf16.gmra.mxu0 %v9134_v17  ;;  %v619_v62 = vld [vmem:[#allocation2 + $0xf0] sm:$0xff] }
 0x302   : > { %2734 = vmatmul.bf16.gmra.mxu1 %v9135_v7  ;;  %v631_v17 = vld [vmem:[#allocation2 + $0x550] sm:$0xff] }
 0x303   : > { %v4407_v59 = vadd.f32 %v2871_v11, %v607_v32  ;;  %2823 = vmatmul.bf16.gmra.mxu2 %v9136_v29  ;;  %v9138_v11 = vld [vmem:[#allocation39_spill] sm:$0xff] }
 0x304   : > { %2912 = vmatmul.bf16.gmra.mxu3 %v9137_v5  ;;  %v6124_v5 = vld [vmem:[%s7334_s12 + $0x2f0] sm:$0xf0] }
 0x305   : > { %4599 = vst [vmem:[#allocation2 + $0x268] sm:$0xff] %v4407_v59 }
 0x306   : > { %v2784_v0 = vpop.f32.mrf.mxu2  ;;  %v2608_v6 = vpop.f32.mrf.mxu0 }
 0x307   : > { %v2785_v63 = vadd.f32 %v2784_v0, %v2696_v19  ;;  %v2873_v12 = vpop.f32.mrf.mxu3  ;;  %v2697_v30 = vpop.f32.mrf.mxu1  ;;  %v9139_v0 = vld [vmem:[#allocation40_spill] sm:$0xff] }
 0x308   : > { %v2698_v20 = vadd.f32 %v2697_v30, %v2608_v6  ;;  %v6731_v6 = vld [vmem:[%s7334_s12 + $0x45c] sm:$0xf] }
 0x309   : > { %v2874_v31 = vadd.f32 %v2873_v12, %v2785_v63  ;;  %v9140_v63 = vld [vmem:[#allocation41_spill] sm:$0xff]  ;;  %v9141_v12 = vld [vmem:[#allocation42_spill] sm:$0xff] }
 0x30b   : > { %v4413_v39 = vadd.f32 %v2874_v31, %v613_v37  ;;  %v6316_v37 = vld [vmem:[%s7334_s12 + $0x470] sm:$0xf0] }
 0x30c   : > { %v6319_v31 = vor.u32 %v6731_v6, %v6316_v37 }
 0x30d   : > { %4605 = vst [vmem:[#allocation2 + $0x308] sm:$0xff] %v4413_v39  ;;  %v6779_v39 = vld [vmem:[%s7334_s12 + $0x5dc] sm:$0xf] }
 0x30e   : > { %v2786_v32 = vpop.f32.mrf.mxu2  ;;  %v2611_v23 = vpop.f32.mrf.mxu0  ;;  %3462 = vmatpush.bf16.msrb.mxu2 %v6319_v31 }
 0x30f   : > { %v2787_v9 = vadd.f32 %v2786_v32, %v2698_v20  ;;  %v2875_v40 = vpop.f32.mrf.mxu3  ;;  %v2700_v8 = vpop.f32.mrf.mxu1  ;;  %v6508_v20 = vld [vmem:[%s7334_s12 + $0x5f0] sm:$0xf0] }
 0x310   : > { %v2701_v19 = vadd.f32 %v2700_v8, %v2611_v23  ;;  %v6511_v23 = vor.u32 %v6779_v39, %v6508_v20 }
 0x311   : > { %v2876_v61 = vadd.f32 %v2875_v40, %v2787_v9  ;;  %2650 = vmatmul.bf16.gmra.mxu0 %v9138_v11  ;;  %v6683_v11 = vld [vmem:[%s7334_s12 + $0x2dc] sm:$0xf] }
 0x312   : > { %2739 = vmatmul.bf16.gmra.mxu1 %v9139_v0  ;;  %3551 = vmatpush.bf16.msrb.mxu3 %v6511_v23  ;;  %v5932_v0 = vld [vmem:[%s7334_s12 + $0x170] sm:$0xf0]  ;;  %v6127_v7 = vor.u32 %v6683_v11, %v6124_v5 }
 0x313   : > { %v4419_v59 = vadd.f32 %v2876_v61, %v619_v62  ;;  %2828 = vmatmul.bf16.gmra.mxu2 %v9140_v63  ;;  %v625_v62 = vld [vmem:[#allocation2 + $0x310] sm:$0xff]  ;;  %v6635_v63 = vld [vmem:[%s7334_s12 + $0x15c] sm:$0xf] }
 0x314   : > { %2917 = vmatmul.bf16.gmra.mxu3 %v9141_v12  ;;  %v5935_v37 = vor.u32 %v6635_v63, %v5932_v0  ;;  %3373 = vmatpush.bf16.msrb.mxu1 %v6127_v7  ;;  %v637_v11 = vld [vmem:[#allocation2 + $0x530] sm:$0xff] }
 0x315   : > { %4611 = vst [vmem:[#allocation2 + $0xf0] sm:$0xff] %v4419_v59 }
 0x316   : > { %v2789_v30 = vpop.f32.mrf.mxu2  ;;  %v2613_v40 = vpop.f32.mrf.mxu0  ;;  %3284 = vmatpush.bf16.msrb.mxu0 %v5935_v37 }
 0x317   : > { %v2790_v32 = vadd.f32 %v2789_v30, %v2701_v19  ;;  %v2878_v9 = vpop.f32.mrf.mxu3  ;;  %v2702_v8 = vpop.f32.mrf.mxu1 }
 0x318   : > { %v2703_v12 = vadd.f32 %v2702_v8, %v2613_v40 }
 0x319   : > { %v2879_v61 = vadd.f32 %v2878_v9, %v2790_v32 }
 0x31b   : > { %v4425_v59 = vadd.f32 %v2879_v61, %v625_v62  ;;  %v643_v61 = vld [vmem:[#allocation2 + $0x4f0] sm:$0xff] }
 0x31d   : > { %4617 = vst [vmem:[#allocation2 + $0x310] sm:$0xff] %v4425_v59 }
 0x31e   : > { %v2791_v6 = vpop.f32.mrf.mxu2  ;;  %v2616_v29 = vpop.f32.mrf.mxu0 }
 0x31f   : > { %v2792_v19 = vadd.f32 %v2791_v6, %v2703_v12  ;;  %v2880_v30 = vpop.f32.mrf.mxu3  ;;  %v2705_v39 = vpop.f32.mrf.mxu1 }
 0x320   : > { %v2706_v32 = vadd.f32 %v2705_v39, %v2616_v29  ;;  %v6292_v39 = vld [vmem:[%s7334_s12 + $0x440] sm:$0xf0] }
 0x321   : > { %v2881_v20 = vadd.f32 %v2880_v30, %v2792_v19  ;;  %2655 = vmatmul.bf16.gmra.mxu0 %v7986_v10  ;;  %v6725_v30 = vld [vmem:[%s7334_s12 + $0x42c] sm:$0xf] }
 0x322   : > { %2744 = vmatmul.bf16.gmra.mxu1 %v7990_v38 }
 0x323   : > { %v4431_v31 = vadd.f32 %v2881_v20, %v631_v17  ;;  %2833 = vmatmul.bf16.gmra.mxu2 %v7992_v42 }
 0x324   : > { %2922 = vmatmul.bf16.gmra.mxu3 %v7994_v60 }
 0x325   : > { %4623 = vst [vmem:[#allocation2 + $0x550] sm:$0xff] %v4431_v31  ;;  %v6295_v31 = vor.u32 %v6725_v30, %v6292_v39 }
 0x326   : > { %v2794_v0 = vpop.f32.mrf.mxu2  ;;  %v2618_v5 = vpop.f32.mrf.mxu0 }
 0x327   : > { %v2795_v63 = vadd.f32 %v2794_v0, %v2706_v32  ;;  %v2883_v12 = vpop.f32.mrf.mxu3  ;;  %v2707_v9 = vpop.f32.mrf.mxu1  ;;  %v6773_v32 = vld [vmem:[%s7334_s12 + $0x5ac] sm:$0xf]  ;;  %v6484_v0 = vld [vmem:[%s7334_s12 + $0x5c0] sm:$0xf0]  ;;  %3463 = vmatpush.bf16.msrb.mxu2 %v6295_v31 }
 0x328   : > { %v2708_v7 = vadd.f32 %v2707_v9, %v2618_v5  ;;  %v649_v9 = vld [vmem:[#allocation2 + $0x498] sm:$0xff] }
 0x329   : > { %v2884_v40 = vadd.f32 %v2883_v12, %v2795_v63 }
 0x32b   : > { %v4437_v23 = vadd.f32 %v2884_v40, %v637_v11  ;;  %v6487_v11 = vor.u32 %v6773_v32, %v6484_v0 }
 0x32d   : > { %4629 = vst [vmem:[#allocation2 + $0x530] sm:$0xff] %v4437_v23  ;;  %3552 = vmatpush.bf16.msrb.mxu3 %v6487_v11 }
 0x32e   : > { %v2796_v17 = vpop.f32.mrf.mxu2  ;;  %v2621_v8 = vpop.f32.mrf.mxu0 }
 0x32f   : > { %v2797_v29 = vadd.f32 %v2796_v17, %v2708_v7  ;;  %v2885_v62 = vpop.f32.mrf.mxu3  ;;  %v2710_v59 = vpop.f32.mrf.mxu1 }
 0x330   : > { %v2711_v19 = vadd.f32 %v2710_v59, %v2621_v8  ;;  %v6677_v59 = vld [vmem:[%s7334_s12 + $0x2ac] sm:$0xf] }
 0x331   : > { %v2886_v6 = vadd.f32 %v2885_v62, %v2797_v29  ;;  %2936 = vmatmul.bf16.vlgmr.msra.gmra.mxu0 %v7622_v48  ;;  %v6629_v29 = vld [vmem:[%s7334_s12 + $0x12c] sm:$0xf]  ;;  %v5908_v62 = vld [vmem:[%s7334_s12 + $0x140] sm:$0xf0] }
 0x332   : > { %3025 = vmatmul.bf16.vlgmr.msra.gmra.mxu1 %v7626_v52 }
 0x333   : > { %v4443_v37 = vadd.f32 %v2886_v6, %v643_v61  ;;  %3114 = vmatmul.bf16.vlgmr.msra.gmra.mxu2 %v7628_v53  ;;  %v5911_v61 = vor.u32 %v6629_v29, %v5908_v62  ;;  %v6100_v6 = vld [vmem:[%s7334_s12 + $0x2c0] sm:$0xf0] }
 0x334   : > { %3203 = vmatmul.bf16.vlgmr.msra.gmra.mxu3 %v7630_v54  ;;  %v6103_v39 = vor.u32 %v6677_v59, %v6100_v6  ;;  %v667_v6 = vld [vmem:[#allocation2 + $0x4a8] sm:$0xff] }
 0x335   : > { %4635 = vst [vmem:[#allocation2 + $0x4f0] sm:$0xff] %v4443_v37  ;;  %3285 = vmatpush.bf16.msrb.mxu0 %v5911_v61 }
 0x336   : > { %v2799_v20 = vpop.f32.mrf.mxu2  ;;  %v2623_v5 = vpop.f32.mrf.mxu0  ;;  %3374 = vmatpush.bf16.msrb.mxu1 %v6103_v39 }
 0x337   : > { %v2800_v63 = vadd.f32 %v2799_v20, %v2711_v19  ;;  %v2888_v12 = vpop.f32.mrf.mxu3  ;;  %v2712_v40 = vpop.f32.mrf.mxu1  ;;  %v655_v20 = vld [vmem:[#allocation2 + $0x538] sm:$0xff] }
 0x338   : > { %v2713_v17 = vadd.f32 %v2712_v40, %v2623_v5  ;;  %v661_v40 = vld [vmem:[#allocation2 + $0xc0] sm:$0xff] }
 0x339   : > { %v2889_v23 = vadd.f32 %v2888_v12, %v2800_v63 }
 0x33b   : > { %v4449_v7 = vadd.f32 %v2889_v23, %v649_v9 }
 0x33d   : > { %4641 = vst [vmem:[#allocation2 + $0x498] sm:$0xff] %v4449_v7 }
 0x33e   : > { %v2801_v8 = vpop.f32.mrf.mxu2  ;;  %v2626_v30 = vpop.f32.mrf.mxu0 }
 0x33f   : > { %v2802_v37 = vadd.f32 %v2801_v8, %v2713_v17  ;;  %v2890_v19 = vpop.f32.mrf.mxu3  ;;  %v2715_v32 = vpop.f32.mrf.mxu1 }
 0x340   : > { %v2716_v63 = vadd.f32 %v2715_v32, %v2626_v30  ;;  %v6268_v32 = vld [vmem:[%s7334_s12 + $0x410] sm:$0xf0] }
 0x341   : > { %v2891_v0 = vadd.f32 %v2890_v19, %v2802_v37  ;;  %2941 = vmatmul.bf16.gmra.mxu0 %v7652_v13 }
 0x342   : > { %3030 = vmatmul.bf16.gmra.mxu1 %v7654_v14 }
 0x343   : > { %v4455_v31 = vadd.f32 %v2891_v0, %v655_v20  ;;  %3119 = vmatmul.bf16.gmra.mxu2 %v7656_v15  ;;  %v6719_v20 = vld [vmem:[%s7334_s12 + $0x3fc] sm:$0xf] }
 0x344   : > { %3208 = vmatmul.bf16.gmra.mxu3 %v7658_v16 }
 0x345   : > { %4647 = vst [vmem:[#allocation2 + $0x538] sm:$0xff] %v4455_v31  ;;  %v6271_v31 = vor.u32 %v6719_v20, %v6268_v32 }
 0x346   : > { %v2804_v12 = vpop.f32.mrf.mxu2  ;;  %v2628_v9 = vpop.f32.mrf.mxu0 }
 0x347   : > { %v2805_v5 = vadd.f32 %v2804_v12, %v2716_v63  ;;  %v2893_v11 = vpop.f32.mrf.mxu3  ;;  %v2717_v23 = vpop.f32.mrf.mxu1  ;;  %v6767_v63 = vld [vmem:[%s7334_s12 + $0x57c] sm:$0xf]  ;;  %v6460_v12 = vld [vmem:[%s7334_s12 + $0x590] sm:$0xf0]  ;;  %3464 = vmatpush.bf16.msrb.mxu2 %v6271_v31 }
 0x348   : > { %v2718_v29 = vadd.f32 %v2717_v23, %v2628_v9  ;;  %v673_v23 = vld [vmem:[#allocation2 + $0x88] sm:$0xff] }
 0x349   : > { %v2894_v7 = vadd.f32 %v2893_v11, %v2805_v5 }
 0x34b   : > { %v4461_v17 = vadd.f32 %v2894_v7, %v661_v40  ;;  %v6463_v40 = vor.u32 %v6767_v63, %v6460_v12 }
 0x34d   : > { %4653 = vst [vmem:[#allocation2 + $0xc0] sm:$0xff] %v4461_v17  ;;  %3553 = vmatpush.bf16.msrb.mxu3 %v6463_v40 }
 0x34e   : > { %v2806_v62 = vpop.f32.mrf.mxu2  ;;  %v2631_v59 = vpop.f32.mrf.mxu0 }
 0x34f   : > { %v2807_v8 = vadd.f32 %v2806_v62, %v2718_v29  ;;  %v2895_v61 = vpop.f32.mrf.mxu3  ;;  %v2720_v37 = vpop.f32.mrf.mxu1 }
 0x350   : > { %v2721_v39 = vadd.f32 %v2720_v37, %v2631_v59  ;;  %v6671_v37 = vld [vmem:[%s7334_s12 + $0x27c] sm:$0xf] }
 0x351   : > { %v2896_v19 = vadd.f32 %v2895_v61, %v2807_v8  ;;  %2946 = vmatmul.bf16.gmra.mxu0 %v7672_v25  ;;  %v6623_v8 = vld [vmem:[%s7334_s12 + $0xfc] sm:$0xf]  ;;  %v5884_v61 = vld [vmem:[%s7334_s12 + $0x110] sm:$0xf0] }
 0x352   : > { %3035 = vmatmul.bf16.gmra.mxu1 %v7674_v26 }
 0x353   : > { %v4467_v30 = vadd.f32 %v2896_v19, %v667_v6  ;;  %3124 = vmatmul.bf16.gmra.mxu2 %v7676_v27  ;;  %v5887_v6 = vor.u32 %v6623_v8, %v5884_v61  ;;  %v6076_v19 = vld [vmem:[%s7334_s12 + $0x290] sm:$0xf0] }
 0x354   : > { %3213 = vmatmul.bf16.gmra.mxu3 %v7678_v28  ;;  %v6079_v32 = vor.u32 %v6671_v37, %v6076_v19  ;;  %v691_v19 = vld [vmem:[#allocation2 + $0x508] sm:$0xff] }
 0x355   : > { %4659 = vst [vmem:[#allocation2 + $0x4a8] sm:$0xff] %v4467_v30  ;;  %3286 = vmatpush.bf16.msrb.mxu0 %v5887_v6 }
 0x356   : > { %v2809_v0 = vpop.f32.mrf.mxu2  ;;  %v2633_v9 = vpop.f32.mrf.mxu0  ;;  %3375 = vmatpush.bf16.msrb.mxu1 %v6079_v32 }
 0x357   : > { %v2810_v5 = vadd.f32 %v2809_v0, %v2721_v39  ;;  %v2898_v11 = vpop.f32.mrf.mxu3  ;;  %v2722_v7 = vpop.f32.mrf.mxu1  ;;  %v679_v0 = vld [vmem:[#allocation2 + $0xa8] sm:$0xff] }
 0x358   : > { %v2723_v62 = vadd.f32 %v2722_v7, %v2633_v9  ;;  %v685_v7 = vld [vmem:[#allocation2 + $0xd0] sm:$0xff] }
 0x359   : > { %v2899_v17 = vadd.f32 %v2898_v11, %v2810_v5 }
 0x35b   : > { %v4473_v29 = vadd.f32 %v2899_v17, %v673_v23 }
 0x35d   : > { %4665 = vst [vmem:[#allocation2 + $0x88] sm:$0xff] %v4473_v29 }
 0x35e   : > { %v2811_v59 = vpop.f32.mrf.mxu2  ;;  %v2636_v20 = vpop.f32.mrf.mxu0 }
 0x35f   : > { %v2812_v30 = vadd.f32 %v2811_v59, %v2723_v62  ;;  %v2900_v39 = vpop.f32.mrf.mxu3  ;;  %v2725_v63 = vpop.f32.mrf.mxu1 }
 0x360   : > { %v2726_v5 = vadd.f32 %v2725_v63, %v2636_v20  ;;  %v6244_v63 = vld [vmem:[%s7334_s12 + $0x3e0] sm:$0xf0] }
 0x361   : > { %v2901_v12 = vadd.f32 %v2900_v39, %v2812_v30  ;;  %2951 = vmatmul.bf16.gmra.mxu0 %v7700_v50 }
 0x362   : > { %3040 = vmatmul.bf16.gmra.mxu1 %v7702_v51 }
 0x363   : > { %v4479_v31 = vadd.f32 %v2901_v12, %v679_v0  ;;  %3129 = vmatmul.bf16.gmra.mxu2 %v7704_v55  ;;  %v6713_v0 = vld [vmem:[%s7334_s12 + $0x3cc] sm:$0xf] }
 0x364   : > { %3218 = vmatmul.bf16.gmra.mxu3 %v7706_v56 }
 0x365   : > { %4671 = vst [vmem:[#allocation2 + $0xa8] sm:$0xff] %v4479_v31  ;;  %v6247_v31 = vor.u32 %v6713_v0, %v6244_v63 }
 0x366   : > { %v2814_v11 = vpop.f32.mrf.mxu2  ;;  %v2638_v23 = vpop.f32.mrf.mxu0 }
 0x367   : > { %v2815_v9 = vadd.f32 %v2814_v11, %v2726_v5  ;;  %v2903_v40 = vpop.f32.mrf.mxu3  ;;  %v2727_v17 = vpop.f32.mrf.mxu1  ;;  %v6761_v5 = vld [vmem:[%s7334_s12 + $0x54c] sm:$0xf]  ;;  %v6436_v11 = vld [vmem:[%s7334_s12 + $0x560] sm:$0xf0]  ;;  %3465 = vmatpush.bf16.msrb.mxu2 %v6247_v31 }
 0x368   : > { %v2728_v8 = vadd.f32 %v2727_v17, %v2638_v23  ;;  %v697_v17 = vld [vmem:[#allocation2 + $0x10] sm:$0xff] }
 0x369   : > { %v2904_v29 = vadd.f32 %v2903_v40, %v2815_v9 }
 0x36b   : > { %v4485_v62 = vadd.f32 %v2904_v29, %v685_v7  ;;  %v6439_v7 = vor.u32 %v6761_v5, %v6436_v11 }
 0x36d   : > { %4677 = vst [vmem:[#allocation2 + $0xd0] sm:$0xff] %v4485_v62  ;;  %3554 = vmatpush.bf16.msrb.mxu3 %v6439_v7 }
 0x36e   : > { %v2816_v61 = vpop.f32.mrf.mxu2  ;;  %v2641_v37 = vpop.f32.mrf.mxu0 }
 0x36f   : > { %v2817_v59 = vadd.f32 %v2816_v61, %v2728_v8  ;;  %v2905_v6 = vpop.f32.mrf.mxu3  ;;  %v2730_v30 = vpop.f32.mrf.mxu1 }
 0x370   : > { %v2731_v32 = vadd.f32 %v2730_v30, %v2641_v37  ;;  %v6665_v30 = vld [vmem:[%s7334_s12 + $0x24c] sm:$0xf] }
 0x371   : > { %v2906_v39 = vadd.f32 %v2905_v6, %v2817_v59  ;;  %2956 = vmatmul.bf16.gmra.mxu0 %v7720_v1  ;;  %v6617_v59 = vld [vmem:[%s7334_s12 + $0xcc] sm:$0xf]  ;;  %v5860_v6 = vld [vmem:[%s7334_s12 + $0xe0] sm:$0xf0] }
 0x372   : > { %3045 = vmatmul.bf16.gmra.mxu1 %v7722_v2 }
 0x373   : > { %v4491_v20 = vadd.f32 %v2906_v39, %v691_v19  ;;  %3134 = vmatmul.bf16.gmra.mxu2 %v7724_v3  ;;  %v5863_v19 = vor.u32 %v6617_v59, %v5860_v6  ;;  %v6052_v39 = vld [vmem:[%s7334_s12 + $0x260] sm:$0xf0] }
 0x374   : > { %3223 = vmatmul.bf16.gmra.mxu3 %v7726_v4  ;;  %v6055_v63 = vor.u32 %v6665_v30, %v6052_v39  ;;  %v715_v39 = vld [vmem:[#allocation2 + $0x320] sm:$0xff] }
 0x375   : > { %4683 = vst [vmem:[#allocation2 + $0x508] sm:$0xff] %v4491_v20  ;;  %3287 = vmatpush.bf16.msrb.mxu0 %v5863_v19 }
 0x376   : > { %v2819_v12 = vpop.f32.mrf.mxu2  ;;  %v2643_v23 = vpop.f32.mrf.mxu0  ;;  %3376 = vmatpush.bf16.msrb.mxu1 %v6055_v63 }
 0x377   : > { %v2820_v9 = vadd.f32 %v2819_v12, %v2731_v32  ;;  %v2908_v40 = vpop.f32.mrf.mxu3  ;;  %v2732_v29 = vpop.f32.mrf.mxu1  ;;  %v703_v12 = vld [vmem:[#allocation2 + $0x48] sm:$0xff] }
 0x378   : > { %v2733_v61 = vadd.f32 %v2732_v29, %v2643_v23  ;;  %v709_v29 = vld [vmem:[#allocation2 + $0x170] sm:$0xff] }
 0x379   : > { %v2909_v62 = vadd.f32 %v2908_v40, %v2820_v9 }
 0x37b   : > { %v4497_v8 = vadd.f32 %v2909_v62, %v697_v17 }
 0x37d   : > { %4689 = vst [vmem:[#allocation2 + $0x10] sm:$0xff] %v4497_v8 }
 0x37e   : > { %v2821_v37 = vpop.f32.mrf.mxu2  ;;  %v2646_v0 = vpop.f32.mrf.mxu0 }
 0x37f   : > { %v2822_v20 = vadd.f32 %v2821_v37, %v2733_v61  ;;  %v2910_v32 = vpop.f32.mrf.mxu3  ;;  %v2735_v5 = vpop.f32.mrf.mxu1 }
 0x380   : > { %v2736_v9 = vadd.f32 %v2735_v5, %v2646_v0  ;;  %v6220_v5 = vld [vmem:[%s7334_s12 + $0x3b0] sm:$0xf0] }
 0x381   : > { %v2911_v11 = vadd.f32 %v2910_v32, %v2822_v20  ;;  %2961 = vmatmul.bf16.gmra.mxu0 %v7748_v33 }
 0x382   : > { %3050 = vmatmul.bf16.gmra.mxu1 %v7750_v34 }
 0x383   : > { %v4503_v31 = vadd.f32 %v2911_v11, %v703_v12  ;;  %3139 = vmatmul.bf16.gmra.mxu2 %v7752_v35  ;;  %v6707_v12 = vld [vmem:[%s7334_s12 + $0x39c] sm:$0xf] }
 0x384   : > { %3228 = vmatmul.bf16.gmra.mxu3 %v7754_v36 }
 0x385   : > { %4695 = vst [vmem:[#allocation2 + $0x48] sm:$0xff] %v4503_v31  ;;  %v6223_v31 = vor.u32 %v6707_v12, %v6220_v5 }
 0x386   : > { %v2824_v40 = vpop.f32.mrf.mxu2  ;;  %v2648_v17 = vpop.f32.mrf.mxu0 }
 0x387   : > { %v2825_v23 = vadd.f32 %v2824_v40, %v2736_v9  ;;  %v2913_v7 = vpop.f32.mrf.mxu3  ;;  %v2737_v62 = vpop.f32.mrf.mxu1  ;;  %v6755_v9 = vld [vmem:[%s7334_s12 + $0x51c] sm:$0xf]  ;;  %v6412_v40 = vld [vmem:[%s7334_s12 + $0x530] sm:$0xf0]  ;;  %3466 = vmatpush.bf16.msrb.mxu2 %v6223_v31 }
 0x388   : > { %v2738_v59 = vadd.f32 %v2737_v62, %v2648_v17  ;;  %v721_v62 = vld [vmem:[#allocation2 + $0xa0] sm:$0xff] }
 0x389   : > { %v2914_v8 = vadd.f32 %v2913_v7, %v2825_v23 }
 0x38b   : > { %v4509_v61 = vadd.f32 %v2914_v8, %v709_v29  ;;  %v6415_v29 = vor.u32 %v6755_v9, %v6412_v40 }
 0x38d   : > { %4701 = vst [vmem:[#allocation2 + $0x170] sm:$0xff] %v4509_v61  ;;  %3555 = vmatpush.bf16.msrb.mxu3 %v6415_v29 }
 0x38e   : > { %v2826_v6 = vpop.f32.mrf.mxu2  ;;  %v2651_v30 = vpop.f32.mrf.mxu0 }
 0x38f   : > { %v2827_v37 = vadd.f32 %v2826_v6, %v2738_v59  ;;  %v2915_v19 = vpop.f32.mrf.mxu3  ;;  %v2740_v20 = vpop.f32.mrf.mxu1 }
 0x390   : > { %v2741_v63 = vadd.f32 %v2740_v20, %v2651_v30  ;;  %v6659_v20 = vld [vmem:[%s7334_s12 + $0x21c] sm:$0xf] }
 0x391   : > { %v2916_v32 = vadd.f32 %v2915_v19, %v2827_v37  ;;  %2966 = vmatmul.bf16.gmra.mxu0 %v7768_v45  ;;  %v6611_v37 = vld [vmem:[%s7334_s12 + $0x9c] sm:$0xf]  ;;  %v5836_v19 = vld [vmem:[%s7334_s12 + $0xb0] sm:$0xf0] }
 0x392   : > { %3055 = vmatmul.bf16.gmra.mxu1 %v7770_v46 }
 0x393   : > { %v4515_v0 = vadd.f32 %v2916_v32, %v715_v39  ;;  %3144 = vmatmul.bf16.gmra.mxu2 %v7772_v47  ;;  %v5839_v39 = vor.u32 %v6611_v37, %v5836_v19  ;;  %v6028_v32 = vld [vmem:[%s7334_s12 + $0x230] sm:$0xf0] }
 0x394   : > { %3233 = vmatmul.bf16.gmra.mxu3 %v7774_v49  ;;  %v6031_v5 = vor.u32 %v6659_v20, %v6028_v32  ;;  %v739_v32 = vld [vmem:[#allocation2 + $0x3f0] sm:$0xff] }
 0x395   : > { %4707 = vst [vmem:[#allocation2 + $0x320] sm:$0xff] %v4515_v0  ;;  %3288 = vmatpush.bf16.msrb.mxu0 %v5839_v39 }
 0x396   : > { %v2829_v11 = vpop.f32.mrf.mxu2  ;;  %v2653_v17 = vpop.f32.mrf.mxu0  ;;  %3377 = vmatpush.bf16.msrb.mxu1 %v6031_v5 }
 0x397   : > { %v2830_v23 = vadd.f32 %v2829_v11, %v2741_v63  ;;  %v2918_v7 = vpop.f32.mrf.mxu3  ;;  %v2742_v8 = vpop.f32.mrf.mxu1  ;;  %v727_v11 = vld [vmem:[#allocation2 + $0x1b8] sm:$0xff] }
 0x398   : > { %v2743_v6 = vadd.f32 %v2742_v8, %v2653_v17  ;;  %v733_v8 = vld [vmem:[#allocation2 + $0x448] sm:$0xff] }
 0x399   : > { %v2919_v61 = vadd.f32 %v2918_v7, %v2830_v23 }
 0x39b   : > { %v4521_v59 = vadd.f32 %v2919_v61, %v721_v62 }
 0x39d   : > { %4713 = vst [vmem:[#allocation2 + $0xa0] sm:$0xff] %v4521_v59 }
 0x39e   : > { %v2831_v30 = vpop.f32.mrf.mxu2  ;;  %v2656_v12 = vpop.f32.mrf.mxu0 }
 0x39f   : > { %v2832_v0 = vadd.f32 %v2831_v30, %v2743_v6  ;;  %v2920_v63 = vpop.f32.mrf.mxu3  ;;  %v2745_v9 = vpop.f32.mrf.mxu1 }
 0x3a0   : > { %v2746_v23 = vadd.f32 %v2745_v9, %v2656_v12  ;;  %v6196_v9 = vld [vmem:[%s7334_s12 + $0x380] sm:$0xf0] }
 0x3a1   : > { %v2921_v40 = vadd.f32 %v2920_v63, %v2832_v0  ;;  %2971 = vmatmul.bf16.gmra.mxu0 %v7795_v18 }
 0x3a2   : > { %3060 = vmatmul.bf16.gmra.mxu1 %v7798_v21 }
 0x3a3   : > { %v4527_v31 = vadd.f32 %v2921_v40, %v727_v11  ;;  %3149 = vmatmul.bf16.gmra.mxu2 %v7800_v22  ;;  %v6701_v11 = vld [vmem:[%s7334_s12 + $0x36c] sm:$0xf] }
 0x3a4   : > { %3238 = vmatmul.bf16.gmra.mxu3 %v7802_v24 }
 0x3a5   : > { %4719 = vst [vmem:[#allocation2 + $0x1b8] sm:$0xff] %v4527_v31  ;;  %v6199_v31 = vor.u32 %v6701_v11, %v6196_v9 }
 0x3a6   : > { %v2834_v7 = vpop.f32.mrf.mxu2  ;;  %v2658_v62 = vpop.f32.mrf.mxu0 }
 0x3a7   : > { %v2835_v17 = vadd.f32 %v2834_v7, %v2746_v23  ;;  %v2923_v29 = vpop.f32.mrf.mxu3  ;;  %v2747_v61 = vpop.f32.mrf.mxu1  ;;  %v6749_v23 = vld [vmem:[%s7334_s12 + $0x4ec] sm:$0xf]  ;;  %v6388_v7 = vld [vmem:[%s7334_s12 + $0x500] sm:$0xf0]  ;;  %3467 = vmatpush.bf16.msrb.mxu2 %v6199_v31 }
 0x3a8   : > { %v2748_v37 = vadd.f32 %v2747_v61, %v2658_v62  ;;  %v554_v61 = vld [vmem:[#allocation2 + $0x4d8] sm:$0xff] }
 0x3a9   : > { %v2924_v59 = vadd.f32 %v2923_v29, %v2835_v17 }
 0x3ab   : > { %v4533_v6 = vadd.f32 %v2924_v59, %v733_v8  ;;  %v6391_v8 = vor.u32 %v6749_v23, %v6388_v7 }
 0x3ad   : > { %4725 = vst [vmem:[#allocation2 + $0x448] sm:$0xff] %v4533_v6  ;;  %3556 = vmatpush.bf16.msrb.mxu3 %v6391_v8  ;;  %v9144_v8 = vld [vmem:[#allocation22_spill] sm:$0xff] }
 0x3ae   : > { %v2836_v19 = vpop.f32.mrf.mxu2  ;;  %v2937_v20 = vpop.f32.mrf.mxu0 }
 0x3af   : > { %v2837_v30 = vadd.f32 %v2836_v19, %v2748_v37  ;;  %v2925_v39 = vpop.f32.mrf.mxu3  ;;  %v3026_v0 = vpop.f32.mrf.mxu1 }
 0x3b0   : > { %v3027_v5 = vadd.f32 %v3026_v0, %v2937_v20  ;;  %v6653_v0 = vld [vmem:[%s7334_s12 + $0x1ec] sm:$0xf] }
 0x3b1   : > { %v2926_v63 = vadd.f32 %v2925_v39, %v2837_v30  ;;  %2976 = vmatmul.bf16.gmra.mxu0 %v7816_v41  ;;  %v6605_v30 = vld [vmem:[%s7334_s12 + $0x6c] sm:$0xf]  ;;  %v5812_v39 = vld [vmem:[%s7334_s12 + $0x80] sm:$0xf0] }
 0x3b2   : > { %3065 = vmatmul.bf16.gmra.mxu1 %v7818_v43 }
 0x3b3   : > { %v4539_v12 = vadd.f32 %v2926_v63, %v739_v32  ;;  %3154 = vmatmul.bf16.gmra.mxu2 %v7820_v44  ;;  %v5815_v32 = vor.u32 %v6605_v30, %v5812_v39  ;;  %v6004_v63 = vld [vmem:[%s7334_s12 + $0x200] sm:$0xf0] }
 0x3b4   : > { %3243 = vmatmul.bf16.gmra.mxu3 %v7822_v58  ;;  %v6007_v9 = vor.u32 %v6653_v0, %v6004_v63 }
 0x3b5   : > { %4731 = vst [vmem:[#allocation2 + $0x3f0] sm:$0xff] %v4539_v12  ;;  %3289 = vmatpush.bf16.msrb.mxu0 %v5815_v32 }
 0x3b6   : > { %v3115_v40 = vpop.f32.mrf.mxu2  ;;  %v2939_v62 = vpop.f32.mrf.mxu0  ;;  %3378 = vmatpush.bf16.msrb.mxu1 %v6007_v9 }
 0x3b7   : > { %v3116_v17 = vadd.f32 %v3115_v40, %v3027_v5  ;;  %v3204_v29 = vpop.f32.mrf.mxu3  ;;  %v3028_v59 = vpop.f32.mrf.mxu1  ;;  %v560_v40 = vld [vmem:[#allocation2 + $0x108] sm:$0xff] }
 0x3b8   : > { %v3029_v19 = vadd.f32 %v3028_v59, %v2939_v62  ;;  %v9143_v62 = vld [vmem:[#allocation21_spill] sm:$0xff] }
 0x3b9   : > { %v3205_v6 = vadd.f32 %v3204_v29, %v3116_v17  ;;  %v9142_v29 = vld [vmem:[#allocation20_spill] sm:$0xff] }
 0x3bb   : > { %v4354_v37 = vadd.f32 %v3205_v6, %v554_v61 }
 0x3bd   : > { %4546 = vst [vmem:[#allocation2 + $0x4d8] sm:$0xff] %v4354_v37 }
 0x3be   : > { %v3117_v20 = vpop.f32.mrf.mxu2  ;;  %v2942_v11 = vpop.f32.mrf.mxu0 }
 0x3bf   : > { %v3118_v12 = vadd.f32 %v3117_v20, %v3029_v19  ;;  %v3206_v5 = vpop.f32.mrf.mxu3  ;;  %v3031_v23 = vpop.f32.mrf.mxu1  ;;  %v566_v19 = vld [vmem:[#allocation2 + $0x58] sm:$0xff] }
 0x3c0   : > { %v3032_v17 = vadd.f32 %v3031_v23, %v2942_v11  ;;  %v572_v11 = vld [vmem:[#allocation2 + $0x330] sm:$0xff]  ;;  %v9145_v23 = vld [vmem:[#allocation23_spill] sm:$0xff] }
 0x3c1   : > { %v3207_v7 = vadd.f32 %v3206_v5, %v3118_v12  ;;  %2981 = vmatmul.bf16.gmra.mxu0 %v7842_v57 }
 0x3c2   : > { %3070 = vmatmul.bf16.gmra.mxu1 %v9142_v29  ;;  %v584_v29 = vld [vmem:[#allocation2 + $0x98] sm:$0xff] }
 0x3c3   : > { %v4360_v31 = vadd.f32 %v3207_v7, %v560_v40  ;;  %3159 = vmatmul.bf16.gmra.mxu2 %v9143_v62 }
 0x3c4   : > { %3248 = vmatmul.bf16.gmra.mxu3 %v9144_v8 }
 0x3c5   : > { %4552 = vst [vmem:[#allocation2 + $0x108] sm:$0xff] %v4360_v31 }
 0x3c6   : > { %v3120_v61 = vpop.f32.mrf.mxu2  ;;  %v2944_v37 = vpop.f32.mrf.mxu0 }
 0x3c7   : > { %v3121_v59 = vadd.f32 %v3120_v61, %v3032_v17  ;;  %v3209_v6 = vpop.f32.mrf.mxu3  ;;  %v3033_v30 = vpop.f32.mrf.mxu1  ;;  %v9146_v17 = vld [vmem:[#allocation24_spill] sm:$0xff]  ;;  %v9147_v61 = vld [vmem:[#allocation25_spill] sm:$0xff] }
 0x3c8   : > { %v3034_v32 = vadd.f32 %v3033_v30, %v2944_v37  ;;  %v6172_v37 = vld [vmem:[%s7334_s12 + $0x350] sm:$0xf0] }
 0x3c9   : > { %v3210_v39 = vadd.f32 %v3209_v6, %v3121_v59  ;;  %v9148_v59 = vld [vmem:[#allocation26_spill] sm:$0xff] }
 0x3ca   : > { %v6695_v6 = vld [vmem:[%s7334_s12 + $0x33c] sm:$0xf] }
 0x3cb   : > { %v4366_v20 = vadd.f32 %v3210_v39, %v566_v19  ;;  %v6175_v30 = vor.u32 %v6695_v6, %v6172_v37  ;;  %v6743_v39 = vld [vmem:[%s7334_s12 + $0x4bc] sm:$0xf] }
 0x3cd   : > { %4558 = vst [vmem:[#allocation2 + $0x58] sm:$0xff] %v4366_v20  ;;  %v6364_v20 = vld [vmem:[%s7334_s12 + $0x4d0] sm:$0xf0]  ;;  %3468 = vmatpush.bf16.msrb.mxu2 %v6175_v30  ;;  %v9149_v30 = vld [vmem:[#allocation27_spill] sm:$0xff] }
 0x3ce   : > { %v3122_v0 = vpop.f32.mrf.mxu2  ;;  %v2947_v5 = vpop.f32.mrf.mxu0 }
 0x3cf   : > { %v3123_v63 = vadd.f32 %v3122_v0, %v3034_v32  ;;  %v3211_v12 = vpop.f32.mrf.mxu3  ;;  %v3036_v9 = vpop.f32.mrf.mxu1 }
 0x3d0   : > { %v3037_v31 = vadd.f32 %v3036_v9, %v2947_v5  ;;  %v578_v5 = vld [vmem:[#allocation2 + $0x388] sm:$0xff] }
 0x3d1   : > { %v3212_v40 = vadd.f32 %v3211_v12, %v3123_v63  ;;  %2986 = vmatmul.bf16.gmra.mxu0 %v9145_v23  ;;  %v6367_v12 = vor.u32 %v6743_v39, %v6364_v20  ;;  %v5980_v23 = vld [vmem:[%s7334_s12 + $0x1d0] sm:$0xf0] }
 0x3d2   : > { %3075 = vmatmul.bf16.gmra.mxu1 %v9146_v17  ;;  %v6647_v17 = vld [vmem:[%s7334_s12 + $0x1bc] sm:$0xf] }
 0x3d3   : > { %v4372_v7 = vadd.f32 %v3212_v40, %v572_v11  ;;  %3164 = vmatmul.bf16.gmra.mxu2 %v9147_v61  ;;  %3557 = vmatpush.bf16.msrb.mxu3 %v6367_v12  ;;  %v5788_v61 = vld [vmem:[%s7334_s12 + $0x50] sm:$0xf0]  ;;  %v5983_v62 = vor.u32 %v6647_v17, %v5980_v23  ;;  %v590_v17 = vld [vmem:[#allocation2 + $0x4c8] sm:$0xff] }
 0x3d4   : > { %3253 = vmatmul.bf16.gmra.mxu3 %v9148_v59  ;;  %v6599_v59 = vld [vmem:[%s7334_s12 + $0x3c] sm:$0xf]  ;;  %v9151_v12 = vld [vmem:[#allocation29_spill] sm:$0xff] }
 0x3d5   : > { %4564 = vst [vmem:[#allocation2 + $0x330] sm:$0xff] %v4372_v7  ;;  %v5791_v37 = vor.u32 %v6599_v59, %v5788_v61  ;;  %3379 = vmatpush.bf16.msrb.mxu1 %v5983_v62  ;;  %v9152_v61 = vld [vmem:[#allocation30_spill] sm:$0xff] }
 0x3d6   : > { %v3125_v19 = vpop.f32.mrf.mxu2  ;;  %v2949_v63 = vpop.f32.mrf.mxu0 }
 0x3d7   : > { %v3126_v32 = vadd.f32 %v3125_v19, %v3037_v31  ;;  %v3214_v0 = vpop.f32.mrf.mxu3  ;;  %v3038_v11 = vpop.f32.mrf.mxu1  ;;  %3290 = vmatpush.bf16.msrb.mxu0 %v5791_v37 }
 0x3d8   : > { %v3039_v7 = vadd.f32 %v3038_v11, %v2949_v63  ;;  %v9150_v63 = vld [vmem:[#allocation28_spill] sm:$0xff] }
 0x3d9   : > { %v3215_v9 = vadd.f32 %v3214_v0, %v3126_v32 }
 0x3db   : > { %v4378_v40 = vadd.f32 %v3215_v9, %v578_v5 }
 0x3dd   : > { %4570 = vst [vmem:[#allocation2 + $0x388] sm:$0xff] %v4378_v40 }
 0x3de   : > { %v3127_v6 = vpop.f32.mrf.mxu2  ;;  %v2952_v8 = vpop.f32.mrf.mxu0 }
 0x3df   : > { %v3128_v31 = vadd.f32 %v3127_v6, %v3039_v7  ;;  %v3216_v19 = vpop.f32.mrf.mxu3  ;;  %v3041_v39 = vpop.f32.mrf.mxu1 }
 0x3e0   : > { %v3042_v0 = vadd.f32 %v3041_v39, %v2952_v8 }
 0x3e1   : > { %v3217_v20 = vadd.f32 %v3216_v19, %v3128_v31  ;;  %2991 = vmatmul.bf16.gmra.mxu0 %v9149_v30  ;;  %v596_v31 = vld [vmem:[#allocation2 + $0x338] sm:$0xff]  ;;  %v608_v30 = vld [vmem:[#allocation2 + $0x560] sm:$0xff] }
 0x3e2   : > { %3080 = vmatmul.bf16.gmra.mxu1 %v9150_v63 }
 0x3e3   : > { %v4384_v32 = vadd.f32 %v3217_v20, %v584_v29  ;;  %3169 = vmatmul.bf16.gmra.mxu2 %v9151_v12  ;;  %v9153_v20 = vld [vmem:[#allocation31_spill] sm:$0xff] }
 0x3e4   : > { %3258 = vmatmul.bf16.gmra.mxu3 %v9152_v61  ;;  %v5956_v61 = vld [vmem:[%s7334_s12 + $0x1a0] sm:$0xf0] }
 0x3e5   : > { %4576 = vst [vmem:[#allocation2 + $0x98] sm:$0xff] %v4384_v32 }
 0x3e6   : > { %v3130_v59 = vpop.f32.mrf.mxu2  ;;  %v2954_v23 = vpop.f32.mrf.mxu0 }
 0x3e7   : > { %v3131_v5 = vadd.f32 %v3130_v59, %v3042_v0  ;;  %v3219_v11 = vpop.f32.mrf.mxu3  ;;  %v3043_v9 = vpop.f32.mrf.mxu1  ;;  %v9154_v59 = vld [vmem:[#allocation32_spill] sm:$0xff] }
 0x3e8   : > { %v3044_v62 = vadd.f32 %v3043_v9, %v2954_v23  ;;  %v6689_v23 = vld [vmem:[%s7334_s12 + $0x30c] sm:$0xf] }
 0x3e9   : > { %v3220_v40 = vadd.f32 %v3219_v11, %v3131_v5  ;;  %v9155_v5 = vld [vmem:[#allocation33_spill] sm:$0xff]  ;;  %v9156_v11 = vld [vmem:[#allocation34_spill] sm:$0xff] }
 0x3eb   : > { %v4390_v7 = vadd.f32 %v3220_v40, %v590_v17  ;;  %v6148_v17 = vld [vmem:[%s7334_s12 + $0x320] sm:$0xf0] }
 0x3ec   : > { %v6151_v40 = vor.u32 %v6689_v23, %v6148_v17 }
 0x3ed   : > { %4582 = vst [vmem:[#allocation2 + $0x4c8] sm:$0xff] %v4390_v7  ;;  %v6737_v7 = vld [vmem:[%s7334_s12 + $0x48c] sm:$0xf] }
 0x3ee   : > { %v3132_v29 = vpop.f32.mrf.mxu2  ;;  %v2957_v37 = vpop.f32.mrf.mxu0  ;;  %3469 = vmatpush.bf16.msrb.mxu2 %v6151_v40  ;;  %v9157_v40 = vld [vmem:[#allocation35_spill] sm:$0xff] }
 0x3ef   : > { %v3133_v8 = vadd.f32 %v3132_v29, %v3044_v62  ;;  %v3221_v6 = vpop.f32.mrf.mxu3  ;;  %v3046_v19 = vpop.f32.mrf.mxu1  ;;  %v6340_v62 = vld [vmem:[%s7334_s12 + $0x4a0] sm:$0xf0] }
 0x3f0   : > { %v3047_v0 = vadd.f32 %v3046_v19, %v2957_v37  ;;  %v6343_v37 = vor.u32 %v6737_v7, %v6340_v62 }
 0x3f1   : > { %v3222_v39 = vadd.f32 %v3221_v6, %v3133_v8  ;;  %2996 = vmatmul.bf16.gmra.mxu0 %v9153_v20  ;;  %v6641_v20 = vld [vmem:[%s7334_s12 + $0x18c] sm:$0xf] }
 0x3f2   : > { %3085 = vmatmul.bf16.gmra.mxu1 %v9154_v59  ;;  %3558 = vmatpush.bf16.msrb.mxu3 %v6343_v37  ;;  %v5764_v59 = vld [vmem:[%s7334_s12 + $0x20] sm:$0xf0]  ;;  %v5959_v63 = vor.u32 %v6641_v20, %v5956_v61  ;;  %v9159_v37 = vld [vmem:[#allocation37_spill] sm:$0xff] }
 0x3f3   : > { %v4396_v32 = vadd.f32 %v3222_v39, %v596_v31  ;;  %3174 = vmatmul.bf16.gmra.mxu2 %v9155_v5  ;;  %v602_v31 = vld [vmem:[#allocation2 + $0x28] sm:$0xff] }
 0x3f4   : > { %3263 = vmatmul.bf16.gmra.mxu3 %v9156_v11  ;;  %v6593_v5 = vld [vmem:[%s7334_s12 + $0xc] sm:$0xf]  ;;  %3380 = vmatpush.bf16.msrb.mxu1 %v5959_v63 }
 0x3f5   : > { %4588 = vst [vmem:[#allocation2 + $0x338] sm:$0xff] %v4396_v32  ;;  %v5767_v17 = vor.u32 %v6593_v5, %v5764_v59  ;;  %v9160_v59 = vld [vmem:[#allocation38_spill] sm:$0xff]  ;;  %v614_v20 = vld [vmem:[#allocation2 + $0x528] sm:$0xff] }
 0x3f6   : > { %v3135_v9 = vpop.f32.mrf.mxu2  ;;  %v2959_v6 = vpop.f32.mrf.mxu0 }
 0x3f7   : > { %v3136_v29 = vadd.f32 %v3135_v9, %v3047_v0  ;;  %v3224_v8 = vpop.f32.mrf.mxu3  ;;  %v3048_v19 = vpop.f32.mrf.mxu1  ;;  %3291 = vmatpush.bf16.msrb.mxu0 %v5767_v17 }
 0x3f8   : > { %v3049_v11 = vadd.f32 %v3048_v19, %v2959_v6  ;;  %v9158_v6 = vld [vmem:[#allocation36_spill] sm:$0xff] }
 0x3f9   : > { %v3225_v39 = vadd.f32 %v3224_v8, %v3136_v29 }
 0x3fb   : > { %v4402_v32 = vadd.f32 %v3225_v39, %v602_v31 }
 0x3fd   : > { %4594 = vst [vmem:[#allocation2 + $0x28] sm:$0xff] %v4402_v32 }
 0x3fe   : > { %v3137_v23 = vpop.f32.mrf.mxu2  ;;  %v2962_v12 = vpop.f32.mrf.mxu0 }
 0x3ff   : > { %v3138_v0 = vadd.f32 %v3137_v23, %v3049_v11  ;;  %v3226_v9 = vpop.f32.mrf.mxu3  ;;  %v3051_v7 = vpop.f32.mrf.mxu1 }
 0x400   : > { %v3052_v8 = vadd.f32 %v3051_v7, %v2962_v12 }
 0x401   : > { %v3227_v62 = vadd.f32 %v3226_v9, %v3138_v0  ;;  %3001 = vmatmul.bf16.gmra.mxu0 %v9157_v40  ;;  %v620_v0 = vld [vmem:[#allocation2 + $0x60] sm:$0xff]  ;;  %v632_v40 = vld [vmem:[#allocation2 + $0x418] sm:$0xff] }
 0x402   : > { %3090 = vmatmul.bf16.gmra.mxu1 %v9158_v6 }
 0x403   : > { %v4408_v29 = vadd.f32 %v3227_v62, %v608_v30  ;;  %3179 = vmatmul.bf16.gmra.mxu2 %v9159_v37  ;;  %v9161_v62 = vld [vmem:[#allocation39_spill] sm:$0xff] }
 0x404   : > { %3268 = vmatmul.bf16.gmra.mxu3 %v9160_v59  ;;  %v6687_v59 = vld [vmem:[%s7334_s12 + $0x2f4] sm:$0xf0] }
 0x405   : > { %4600 = vst [vmem:[#allocation2 + $0x560] sm:$0xff] %v4408_v29 }
 0x406   : > { %v3140_v5 = vpop.f32.mrf.mxu2  ;;  %v2964_v61 = vpop.f32.mrf.mxu0 }
 0x407   : > { %v3141_v11 = vadd.f32 %v3140_v5, %v3052_v8  ;;  %v3229_v31 = vpop.f32.mrf.mxu3  ;;  %v3053_v19 = vpop.f32.mrf.mxu1  ;;  %v9162_v5 = vld [vmem:[#allocation40_spill] sm:$0xff] }
 0x408   : > { %v3054_v63 = vadd.f32 %v3053_v19, %v2964_v61  ;;  %v6322_v61 = vld [vmem:[%s7334_s12 + $0x460] sm:$0xf] }
 0x409   : > { %v3230_v39 = vadd.f32 %v3229_v31, %v3141_v11  ;;  %v9163_v11 = vld [vmem:[#allocation41_spill] sm:$0xff]  ;;  %v9164_v31 = vld [vmem:[#allocation42_spill] sm:$0xff] }
 0x40b   : > { %v4414_v32 = vadd.f32 %v3230_v39, %v614_v20  ;;  %v6735_v20 = vld [vmem:[%s7334_s12 + $0x474] sm:$0xf0] }
 0x40c   : > { %v6323_v39 = vor.u32 %v6735_v20, %v6322_v61 }
 0x40d   : > { %4606 = vst [vmem:[#allocation2 + $0x528] sm:$0xff] %v4414_v32  ;;  %v6514_v32 = vld [vmem:[%s7334_s12 + $0x5e0] sm:$0xf] }
 0x40e   : > { %v3142_v30 = vpop.f32.mrf.mxu2  ;;  %v2967_v17 = vpop.f32.mrf.mxu0  ;;  %3818 = vmatpush.bf16.msra.mxu2 %v6323_v39 }
 0x40f   : > { %v3143_v12 = vadd.f32 %v3142_v30, %v3054_v63  ;;  %v3231_v23 = vpop.f32.mrf.mxu3  ;;  %v3056_v9 = vpop.f32.mrf.mxu1  ;;  %v6783_v63 = vld [vmem:[%s7334_s12 + $0x5f4] sm:$0xf0] }
 0x410   : > { %v3057_v8 = vadd.f32 %v3056_v9, %v2967_v17  ;;  %v6515_v17 = vor.u32 %v6783_v63, %v6514_v32 }
 0x411   : > { %v3232_v7 = vadd.f32 %v3231_v23, %v3143_v12  ;;  %3006 = vmatmul.bf16.gmra.mxu0 %v9161_v62  ;;  %v6130_v62 = vld [vmem:[%s7334_s12 + $0x2e0] sm:$0xf] }
 0x412   : > { %3095 = vmatmul.bf16.gmra.mxu1 %v9162_v5  ;;  %3907 = vmatpush.bf16.msra.mxu3 %v6515_v17  ;;  %v6639_v5 = vld [vmem:[%s7334_s12 + $0x174] sm:$0xf0]  ;;  %v6131_v6 = vor.u32 %v6687_v59, %v6130_v62  ;;  %v638_v62 = vld [vmem:[#allocation2 + $0x1f0] sm:$0xff] }
 0x413   : > { %v4420_v29 = vadd.f32 %v3232_v7, %v620_v0  ;;  %3184 = vmatmul.bf16.gmra.mxu2 %v9163_v11  ;;  %v626_v0 = vld [vmem:[#allocation2 + $0x1e8] sm:$0xff]  ;;  %v5938_v11 = vld [vmem:[%s7334_s12 + $0x160] sm:$0xf] }
 0x414   : > { %3273 = vmatmul.bf16.gmra.mxu3 %v9164_v31  ;;  %v5939_v20 = vor.u32 %v6639_v5, %v5938_v11  ;;  %3729 = vmatpush.bf16.msra.mxu1 %v6131_v6 }
 0x415   : > { %4612 = vst [vmem:[#allocation2 + $0x60] sm:$0xff] %v4420_v29 }
 0x416   : > { %v3145_v19 = vpop.f32.mrf.mxu2  ;;  %v2969_v23 = vpop.f32.mrf.mxu0  ;;  %3640 = vmatpush.bf16.msra.mxu0 %v5939_v20 }
 0x417   : > { %v3146_v30 = vadd.f32 %v3145_v19, %v3057_v8  ;;  %v3234_v12 = vpop.f32.mrf.mxu3  ;;  %v3058_v9 = vpop.f32.mrf.mxu1 }
 0x418   : > { %v3059_v31 = vadd.f32 %v3058_v9, %v2969_v23 }
 0x419   : > { %v3235_v7 = vadd.f32 %v3234_v12, %v3146_v30 }
 0x41b   : > { %v4426_v29 = vadd.f32 %v3235_v7, %v626_v0  ;;  %v644_v7 = vld [vmem:[#allocation2 + $0x50] sm:$0xff] }
 0x41d   : > { %4618 = vst [vmem:[#allocation2 + $0x1e8] sm:$0xff] %v4426_v29 }
 0x41e   : > { %v3147_v61 = vpop.f32.mrf.mxu2  ;;  %v2972_v37 = vpop.f32.mrf.mxu0 }
 0x41f   : > { %v3148_v8 = vadd.f32 %v3147_v61, %v3059_v31  ;;  %v3236_v19 = vpop.f32.mrf.mxu3  ;;  %v3061_v32 = vpop.f32.mrf.mxu1 }
 0x420   : > { %v3062_v30 = vadd.f32 %v3061_v32, %v2972_v37  ;;  %v6729_v32 = vld [vmem:[%s7334_s12 + $0x444] sm:$0xf0] }
 0x421   : > { %v3237_v63 = vadd.f32 %v3236_v19, %v3148_v8  ;;  %3011 = vmatmul.bf16.gmra.mxu0 %v7986_v10  ;;  %v6298_v19 = vld [vmem:[%s7334_s12 + $0x430] sm:$0xf] }
 0x422   : > { %3100 = vmatmul.bf16.gmra.mxu1 %v7990_v38 }
 0x423   : > { %v4432_v39 = vadd.f32 %v3237_v63, %v632_v40  ;;  %3189 = vmatmul.bf16.gmra.mxu2 %v7992_v42 }
 0x424   : > { %3278 = vmatmul.bf16.gmra.mxu3 %v7994_v60 }
 0x425   : > { %4624 = vst [vmem:[#allocation2 + $0x418] sm:$0xff] %v4432_v39  ;;  %v6299_v39 = vor.u32 %v6729_v32, %v6298_v19 }
 0x426   : > { %v3150_v5 = vpop.f32.mrf.mxu2  ;;  %v2974_v59 = vpop.f32.mrf.mxu0 }
 0x427   : > { %v3151_v11 = vadd.f32 %v3150_v5, %v3062_v30  ;;  %v3239_v31 = vpop.f32.mrf.mxu3  ;;  %v3063_v12 = vpop.f32.mrf.mxu1  ;;  %v6490_v30 = vld [vmem:[%s7334_s12 + $0x5b0] sm:$0xf]  ;;  %v6777_v5 = vld [vmem:[%s7334_s12 + $0x5c4] sm:$0xf0]  ;;  %3819 = vmatpush.bf16.msra.mxu2 %v6299_v39 }
 0x428   : > { %v3064_v6 = vadd.f32 %v3063_v12, %v2974_v59  ;;  %v650_v12 = vld [vmem:[#allocation2 + $0x400] sm:$0xff] }
 0x429   : > { %v3240_v23 = vadd.f32 %v3239_v31, %v3151_v11 }
 0x42b   : > { %v4438_v17 = vadd.f32 %v3240_v23, %v638_v62  ;;  %v6491_v62 = vor.u32 %v6777_v5, %v6490_v30 }
 0x42d   : > { %4630 = vst [vmem:[#allocation2 + $0x1f0] sm:$0xff] %v4438_v17  ;;  %3908 = vmatpush.bf16.msra.mxu3 %v6491_v62 }
 0x42e   : > { %v3152_v40 = vpop.f32.mrf.mxu2  ;;  %v2977_v9 = vpop.f32.mrf.mxu0 }
 0x42f   : > { %v3153_v37 = vadd.f32 %v3152_v40, %v3064_v6  ;;  %v3241_v0 = vpop.f32.mrf.mxu3  ;;  %v3066_v29 = vpop.f32.mrf.mxu1 }
 0x430   : > { %v3067_v8 = vadd.f32 %v3066_v29, %v2977_v9  ;;  %v6106_v29 = vld [vmem:[%s7334_s12 + $0x2b0] sm:$0xf] }
 0x431   : > { %v3242_v61 = vadd.f32 %v3241_v0, %v3153_v37  ;;  %3292 = vmatmul.bf16.vlgmr.msrb.gmra.mxu0 %v7622_v48  ;;  %v5914_v37 = vld [vmem:[%s7334_s12 + $0x130] sm:$0xf]  ;;  %v6633_v0 = vld [vmem:[%s7334_s12 + $0x144] sm:$0xf0] }
 0x432   : > { %3381 = vmatmul.bf16.vlgmr.msrb.gmra.mxu1 %v7626_v52 }
 0x433   : > { %v4444_v20 = vadd.f32 %v3242_v61, %v644_v7  ;;  %3470 = vmatmul.bf16.vlgmr.msrb.gmra.mxu2 %v7628_v53  ;;  %v5915_v7 = vor.u32 %v6633_v0, %v5914_v37  ;;  %v6681_v61 = vld [vmem:[%s7334_s12 + $0x2c4] sm:$0xf0] }
 0x434   : > { %3559 = vmatmul.bf16.vlgmr.msrb.gmra.mxu3 %v7630_v54  ;;  %v6107_v32 = vor.u32 %v6681_v61, %v6106_v29  ;;  %v668_v61 = vld [vmem:[#allocation2 + $0x5b8] sm:$0xff] }
 0x435   : > { %4636 = vst [vmem:[#allocation2 + $0x50] sm:$0xff] %v4444_v20  ;;  %3641 = vmatpush.bf16.msra.mxu0 %v5915_v7 }
 0x436   : > { %v3155_v63 = vpop.f32.mrf.mxu2  ;;  %v2979_v59 = vpop.f32.mrf.mxu0  ;;  %3730 = vmatpush.bf16.msra.mxu1 %v6107_v32 }
 0x437   : > { %v3156_v11 = vadd.f32 %v3155_v63, %v3067_v8  ;;  %v3244_v31 = vpop.f32.mrf.mxu3  ;;  %v3068_v23 = vpop.f32.mrf.mxu1  ;;  %v656_v63 = vld [vmem:[#allocation2 + $0x1e0] sm:$0xff] }
 0x438   : > { %v3069_v40 = vadd.f32 %v3068_v23, %v2979_v59  ;;  %v662_v23 = vld [vmem:[#allocation2 + $0xd8] sm:$0xff] }
 0x439   : > { %v3245_v17 = vadd.f32 %v3244_v31, %v3156_v11 }
 0x43b   : > { %v4450_v6 = vadd.f32 %v3245_v17, %v650_v12 }
 0x43d   : > { %4642 = vst [vmem:[#allocation2 + $0x400] sm:$0xff] %v4450_v6 }
 0x43e   : > { %v3157_v9 = vpop.f32.mrf.mxu2  ;;  %v2982_v19 = vpop.f32.mrf.mxu0 }
 0x43f   : > { %v3158_v20 = vadd.f32 %v3157_v9, %v3069_v40  ;;  %v3246_v8 = vpop.f32.mrf.mxu3  ;;  %v3071_v30 = vpop.f32.mrf.mxu1 }
 0x440   : > { %v3072_v11 = vadd.f32 %v3071_v30, %v2982_v19  ;;  %v6723_v30 = vld [vmem:[%s7334_s12 + $0x414] sm:$0xf0] }
 0x441   : > { %v3247_v5 = vadd.f32 %v3246_v8, %v3158_v20  ;;  %3297 = vmatmul.bf16.gmra.mxu0 %v7652_v13 }
 0x442   : > { %3386 = vmatmul.bf16.gmra.mxu1 %v7654_v14 }
 0x443   : > { %v4456_v39 = vadd.f32 %v3247_v5, %v656_v63  ;;  %3475 = vmatmul.bf16.gmra.mxu2 %v7656_v15  ;;  %v6274_v63 = vld [vmem:[%s7334_s12 + $0x400] sm:$0xf] }
 0x444   : > { %3564 = vmatmul.bf16.gmra.mxu3 %v7658_v16 }
 0x445   : > { %4648 = vst [vmem:[#allocation2 + $0x1e0] sm:$0xff] %v4456_v39  ;;  %v6275_v39 = vor.u32 %v6723_v30, %v6274_v63 }
 0x446   : > { %v3160_v31 = vpop.f32.mrf.mxu2  ;;  %v2984_v12 = vpop.f32.mrf.mxu0 }
 0x447   : > { %v3161_v59 = vadd.f32 %v3160_v31, %v3072_v11  ;;  %v3249_v62 = vpop.f32.mrf.mxu3  ;;  %v3073_v17 = vpop.f32.mrf.mxu1  ;;  %v6466_v11 = vld [vmem:[%s7334_s12 + $0x580] sm:$0xf]  ;;  %v6771_v31 = vld [vmem:[%s7334_s12 + $0x594] sm:$0xf0]  ;;  %3820 = vmatpush.bf16.msra.mxu2 %v6275_v39 }
 0x448   : > { %v3074_v37 = vadd.f32 %v3073_v17, %v2984_v12  ;;  %v674_v17 = vld [vmem:[#allocation2 + $0x130] sm:$0xff] }
 0x449   : > { %v3250_v6 = vadd.f32 %v3249_v62, %v3161_v59 }
 0x44b   : > { %v4462_v40 = vadd.f32 %v3250_v6, %v662_v23  ;;  %v6467_v23 = vor.u32 %v6771_v31, %v6466_v11 }
 0x44d   : > { %4654 = vst [vmem:[#allocation2 + $0xd8] sm:$0xff] %v4462_v40  ;;  %3909 = vmatpush.bf16.msra.mxu3 %v6467_v23 }
 0x44e   : > { %v3162_v0 = vpop.f32.mrf.mxu2  ;;  %v2987_v29 = vpop.f32.mrf.mxu0 }
 0x44f   : > { %v3163_v9 = vadd.f32 %v3162_v0, %v3074_v37  ;;  %v3251_v7 = vpop.f32.mrf.mxu3  ;;  %v3076_v20 = vpop.f32.mrf.mxu1 }
 0x450   : > { %v3077_v32 = vadd.f32 %v3076_v20, %v2987_v29  ;;  %v6082_v20 = vld [vmem:[%s7334_s12 + $0x280] sm:$0xf] }
 0x451   : > { %v3252_v8 = vadd.f32 %v3251_v7, %v3163_v9  ;;  %3302 = vmatmul.bf16.gmra.mxu0 %v7672_v25  ;;  %v5890_v9 = vld [vmem:[%s7334_s12 + $0x100] sm:$0xf]  ;;  %v6627_v7 = vld [vmem:[%s7334_s12 + $0x114] sm:$0xf0] }
 0x452   : > { %3391 = vmatmul.bf16.gmra.mxu1 %v7674_v26 }
 0x453   : > { %v4468_v19 = vadd.f32 %v3252_v8, %v668_v61  ;;  %3480 = vmatmul.bf16.gmra.mxu2 %v7676_v27  ;;  %v5891_v61 = vor.u32 %v6627_v7, %v5890_v9  ;;  %v6675_v8 = vld [vmem:[%s7334_s12 + $0x294] sm:$0xf0] }
 0x454   : > { %3569 = vmatmul.bf16.gmra.mxu3 %v7678_v28  ;;  %v6083_v30 = vor.u32 %v6675_v8, %v6082_v20  ;;  %v692_v8 = vld [vmem:[#allocation2 + $0x3d0] sm:$0xff] }
 0x455   : > { %4660 = vst [vmem:[#allocation2 + $0x5b8] sm:$0xff] %v4468_v19  ;;  %3642 = vmatpush.bf16.msra.mxu0 %v5891_v61 }
 0x456   : > { %v3165_v5 = vpop.f32.mrf.mxu2  ;;  %v2989_v12 = vpop.f32.mrf.mxu0  ;;  %3731 = vmatpush.bf16.msra.mxu1 %v6083_v30 }
 0x457   : > { %v3166_v59 = vadd.f32 %v3165_v5, %v3077_v32  ;;  %v3254_v62 = vpop.f32.mrf.mxu3  ;;  %v3078_v6 = vpop.f32.mrf.mxu1  ;;  %v680_v5 = vld [vmem:[#allocation2 + $0x190] sm:$0xff] }
 0x458   : > { %v3079_v0 = vadd.f32 %v3078_v6, %v2989_v12  ;;  %v686_v6 = vld [vmem:[#allocation2 + $0x38] sm:$0xff] }
 0x459   : > { %v3255_v40 = vadd.f32 %v3254_v62, %v3166_v59 }
 0x45b   : > { %v4474_v37 = vadd.f32 %v3255_v40, %v674_v17 }
 0x45d   : > { %4666 = vst [vmem:[#allocation2 + $0x130] sm:$0xff] %v4474_v37 }
 0x45e   : > { %v3167_v29 = vpop.f32.mrf.mxu2  ;;  %v2992_v63 = vpop.f32.mrf.mxu0 }
 0x45f   : > { %v3168_v19 = vadd.f32 %v3167_v29, %v3079_v0  ;;  %v3256_v32 = vpop.f32.mrf.mxu3  ;;  %v3081_v11 = vpop.f32.mrf.mxu1 }
 0x460   : > { %v3082_v59 = vadd.f32 %v3081_v11, %v2992_v63  ;;  %v6717_v11 = vld [vmem:[%s7334_s12 + $0x3e4] sm:$0xf0] }
 0x461   : > { %v3257_v31 = vadd.f32 %v3256_v32, %v3168_v19  ;;  %3307 = vmatmul.bf16.gmra.mxu0 %v7700_v50 }
 0x462   : > { %3396 = vmatmul.bf16.gmra.mxu1 %v7702_v51 }
 0x463   : > { %v4480_v39 = vadd.f32 %v3257_v31, %v680_v5  ;;  %3485 = vmatmul.bf16.gmra.mxu2 %v7704_v55  ;;  %v6250_v5 = vld [vmem:[%s7334_s12 + $0x3d0] sm:$0xf] }
 0x464   : > { %3574 = vmatmul.bf16.gmra.mxu3 %v7706_v56 }
 0x465   : > { %4672 = vst [vmem:[#allocation2 + $0x190] sm:$0xff] %v4480_v39  ;;  %v6251_v39 = vor.u32 %v6717_v11, %v6250_v5 }
 0x466   : > { %v3170_v62 = vpop.f32.mrf.mxu2  ;;  %v2994_v17 = vpop.f32.mrf.mxu0 }
 0x467   : > { %v3171_v12 = vadd.f32 %v3170_v62, %v3082_v59  ;;  %v3259_v23 = vpop.f32.mrf.mxu3  ;;  %v3083_v40 = vpop.f32.mrf.mxu1  ;;  %v6442_v59 = vld [vmem:[%s7334_s12 + $0x550] sm:$0xf]  ;;  %v6765_v62 = vld [vmem:[%s7334_s12 + $0x564] sm:$0xf0]  ;;  %3821 = vmatpush.bf16.msra.mxu2 %v6251_v39 }
 0x468   : > { %v3084_v9 = vadd.f32 %v3083_v40, %v2994_v17  ;;  %v698_v40 = vld [vmem:[#allocation2 + $0x20] sm:$0xff] }
 0x469   : > { %v3260_v37 = vadd.f32 %v3259_v23, %v3171_v12 }
 0x46b   : > { %v4486_v0 = vadd.f32 %v3260_v37, %v686_v6  ;;  %v6443_v6 = vor.u32 %v6765_v62, %v6442_v59 }
 0x46d   : > { %4678 = vst [vmem:[#allocation2 + $0x38] sm:$0xff] %v4486_v0  ;;  %3910 = vmatpush.bf16.msra.mxu3 %v6443_v6 }
 0x46e   : > { %v3172_v7 = vpop.f32.mrf.mxu2  ;;  %v2997_v20 = vpop.f32.mrf.mxu0 }
 0x46f   : > { %v3173_v29 = vadd.f32 %v3172_v7, %v3084_v9  ;;  %v3261_v61 = vpop.f32.mrf.mxu3  ;;  %v3086_v19 = vpop.f32.mrf.mxu1 }
 0x470   : > { %v3087_v30 = vadd.f32 %v3086_v19, %v2997_v20  ;;  %v6058_v19 = vld [vmem:[%s7334_s12 + $0x250] sm:$0xf] }
 0x471   : > { %v3262_v32 = vadd.f32 %v3261_v61, %v3173_v29  ;;  %3312 = vmatmul.bf16.gmra.mxu0 %v7720_v1  ;;  %v5866_v29 = vld [vmem:[%s7334_s12 + $0xd0] sm:$0xf]  ;;  %v6621_v61 = vld [vmem:[%s7334_s12 + $0xe4] sm:$0xf0] }
 0x472   : > { %3401 = vmatmul.bf16.gmra.mxu1 %v7722_v2 }
 0x473   : > { %v4492_v63 = vadd.f32 %v3262_v32, %v692_v8  ;;  %3490 = vmatmul.bf16.gmra.mxu2 %v7724_v3  ;;  %v5867_v8 = vor.u32 %v6621_v61, %v5866_v29  ;;  %v6669_v32 = vld [vmem:[%s7334_s12 + $0x264] sm:$0xf0] }
 0x474   : > { %3579 = vmatmul.bf16.gmra.mxu3 %v7726_v4  ;;  %v6059_v11 = vor.u32 %v6669_v32, %v6058_v19  ;;  %v716_v32 = vld [vmem:[#allocation2 + $0x158] sm:$0xff] }
 0x475   : > { %4684 = vst [vmem:[#allocation2 + $0x3d0] sm:$0xff] %v4492_v63  ;;  %3643 = vmatpush.bf16.msra.mxu0 %v5867_v8 }
 0x476   : > { %v3175_v31 = vpop.f32.mrf.mxu2  ;;  %v2999_v17 = vpop.f32.mrf.mxu0  ;;  %3732 = vmatpush.bf16.msra.mxu1 %v6059_v11 }
 0x477   : > { %v3176_v12 = vadd.f32 %v3175_v31, %v3087_v30  ;;  %v3264_v23 = vpop.f32.mrf.mxu3  ;;  %v3088_v37 = vpop.f32.mrf.mxu1  ;;  %v704_v31 = vld [vmem:[#allocation2 + $0x118] sm:$0xff] }
 0x478   : > { %v3089_v7 = vadd.f32 %v3088_v37, %v2999_v17  ;;  %v710_v37 = vld [vmem:[#allocation2 + $0x1a0] sm:$0xff] }
 0x479   : > { %v3265_v0 = vadd.f32 %v3264_v23, %v3176_v12 }
 0x47b   : > { %v4498_v9 = vadd.f32 %v3265_v0, %v698_v40 }
 0x47d   : > { %4690 = vst [vmem:[#allocation2 + $0x20] sm:$0xff] %v4498_v9 }
 0x47e   : > { %v3177_v20 = vpop.f32.mrf.mxu2  ;;  %v3002_v5 = vpop.f32.mrf.mxu0 }
 0x47f   : > { %v3178_v63 = vadd.f32 %v3177_v20, %v3089_v7  ;;  %v3266_v30 = vpop.f32.mrf.mxu3  ;;  %v3091_v59 = vpop.f32.mrf.mxu1 }
 0x480   : > { %v3092_v12 = vadd.f32 %v3091_v59, %v3002_v5  ;;  %v6711_v59 = vld [vmem:[%s7334_s12 + $0x3b4] sm:$0xf0] }
 0x481   : > { %v3267_v62 = vadd.f32 %v3266_v30, %v3178_v63  ;;  %3317 = vmatmul.bf16.gmra.mxu0 %v7748_v33 }
 0x482   : > { %3406 = vmatmul.bf16.gmra.mxu1 %v7750_v34 }
 0x483   : > { %v4504_v39 = vadd.f32 %v3267_v62, %v704_v31  ;;  %3495 = vmatmul.bf16.gmra.mxu2 %v7752_v35  ;;  %v6226_v31 = vld [vmem:[%s7334_s12 + $0x3a0] sm:$0xf] }
 0x484   : > { %3584 = vmatmul.bf16.gmra.mxu3 %v7754_v36 }
 0x485   : > { %4696 = vst [vmem:[#allocation2 + $0x118] sm:$0xff] %v4504_v39  ;;  %v6227_v39 = vor.u32 %v6711_v59, %v6226_v31 }
 0x486   : > { %v3180_v23 = vpop.f32.mrf.mxu2  ;;  %v3004_v40 = vpop.f32.mrf.mxu0 }
 0x487   : > { %v3181_v17 = vadd.f32 %v3180_v23, %v3092_v12  ;;  %v3269_v6 = vpop.f32.mrf.mxu3  ;;  %v3093_v0 = vpop.f32.mrf.mxu1  ;;  %v6418_v12 = vld [vmem:[%s7334_s12 + $0x520] sm:$0xf]  ;;  %v6759_v23 = vld [vmem:[%s7334_s12 + $0x534] sm:$0xf0]  ;;  %3822 = vmatpush.bf16.msra.mxu2 %v6227_v39 }
 0x488   : > { %v3094_v29 = vadd.f32 %v3093_v0, %v3004_v40  ;;  %v722_v0 = vld [vmem:[#allocation2 + $0x408] sm:$0xff] }
 0x489   : > { %v3270_v9 = vadd.f32 %v3269_v6, %v3181_v17 }
 0x48b   : > { %v4510_v7 = vadd.f32 %v3270_v9, %v710_v37  ;;  %v6419_v37 = vor.u32 %v6759_v23, %v6418_v12 }
 0x48d   : > { %4702 = vst [vmem:[#allocation2 + $0x1a0] sm:$0xff] %v4510_v7  ;;  %3911 = vmatpush.bf16.msra.mxu3 %v6419_v37 }
 0x48e   : > { %v3182_v61 = vpop.f32.mrf.mxu2  ;;  %v3007_v19 = vpop.f32.mrf.mxu0 }
 0x48f   : > { %v3183_v20 = vadd.f32 %v3182_v61, %v3094_v29  ;;  %v3271_v8 = vpop.f32.mrf.mxu3  ;;  %v3096_v63 = vpop.f32.mrf.mxu1 }
 0x490   : > { %v3097_v11 = vadd.f32 %v3096_v63, %v3007_v19  ;;  %v6034_v63 = vld [vmem:[%s7334_s12 + $0x220] sm:$0xf] }
 0x491   : > { %v3272_v30 = vadd.f32 %v3271_v8, %v3183_v20  ;;  %3322 = vmatmul.bf16.gmra.mxu0 %v7768_v45  ;;  %v5842_v20 = vld [vmem:[%s7334_s12 + $0xa0] sm:$0xf]  ;;  %v6615_v8 = vld [vmem:[%s7334_s12 + $0xb4] sm:$0xf0] }
 0x492   : > { %3411 = vmatmul.bf16.gmra.mxu1 %v7770_v46 }
 0x493   : > { %v4516_v5 = vadd.f32 %v3272_v30, %v716_v32  ;;  %3500 = vmatmul.bf16.gmra.mxu2 %v7772_v47  ;;  %v5843_v32 = vor.u32 %v6615_v8, %v5842_v20  ;;  %v6663_v30 = vld [vmem:[%s7334_s12 + $0x234] sm:$0xf0] }
 0x494   : > { %3589 = vmatmul.bf16.gmra.mxu3 %v7774_v49  ;;  %v6035_v59 = vor.u32 %v6663_v30, %v6034_v63  ;;  %v740_v30 = vld [vmem:[#allocation2 + $0x238] sm:$0xff] }
 0x495   : > { %4708 = vst [vmem:[#allocation2 + $0x158] sm:$0xff] %v4516_v5  ;;  %3644 = vmatpush.bf16.msra.mxu0 %v5843_v32 }
 0x496   : > { %v3185_v62 = vpop.f32.mrf.mxu2  ;;  %v3009_v40 = vpop.f32.mrf.mxu0  ;;  %3733 = vmatpush.bf16.msra.mxu1 %v6035_v59 }
 0x497   : > { %v3186_v17 = vadd.f32 %v3185_v62, %v3097_v11  ;;  %v3274_v6 = vpop.f32.mrf.mxu3  ;;  %v3098_v9 = vpop.f32.mrf.mxu1  ;;  %v728_v62 = vld [vmem:[#allocation2 + $0x150] sm:$0xff] }
 0x498   : > { %v3099_v61 = vadd.f32 %v3098_v9, %v3009_v40  ;;  %v734_v9 = vld [vmem:[#allocation2 + $0x430] sm:$0xff] }
 0x499   : > { %v3275_v7 = vadd.f32 %v3274_v6, %v3186_v17 }
 0x49b   : > { %v4522_v29 = vadd.f32 %v3275_v7, %v722_v0 }
 0x49d   : > { %4714 = vst [vmem:[#allocation2 + $0x408] sm:$0xff] %v4522_v29 }
 0x49e   : > { %v3187_v19 = vpop.f32.mrf.mxu2  ;;  %v3012_v31 = vpop.f32.mrf.mxu0 }
 0x49f   : > { %v3188_v5 = vadd.f32 %v3187_v19, %v3099_v61  ;;  %v3276_v11 = vpop.f32.mrf.mxu3  ;;  %v3101_v12 = vpop.f32.mrf.mxu1 }
 0x4a0   : > { %v3102_v17 = vadd.f32 %v3101_v12, %v3012_v31  ;;  %v6705_v12 = vld [vmem:[%s7334_s12 + $0x384] sm:$0xf0] }
 0x4a1   : > { %v3277_v23 = vadd.f32 %v3276_v11, %v3188_v5  ;;  %3327 = vmatmul.bf16.gmra.mxu0 %v7795_v18 }
 0x4a2   : > { %3416 = vmatmul.bf16.gmra.mxu1 %v7798_v21 }
 0x4a3   : > { %v4528_v39 = vadd.f32 %v3277_v23, %v728_v62  ;;  %3505 = vmatmul.bf16.gmra.mxu2 %v7800_v22  ;;  %v6202_v62 = vld [vmem:[%s7334_s12 + $0x370] sm:$0xf] }
 0x4a4   : > { %3594 = vmatmul.bf16.gmra.mxu3 %v7802_v24 }
 0x4a5   : > { %4720 = vst [vmem:[#allocation2 + $0x150] sm:$0xff] %v4528_v39  ;;  %v6203_v39 = vor.u32 %v6705_v12, %v6202_v62 }
 0x4a6   : > { %v3190_v6 = vpop.f32.mrf.mxu2  ;;  %v3014_v0 = vpop.f32.mrf.mxu0 }
 0x4a7   : > { %v3191_v40 = vadd.f32 %v3190_v6, %v3102_v17  ;;  %v3279_v37 = vpop.f32.mrf.mxu3  ;;  %v3103_v7 = vpop.f32.mrf.mxu1  ;;  %v6394_v17 = vld [vmem:[%s7334_s12 + $0x4f0] sm:$0xf]  ;;  %v6753_v6 = vld [vmem:[%s7334_s12 + $0x504] sm:$0xf0]  ;;  %3823 = vmatpush.bf16.msra.mxu2 %v6203_v39 }
 0x4a8   : > { %v3104_v20 = vadd.f32 %v3103_v7, %v3014_v0  ;;  %v555_v7 = vld [vmem:[#allocation2 + $0x18] sm:$0xff] }
 0x4a9   : > { %v3280_v29 = vadd.f32 %v3279_v37, %v3191_v40 }
 0x4ab   : > { %v4534_v61 = vadd.f32 %v3280_v29, %v734_v9  ;;  %v6395_v9 = vor.u32 %v6753_v6, %v6394_v17 }
 0x4ad   : > { %4726 = vst [vmem:[#allocation2 + $0x430] sm:$0xff] %v4534_v61  ;;  %3912 = vmatpush.bf16.msra.mxu3 %v6395_v9  ;;  %v9167_v9 = vld [vmem:[#allocation22_spill] sm:$0xff] }
 0x4ae   : > { %v3192_v8 = vpop.f32.mrf.mxu2  ;;  %v3293_v63 = vpop.f32.mrf.mxu0 }
 0x4af   : > { %v3193_v19 = vadd.f32 %v3192_v8, %v3104_v20  ;;  %v3281_v32 = vpop.f32.mrf.mxu3  ;;  %v3382_v5 = vpop.f32.mrf.mxu1 }
 0x4b0   : > { %v3383_v59 = vadd.f32 %v3382_v5, %v3293_v63  ;;  %v6010_v5 = vld [vmem:[%s7334_s12 + $0x1f0] sm:$0xf] }
 0x4b1   : > { %v3282_v11 = vadd.f32 %v3281_v32, %v3193_v19  ;;  %3332 = vmatmul.bf16.gmra.mxu0 %v7816_v41  ;;  %v5818_v19 = vld [vmem:[%s7334_s12 + $0x70] sm:$0xf]  ;;  %v6609_v32 = vld [vmem:[%s7334_s12 + $0x84] sm:$0xf0] }
 0x4b2   : > { %3421 = vmatmul.bf16.gmra.mxu1 %v7818_v43 }
 0x4b3   : > { %v4540_v31 = vadd.f32 %v3282_v11, %v740_v30  ;;  %3510 = vmatmul.bf16.gmra.mxu2 %v7820_v44  ;;  %v5819_v30 = vor.u32 %v6609_v32, %v5818_v19  ;;  %v6657_v11 = vld [vmem:[%s7334_s12 + $0x204] sm:$0xf0] }
 0x4b4   : > { %3599 = vmatmul.bf16.gmra.mxu3 %v7822_v58  ;;  %v6011_v12 = vor.u32 %v6657_v11, %v6010_v5 }
 0x4b5   : > { %4732 = vst [vmem:[#allocation2 + $0x238] sm:$0xff] %v4540_v31  ;;  %3645 = vmatpush.bf16.msra.mxu0 %v5819_v30 }
 0x4b6   : > { %v3471_v23 = vpop.f32.mrf.mxu2  ;;  %v3295_v0 = vpop.f32.mrf.mxu0  ;;  %3734 = vmatpush.bf16.msra.mxu1 %v6011_v12 }
 0x4b7   : > { %v3472_v40 = vadd.f32 %v3471_v23, %v3383_v59  ;;  %v3560_v37 = vpop.f32.mrf.mxu3  ;;  %v3384_v29 = vpop.f32.mrf.mxu1  ;;  %v561_v23 = vld [vmem:[#allocation2 + $0x510] sm:$0xff] }
 0x4b8   : > { %v3385_v8 = vadd.f32 %v3384_v29, %v3295_v0  ;;  %v9166_v0 = vld [vmem:[#allocation21_spill] sm:$0xff] }
 0x4b9   : > { %v3561_v61 = vadd.f32 %v3560_v37, %v3472_v40  ;;  %v9165_v37 = vld [vmem:[#allocation20_spill] sm:$0xff] }
 0x4bb   : > { %v4355_v20 = vadd.f32 %v3561_v61, %v555_v7 }
 0x4bd   : > { %4547 = vst [vmem:[#allocation2 + $0x18] sm:$0xff] %v4355_v20 }
 0x4be   : > { %v3473_v63 = vpop.f32.mrf.mxu2  ;;  %v3298_v62 = vpop.f32.mrf.mxu0 }
 0x4bf   : > { %v3474_v31 = vadd.f32 %v3473_v63, %v3385_v8  ;;  %v3562_v59 = vpop.f32.mrf.mxu3  ;;  %v3387_v17 = vpop.f32.mrf.mxu1  ;;  %v567_v8 = vld [vmem:[#allocation2 + $0x2b8] sm:$0xff] }
 0x4c0   : > { %v3388_v40 = vadd.f32 %v3387_v17, %v3298_v62  ;;  %v573_v62 = vld [vmem:[#allocation2 + $0x100] sm:$0xff] }
 0x4c1   : > { %v3563_v6 = vadd.f32 %v3562_v59, %v3474_v31  ;;  %3337 = vmatmul.bf16.gmra.mxu0 %v7842_v57  ;;  %v9168_v17 = vld [vmem:[#allocation23_spill] sm:$0xff] }
 0x4c2   : > { %3426 = vmatmul.bf16.gmra.mxu1 %v9165_v37  ;;  %v585_v37 = vld [vmem:[#allocation2 + $0xb0] sm:$0xff] }
 0x4c3   : > { %v4361_v39 = vadd.f32 %v3563_v6, %v561_v23  ;;  %3515 = vmatmul.bf16.gmra.mxu2 %v9166_v0 }
 0x4c4   : > { %3604 = vmatmul.bf16.gmra.mxu3 %v9167_v9 }
 0x4c5   : > { %4553 = vst [vmem:[#allocation2 + $0x510] sm:$0xff] %v4361_v39 }
 0x4c6   : > { %v3476_v7 = vpop.f32.mrf.mxu2  ;;  %v3300_v20 = vpop.f32.mrf.mxu0 }
 0x4c7   : > { %v3477_v29 = vadd.f32 %v3476_v7, %v3388_v40  ;;  %v3565_v61 = vpop.f32.mrf.mxu3  ;;  %v3389_v19 = vpop.f32.mrf.mxu1  ;;  %v9169_v40 = vld [vmem:[#allocation24_spill] sm:$0xff]  ;;  %v9170_v7 = vld [vmem:[#allocation25_spill] sm:$0xff] }
 0x4c8   : > { %v3390_v30 = vadd.f32 %v3389_v19, %v3300_v20  ;;  %v6699_v20 = vld [vmem:[%s7334_s12 + $0x354] sm:$0xf0] }
 0x4c9   : > { %v3566_v32 = vadd.f32 %v3565_v61, %v3477_v29  ;;  %v9171_v29 = vld [vmem:[#allocation26_spill] sm:$0xff]  ;;  %v6178_v61 = vld [vmem:[%s7334_s12 + $0x340] sm:$0xf] }
 0x4ca   : > { %v6179_v19 = vor.u32 %v6699_v20, %v6178_v61 }
 0x4cb   : > { %v4367_v63 = vadd.f32 %v3566_v32, %v567_v8  ;;  %v6370_v32 = vld [vmem:[%s7334_s12 + $0x4c0] sm:$0xf] }
 0x4cc   : > { %3824 = vmatpush.bf16.msra.mxu2 %v6179_v19  ;;  %v9172_v19 = vld [vmem:[#allocation27_spill] sm:$0xff] }
 0x4cd   : > { %4559 = vst [vmem:[#allocation2 + $0x2b8] sm:$0xff] %v4367_v63  ;;  %v6747_v63 = vld [vmem:[%s7334_s12 + $0x4d4] sm:$0xf0] }
 0x4ce   : > { %v3478_v5 = vpop.f32.mrf.mxu2  ;;  %v3303_v59 = vpop.f32.mrf.mxu0 }
 0x4cf   : > { %v3479_v11 = vadd.f32 %v3478_v5, %v3390_v30  ;;  %v3567_v31 = vpop.f32.mrf.mxu3  ;;  %v3392_v12 = vpop.f32.mrf.mxu1 }
 0x4d0   : > { %v3393_v39 = vadd.f32 %v3392_v12, %v3303_v59  ;;  %v579_v59 = vld [vmem:[#allocation2 + $0x520] sm:$0xff] }
 0x4d1   : > { %v3568_v23 = vadd.f32 %v3567_v31, %v3479_v11  ;;  %3342 = vmatmul.bf16.gmra.mxu0 %v9168_v17  ;;  %v6371_v31 = vor.u32 %v6747_v63, %v6370_v32  ;;  %v6651_v17 = vld [vmem:[%s7334_s12 + $0x1d4] sm:$0xf0] }
 0x4d2   : > { %3431 = vmatmul.bf16.gmra.mxu1 %v9169_v40  ;;  %v5986_v40 = vld [vmem:[%s7334_s12 + $0x1c0] sm:$0xf] }
 0x4d3   : > { %v4373_v6 = vadd.f32 %v3568_v23, %v573_v62  ;;  %3520 = vmatmul.bf16.gmra.mxu2 %v9170_v7  ;;  %3913 = vmatpush.bf16.msra.mxu3 %v6371_v31  ;;  %v6603_v7 = vld [vmem:[%s7334_s12 + $0x54] sm:$0xf0]  ;;  %v5987_v0 = vor.u32 %v6651_v17, %v5986_v40  ;;  %v9174_v31 = vld [vmem:[#allocation29_spill] sm:$0xff] }
 0x4d4   : > { %3609 = vmatmul.bf16.gmra.mxu3 %v9171_v29  ;;  %v5794_v29 = vld [vmem:[%s7334_s12 + $0x40] sm:$0xf]  ;;  %v591_v40 = vld [vmem:[#allocation2 + $0x5e8] sm:$0xff] }
 0x4d5   : > { %4565 = vst [vmem:[#allocation2 + $0x100] sm:$0xff] %v4373_v6  ;;  %v5795_v20 = vor.u32 %v6603_v7, %v5794_v29  ;;  %3735 = vmatpush.bf16.msra.mxu1 %v5987_v0  ;;  %v9175_v7 = vld [vmem:[#allocation30_spill] sm:$0xff] }
 0x4d6   : > { %v3481_v8 = vpop.f32.mrf.mxu2  ;;  %v3305_v11 = vpop.f32.mrf.mxu0 }
 0x4d7   : > { %v3482_v30 = vadd.f32 %v3481_v8, %v3393_v39  ;;  %v3570_v5 = vpop.f32.mrf.mxu3  ;;  %v3394_v62 = vpop.f32.mrf.mxu1  ;;  %3646 = vmatpush.bf16.msra.mxu0 %v5795_v20 }
 0x4d8   : > { %v3395_v6 = vadd.f32 %v3394_v62, %v3305_v11  ;;  %v9173_v11 = vld [vmem:[#allocation28_spill] sm:$0xff] }
 0x4d9   : > { %v3571_v12 = vadd.f32 %v3570_v5, %v3482_v30 }
 0x4db   : > { %v4379_v23 = vadd.f32 %v3571_v12, %v579_v59 }
 0x4dd   : > { %4571 = vst [vmem:[#allocation2 + $0x520] sm:$0xff] %v4379_v23 }
 0x4de   : > { %v3483_v61 = vpop.f32.mrf.mxu2  ;;  %v3308_v9 = vpop.f32.mrf.mxu0 }
 0x4df   : > { %v3484_v39 = vadd.f32 %v3483_v61, %v3395_v6  ;;  %v3572_v8 = vpop.f32.mrf.mxu3  ;;  %v3397_v32 = vpop.f32.mrf.mxu1 }
 0x4e0   : > { %v3398_v5 = vadd.f32 %v3397_v32, %v3308_v9 }
 0x4e1   : > { %v3573_v63 = vadd.f32 %v3572_v8, %v3484_v39  ;;  %3347 = vmatmul.bf16.gmra.mxu0 %v9172_v19  ;;  %v597_v39 = vld [vmem:[#allocation2 + $0x480] sm:$0xff]  ;;  %v609_v19 = vld [vmem:[#allocation2 + $0x4f8] sm:$0xff] }
 0x4e2   : > { %3436 = vmatmul.bf16.gmra.mxu1 %v9173_v11 }
 0x4e3   : > { %v4385_v30 = vadd.f32 %v3573_v63, %v585_v37  ;;  %3525 = vmatmul.bf16.gmra.mxu2 %v9174_v31  ;;  %v9176_v63 = vld [vmem:[#allocation31_spill] sm:$0xff] }
 0x4e4   : > { %3614 = vmatmul.bf16.gmra.mxu3 %v9175_v7  ;;  %v6645_v7 = vld [vmem:[%s7334_s12 + $0x1a4] sm:$0xf0] }
 0x4e5   : > { %4577 = vst [vmem:[#allocation2 + $0xb0] sm:$0xff] %v4385_v30 }
 0x4e6   : > { %v3486_v29 = vpop.f32.mrf.mxu2  ;;  %v3310_v17 = vpop.f32.mrf.mxu0 }
 0x4e7   : > { %v3487_v59 = vadd.f32 %v3486_v29, %v3398_v5  ;;  %v3575_v62 = vpop.f32.mrf.mxu3  ;;  %v3399_v12 = vpop.f32.mrf.mxu1  ;;  %v9177_v29 = vld [vmem:[#allocation32_spill] sm:$0xff] }
 0x4e8   : > { %v3400_v0 = vadd.f32 %v3399_v12, %v3310_v17  ;;  %v6154_v17 = vld [vmem:[%s7334_s12 + $0x310] sm:$0xf] }
 0x4e9   : > { %v3576_v23 = vadd.f32 %v3575_v62, %v3487_v59  ;;  %v9178_v59 = vld [vmem:[#allocation33_spill] sm:$0xff]  ;;  %v9179_v62 = vld [vmem:[#allocation34_spill] sm:$0xff] }
 0x4eb   : > { %v4391_v6 = vadd.f32 %v3576_v23, %v591_v40  ;;  %v6693_v40 = vld [vmem:[%s7334_s12 + $0x324] sm:$0xf0] }
 0x4ec   : > { %v6155_v23 = vor.u32 %v6693_v40, %v6154_v17 }
 0x4ed   : > { %4583 = vst [vmem:[#allocation2 + $0x5e8] sm:$0xff] %v4391_v6  ;;  %v6346_v6 = vld [vmem:[%s7334_s12 + $0x490] sm:$0xf] }
 0x4ee   : > { %v3488_v37 = vpop.f32.mrf.mxu2  ;;  %v3313_v20 = vpop.f32.mrf.mxu0  ;;  %3825 = vmatpush.bf16.msra.mxu2 %v6155_v23  ;;  %v9180_v23 = vld [vmem:[#allocation35_spill] sm:$0xff] }
 0x4ef   : > { %v3489_v9 = vadd.f32 %v3488_v37, %v3400_v0  ;;  %v3577_v61 = vpop.f32.mrf.mxu3  ;;  %v3402_v8 = vpop.f32.mrf.mxu1  ;;  %v6741_v0 = vld [vmem:[%s7334_s12 + $0x4a4] sm:$0xf0] }
 0x4f0   : > { %v3403_v5 = vadd.f32 %v3402_v8, %v3313_v20  ;;  %v6347_v20 = vor.u32 %v6741_v0, %v6346_v6 }
 0x4f1   : > { %v3578_v32 = vadd.f32 %v3577_v61, %v3489_v9  ;;  %3352 = vmatmul.bf16.gmra.mxu0 %v9176_v63  ;;  %v5962_v63 = vld [vmem:[%s7334_s12 + $0x190] sm:$0xf] }
 0x4f2   : > { %3441 = vmatmul.bf16.gmra.mxu1 %v9177_v29  ;;  %3914 = vmatpush.bf16.msra.mxu3 %v6347_v20  ;;  %v6597_v29 = vld [vmem:[%s7334_s12 + $0x24] sm:$0xf0]  ;;  %v5963_v11 = vor.u32 %v6645_v7, %v5962_v63  ;;  %v9182_v20 = vld [vmem:[#allocation37_spill] sm:$0xff]  ;;  %v615_v63 = vld [vmem:[#allocation2 + $0x1c0] sm:$0xff] }
 0x4f3   : > { %v4397_v30 = vadd.f32 %v3578_v32, %v597_v39  ;;  %3530 = vmatmul.bf16.gmra.mxu2 %v9178_v59  ;;  %v603_v39 = vld [vmem:[#allocation2 + $0xf8] sm:$0xff]  ;;  %v5770_v59 = vld [vmem:[%s7334_s12 + $0x10] sm:$0xf] }
 0x4f4   : > { %3619 = vmatmul.bf16.gmra.mxu3 %v9179_v62  ;;  %v5771_v40 = vor.u32 %v6597_v29, %v5770_v59  ;;  %3736 = vmatpush.bf16.msra.mxu1 %v5963_v11  ;;  %v9183_v29 = vld [vmem:[#allocation38_spill] sm:$0xff] }
 0x4f5   : > { %4589 = vst [vmem:[#allocation2 + $0x480] sm:$0xff] %v4397_v30 }
 0x4f6   : > { %v3491_v12 = vpop.f32.mrf.mxu2  ;;  %v3315_v61 = vpop.f32.mrf.mxu0  ;;  %3647 = vmatpush.bf16.msra.mxu0 %v5771_v40 }
 0x4f7   : > { %v3492_v37 = vadd.f32 %v3491_v12, %v3403_v5  ;;  %v3580_v9 = vpop.f32.mrf.mxu3  ;;  %v3404_v8 = vpop.f32.mrf.mxu1 }
 0x4f8   : > { %v3405_v62 = vadd.f32 %v3404_v8, %v3315_v61  ;;  %v9181_v61 = vld [vmem:[#allocation36_spill] sm:$0xff] }
 0x4f9   : > { %v3581_v32 = vadd.f32 %v3580_v9, %v3492_v37 }
 0x4fb   : > { %v4403_v30 = vadd.f32 %v3581_v32, %v603_v39 }
 0x4fd   : > { %4595 = vst [vmem:[#allocation2 + $0xf8] sm:$0xff] %v4403_v30 }
 0x4fe   : > { %v3493_v17 = vpop.f32.mrf.mxu2  ;;  %v3318_v31 = vpop.f32.mrf.mxu0 }
 0x4ff   : > { %v3494_v5 = vadd.f32 %v3493_v17, %v3405_v62  ;;  %v3582_v12 = vpop.f32.mrf.mxu3  ;;  %v3407_v6 = vpop.f32.mrf.mxu1 }
 0x500   : > { %v3408_v9 = vadd.f32 %v3407_v6, %v3318_v31 }
 0x501   : > { %v3583_v0 = vadd.f32 %v3582_v12, %v3494_v5  ;;  %3357 = vmatmul.bf16.gmra.mxu0 %v9180_v23  ;;  %v621_v5 = vld [vmem:[#allocation2 + $0x200] sm:$0xff]  ;;  %v633_v23 = vld [vmem:[#allocation2 + $0x5c8] sm:$0xff] }
 0x502   : > { %3446 = vmatmul.bf16.gmra.mxu1 %v9181_v61 }
 0x503   : > { %v4409_v37 = vadd.f32 %v3583_v0, %v609_v19  ;;  %3535 = vmatmul.bf16.gmra.mxu2 %v9182_v20  ;;  %v9184_v0 = vld [vmem:[#allocation39_spill] sm:$0xff] }
 0x504   : > { %3624 = vmatmul.bf16.gmra.mxu3 %v9183_v29  ;;  %v6132_v29 = vld [vmem:[%s7334_s12 + $0x2f8] sm:$0xf0] }
 0x505   : > { %4601 = vst [vmem:[#allocation2 + $0x4f8] sm:$0xff] %v4409_v37 }
 0x506   : > { %v3496_v59 = vpop.f32.mrf.mxu2  ;;  %v3320_v7 = vpop.f32.mrf.mxu0 }
 0x507   : > { %v3497_v62 = vadd.f32 %v3496_v59, %v3408_v9  ;;  %v3585_v39 = vpop.f32.mrf.mxu3  ;;  %v3409_v8 = vpop.f32.mrf.mxu1  ;;  %v9185_v59 = vld [vmem:[#allocation40_spill] sm:$0xff] }
 0x508   : > { %v3410_v11 = vadd.f32 %v3409_v8, %v3320_v7  ;;  %v6732_v7 = vld [vmem:[%s7334_s12 + $0x464] sm:$0xf] }
 0x509   : > { %v3586_v32 = vadd.f32 %v3585_v39, %v3497_v62  ;;  %v9186_v62 = vld [vmem:[#allocation41_spill] sm:$0xff]  ;;  %v9187_v39 = vld [vmem:[#allocation42_spill] sm:$0xff] }
 0x50b   : > { %v4415_v30 = vadd.f32 %v3586_v32, %v615_v63  ;;  %v6324_v63 = vld [vmem:[%s7334_s12 + $0x478] sm:$0xf0] }
 0x50c   : > { %v6327_v32 = vor.u32 %v6732_v7, %v6324_v63 }
 0x50d   : > { %4607 = vst [vmem:[#allocation2 + $0x1c0] sm:$0xff] %v4415_v30  ;;  %v6780_v30 = vld [vmem:[%s7334_s12 + $0x5e4] sm:$0xf] }
 0x50e   : > { %v3498_v19 = vpop.f32.mrf.mxu2  ;;  %v3323_v40 = vpop.f32.mrf.mxu0  ;;  %4174 = vmatpush.bf16.msrb.mxu2 %v6327_v32 }
 0x50f   : > { %v3499_v31 = vadd.f32 %v3498_v19, %v3410_v11  ;;  %v3587_v17 = vpop.f32.mrf.mxu3  ;;  %v3412_v12 = vpop.f32.mrf.mxu1  ;;  %v6516_v11 = vld [vmem:[%s7334_s12 + $0x5f8] sm:$0xf0] }
 0x510   : > { %v3413_v9 = vadd.f32 %v3412_v12, %v3323_v40  ;;  %v6519_v40 = vor.u32 %v6780_v30, %v6516_v11 }
 0x511   : > { %v3588_v6 = vadd.f32 %v3587_v17, %v3499_v31  ;;  %3362 = vmatmul.bf16.gmra.mxu0 %v9184_v0  ;;  %v6684_v0 = vld [vmem:[%s7334_s12 + $0x2e4] sm:$0xf] }
 0x512   : > { %3451 = vmatmul.bf16.gmra.mxu1 %v9185_v59  ;;  %4263 = vmatpush.bf16.msrb.mxu3 %v6519_v40  ;;  %v5940_v59 = vld [vmem:[%s7334_s12 + $0x178] sm:$0xf0]  ;;  %v6135_v61 = vor.u32 %v6684_v0, %v6132_v29  ;;  %v639_v0 = vld [vmem:[#allocation2 + $0x3a0] sm:$0xff] }
 0x513   : > { %v4421_v37 = vadd.f32 %v3588_v6, %v621_v5  ;;  %3540 = vmatmul.bf16.gmra.mxu2 %v9186_v62  ;;  %v627_v5 = vld [vmem:[#allocation2 + $0x258] sm:$0xff]  ;;  %v6636_v62 = vld [vmem:[%s7334_s12 + $0x164] sm:$0xf] }
 0x514   : > { %3629 = vmatmul.bf16.gmra.mxu3 %v9187_v39  ;;  %v5943_v63 = vor.u32 %v6636_v62, %v5940_v59  ;;  %4085 = vmatpush.bf16.msrb.mxu1 %v6135_v61 }
 0x515   : > { %4613 = vst [vmem:[#allocation2 + $0x200] sm:$0xff] %v4421_v37 }
 0x516   : > { %v3501_v8 = vpop.f32.mrf.mxu2  ;;  %v3325_v17 = vpop.f32.mrf.mxu0  ;;  %3996 = vmatpush.bf16.msrb.mxu0 %v5943_v63 }
 0x517   : > { %v3502_v19 = vadd.f32 %v3501_v8, %v3413_v9  ;;  %v3590_v31 = vpop.f32.mrf.mxu3  ;;  %v3414_v12 = vpop.f32.mrf.mxu1 }
 0x518   : > { %v3415_v39 = vadd.f32 %v3414_v12, %v3325_v17 }
 0x519   : > { %v3591_v6 = vadd.f32 %v3590_v31, %v3502_v19 }
 0x51b   : > { %v4427_v37 = vadd.f32 %v3591_v6, %v627_v5  ;;  %v645_v6 = vld [vmem:[#allocation2 + $0x4a0] sm:$0xff] }
 0x51d   : > { %4619 = vst [vmem:[#allocation2 + $0x258] sm:$0xff] %v4427_v37 }
 0x51e   : > { %v3503_v7 = vpop.f32.mrf.mxu2  ;;  %v3328_v20 = vpop.f32.mrf.mxu0 }
 0x51f   : > { %v3504_v9 = vadd.f32 %v3503_v7, %v3415_v39  ;;  %v3592_v8 = vpop.f32.mrf.mxu3  ;;  %v3417_v30 = vpop.f32.mrf.mxu1 }
 0x520   : > { %v3418_v19 = vadd.f32 %v3417_v30, %v3328_v20  ;;  %v6300_v30 = vld [vmem:[%s7334_s12 + $0x448] sm:$0xf0] }
 0x521   : > { %v3593_v11 = vadd.f32 %v3592_v8, %v3504_v9  ;;  %3367 = vmatmul.bf16.gmra.mxu0 %v7986_v10  ;;  %v6726_v8 = vld [vmem:[%s7334_s12 + $0x434] sm:$0xf] }
 0x522   : > { %3456 = vmatmul.bf16.gmra.mxu1 %v7990_v38 }
 0x523   : > { %v4433_v32 = vadd.f32 %v3593_v11, %v633_v23  ;;  %3545 = vmatmul.bf16.gmra.mxu2 %v7992_v42 }
 0x524   : > { %3634 = vmatmul.bf16.gmra.mxu3 %v7994_v60 }
 0x525   : > { %4625 = vst [vmem:[#allocation2 + $0x5c8] sm:$0xff] %v4433_v32  ;;  %v6303_v32 = vor.u32 %v6726_v8, %v6300_v30 }
 0x526   : > { %v3506_v59 = vpop.f32.mrf.mxu2  ;;  %v3330_v29 = vpop.f32.mrf.mxu0 }
 0x527   : > { %v3507_v62 = vadd.f32 %v3506_v59, %v3418_v19  ;;  %v3595_v39 = vpop.f32.mrf.mxu3  ;;  %v3419_v31 = vpop.f32.mrf.mxu1  ;;  %v6774_v19 = vld [vmem:[%s7334_s12 + $0x5b4] sm:$0xf]  ;;  %v6492_v59 = vld [vmem:[%s7334_s12 + $0x5c8] sm:$0xf0]  ;;  %4175 = vmatpush.bf16.msrb.mxu2 %v6303_v32 }
 0x528   : > { %v3420_v61 = vadd.f32 %v3419_v31, %v3330_v29  ;;  %v651_v31 = vld [vmem:[#allocation2 + $0x5d8] sm:$0xff] }
 0x529   : > { %v3596_v17 = vadd.f32 %v3595_v39, %v3507_v62 }
 0x52b   : > { %v4439_v40 = vadd.f32 %v3596_v17, %v639_v0  ;;  %v6495_v0 = vor.u32 %v6774_v19, %v6492_v59 }
 0x52d   : > { %4631 = vst [vmem:[#allocation2 + $0x3a0] sm:$0xff] %v4439_v40  ;;  %4264 = vmatpush.bf16.msrb.mxu3 %v6495_v0 }
 0x52e   : > { %v3508_v23 = vpop.f32.mrf.mxu2  ;;  %v3333_v12 = vpop.f32.mrf.mxu0 }
 0x52f   : > { %v3509_v20 = vadd.f32 %v3508_v23, %v3420_v61  ;;  %v3597_v5 = vpop.f32.mrf.mxu3  ;;  %v3422_v37 = vpop.f32.mrf.mxu1 }
 0x530   : > { %v3423_v9 = vadd.f32 %v3422_v37, %v3333_v12  ;;  %v6678_v37 = vld [vmem:[%s7334_s12 + $0x2b4] sm:$0xf] }
 0x531   : > { %v3598_v7 = vadd.f32 %v3597_v5, %v3509_v20  ;;  %3648 = vmatmul.bf16.vlgmr.msra.gmra.mxu0 %v7622_v48  ;;  %v6630_v20 = vld [vmem:[%s7334_s12 + $0x134] sm:$0xf]  ;;  %v5916_v5 = vld [vmem:[%s7334_s12 + $0x148] sm:$0xf0] }
 0x532   : > { %3737 = vmatmul.bf16.vlgmr.msra.gmra.mxu1 %v7626_v52 }
 0x533   : > { %v4445_v63 = vadd.f32 %v3598_v7, %v645_v6  ;;  %3826 = vmatmul.bf16.vlgmr.msra.gmra.mxu2 %v7628_v53  ;;  %v5919_v6 = vor.u32 %v6630_v20, %v5916_v5  ;;  %v6108_v7 = vld [vmem:[%s7334_s12 + $0x2c8] sm:$0xf0] }
 0x534   : > { %3915 = vmatmul.bf16.vlgmr.msra.gmra.mxu3 %v7630_v54  ;;  %v6111_v30 = vor.u32 %v6678_v37, %v6108_v7  ;;  %v669_v7 = vld [vmem:[#allocation2 + $0x218] sm:$0xff] }
 0x535   : > { %4637 = vst [vmem:[#allocation2 + $0x4a0] sm:$0xff] %v4445_v63  ;;  %3997 = vmatpush.bf16.msrb.mxu0 %v5919_v6 }
 0x536   : > { %v3511_v11 = vpop.f32.mrf.mxu2  ;;  %v3335_v29 = vpop.f32.mrf.mxu0  ;;  %4086 = vmatpush.bf16.msrb.mxu1 %v6111_v30 }
 0x537   : > { %v3512_v62 = vadd.f32 %v3511_v11, %v3423_v9  ;;  %v3600_v39 = vpop.f32.mrf.mxu3  ;;  %v3424_v17 = vpop.f32.mrf.mxu1  ;;  %v657_v11 = vld [vmem:[#allocation2 + $0x390] sm:$0xff] }
 0x538   : > { %v3425_v23 = vadd.f32 %v3424_v17, %v3335_v29  ;;  %v663_v17 = vld [vmem:[#allocation2 + $0x428] sm:$0xff] }
 0x539   : > { %v3601_v40 = vadd.f32 %v3600_v39, %v3512_v62 }
 0x53b   : > { %v4451_v61 = vadd.f32 %v3601_v40, %v651_v31 }
 0x53d   : > { %4643 = vst [vmem:[#allocation2 + $0x5d8] sm:$0xff] %v4451_v61 }
 0x53e   : > { %v3513_v12 = vpop.f32.mrf.mxu2  ;;  %v3338_v8 = vpop.f32.mrf.mxu0 }
 0x53f   : > { %v3514_v63 = vadd.f32 %v3513_v12, %v3425_v23  ;;  %v3602_v9 = vpop.f32.mrf.mxu3  ;;  %v3427_v19 = vpop.f32.mrf.mxu1 }
 0x540   : > { %v3428_v62 = vadd.f32 %v3427_v19, %v3338_v8  ;;  %v6276_v19 = vld [vmem:[%s7334_s12 + $0x418] sm:$0xf0] }
 0x541   : > { %v3603_v59 = vadd.f32 %v3602_v9, %v3514_v63  ;;  %3653 = vmatmul.bf16.gmra.mxu0 %v7652_v13 }
 0x542   : > { %3742 = vmatmul.bf16.gmra.mxu1 %v7654_v14 }
 0x543   : > { %v4457_v32 = vadd.f32 %v3603_v59, %v657_v11  ;;  %3831 = vmatmul.bf16.gmra.mxu2 %v7656_v15  ;;  %v6720_v11 = vld [vmem:[%s7334_s12 + $0x404] sm:$0xf] }
 0x544   : > { %3920 = vmatmul.bf16.gmra.mxu3 %v7658_v16 }
 0x545   : > { %4649 = vst [vmem:[#allocation2 + $0x390] sm:$0xff] %v4457_v32  ;;  %v6279_v32 = vor.u32 %v6720_v11, %v6276_v19 }
 0x546   : > { %v3516_v39 = vpop.f32.mrf.mxu2  ;;  %v3340_v31 = vpop.f32.mrf.mxu0 }
 0x547   : > { %v3517_v29 = vadd.f32 %v3516_v39, %v3428_v62  ;;  %v3605_v0 = vpop.f32.mrf.mxu3  ;;  %v3429_v40 = vpop.f32.mrf.mxu1  ;;  %v6768_v62 = vld [vmem:[%s7334_s12 + $0x584] sm:$0xf]  ;;  %v6468_v39 = vld [vmem:[%s7334_s12 + $0x598] sm:$0xf0]  ;;  %4176 = vmatpush.bf16.msrb.mxu2 %v6279_v32 }
 0x548   : > { %v3430_v20 = vadd.f32 %v3429_v40, %v3340_v31  ;;  %v675_v40 = vld [vmem:[#allocation2 + $0x5f0] sm:$0xff] }
 0x549   : > { %v3606_v61 = vadd.f32 %v3605_v0, %v3517_v29 }
 0x54b   : > { %v4463_v23 = vadd.f32 %v3606_v61, %v663_v17  ;;  %v6471_v17 = vor.u32 %v6768_v62, %v6468_v39 }
 0x54d   : > { %4655 = vst [vmem:[#allocation2 + $0x428] sm:$0xff] %v4463_v23  ;;  %4265 = vmatpush.bf16.msrb.mxu3 %v6471_v17 }
 0x54e   : > { %v3518_v5 = vpop.f32.mrf.mxu2  ;;  %v3343_v37 = vpop.f32.mrf.mxu0 }
 0x54f   : > { %v3519_v12 = vadd.f32 %v3518_v5, %v3430_v20  ;;  %v3607_v6 = vpop.f32.mrf.mxu3  ;;  %v3432_v63 = vpop.f32.mrf.mxu1 }
 0x550   : > { %v3433_v30 = vadd.f32 %v3432_v63, %v3343_v37  ;;  %v6672_v63 = vld [vmem:[%s7334_s12 + $0x284] sm:$0xf] }
 0x551   : > { %v3608_v9 = vadd.f32 %v3607_v6, %v3519_v12  ;;  %3658 = vmatmul.bf16.gmra.mxu0 %v7672_v25  ;;  %v6624_v12 = vld [vmem:[%s7334_s12 + $0x104] sm:$0xf]  ;;  %v5892_v6 = vld [vmem:[%s7334_s12 + $0x118] sm:$0xf0] }
 0x552   : > { %3747 = vmatmul.bf16.gmra.mxu1 %v7674_v26 }
 0x553   : > { %v4469_v8 = vadd.f32 %v3608_v9, %v669_v7  ;;  %3836 = vmatmul.bf16.gmra.mxu2 %v7676_v27  ;;  %v5895_v7 = vor.u32 %v6624_v12, %v5892_v6  ;;  %v6084_v9 = vld [vmem:[%s7334_s12 + $0x298] sm:$0xf0] }
 0x554   : > { %3925 = vmatmul.bf16.gmra.mxu3 %v7678_v28  ;;  %v6087_v19 = vor.u32 %v6672_v63, %v6084_v9  ;;  %v693_v9 = vld [vmem:[#allocation2 + $0x68] sm:$0xff] }
 0x555   : > { %4661 = vst [vmem:[#allocation2 + $0x218] sm:$0xff] %v4469_v8  ;;  %3998 = vmatpush.bf16.msrb.mxu0 %v5895_v7 }
 0x556   : > { %v3521_v59 = vpop.f32.mrf.mxu2  ;;  %v3345_v31 = vpop.f32.mrf.mxu0  ;;  %4087 = vmatpush.bf16.msrb.mxu1 %v6087_v19 }
 0x557   : > { %v3522_v29 = vadd.f32 %v3521_v59, %v3433_v30  ;;  %v3610_v0 = vpop.f32.mrf.mxu3  ;;  %v3434_v61 = vpop.f32.mrf.mxu1  ;;  %v681_v59 = vld [vmem:[#allocation2 + $0x1a8] sm:$0xff] }
 0x558   : > { %v3435_v5 = vadd.f32 %v3434_v61, %v3345_v31  ;;  %v687_v61 = vld [vmem:[#allocation2 + $0x240] sm:$0xff] }
 0x559   : > { %v3611_v23 = vadd.f32 %v3610_v0, %v3522_v29 }
 0x55b   : > { %v4475_v20 = vadd.f32 %v3611_v23, %v675_v40 }
 0x55d   : > { %4667 = vst [vmem:[#allocation2 + $0x5f0] sm:$0xff] %v4475_v20 }
 0x55e   : > { %v3523_v37 = vpop.f32.mrf.mxu2  ;;  %v3348_v11 = vpop.f32.mrf.mxu0 }
 0x55f   : > { %v3524_v8 = vadd.f32 %v3523_v37, %v3435_v5  ;;  %v3612_v30 = vpop.f32.mrf.mxu3  ;;  %v3437_v62 = vpop.f32.mrf.mxu1 }
 0x560   : > { %v3438_v29 = vadd.f32 %v3437_v62, %v3348_v11  ;;  %v6252_v62 = vld [vmem:[%s7334_s12 + $0x3e8] sm:$0xf0] }
 0x561   : > { %v3613_v39 = vadd.f32 %v3612_v30, %v3524_v8  ;;  %3663 = vmatmul.bf16.gmra.mxu0 %v7700_v50 }
 0x562   : > { %3752 = vmatmul.bf16.gmra.mxu1 %v7702_v51 }
 0x563   : > { %v4481_v32 = vadd.f32 %v3613_v39, %v681_v59  ;;  %3841 = vmatmul.bf16.gmra.mxu2 %v7704_v55  ;;  %v6714_v59 = vld [vmem:[%s7334_s12 + $0x3d4] sm:$0xf] }
 0x564   : > { %3930 = vmatmul.bf16.gmra.mxu3 %v7706_v56 }
 0x565   : > { %4673 = vst [vmem:[#allocation2 + $0x1a8] sm:$0xff] %v4481_v32  ;;  %v6255_v32 = vor.u32 %v6714_v59, %v6252_v62 }
 0x566   : > { %v3526_v0 = vpop.f32.mrf.mxu2  ;;  %v3350_v40 = vpop.f32.mrf.mxu0 }
 0x567   : > { %v3527_v31 = vadd.f32 %v3526_v0, %v3438_v29  ;;  %v3615_v17 = vpop.f32.mrf.mxu3  ;;  %v3439_v23 = vpop.f32.mrf.mxu1  ;;  %v6762_v29 = vld [vmem:[%s7334_s12 + $0x554] sm:$0xf]  ;;  %v6444_v0 = vld [vmem:[%s7334_s12 + $0x568] sm:$0xf0]  ;;  %4177 = vmatpush.bf16.msrb.mxu2 %v6255_v32 }
 0x568   : > { %v3440_v12 = vadd.f32 %v3439_v23, %v3350_v40  ;;  %v699_v23 = vld [vmem:[#allocation2 + $0x78] sm:$0xff] }
 0x569   : > { %v3616_v20 = vadd.f32 %v3615_v17, %v3527_v31 }
 0x56b   : > { %v4487_v5 = vadd.f32 %v3616_v20, %v687_v61  ;;  %v6447_v61 = vor.u32 %v6762_v29, %v6444_v0 }
 0x56d   : > { %4679 = vst [vmem:[#allocation2 + $0x240] sm:$0xff] %v4487_v5  ;;  %4266 = vmatpush.bf16.msrb.mxu3 %v6447_v61 }
 0x56e   : > { %v3528_v6 = vpop.f32.mrf.mxu2  ;;  %v3353_v63 = vpop.f32.mrf.mxu0 }
 0x56f   : > { %v3529_v37 = vadd.f32 %v3528_v6, %v3440_v12  ;;  %v3617_v7 = vpop.f32.mrf.mxu3  ;;  %v3442_v8 = vpop.f32.mrf.mxu1 }
 0x570   : > { %v3443_v19 = vadd.f32 %v3442_v8, %v3353_v63  ;;  %v6666_v8 = vld [vmem:[%s7334_s12 + $0x254] sm:$0xf] }
 0x571   : > { %v3618_v30 = vadd.f32 %v3617_v7, %v3529_v37  ;;  %3668 = vmatmul.bf16.gmra.mxu0 %v7720_v1  ;;  %v6618_v37 = vld [vmem:[%s7334_s12 + $0xd4] sm:$0xf]  ;;  %v5868_v7 = vld [vmem:[%s7334_s12 + $0xe8] sm:$0xf0] }
 0x572   : > { %3757 = vmatmul.bf16.gmra.mxu1 %v7722_v2 }
 0x573   : > { %v4493_v11 = vadd.f32 %v3618_v30, %v693_v9  ;;  %3846 = vmatmul.bf16.gmra.mxu2 %v7724_v3  ;;  %v5871_v9 = vor.u32 %v6618_v37, %v5868_v7  ;;  %v6060_v30 = vld [vmem:[%s7334_s12 + $0x268] sm:$0xf0] }
 0x574   : > { %3935 = vmatmul.bf16.gmra.mxu3 %v7726_v4  ;;  %v6063_v62 = vor.u32 %v6666_v8, %v6060_v30  ;;  %v717_v30 = vld [vmem:[#allocation2 + $0x348] sm:$0xff] }
 0x575   : > { %4685 = vst [vmem:[#allocation2 + $0x68] sm:$0xff] %v4493_v11  ;;  %3999 = vmatpush.bf16.msrb.mxu0 %v5871_v9 }
 0x576   : > { %v3531_v39 = vpop.f32.mrf.mxu2  ;;  %v3355_v40 = vpop.f32.mrf.mxu0  ;;  %4088 = vmatpush.bf16.msrb.mxu1 %v6063_v62 }
 0x577   : > { %v3532_v31 = vadd.f32 %v3531_v39, %v3443_v19  ;;  %v3620_v17 = vpop.f32.mrf.mxu3  ;;  %v3444_v20 = vpop.f32.mrf.mxu1  ;;  %v705_v39 = vld [vmem:[#allocation2 + $0x478] sm:$0xff] }
 0x578   : > { %v3445_v6 = vadd.f32 %v3444_v20, %v3355_v40  ;;  %v711_v20 = vld [vmem:[#allocation2 + $0x288] sm:$0xff] }
 0x579   : > { %v3621_v5 = vadd.f32 %v3620_v17, %v3532_v31 }
 0x57b   : > { %v4499_v12 = vadd.f32 %v3621_v5, %v699_v23 }
 0x57d   : > { %4691 = vst [vmem:[#allocation2 + $0x78] sm:$0xff] %v4499_v12 }
 0x57e   : > { %v3533_v63 = vpop.f32.mrf.mxu2  ;;  %v3358_v59 = vpop.f32.mrf.mxu0 }
 0x57f   : > { %v3534_v11 = vadd.f32 %v3533_v63, %v3445_v6  ;;  %v3622_v19 = vpop.f32.mrf.mxu3  ;;  %v3447_v29 = vpop.f32.mrf.mxu1 }
 0x580   : > { %v3448_v31 = vadd.f32 %v3447_v29, %v3358_v59  ;;  %v6228_v29 = vld [vmem:[%s7334_s12 + $0x3b8] sm:$0xf0] }
 0x581   : > { %v3623_v0 = vadd.f32 %v3622_v19, %v3534_v11  ;;  %3673 = vmatmul.bf16.gmra.mxu0 %v7748_v33 }
 0x582   : > { %3762 = vmatmul.bf16.gmra.mxu1 %v7750_v34 }
 0x583   : > { %v4505_v32 = vadd.f32 %v3623_v0, %v705_v39  ;;  %3851 = vmatmul.bf16.gmra.mxu2 %v7752_v35  ;;  %v6708_v39 = vld [vmem:[%s7334_s12 + $0x3a4] sm:$0xf] }
 0x584   : > { %3940 = vmatmul.bf16.gmra.mxu3 %v7754_v36 }
 0x585   : > { %4697 = vst [vmem:[#allocation2 + $0x478] sm:$0xff] %v4505_v32  ;;  %v6231_v32 = vor.u32 %v6708_v39, %v6228_v29 }
 0x586   : > { %v3536_v17 = vpop.f32.mrf.mxu2  ;;  %v3360_v23 = vpop.f32.mrf.mxu0 }
 0x587   : > { %v3537_v40 = vadd.f32 %v3536_v17, %v3448_v31  ;;  %v3625_v61 = vpop.f32.mrf.mxu3  ;;  %v3449_v5 = vpop.f32.mrf.mxu1  ;;  %v6756_v31 = vld [vmem:[%s7334_s12 + $0x524] sm:$0xf]  ;;  %v6420_v17 = vld [vmem:[%s7334_s12 + $0x538] sm:$0xf0]  ;;  %4178 = vmatpush.bf16.msrb.mxu2 %v6231_v32 }
 0x588   : > { %v3450_v37 = vadd.f32 %v3449_v5, %v3360_v23  ;;  %v723_v5 = vld [vmem:[#allocation2 + $0x5f8] sm:$0xff] }
 0x589   : > { %v3626_v12 = vadd.f32 %v3625_v61, %v3537_v40 }
 0x58b   : > { %v4511_v6 = vadd.f32 %v3626_v12, %v711_v20  ;;  %v6423_v20 = vor.u32 %v6756_v31, %v6420_v17 }
 0x58d   : > { %4703 = vst [vmem:[#allocation2 + $0x288] sm:$0xff] %v4511_v6  ;;  %4267 = vmatpush.bf16.msrb.mxu3 %v6423_v20 }
 0x58e   : > { %v3538_v7 = vpop.f32.mrf.mxu2  ;;  %v3363_v8 = vpop.f32.mrf.mxu0 }
 0x58f   : > { %v3539_v63 = vadd.f32 %v3538_v7, %v3450_v37  ;;  %v3627_v9 = vpop.f32.mrf.mxu3  ;;  %v3452_v11 = vpop.f32.mrf.mxu1 }
 0x590   : > { %v3453_v62 = vadd.f32 %v3452_v11, %v3363_v8  ;;  %v6660_v11 = vld [vmem:[%s7334_s12 + $0x224] sm:$0xf] }
 0x591   : > { %v3628_v19 = vadd.f32 %v3627_v9, %v3539_v63  ;;  %3678 = vmatmul.bf16.gmra.mxu0 %v7768_v45  ;;  %v6612_v63 = vld [vmem:[%s7334_s12 + $0xa4] sm:$0xf]  ;;  %v5844_v9 = vld [vmem:[%s7334_s12 + $0xb8] sm:$0xf0] }
 0x592   : > { %3767 = vmatmul.bf16.gmra.mxu1 %v7770_v46 }
 0x593   : > { %v4517_v59 = vadd.f32 %v3628_v19, %v717_v30  ;;  %3856 = vmatmul.bf16.gmra.mxu2 %v7772_v47  ;;  %v5847_v30 = vor.u32 %v6612_v63, %v5844_v9  ;;  %v6036_v19 = vld [vmem:[%s7334_s12 + $0x238] sm:$0xf0] }
 0x594   : > { %3945 = vmatmul.bf16.gmra.mxu3 %v7774_v49  ;;  %v6039_v29 = vor.u32 %v6660_v11, %v6036_v19  ;;  %v741_v19 = vld [vmem:[#allocation2 + $0x290] sm:$0xff] }
 0x595   : > { %4709 = vst [vmem:[#allocation2 + $0x348] sm:$0xff] %v4517_v59  ;;  %4000 = vmatpush.bf16.msrb.mxu0 %v5847_v30 }
 0x596   : > { %v3541_v0 = vpop.f32.mrf.mxu2  ;;  %v3365_v23 = vpop.f32.mrf.mxu0  ;;  %4089 = vmatpush.bf16.msrb.mxu1 %v6039_v29 }
 0x597   : > { %v3542_v40 = vadd.f32 %v3541_v0, %v3453_v62  ;;  %v3630_v61 = vpop.f32.mrf.mxu3  ;;  %v3454_v12 = vpop.f32.mrf.mxu1  ;;  %v729_v0 = vld [vmem:[#allocation2 + $0x1b0] sm:$0xff] }
 0x598   : > { %v3455_v7 = vadd.f32 %v3454_v12, %v3365_v23  ;;  %v735_v12 = vld [vmem:[#allocation2 + $0x180] sm:$0xff] }
 0x599   : > { %v3631_v6 = vadd.f32 %v3630_v61, %v3542_v40 }
 0x59b   : > { %v4523_v37 = vadd.f32 %v3631_v6, %v723_v5 }
 0x59d   : > { %4715 = vst [vmem:[#allocation2 + $0x5f8] sm:$0xff] %v4523_v37 }
 0x59e   : > { %v3543_v8 = vpop.f32.mrf.mxu2  ;;  %v3368_v39 = vpop.f32.mrf.mxu0 }
 0x59f   : > { %v3544_v59 = vadd.f32 %v3543_v8, %v3455_v7  ;;  %v3632_v62 = vpop.f32.mrf.mxu3  ;;  %v3457_v31 = vpop.f32.mrf.mxu1 }
 0x5a0   : > { %v3458_v40 = vadd.f32 %v3457_v31, %v3368_v39  ;;  %v6204_v31 = vld [vmem:[%s7334_s12 + $0x388] sm:$0xf0] }
 0x5a1   : > { %v3633_v17 = vadd.f32 %v3632_v62, %v3544_v59  ;;  %3683 = vmatmul.bf16.gmra.mxu0 %v7795_v18 }
 0x5a2   : > { %3772 = vmatmul.bf16.gmra.mxu1 %v7798_v21 }
 0x5a3   : > { %v4529_v32 = vadd.f32 %v3633_v17, %v729_v0  ;;  %3861 = vmatmul.bf16.gmra.mxu2 %v7800_v22  ;;  %v6702_v0 = vld [vmem:[%s7334_s12 + $0x374] sm:$0xf] }
 0x5a4   : > { %3950 = vmatmul.bf16.gmra.mxu3 %v7802_v24 }
 0x5a5   : > { %4721 = vst [vmem:[#allocation2 + $0x1b0] sm:$0xff] %v4529_v32  ;;  %v6207_v32 = vor.u32 %v6702_v0, %v6204_v31 }
 0x5a6   : > { %v3546_v61 = vpop.f32.mrf.mxu2  ;;  %v3370_v5 = vpop.f32.mrf.mxu0 }
 0x5a7   : > { %v3547_v23 = vadd.f32 %v3546_v61, %v3458_v40  ;;  %v3635_v20 = vpop.f32.mrf.mxu3  ;;  %v3459_v6 = vpop.f32.mrf.mxu1  ;;  %v6750_v40 = vld [vmem:[%s7334_s12 + $0x4f4] sm:$0xf]  ;;  %v6396_v61 = vld [vmem:[%s7334_s12 + $0x508] sm:$0xf0]  ;;  %4179 = vmatpush.bf16.msrb.mxu2 %v6207_v32 }
 0x5a8   : > { %v3460_v63 = vadd.f32 %v3459_v6, %v3370_v5  ;;  %v556_v6 = vld [vmem:[#allocation2 + $0x450] sm:$0xff] }
 0x5a9   : > { %v3636_v37 = vadd.f32 %v3635_v20, %v3547_v23 }
 0x5ab   : > { %v4535_v7 = vadd.f32 %v3636_v37, %v735_v12  ;;  %v6399_v12 = vor.u32 %v6750_v40, %v6396_v61 }
 0x5ad   : > { %4727 = vst [vmem:[#allocation2 + $0x180] sm:$0xff] %v4535_v7  ;;  %4268 = vmatpush.bf16.msrb.mxu3 %v6399_v12  ;;  %v9190_v12 = vld [vmem:[#allocation22_spill] sm:$0xff] }
 0x5ae   : > { %v3548_v9 = vpop.f32.mrf.mxu2  ;;  %v3649_v11 = vpop.f32.mrf.mxu0 }
 0x5af   : > { %v3549_v8 = vadd.f32 %v3548_v9, %v3460_v63  ;;  %v3637_v30 = vpop.f32.mrf.mxu3  ;;  %v3738_v59 = vpop.f32.mrf.mxu1 }
 0x5b0   : > { %v3739_v29 = vadd.f32 %v3738_v59, %v3649_v11  ;;  %v6654_v59 = vld [vmem:[%s7334_s12 + $0x1f4] sm:$0xf] }
 0x5b1   : > { %v3638_v62 = vadd.f32 %v3637_v30, %v3549_v8  ;;  %3688 = vmatmul.bf16.gmra.mxu0 %v7816_v41  ;;  %v6606_v8 = vld [vmem:[%s7334_s12 + $0x74] sm:$0xf]  ;;  %v5820_v30 = vld [vmem:[%s7334_s12 + $0x88] sm:$0xf0] }
 0x5b2   : > { %3777 = vmatmul.bf16.gmra.mxu1 %v7818_v43 }
 0x5b3   : > { %v4541_v39 = vadd.f32 %v3638_v62, %v741_v19  ;;  %3866 = vmatmul.bf16.gmra.mxu2 %v7820_v44  ;;  %v5823_v19 = vor.u32 %v6606_v8, %v5820_v30  ;;  %v6012_v62 = vld [vmem:[%s7334_s12 + $0x208] sm:$0xf0] }
 0x5b4   : > { %3955 = vmatmul.bf16.gmra.mxu3 %v7822_v58  ;;  %v6015_v31 = vor.u32 %v6654_v59, %v6012_v62 }
 0x5b5   : > { %4733 = vst [vmem:[#allocation2 + $0x290] sm:$0xff] %v4541_v39  ;;  %4001 = vmatpush.bf16.msrb.mxu0 %v5823_v19 }
 0x5b6   : > { %v3827_v17 = vpop.f32.mrf.mxu2  ;;  %v3651_v5 = vpop.f32.mrf.mxu0  ;;  %4090 = vmatpush.bf16.msrb.mxu1 %v6015_v31 }
 0x5b7   : > { %v3828_v23 = vadd.f32 %v3827_v17, %v3739_v29  ;;  %v3916_v20 = vpop.f32.mrf.mxu3  ;;  %v3740_v37 = vpop.f32.mrf.mxu1  ;;  %v562_v17 = vld [vmem:[#allocation2 + $0x490] sm:$0xff] }
 0x5b8   : > { %v3741_v9 = vadd.f32 %v3740_v37, %v3651_v5  ;;  %v9189_v5 = vld [vmem:[#allocation21_spill] sm:$0xff] }
 0x5b9   : > { %v3917_v7 = vadd.f32 %v3916_v20, %v3828_v23  ;;  %v9188_v20 = vld [vmem:[#allocation20_spill] sm:$0xff] }
 0x5bb   : > { %v4356_v63 = vadd.f32 %v3917_v7, %v556_v6 }
 0x5bd   : > { %4548 = vst [vmem:[#allocation2 + $0x450] sm:$0xff] %v4356_v63 }
 0x5be   : > { %v3829_v11 = vpop.f32.mrf.mxu2  ;;  %v3654_v0 = vpop.f32.mrf.mxu0 }
 0x5bf   : > { %v3830_v39 = vadd.f32 %v3829_v11, %v3741_v9  ;;  %v3918_v29 = vpop.f32.mrf.mxu3  ;;  %v3743_v40 = vpop.f32.mrf.mxu1  ;;  %v568_v9 = vld [vmem:[#allocation2 + $0x580] sm:$0xff] }
 0x5c0   : > { %v3744_v23 = vadd.f32 %v3743_v40, %v3654_v0  ;;  %v574_v0 = vld [vmem:[#allocation2 + $0x8] sm:$0xff]  ;;  %v9191_v40 = vld [vmem:[#allocation23_spill] sm:$0xff] }
 0x5c1   : > { %v3919_v61 = vadd.f32 %v3918_v29, %v3830_v39  ;;  %3693 = vmatmul.bf16.gmra.mxu0 %v7842_v57 }
 0x5c2   : > { %3782 = vmatmul.bf16.gmra.mxu1 %v9188_v20  ;;  %v586_v20 = vld [vmem:[#allocation2 + $0x2a0] sm:$0xff] }
 0x5c3   : > { %v4362_v32 = vadd.f32 %v3919_v61, %v562_v17  ;;  %3871 = vmatmul.bf16.gmra.mxu2 %v9189_v5 }
 0x5c4   : > { %3960 = vmatmul.bf16.gmra.mxu3 %v9190_v12 }
 0x5c5   : > { %4554 = vst [vmem:[#allocation2 + $0x490] sm:$0xff] %v4362_v32 }
 0x5c6   : > { %v3832_v6 = vpop.f32.mrf.mxu2  ;;  %v3656_v63 = vpop.f32.mrf.mxu0 }
 0x5c7   : > { %v3833_v37 = vadd.f32 %v3832_v6, %v3744_v23  ;;  %v3921_v7 = vpop.f32.mrf.mxu3  ;;  %v3745_v8 = vpop.f32.mrf.mxu1  ;;  %v9192_v23 = vld [vmem:[#allocation24_spill] sm:$0xff]  ;;  %v9193_v6 = vld [vmem:[#allocation25_spill] sm:$0xff] }
 0x5c8   : > { %v3746_v19 = vadd.f32 %v3745_v8, %v3656_v63  ;;  %v6180_v63 = vld [vmem:[%s7334_s12 + $0x358] sm:$0xf0] }
 0x5c9   : > { %v3922_v30 = vadd.f32 %v3921_v7, %v3833_v37  ;;  %v9194_v37 = vld [vmem:[#allocation26_spill] sm:$0xff]  ;;  %v6696_v7 = vld [vmem:[%s7334_s12 + $0x344] sm:$0xf] }
 0x5ca   : > { %v6183_v8 = vor.u32 %v6696_v7, %v6180_v63 }
 0x5cb   : > { %v4368_v11 = vadd.f32 %v3922_v30, %v568_v9  ;;  %v6744_v30 = vld [vmem:[%s7334_s12 + $0x4c4] sm:$0xf] }
 0x5cc   : > { %4180 = vmatpush.bf16.msrb.mxu2 %v6183_v8  ;;  %v9195_v8 = vld [vmem:[#allocation27_spill] sm:$0xff] }
 0x5cd   : > { %4560 = vst [vmem:[#allocation2 + $0x580] sm:$0xff] %v4368_v11  ;;  %v6372_v11 = vld [vmem:[%s7334_s12 + $0x4d8] sm:$0xf0] }
 0x5ce   : > { %v3834_v59 = vpop.f32.mrf.mxu2  ;;  %v3659_v29 = vpop.f32.mrf.mxu0 }
 0x5cf   : > { %v3835_v62 = vadd.f32 %v3834_v59, %v3746_v19  ;;  %v3923_v39 = vpop.f32.mrf.mxu3  ;;  %v3748_v31 = vpop.f32.mrf.mxu1 }
 0x5d0   : > { %v3749_v32 = vadd.f32 %v3748_v31, %v3659_v29  ;;  %v580_v29 = vld [vmem:[#allocation2 + $0x3a8] sm:$0xff] }
 0x5d1   : > { %v3924_v17 = vadd.f32 %v3923_v39, %v3835_v62  ;;  %3698 = vmatmul.bf16.gmra.mxu0 %v9191_v40  ;;  %v6375_v39 = vor.u32 %v6744_v30, %v6372_v11  ;;  %v5988_v40 = vld [vmem:[%s7334_s12 + $0x1d8] sm:$0xf0] }
 0x5d2   : > { %3787 = vmatmul.bf16.gmra.mxu1 %v9192_v23  ;;  %v6648_v23 = vld [vmem:[%s7334_s12 + $0x1c4] sm:$0xf] }
 0x5d3   : > { %v4374_v61 = vadd.f32 %v3924_v17, %v574_v0  ;;  %3876 = vmatmul.bf16.gmra.mxu2 %v9193_v6  ;;  %4269 = vmatpush.bf16.msrb.mxu3 %v6375_v39  ;;  %v5796_v6 = vld [vmem:[%s7334_s12 + $0x58] sm:$0xf0]  ;;  %v5991_v5 = vor.u32 %v6648_v23, %v5988_v40  ;;  %v9197_v39 = vld [vmem:[#allocation29_spill] sm:$0xff] }
 0x5d4   : > { %3965 = vmatmul.bf16.gmra.mxu3 %v9194_v37  ;;  %v6600_v37 = vld [vmem:[%s7334_s12 + $0x44] sm:$0xf]  ;;  %v592_v23 = vld [vmem:[#allocation2 + $0x1f8] sm:$0xff] }
 0x5d5   : > { %4566 = vst [vmem:[#allocation2 + $0x8] sm:$0xff] %v4374_v61  ;;  %v5799_v63 = vor.u32 %v6600_v37, %v5796_v6  ;;  %4091 = vmatpush.bf16.msrb.mxu1 %v5991_v5  ;;  %v9198_v6 = vld [vmem:[#allocation30_spill] sm:$0xff] }
 0x5d6   : > { %v3837_v9 = vpop.f32.mrf.mxu2  ;;  %v3661_v62 = vpop.f32.mrf.mxu0 }
 0x5d7   : > { %v3838_v19 = vadd.f32 %v3837_v9, %v3749_v32  ;;  %v3926_v59 = vpop.f32.mrf.mxu3  ;;  %v3750_v0 = vpop.f32.mrf.mxu1  ;;  %4002 = vmatpush.bf16.msrb.mxu0 %v5799_v63 }
 0x5d8   : > { %v3751_v61 = vadd.f32 %v3750_v0, %v3661_v62  ;;  %v9196_v62 = vld [vmem:[#allocation28_spill] sm:$0xff] }
 0x5d9   : > { %v3927_v31 = vadd.f32 %v3926_v59, %v3838_v19 }
 0x5db   : > { %v4380_v17 = vadd.f32 %v3927_v31, %v580_v29 }
 0x5dd   : > { %4572 = vst [vmem:[#allocation2 + $0x3a8] sm:$0xff] %v4380_v17 }
 0x5de   : > { %v3839_v7 = vpop.f32.mrf.mxu2  ;;  %v3664_v12 = vpop.f32.mrf.mxu0 }
 0x5df   : > { %v3840_v32 = vadd.f32 %v3839_v7, %v3751_v61  ;;  %v3928_v9 = vpop.f32.mrf.mxu3  ;;  %v3753_v30 = vpop.f32.mrf.mxu1 }
 0x5e0   : > { %v3754_v59 = vadd.f32 %v3753_v30, %v3664_v12 }
 0x5e1   : > { %v3929_v11 = vadd.f32 %v3928_v9, %v3840_v32  ;;  %3703 = vmatmul.bf16.gmra.mxu0 %v9195_v8  ;;  %v598_v32 = vld [vmem:[#allocation2 + $0x2a8] sm:$0xff] }
 0x5e2   : > { %3792 = vmatmul.bf16.gmra.mxu1 %v9196_v62  ;;  %v610_v8 = vld [vmem:[#allocation2 + $0x2e8] sm:$0xff] }
 0x5e3   : > { %v4386_v19 = vadd.f32 %v3929_v11, %v586_v20  ;;  %3881 = vmatmul.bf16.gmra.mxu2 %v9197_v39  ;;  %v9199_v11 = vld [vmem:[#allocation31_spill] sm:$0xff] }
 0x5e4   : > { %3970 = vmatmul.bf16.gmra.mxu3 %v9198_v6  ;;  %v5964_v6 = vld [vmem:[%s7334_s12 + $0x1a8] sm:$0xf0] }
 0x5e5   : > { %4578 = vst [vmem:[#allocation2 + $0x2a0] sm:$0xff] %v4386_v19 }
 0x5e6   : > { %v3842_v37 = vpop.f32.mrf.mxu2  ;;  %v3666_v40 = vpop.f32.mrf.mxu0 }
 0x5e7   : > { %v3843_v29 = vadd.f32 %v3842_v37, %v3754_v59  ;;  %v3931_v0 = vpop.f32.mrf.mxu3  ;;  %v3755_v31 = vpop.f32.mrf.mxu1  ;;  %v9200_v37 = vld [vmem:[#allocation32_spill] sm:$0xff] }
 0x5e8   : > { %v3756_v5 = vadd.f32 %v3755_v31, %v3666_v40  ;;  %v6690_v40 = vld [vmem:[%s7334_s12 + $0x314] sm:$0xf] }
 0x5e9   : > { %v3932_v17 = vadd.f32 %v3931_v0, %v3843_v29  ;;  %v9201_v29 = vld [vmem:[#allocation33_spill] sm:$0xff]  ;;  %v9202_v0 = vld [vmem:[#allocation34_spill] sm:$0xff] }
 0x5eb   : > { %v4392_v61 = vadd.f32 %v3932_v17, %v592_v23  ;;  %v6156_v23 = vld [vmem:[%s7334_s12 + $0x328] sm:$0xf0] }
 0x5ec   : > { %v6159_v17 = vor.u32 %v6690_v40, %v6156_v23 }
 0x5ed   : > { %4584 = vst [vmem:[#allocation2 + $0x1f8] sm:$0xff] %v4392_v61  ;;  %v6738_v61 = vld [vmem:[%s7334_s12 + $0x494] sm:$0xf] }
 0x5ee   : > { %v3844_v20 = vpop.f32.mrf.mxu2  ;;  %v3669_v63 = vpop.f32.mrf.mxu0  ;;  %4181 = vmatpush.bf16.msrb.mxu2 %v6159_v17  ;;  %v9203_v17 = vld [vmem:[#allocation35_spill] sm:$0xff] }
 0x5ef   : > { %v3845_v12 = vadd.f32 %v3844_v20, %v3756_v5  ;;  %v3933_v7 = vpop.f32.mrf.mxu3  ;;  %v3758_v9 = vpop.f32.mrf.mxu1  ;;  %v6348_v5 = vld [vmem:[%s7334_s12 + $0x4a8] sm:$0xf0] }
 0x5f0   : > { %v3759_v59 = vadd.f32 %v3758_v9, %v3669_v63  ;;  %v6351_v63 = vor.u32 %v6738_v61, %v6348_v5 }
 0x5f1   : > { %v3934_v30 = vadd.f32 %v3933_v7, %v3845_v12  ;;  %3708 = vmatmul.bf16.gmra.mxu0 %v9199_v11  ;;  %v6642_v11 = vld [vmem:[%s7334_s12 + $0x194] sm:$0xf] }
 0x5f2   : > { %3797 = vmatmul.bf16.gmra.mxu1 %v9200_v37  ;;  %4270 = vmatpush.bf16.msrb.mxu3 %v6351_v63  ;;  %v5772_v37 = vld [vmem:[%s7334_s12 + $0x28] sm:$0xf0]  ;;  %v5967_v62 = vor.u32 %v6642_v11, %v5964_v6  ;;  %v616_v11 = vld [vmem:[#allocation2 + $0x5d0] sm:$0xff] }
 0x5f3   : > { %v4398_v19 = vadd.f32 %v3934_v30, %v598_v32  ;;  %3886 = vmatmul.bf16.gmra.mxu2 %v9201_v29  ;;  %v604_v32 = vld [vmem:[#allocation2 + $0x4e8] sm:$0xff]  ;;  %v6594_v29 = vld [vmem:[%s7334_s12 + $0x14] sm:$0xf] }
 0x5f4   : > { %3975 = vmatmul.bf16.gmra.mxu3 %v9202_v0  ;;  %v5775_v23 = vor.u32 %v6594_v29, %v5772_v37  ;;  %4092 = vmatpush.bf16.msrb.mxu1 %v5967_v62  ;;  %v9205_v63 = vld [vmem:[#allocation37_spill] sm:$0xff]  ;;  %v9206_v37 = vld [vmem:[#allocation38_spill] sm:$0xff] }
 0x5f5   : > { %4590 = vst [vmem:[#allocation2 + $0x2a8] sm:$0xff] %v4398_v19 }
 0x5f6   : > { %v3847_v31 = vpop.f32.mrf.mxu2  ;;  %v3671_v7 = vpop.f32.mrf.mxu0  ;;  %4003 = vmatpush.bf16.msrb.mxu0 %v5775_v23 }
 0x5f7   : > { %v3848_v20 = vadd.f32 %v3847_v31, %v3759_v59  ;;  %v3936_v12 = vpop.f32.mrf.mxu3  ;;  %v3760_v9 = vpop.f32.mrf.mxu1 }
 0x5f8   : > { %v3761_v0 = vadd.f32 %v3760_v9, %v3671_v7  ;;  %v9204_v7 = vld [vmem:[#allocation36_spill] sm:$0xff] }
 0x5f9   : > { %v3937_v30 = vadd.f32 %v3936_v12, %v3848_v20 }
 0x5fb   : > { %v4404_v19 = vadd.f32 %v3937_v30, %v604_v32 }
 0x5fd   : > { %4596 = vst [vmem:[#allocation2 + $0x4e8] sm:$0xff] %v4404_v19 }
 0x5fe   : > { %v3849_v40 = vpop.f32.mrf.mxu2  ;;  %v3674_v39 = vpop.f32.mrf.mxu0 }
 0x5ff   : > { %v3850_v59 = vadd.f32 %v3849_v40, %v3761_v0  ;;  %v3938_v31 = vpop.f32.mrf.mxu3  ;;  %v3763_v61 = vpop.f32.mrf.mxu1 }
 0x600   : > { %v3764_v12 = vadd.f32 %v3763_v61, %v3674_v39 }
 0x601   : > { %v3939_v5 = vadd.f32 %v3938_v31, %v3850_v59  ;;  %3713 = vmatmul.bf16.gmra.mxu0 %v9203_v17  ;;  %v622_v59 = vld [vmem:[#allocation2 + $0x80] sm:$0xff] }
 0x602   : > { %3802 = vmatmul.bf16.gmra.mxu1 %v9204_v7 }
 0x603   : > { %v4410_v20 = vadd.f32 %v3939_v5, %v610_v8  ;;  %3891 = vmatmul.bf16.gmra.mxu2 %v9205_v63  ;;  %v9207_v5 = vld [vmem:[#allocation39_spill] sm:$0xff]  ;;  %v9210_v63 = vld [vmem:[#allocation42_spill] sm:$0xff] }
 0x604   : > { %3980 = vmatmul.bf16.gmra.mxu3 %v9206_v37 }
 0x605   : > { %4602 = vst [vmem:[#allocation2 + $0x2e8] sm:$0xff] %v4410_v20 }
 0x606   : > { %v3852_v29 = vpop.f32.mrf.mxu2  ;;  %v3676_v6 = vpop.f32.mrf.mxu0 }
 0x607   : > { %v3853_v0 = vadd.f32 %v3852_v29, %v3764_v12  ;;  %v3941_v32 = vpop.f32.mrf.mxu3  ;;  %v3765_v9 = vpop.f32.mrf.mxu1  ;;  %v9208_v12 = vld [vmem:[#allocation40_spill] sm:$0xff]  ;;  %v9209_v29 = vld [vmem:[#allocation41_spill] sm:$0xff] }
 0x608   : > { %v3766_v62 = vadd.f32 %v3765_v9, %v3676_v6  ;;  %v628_v9 = vld [vmem:[#allocation2 + $0x40] sm:$0xff] }
 0x609   : > { %v3942_v30 = vadd.f32 %v3941_v32, %v3853_v0 }
 0x60b   : > { %v4416_v19 = vadd.f32 %v3942_v30, %v616_v11 }
 0x60d   : > { %4608 = vst [vmem:[#allocation2 + $0x5d0] sm:$0xff] %v4416_v19 }
 0x60e   : > { %v3854_v40 = vpop.f32.mrf.mxu2  ;;  %v3679_v23 = vpop.f32.mrf.mxu0 }
 0x60f   : > { %v3855_v8 = vadd.f32 %v3854_v40, %v3766_v62  ;;  %v3943_v39 = vpop.f32.mrf.mxu3  ;;  %v3768_v31 = vpop.f32.mrf.mxu1 }
 0x610   : > { %v3769_v37 = vadd.f32 %v3768_v31, %v3679_v23  ;;  %v634_v31 = vld [vmem:[#allocation2 + $0x340] sm:$0xff] }
 0x611   : > { %v3944_v61 = vadd.f32 %v3943_v39, %v3855_v8  ;;  %3718 = vmatmul.bf16.gmra.mxu0 %v9207_v5 }
 0x612   : > { %3807 = vmatmul.bf16.gmra.mxu1 %v9208_v12 }
 0x613   : > { %v4422_v20 = vadd.f32 %v3944_v61, %v622_v59  ;;  %3896 = vmatmul.bf16.gmra.mxu2 %v9209_v29 }
 0x614   : > { %3985 = vmatmul.bf16.gmra.mxu3 %v9210_v63 }
 0x615   : > { %4614 = vst [vmem:[#allocation2 + $0x80] sm:$0xff] %v4422_v20 }
 0x616   : > { %v3857_v0 = vpop.f32.mrf.mxu2  ;;  %v3681_v11 = vpop.f32.mrf.mxu0 }
 0x617   : > { %v3858_v32 = vadd.f32 %v3857_v0, %v3769_v37  ;;  %v3946_v6 = vpop.f32.mrf.mxu3  ;;  %v3770_v30 = vpop.f32.mrf.mxu1 }
 0x618   : > { %v3771_v40 = vadd.f32 %v3770_v30, %v3681_v11  ;;  %v640_v11 = vld [vmem:[#allocation2 + $0x460] sm:$0xff] }
 0x619   : > { %v3947_v19 = vadd.f32 %v3946_v6, %v3858_v32 }
 0x61b   : > { %v4428_v62 = vadd.f32 %v3947_v19, %v628_v9 }
 0x61d   : > { %4620 = vst [vmem:[#allocation2 + $0x40] sm:$0xff] %v4428_v62 }
 0x61e   : > { %v3859_v8 = vpop.f32.mrf.mxu2  ;;  %v3684_v59 = vpop.f32.mrf.mxu0 }
 0x61f   : > { %v3860_v39 = vadd.f32 %v3859_v8, %v3771_v40  ;;  %v3948_v23 = vpop.f32.mrf.mxu3  ;;  %v3773_v61 = vpop.f32.mrf.mxu1 }
 0x620   : > { %v3774_v63 = vadd.f32 %v3773_v61, %v3684_v59 }
 0x621   : > { %v3949_v29 = vadd.f32 %v3948_v23, %v3860_v39  ;;  %3723 = vmatmul.bf16.gmra.mxu0 %v7986_v10  ;;  %v646_v23 = vld [vmem:[#allocation2 + $0x468] sm:$0xff] }
 0x622   : > { %3812 = vmatmul.bf16.gmra.mxu1 %v7990_v38 }
 0x623   : > { %v4434_v20 = vadd.f32 %v3949_v29, %v634_v31  ;;  %3901 = vmatmul.bf16.gmra.mxu2 %v7992_v42 }
 0x624   : > { %3990 = vmatmul.bf16.gmra.mxu3 %v7994_v60 }
 0x625   : > { %4626 = vst [vmem:[#allocation2 + $0x340] sm:$0xff] %v4434_v20 }
 0x626   : > { %v3862_v37 = vpop.f32.mrf.mxu2  ;;  %v3686_v6 = vpop.f32.mrf.mxu0 }
 0x627   : > { %v3863_v0 = vadd.f32 %v3862_v37, %v3774_v63  ;;  %v3951_v32 = vpop.f32.mrf.mxu3  ;;  %v3775_v9 = vpop.f32.mrf.mxu1 }
 0x628   : > { %v3776_v62 = vadd.f32 %v3775_v9, %v3686_v6  ;;  %v652_v6 = vld [vmem:[#allocation2 + $0xe8] sm:$0xff] }
 0x629   : > { %v3952_v30 = vadd.f32 %v3951_v32, %v3863_v0 }
 0x62b   : > { %v4440_v19 = vadd.f32 %v3952_v30, %v640_v11 }
 0x62d   : > { %4632 = vst [vmem:[#allocation2 + $0x460] sm:$0xff] %v4440_v19 }
 0x62e   : > { %v3864_v40 = vpop.f32.mrf.mxu2  ;;  %v3689_v39 = vpop.f32.mrf.mxu0 }
 0x62f   : > { %v3865_v29 = vadd.f32 %v3864_v40, %v3776_v62  ;;  %v3953_v8 = vpop.f32.mrf.mxu3  ;;  %v3778_v59 = vpop.f32.mrf.mxu1 }
 0x630   : > { %v3779_v20 = vadd.f32 %v3778_v59, %v3689_v39 }
 0x631   : > { %v3954_v31 = vadd.f32 %v3953_v8, %v3865_v29  ;;  %4004 = vmatmul.bf16.vlgmr.msrb.gmra.mxu0 %v7622_v48 }
 0x632   : > { %4093 = vmatmul.bf16.vlgmr.msrb.gmra.mxu1 %v7626_v52  ;;  %v658_v52 = vld [vmem:[#allocation2 + $0x2c0] sm:$0xff] }
 0x633   : > { %v4446_v61 = vadd.f32 %v3954_v31, %v646_v23  ;;  %4182 = vmatmul.bf16.vlgmr.msrb.gmra.mxu2 %v7628_v53 }
 0x634   : > { %4271 = vmatmul.bf16.vlgmr.msrb.gmra.mxu3 %v7630_v54 }
 0x635   : > { %4638 = vst [vmem:[#allocation2 + $0x468] sm:$0xff] %v4446_v61 }
 0x636   : > { %v3867_v63 = vpop.f32.mrf.mxu2  ;;  %v3691_v32 = vpop.f32.mrf.mxu0 }
 0x637   : > { %v3868_v37 = vadd.f32 %v3867_v63, %v3779_v20  ;;  %v3956_v0 = vpop.f32.mrf.mxu3  ;;  %v3780_v11 = vpop.f32.mrf.mxu1  ;;  %v664_v20 = vld [vmem:[#allocation2 + $0x30] sm:$0xff] }
 0x638   : > { %v3781_v19 = vadd.f32 %v3780_v11, %v3691_v32 }
 0x639   : > { %v3957_v9 = vadd.f32 %v3956_v0, %v3868_v37 }
 0x63b   : > { %v4452_v30 = vadd.f32 %v3957_v9, %v652_v6 }
 0x63d   : > { %4644 = vst [vmem:[#allocation2 + $0xe8] sm:$0xff] %v4452_v30 }
 0x63e   : > { %v3869_v48 = vpop.f32.mrf.mxu2  ;;  %v3694_v29 = vpop.f32.mrf.mxu0 }
 0x63f   : > { %v3870_v62 = vadd.f32 %v3869_v48, %v3781_v19  ;;  %v3958_v40 = vpop.f32.mrf.mxu3  ;;  %v3783_v8 = vpop.f32.mrf.mxu1 }
 0x640   : > { %v3784_v39 = vadd.f32 %v3783_v8, %v3694_v29 }
 0x641   : > { %v3959_v53 = vadd.f32 %v3958_v40, %v3870_v62  ;;  %4009 = vmatmul.bf16.gmra.mxu0 %v7652_v13 }
 0x642   : > { %4098 = vmatmul.bf16.gmra.mxu1 %v7654_v14  ;;  %v670_v14 = vld [vmem:[#allocation2 + $0x368] sm:$0xff] }
 0x643   : > { %v4458_v54 = vadd.f32 %v3959_v53, %v658_v52  ;;  %4187 = vmatmul.bf16.gmra.mxu2 %v7656_v15  ;;  %v676_v52 = vld [vmem:[#allocation2 + $0x230] sm:$0xff] }
 0x644   : > { %4276 = vmatmul.bf16.gmra.mxu3 %v7658_v16 }
 0x645   : > { %4650 = vst [vmem:[#allocation2 + $0x2c0] sm:$0xff] %v4458_v54 }
 0x646   : > { %v3872_v23 = vpop.f32.mrf.mxu2  ;;  %v3696_v61 = vpop.f32.mrf.mxu0 }
 0x647   : > { %v3873_v59 = vadd.f32 %v3872_v23, %v3784_v39  ;;  %v3961_v31 = vpop.f32.mrf.mxu3  ;;  %v3785_v63 = vpop.f32.mrf.mxu1 }
 0x648   : > { %v3786_v32 = vadd.f32 %v3785_v63, %v3696_v61 }
 0x649   : > { %v3962_v37 = vadd.f32 %v3961_v31, %v3873_v59 }
 0x64b   : > { %v4464_v0 = vadd.f32 %v3962_v37, %v664_v20 }
 0x64d   : > { %4656 = vst [vmem:[#allocation2 + $0x30] sm:$0xff] %v4464_v0 }
 0x64e   : > { %v3874_v13 = vpop.f32.mrf.mxu2  ;;  %v3699_v9 = vpop.f32.mrf.mxu0 }
 0x64f   : > { %v3875_v6 = vadd.f32 %v3874_v13, %v3786_v32  ;;  %v3963_v11 = vpop.f32.mrf.mxu3  ;;  %v3788_v30 = vpop.f32.mrf.mxu1  ;;  %v688_v13 = vld [vmem:[#allocation2 + $0x280] sm:$0xff] }
 0x650   : > { %v3789_v19 = vadd.f32 %v3788_v30, %v3699_v9 }
 0x651   : > { %v3964_v15 = vadd.f32 %v3963_v11, %v3875_v6  ;;  %4014 = vmatmul.bf16.gmra.mxu0 %v7672_v25 }
 0x652   : > { %4103 = vmatmul.bf16.gmra.mxu1 %v7674_v26  ;;  %v682_v26 = vld [vmem:[#allocation2 + $0x398] sm:$0xff] }
 0x653   : > { %v4470_v16 = vadd.f32 %v3964_v15, %v670_v14  ;;  %4192 = vmatmul.bf16.gmra.mxu2 %v7676_v27 }
 0x654   : > { %4281 = vmatmul.bf16.gmra.mxu3 %v7678_v28 }
 0x655   : > { %4662 = vst [vmem:[#allocation2 + $0x368] sm:$0xff] %v4470_v16 }
 0x656   : > { %v3877_v48 = vpop.f32.mrf.mxu2  ;;  %v3701_v29 = vpop.f32.mrf.mxu0 }
 0x657   : > { %v3878_v62 = vadd.f32 %v3877_v48, %v3789_v19  ;;  %v3966_v40 = vpop.f32.mrf.mxu3  ;;  %v3790_v8 = vpop.f32.mrf.mxu1 }
 0x658   : > { %v3791_v39 = vadd.f32 %v3790_v8, %v3701_v29  ;;  %v700_v8 = vld [vmem:[#allocation2 + $0x210] sm:$0xff] }
 0x659   : > { %v3967_v53 = vadd.f32 %v3966_v40, %v3878_v62 }
 0x65b   : > { %v4476_v54 = vadd.f32 %v3967_v53, %v676_v52 }
 0x65d   : > { %4668 = vst [vmem:[#allocation2 + $0x230] sm:$0xff] %v4476_v54 }
 0x65e   : > { %v3879_v25 = vpop.f32.mrf.mxu2  ;;  %v3704_v31 = vpop.f32.mrf.mxu0 }
 0x65f   : > { %v3880_v23 = vadd.f32 %v3879_v25, %v3791_v39  ;;  %v3968_v59 = vpop.f32.mrf.mxu3  ;;  %v3793_v61 = vpop.f32.mrf.mxu1 }
 0x660   : > { %v3794_v20 = vadd.f32 %v3793_v61, %v3704_v31 }
 0x661   : > { %v3969_v27 = vadd.f32 %v3968_v59, %v3880_v23  ;;  %4019 = vmatmul.bf16.gmra.mxu0 %v7700_v50 }
 0x662   : > { %4108 = vmatmul.bf16.gmra.mxu1 %v7702_v51  ;;  %v694_v51 = vld [vmem:[#allocation2 + $0x358] sm:$0xff] }
 0x663   : > { %v4482_v28 = vadd.f32 %v3969_v27, %v682_v26  ;;  %4197 = vmatmul.bf16.gmra.mxu2 %v7704_v55 }
 0x664   : > { %4286 = vmatmul.bf16.gmra.mxu3 %v7706_v56 }
 0x665   : > { %4674 = vst [vmem:[#allocation2 + $0x398] sm:$0xff] %v4482_v28 }
 0x666   : > { %v3882_v63 = vpop.f32.mrf.mxu2  ;;  %v3706_v32 = vpop.f32.mrf.mxu0 }
 0x667   : > { %v3883_v37 = vadd.f32 %v3882_v63, %v3794_v20  ;;  %v3971_v0 = vpop.f32.mrf.mxu3  ;;  %v3795_v6 = vpop.f32.mrf.mxu1 }
 0x668   : > { %v3796_v14 = vadd.f32 %v3795_v6, %v3706_v32 }
 0x669   : > { %v3972_v11 = vadd.f32 %v3971_v0, %v3883_v37  ;;  %v712_v37 = vld [vmem:[#allocation2 + $0x140] sm:$0xff] }
 0x66b   : > { %v4488_v9 = vadd.f32 %v3972_v11, %v688_v13 }
 0x66d   : > { %4680 = vst [vmem:[#allocation2 + $0x280] sm:$0xff] %v4488_v9 }
 0x66e   : > { %v3884_v50 = vpop.f32.mrf.mxu2  ;;  %v3709_v16 = vpop.f32.mrf.mxu0 }
 0x66f   : > { %v3885_v30 = vadd.f32 %v3884_v50, %v3796_v14  ;;  %v3973_v15 = vpop.f32.mrf.mxu3  ;;  %v3798_v19 = vpop.f32.mrf.mxu1 }
 0x670   : > { %v3799_v48 = vadd.f32 %v3798_v19, %v3709_v16 }
 0x671   : > { %v3974_v55 = vadd.f32 %v3973_v15, %v3885_v30  ;;  %4024 = vmatmul.bf16.gmra.mxu0 %v7720_v1 }
 0x672   : > { %4113 = vmatmul.bf16.gmra.mxu1 %v7722_v2  ;;  %v706_v2 = vld [vmem:[#allocation2 + $0x3f8] sm:$0xff] }
 0x673   : > { %v4494_v56 = vadd.f32 %v3974_v55, %v694_v51  ;;  %4202 = vmatmul.bf16.gmra.mxu2 %v7724_v3  ;;  %v724_v55 = vld [vmem:[#allocation2 + $0x270] sm:$0xff] }
 0x674   : > { %4291 = vmatmul.bf16.gmra.mxu3 %v7726_v4 }
 0x675   : > { %4686 = vst [vmem:[#allocation2 + $0x358] sm:$0xff] %v4494_v56 }
 0x676   : > { %v3887_v62 = vpop.f32.mrf.mxu2  ;;  %v3711_v52 = vpop.f32.mrf.mxu0 }
 0x677   : > { %v3888_v40 = vadd.f32 %v3887_v62, %v3799_v48  ;;  %v3976_v29 = vpop.f32.mrf.mxu3  ;;  %v3800_v53 = vpop.f32.mrf.mxu1 }
 0x678   : > { %v3801_v25 = vadd.f32 %v3800_v53, %v3711_v52 }
 0x679   : > { %v3977_v54 = vadd.f32 %v3976_v29, %v3888_v40 }
 0x67b   : > { %v4500_v39 = vadd.f32 %v3977_v54, %v700_v8 }
 0x67d   : > { %4692 = vst [vmem:[#allocation2 + $0x210] sm:$0xff] %v4500_v39 }
 0x67e   : > { %v3889_v1 = vpop.f32.mrf.mxu2  ;;  %v3714_v31 = vpop.f32.mrf.mxu0 }
 0x67f   : > { %v3890_v23 = vadd.f32 %v3889_v1, %v3801_v25  ;;  %v3978_v59 = vpop.f32.mrf.mxu3  ;;  %v3803_v26 = vpop.f32.mrf.mxu1 }
 0x680   : > { %v3804_v61 = vadd.f32 %v3803_v26, %v3714_v31 }
 0x681   : > { %v3979_v3 = vadd.f32 %v3978_v59, %v3890_v23  ;;  %4029 = vmatmul.bf16.gmra.mxu0 %v7748_v33  ;;  %v736_v59 = vld [vmem:[#allocation2 + $0x350] sm:$0xff] }
 0x682   : > { %4118 = vmatmul.bf16.gmra.mxu1 %v7750_v34  ;;  %v718_v34 = vld [vmem:[#allocation2 + $0x2d8] sm:$0xff] }
 0x683   : > { %v4506_v4 = vadd.f32 %v3979_v3, %v706_v2  ;;  %4207 = vmatmul.bf16.gmra.mxu2 %v7752_v35 }
 0x684   : > { %4296 = vmatmul.bf16.gmra.mxu3 %v7754_v36 }
 0x685   : > { %4698 = vst [vmem:[#allocation2 + $0x3f8] sm:$0xff] %v4506_v4 }
 0x686   : > { %v3892_v27 = vpop.f32.mrf.mxu2  ;;  %v3716_v63 = vpop.f32.mrf.mxu0 }
 0x687   : > { %v3893_v28 = vadd.f32 %v3892_v27, %v3804_v61  ;;  %v3981_v20 = vpop.f32.mrf.mxu3  ;;  %v3805_v0 = vpop.f32.mrf.mxu1 }
 0x688   : > { %v3806_v6 = vadd.f32 %v3805_v0, %v3716_v63 }
 0x689   : > { %v3982_v32 = vadd.f32 %v3981_v20, %v3893_v28 }
 0x68b   : > { %v4512_v13 = vadd.f32 %v3982_v32, %v712_v37 }
 0x68d   : > { %4704 = vst [vmem:[#allocation2 + $0x140] sm:$0xff] %v4512_v13  ;;  %v557_v13 = vld [vmem:[#allocation2 + $0x328] sm:$0xff] }
 0x68e   : > { %v3894_v33 = vpop.f32.mrf.mxu2  ;;  %v3719_v14 = vpop.f32.mrf.mxu0 }
 0x68f   : > { %v3895_v11 = vadd.f32 %v3894_v33, %v3806_v6  ;;  %v3983_v9 = vpop.f32.mrf.mxu3  ;;  %v3808_v50 = vpop.f32.mrf.mxu1 }
 0x690   : > { %v3809_v30 = vadd.f32 %v3808_v50, %v3719_v14 }
 0x691   : > { %v3984_v35 = vadd.f32 %v3983_v9, %v3895_v11  ;;  %4034 = vmatmul.bf16.gmra.mxu0 %v7768_v45 }
 0x692   : > { %4123 = vmatmul.bf16.gmra.mxu1 %v7770_v46  ;;  %v730_v46 = vld [vmem:[#allocation2 + $0x220] sm:$0xff] }
 0x693   : > { %v4518_v36 = vadd.f32 %v3984_v35, %v718_v34  ;;  %4212 = vmatmul.bf16.gmra.mxu2 %v7772_v47 }
 0x694   : > { %4301 = vmatmul.bf16.gmra.mxu3 %v7774_v49 }
 0x695   : > { %4710 = vst [vmem:[#allocation2 + $0x2d8] sm:$0xff] %v4518_v36 }
 0x696   : > { %v3897_v15 = vpop.f32.mrf.mxu2  ;;  %v3721_v19 = vpop.f32.mrf.mxu0 }
 0x697   : > { %v3898_v16 = vadd.f32 %v3897_v15, %v3809_v30  ;;  %v3986_v51 = vpop.f32.mrf.mxu3  ;;  %v3810_v56 = vpop.f32.mrf.mxu1  ;;  %v9211_v30 = vld [vmem:[#allocation20_spill] sm:$0xff]  ;;  %v9212_v15 = vld [vmem:[#allocation21_spill] sm:$0xff] }
 0x698   : > { %v3811_v40 = vadd.f32 %v3810_v56, %v3721_v19 }
 0x699   : > { %v3987_v48 = vadd.f32 %v3986_v51, %v3898_v16  ;;  %v9213_v16 = vld [vmem:[#allocation22_spill] sm:$0xff] }
 0x69b   : > { %v4524_v62 = vadd.f32 %v3987_v48, %v724_v55  ;;  %v569_v48 = vld [vmem:[#allocation2 + $0x590] sm:$0xff] }
 0x69d   : > { %4716 = vst [vmem:[#allocation2 + $0x270] sm:$0xff] %v4524_v62 }
 0x69e   : > { %v3899_v45 = vpop.f32.mrf.mxu2  ;;  %v3724_v8 = vpop.f32.mrf.mxu0 }
 0x69f   : > { %v3900_v29 = vadd.f32 %v3899_v45, %v3811_v40  ;;  %v3988_v52 = vpop.f32.mrf.mxu3  ;;  %v3813_v53 = vpop.f32.mrf.mxu1 }
 0x6a0   : > { %v3814_v54 = vadd.f32 %v3813_v53, %v3724_v8  ;;  %v575_v53 = vld [vmem:[#allocation2 + $0x188] sm:$0xff] }
 0x6a1   : > { %v3989_v47 = vadd.f32 %v3988_v52, %v3900_v29  ;;  %4039 = vmatmul.bf16.gmra.mxu0 %v7795_v18 }
 0x6a2   : > { %4128 = vmatmul.bf16.gmra.mxu1 %v7798_v21  ;;  %v742_v21 = vld [vmem:[#allocation2 + $0x568] sm:$0xff] }
 0x6a3   : > { %v4530_v49 = vadd.f32 %v3989_v47, %v730_v46  ;;  %4217 = vmatmul.bf16.gmra.mxu2 %v7800_v22 }
 0x6a4   : > { %4306 = vmatmul.bf16.gmra.mxu3 %v7802_v24 }
 0x6a5   : > { %4722 = vst [vmem:[#allocation2 + $0x220] sm:$0xff] %v4530_v49 }
 0x6a6   : > { %v3902_v39 = vpop.f32.mrf.mxu2  ;;  %v3726_v23 = vpop.f32.mrf.mxu0 }
 0x6a7   : > { %v3903_v25 = vadd.f32 %v3902_v39, %v3814_v54  ;;  %v3991_v1 = vpop.f32.mrf.mxu3  ;;  %v3815_v31 = vpop.f32.mrf.mxu1  ;;  %v9214_v54 = vld [vmem:[#allocation23_spill] sm:$0xff] }
 0x6a8   : > { %v3816_v3 = vadd.f32 %v3815_v31, %v3726_v23  ;;  %v9216_v23 = vld [vmem:[#allocation25_spill] sm:$0xff] }
 0x6a9   : > { %v3992_v2 = vadd.f32 %v3991_v1, %v3903_v25  ;;  %v9215_v1 = vld [vmem:[#allocation24_spill] sm:$0xff] }
 0x6ab   : > { %v4536_v26 = vadd.f32 %v3992_v2, %v736_v59  ;;  %v9217_v59 = vld [vmem:[#allocation26_spill] sm:$0xff] }
 0x6ad   : > { %4728 = vst [vmem:[#allocation2 + $0x350] sm:$0xff] %v4536_v26 }
 0x6ae   : > { %v3904_v18 = vpop.f32.mrf.mxu2  ;;  %v4005_v27 = vpop.f32.mrf.mxu0 }
 0x6af   : > { %v3905_v4 = vadd.f32 %v3904_v18, %v3816_v3  ;;  %v3993_v61 = vpop.f32.mrf.mxu3  ;;  %v4094_v28 = vpop.f32.mrf.mxu1  ;;  %v581_v18 = vld [vmem:[#allocation2 + $0x5e0] sm:$0xff] }
 0x6b0   : > { %v4095_v20 = vadd.f32 %v4094_v28, %v4005_v27 }
 0x6b1   : > { %v3994_v22 = vadd.f32 %v3993_v61, %v3905_v4  ;;  %4044 = vmatmul.bf16.gmra.mxu0 %v7816_v41 }
 0x6b2   : > { %4133 = vmatmul.bf16.gmra.mxu1 %v7818_v43  ;;  %v563_v43 = vld [vmem:[#allocation2 + $0x318] sm:$0xff] }
 0x6b3   : > { %v4542_v24 = vadd.f32 %v3994_v22, %v742_v21  ;;  %4222 = vmatmul.bf16.gmra.mxu2 %v7820_v44 }
 0x6b4   : > { %4311 = vmatmul.bf16.gmra.mxu3 %v7822_v58 }
 0x6b5   : > { %4734 = vst [vmem:[#allocation2 + $0x568] sm:$0xff] %v4542_v24 }
 0x6b6   : > { %v4183_v63 = vpop.f32.mrf.mxu2  ;;  %v4007_v32 = vpop.f32.mrf.mxu0 }
 0x6b7   : > { %v4184_v37 = vadd.f32 %v4183_v63, %v4095_v20  ;;  %v4272_v0 = vpop.f32.mrf.mxu3  ;;  %v4096_v6 = vpop.f32.mrf.mxu1  ;;  %v587_v63 = vld [vmem:[#allocation2 + $0x570] sm:$0xff] }
 0x6b8   : > { %v4097_v9 = vadd.f32 %v4096_v6, %v4007_v32  ;;  %v9218_v32 = vld [vmem:[#allocation27_spill] sm:$0xff] }
 0x6b9   : > { %v4273_v33 = vadd.f32 %v4272_v0, %v4184_v37 }
 0x6bb   : > { %v4357_v11 = vadd.f32 %v4273_v33, %v557_v13  ;;  %v9219_v33 = vld [vmem:[#allocation28_spill] sm:$0xff] }
 0x6bd   : > { %4549 = vst [vmem:[#allocation2 + $0x328] sm:$0xff] %v4357_v11  ;;  %v9220_v11 = vld [vmem:[#allocation29_spill] sm:$0xff] }
 0x6be   : > { %v4185_v41 = vpop.f32.mrf.mxu2  ;;  %v4010_v50 = vpop.f32.mrf.mxu0 }
 0x6bf   : > { %v4186_v14 = vadd.f32 %v4185_v41, %v4097_v9  ;;  %v4274_v34 = vpop.f32.mrf.mxu3  ;;  %v4099_v35 = vpop.f32.mrf.mxu1  ;;  %v9221_v9 = vld [vmem:[#allocation30_spill] sm:$0xff] }
 0x6c0   : > { %v4100_v36 = vadd.f32 %v4099_v35, %v4010_v50 }
 0x6c1   : > { %v4275_v44 = vadd.f32 %v4274_v34, %v4186_v14  ;;  %4049 = vmatmul.bf16.gmra.mxu0 %v7842_v57 }
 0x6c2   : > { %4138 = vmatmul.bf16.gmra.mxu1 %v9211_v30 }
 0x6c3   : > { %v4363_v58 = vadd.f32 %v4275_v44, %v563_v43  ;;  %4227 = vmatmul.bf16.gmra.mxu2 %v9212_v15  ;;  %v593_v43 = vld [vmem:[#allocation2 + $0x2f0] sm:$0xff] }
 0x6c4   : > { %4316 = vmatmul.bf16.gmra.mxu3 %v9213_v16 }
 0x6c5   : > { %4555 = vst [vmem:[#allocation2 + $0x318] sm:$0xff] %v4363_v58 }
 0x6c6   : > { %v4188_v51 = vpop.f32.mrf.mxu2  ;;  %v4012_v56 = vpop.f32.mrf.mxu0 }
 0x6c7   : > { %v4189_v19 = vadd.f32 %v4188_v51, %v4100_v36  ;;  %v4277_v55 = vpop.f32.mrf.mxu3  ;;  %v4101_v62 = vpop.f32.mrf.mxu1 }
 0x6c8   : > { %v4102_v29 = vadd.f32 %v4101_v62, %v4012_v56 }
 0x6c9   : > { %v4278_v40 = vadd.f32 %v4277_v55, %v4189_v19  ;;  %v599_v19 = vld [vmem:[#allocation2 + $0x3e0] sm:$0xff] }
 0x6cb   : > { %v4369_v45 = vadd.f32 %v4278_v40, %v569_v48  ;;  %v9222_v48 = vld [vmem:[#allocation31_spill] sm:$0xff] }
 0x6cd   : > { %4561 = vst [vmem:[#allocation2 + $0x590] sm:$0xff] %v4369_v45  ;;  %v9223_v45 = vld [vmem:[#allocation32_spill] sm:$0xff] }
 0x6ce   : > { %v4190_v57 = vpop.f32.mrf.mxu2  ;;  %v4015_v46 = vpop.f32.mrf.mxu0 }
 0x6cf   : > { %v4191_v52 = vadd.f32 %v4190_v57, %v4102_v29  ;;  %v4279_v8 = vpop.f32.mrf.mxu3  ;;  %v4104_v47 = vpop.f32.mrf.mxu1  ;;  %v9224_v29 = vld [vmem:[#allocation33_spill] sm:$0xff]  ;;  %v9225_v57 = vld [vmem:[#allocation34_spill] sm:$0xff] }
 0x6d0   : > { %v4105_v25 = vadd.f32 %v4104_v47, %v4015_v46  ;;  %v605_v47 = vld [vmem:[#allocation2 + $0x120] sm:$0xff] }
 0x6d1   : > { %v4280_v49 = vadd.f32 %v4279_v8, %v4191_v52  ;;  %4054 = vmatmul.bf16.gmra.mxu0 %v9214_v54 }
 0x6d2   : > { %4143 = vmatmul.bf16.gmra.mxu1 %v9215_v1 }
 0x6d3   : > { %v4375_v39 = vadd.f32 %v4280_v49, %v575_v53  ;;  %4232 = vmatmul.bf16.gmra.mxu2 %v9216_v23 }
 0x6d4   : > { %4321 = vmatmul.bf16.gmra.mxu3 %v9217_v59 }
 0x6d5   : > { %4567 = vst [vmem:[#allocation2 + $0x188] sm:$0xff] %v4375_v39 }
 0x6d6   : > { %v4193_v31 = vpop.f32.mrf.mxu2  ;;  %v4017_v3 = vpop.f32.mrf.mxu0 }
 0x6d7   : > { %v4194_v2 = vadd.f32 %v4193_v31, %v4105_v25  ;;  %v4282_v26 = vpop.f32.mrf.mxu3  ;;  %v4106_v4 = vpop.f32.mrf.mxu1 }
 0x6d8   : > { %v4107_v21 = vadd.f32 %v4106_v4, %v4017_v3 }
 0x6d9   : > { %v4283_v61 = vadd.f32 %v4282_v26, %v4194_v2  ;;  %v611_v2 = vld [vmem:[#allocation2 + $0x370] sm:$0xff] }
 0x6db   : > { %v4381_v27 = vadd.f32 %v4283_v61, %v581_v18  ;;  %v9226_v61 = vld [vmem:[#allocation37_spill] sm:$0xff] }
 0x6dd   : > { %4573 = vst [vmem:[#allocation2 + $0x5e0] sm:$0xff] %v4381_v27  ;;  %v9227_v27 = vld [vmem:[#allocation38_spill] sm:$0xff] }
 0x6de   : > { %v4195_v28 = vpop.f32.mrf.mxu2  ;;  %v4020_v20 = vpop.f32.mrf.mxu0 }
 0x6df   : > { %v4196_v22 = vadd.f32 %v4195_v28, %v4107_v21  ;;  %v4284_v24 = vpop.f32.mrf.mxu3  ;;  %v4109_v37 = vpop.f32.mrf.mxu1 }
 0x6e0   : > { %v4110_v6 = vadd.f32 %v4109_v37, %v4020_v20  ;;  %v617_v20 = vld [vmem:[#allocation2 + $0x260] sm:$0xff] }
 0x6e1   : > { %v4285_v0 = vadd.f32 %v4284_v24, %v4196_v22  ;;  %4059 = vmatmul.bf16.gmra.mxu0 %v9218_v32 }
 0x6e2   : > { %4148 = vmatmul.bf16.gmra.mxu1 %v9219_v33 }
 0x6e3   : > { %v4387_v13 = vadd.f32 %v4285_v0, %v587_v63  ;;  %4237 = vmatmul.bf16.gmra.mxu2 %v9220_v11 }
 0x6e4   : > { %4326 = vmatmul.bf16.gmra.mxu3 %v9221_v9 }
 0x6e5   : > { %4579 = vst [vmem:[#allocation2 + $0x570] sm:$0xff] %v4387_v13 }
 0x6e6   : > { %v4198_v41 = vpop.f32.mrf.mxu2  ;;  %v4022_v50 = vpop.f32.mrf.mxu0 }
 0x6e7   : > { %v4199_v14 = vadd.f32 %v4198_v41, %v4110_v6  ;;  %v4287_v34 = vpop.f32.mrf.mxu3  ;;  %v4111_v35 = vpop.f32.mrf.mxu1 }
 0x6e8   : > { %v4112_v36 = vadd.f32 %v4111_v35, %v4022_v50  ;;  %v9229_v50 = vld [vmem:[#allocation42_spill] sm:$0xff] }
 0x6e9   : > { %v4288_v44 = vadd.f32 %v4287_v34, %v4199_v14  ;;  %v9228_v34 = vld [vmem:[#allocation41_spill] sm:$0xff] }
 0x6eb   : > { %v4393_v58 = vadd.f32 %v4288_v44, %v593_v43 }
 0x6ed   : > { %4585 = vst [vmem:[#allocation2 + $0x2f0] sm:$0xff] %v4393_v58 }
 0x6ee   : > { %v4200_v30 = vpop.f32.mrf.mxu2  ;;  %v4025_v51 = vpop.f32.mrf.mxu0 }
 0x6ef   : > { %v4201_v15 = vadd.f32 %v4200_v30, %v4112_v36  ;;  %v4289_v16 = vpop.f32.mrf.mxu3  ;;  %v4114_v55 = vpop.f32.mrf.mxu1  ;;  %v629_v36 = vld [vmem:[#allocation2 + $0x4e0] sm:$0xff] }
 0x6f0   : > { %v4115_v40 = vadd.f32 %v4114_v55, %v4025_v51 }
 0x6f1   : > { %v4290_v56 = vadd.f32 %v4289_v16, %v4201_v15  ;;  %4064 = vmatmul.bf16.gmra.mxu0 %v9222_v48 }
 0x6f2   : > { %4153 = vmatmul.bf16.gmra.mxu1 %v9223_v45 }
 0x6f3   : > { %v4399_v62 = vadd.f32 %v4290_v56, %v599_v19  ;;  %4242 = vmatmul.bf16.gmra.mxu2 %v9224_v29 }
 0x6f4   : > { %4331 = vmatmul.bf16.gmra.mxu3 %v9225_v57 }
 0x6f5   : > { %4591 = vst [vmem:[#allocation2 + $0x3e0] sm:$0xff] %v4399_v62 }
 0x6f6   : > { %v4203_v52 = vpop.f32.mrf.mxu2  ;;  %v4027_v53 = vpop.f32.mrf.mxu0 }
 0x6f7   : > { %v4204_v8 = vadd.f32 %v4203_v52, %v4115_v40  ;;  %v4292_v46 = vpop.f32.mrf.mxu3  ;;  %v4116_v49 = vpop.f32.mrf.mxu1 }
 0x6f8   : > { %v4117_v25 = vadd.f32 %v4116_v49, %v4027_v53 }
 0x6f9   : > { %v4293_v54 = vadd.f32 %v4292_v46, %v4204_v8  ;;  %v641_v46 = vld [vmem:[#allocation2 + $0x2c8] sm:$0xff] }
 0x6fb   : > { %v4405_v39 = vadd.f32 %v4293_v54, %v605_v47 }
 0x6fd   : > { %4597 = vst [vmem:[#allocation2 + $0x120] sm:$0xff] %v4405_v39 }
 0x6fe   : > { %v4205_v1 = vpop.f32.mrf.mxu2  ;;  %v4030_v31 = vpop.f32.mrf.mxu0 }
 0x6ff   : > { %v4206_v23 = vadd.f32 %v4205_v1, %v4117_v25  ;;  %v4294_v59 = vpop.f32.mrf.mxu3  ;;  %v4119_v26 = vpop.f32.mrf.mxu1 }
 0x700   : > { %v4120_v4 = vadd.f32 %v4119_v26, %v4030_v31 }
 0x701   : > { %v4295_v3 = vadd.f32 %v4294_v59, %v4206_v23  ;;  %4069 = vmatmul.bf16.gmra.mxu0 %v9203_v17 }
 0x702   : > { %4158 = vmatmul.bf16.gmra.mxu1 %v9204_v7  ;;  %v623_v7 = vld [vmem:[#allocation2 + $0x5a0] sm:$0xff] }
 0x703   : > { %v4411_v18 = vadd.f32 %v4295_v3, %v611_v2  ;;  %4247 = vmatmul.bf16.gmra.mxu2 %v9226_v61 }
 0x704   : > { %4336 = vmatmul.bf16.gmra.mxu3 %v9227_v27 }
 0x705   : > { %4603 = vst [vmem:[#allocation2 + $0x370] sm:$0xff] %v4411_v18  ;;  %v653_v18 = vld [vmem:[#allocation2 + $0x160] sm:$0xff] }
 0x706   : > { %v4208_v21 = vpop.f32.mrf.mxu2  ;;  %v4032_v24 = vpop.f32.mrf.mxu0 }
 0x707   : > { %v4209_v28 = vadd.f32 %v4208_v21, %v4120_v4  ;;  %v4297_v22 = vpop.f32.mrf.mxu3  ;;  %v4121_v63 = vpop.f32.mrf.mxu1 }
 0x708   : > { %v4122_v32 = vadd.f32 %v4121_v63, %v4032_v24  ;;  %v659_v63 = vld [vmem:[#allocation2 + $0x228] sm:$0xff] }
 0x709   : > { %v4298_v37 = vadd.f32 %v4297_v22, %v4209_v28 }
 0x70b   : > { %v4417_v0 = vadd.f32 %v4298_v37, %v617_v20 }
 0x70d   : > { %4609 = vst [vmem:[#allocation2 + $0x260] sm:$0xff] %v4417_v0 }
 0x70e   : > { %v4210_v17 = vpop.f32.mrf.mxu2  ;;  %v4035_v33 = vpop.f32.mrf.mxu0 }
 0x70f   : > { %v4211_v13 = vadd.f32 %v4210_v17, %v4122_v32  ;;  %v4299_v6 = vpop.f32.mrf.mxu3  ;;  %v4124_v11 = vpop.f32.mrf.mxu1 }
 0x710   : > { %v4125_v14 = vadd.f32 %v4124_v11, %v4035_v33  ;;  %v665_v11 = vld [vmem:[#allocation2 + $0x410] sm:$0xff] }
 0x711   : > { %v4300_v9 = vadd.f32 %v4299_v6, %v4211_v13  ;;  %4074 = vmatmul.bf16.gmra.mxu0 %v9207_v5 }
 0x712   : > { %4163 = vmatmul.bf16.gmra.mxu1 %v9208_v12  ;;  %v635_v12 = vld [vmem:[#allocation2 + $0x360] sm:$0xff] }
 0x713   : > { %v4423_v41 = vadd.f32 %v4300_v9, %v623_v7  ;;  %4252 = vmatmul.bf16.gmra.mxu2 %v9228_v34 }
 0x714   : > { %4341 = vmatmul.bf16.gmra.mxu3 %v9229_v50 }
 0x715   : > { %4615 = vst [vmem:[#allocation2 + $0x5a0] sm:$0xff] %v4423_v41 }
 0x716   : > { %v4213_v43 = vpop.f32.mrf.mxu2  ;;  %v4037_v58 = vpop.f32.mrf.mxu0 }
 0x717   : > { %v4214_v35 = vadd.f32 %v4213_v43, %v4125_v14  ;;  %v4302_v44 = vpop.f32.mrf.mxu3  ;;  %v4126_v30 = vpop.f32.mrf.mxu1 }
 0x718   : > { %v4127_v51 = vadd.f32 %v4126_v30, %v4037_v58  ;;  %v671_v58 = vld [vmem:[#allocation2 + $0x298] sm:$0xff] }
 0x719   : > { %v4303_v15 = vadd.f32 %v4302_v44, %v4214_v35 }
 0x71b   : > { %v4429_v16 = vadd.f32 %v4303_v15, %v629_v36 }
 0x71d   : > { %4621 = vst [vmem:[#allocation2 + $0x4e0] sm:$0xff] %v4429_v16 }
 0x71e   : > { %v4215_v5 = vpop.f32.mrf.mxu2  ;;  %v4040_v56 = vpop.f32.mrf.mxu0 }
 0x71f   : > { %v4216_v19 = vadd.f32 %v4215_v5, %v4127_v51  ;;  %v4304_v55 = vpop.f32.mrf.mxu3  ;;  %v4129_v48 = vpop.f32.mrf.mxu1 }
 0x720   : > { %v4130_v45 = vadd.f32 %v4129_v48, %v4040_v56  ;;  %v677_v56 = vld [vmem:[#allocation2 + $0x2e0] sm:$0xff] }
 0x721   : > { %v4305_v62 = vadd.f32 %v4304_v55, %v4216_v19  ;;  %4079 = vmatmul.bf16.gmra.mxu0 %v7986_v10 }
 0x722   : > { %4168 = vmatmul.bf16.gmra.mxu1 %v7990_v38  ;;  %v647_v38 = vld [vmem:[#allocation2 + $0x278] sm:$0xff] }
 0x723   : > { %v4435_v40 = vadd.f32 %v4305_v62, %v635_v12  ;;  %4257 = vmatmul.bf16.gmra.mxu2 %v7992_v42 }
 0x724   : > { %4346 = vmatmul.bf16.gmra.mxu3 %v7994_v60 }
 0x725   : > { %4627 = vst [vmem:[#allocation2 + $0x360] sm:$0xff] %v4435_v40 }
 0x726   : > { %v4218_v29 = vpop.f32.mrf.mxu2  ;;  %v4042_v8 = vpop.f32.mrf.mxu0 }
 0x727   : > { %v4219_v57 = vadd.f32 %v4218_v29, %v4130_v45  ;;  %v4307_v52 = vpop.f32.mrf.mxu3  ;;  %v4131_v53 = vpop.f32.mrf.mxu1 }
 0x728   : > { %v4132_v54 = vadd.f32 %v4131_v53, %v4042_v8  ;;  %v683_v8 = vld [vmem:[#allocation2 + $0x470] sm:$0xff] }
 0x729   : > { %v4308_v47 = vadd.f32 %v4307_v52, %v4219_v57 }
 0x72b   : > { %v4441_v49 = vadd.f32 %v4308_v47, %v641_v46 }
 0x72d   : > { %4633 = vst [vmem:[#allocation2 + $0x2c8] sm:$0xff] %v4441_v49 }
 0x72e   : > { %v4220_v10 = vpop.f32.mrf.mxu2  ;;  %v4045_v1 = vpop.f32.mrf.mxu0 }
 0x72f   : > { %v4221_v39 = vadd.f32 %v4220_v10, %v4132_v54  ;;  %v4309_v25 = vpop.f32.mrf.mxu3  ;;  %v4134_v23 = vpop.f32.mrf.mxu1 }
 0x730   : > { %v4135_v60 = vadd.f32 %v4134_v23, %v4045_v1  ;;  %v689_v1 = vld [vmem:[#allocation2 + $0x518] sm:$0xff] }
 0x731   : > { %v4310_v42 = vadd.f32 %v4309_v25, %v4221_v39 }
 0x733   : > { %v4447_v59 = vadd.f32 %v4310_v42, %v647_v38 }
 0x735   : > { %4639 = vst [vmem:[#allocation2 + $0x278] sm:$0xff] %v4447_v59 }
 0x736   : > { %v4223_v31 = vpop.f32.mrf.mxu2  ;;  %v4047_v3 = vpop.f32.mrf.mxu0 }
 0x737   : > { %v4224_v2 = vadd.f32 %v4223_v31, %v4135_v60  ;;  %v4312_v26 = vpop.f32.mrf.mxu3  ;;  %v4136_v4 = vpop.f32.mrf.mxu1 }
 0x738   : > { %v4137_v21 = vadd.f32 %v4136_v4, %v4047_v3  ;;  %v695_v3 = vld [vmem:[#allocation2 + $0x70] sm:$0xff] }
 0x739   : > { %v4313_v61 = vadd.f32 %v4312_v26, %v4224_v2 }
 0x73b   : > { %v4453_v27 = vadd.f32 %v4313_v61, %v653_v18 }
 0x73d   : > { %4645 = vst [vmem:[#allocation2 + $0x160] sm:$0xff] %v4453_v27 }
 0x73e   : > { %v4225_v28 = vpop.f32.mrf.mxu2  ;;  %v4050_v20 = vpop.f32.mrf.mxu0 }
 0x73f   : > { %v4226_v22 = vadd.f32 %v4225_v28, %v4137_v21  ;;  %v4314_v24 = vpop.f32.mrf.mxu3  ;;  %v4139_v37 = vpop.f32.mrf.mxu1 }
 0x740   : > { %v4140_v17 = vadd.f32 %v4139_v37, %v4050_v20  ;;  %v701_v20 = vld [vmem:[#allocation2 + $0x558] sm:$0xff] }
 0x741   : > { %v4315_v0 = vadd.f32 %v4314_v24, %v4226_v22 }
 0x743   : > { %v4459_v32 = vadd.f32 %v4315_v0, %v659_v63 }
 0x745   : > { %4651 = vst [vmem:[#allocation2 + $0x228] sm:$0xff] %v4459_v32 }
 0x746   : > { %v4228_v13 = vpop.f32.mrf.mxu2  ;;  %v4052_v7 = vpop.f32.mrf.mxu0 }
 0x747   : > { %v4229_v6 = vadd.f32 %v4228_v13, %v4140_v17  ;;  %v4317_v33 = vpop.f32.mrf.mxu3  ;;  %v4141_v9 = vpop.f32.mrf.mxu1 }
 0x748   : > { %v4142_v34 = vadd.f32 %v4141_v9, %v4052_v7  ;;  %v707_v7 = vld [vmem:[#allocation2 + $0x380] sm:$0xff] }
 0x749   : > { %v4318_v41 = vadd.f32 %v4317_v33, %v4229_v6 }
 0x74b   : > { %v4465_v14 = vadd.f32 %v4318_v41, %v665_v11 }
 0x74d   : > { %4657 = vst [vmem:[#allocation2 + $0x410] sm:$0xff] %v4465_v14 }
 0x74e   : > { %v4230_v50 = vpop.f32.mrf.mxu2  ;;  %v4055_v44 = vpop.f32.mrf.mxu0 }
 0x74f   : > { %v4231_v43 = vadd.f32 %v4230_v50, %v4142_v34  ;;  %v4319_v35 = vpop.f32.mrf.mxu3  ;;  %v4144_v36 = vpop.f32.mrf.mxu1 }
 0x750   : > { %v4145_v16 = vadd.f32 %v4144_v36, %v4055_v44  ;;  %v713_v44 = vld [vmem:[#allocation2 + $0x300] sm:$0xff] }
 0x751   : > { %v4320_v30 = vadd.f32 %v4319_v35, %v4231_v43 }
 0x753   : > { %v4471_v15 = vadd.f32 %v4320_v30, %v671_v58 }
 0x755   : > { %4663 = vst [vmem:[#allocation2 + $0x298] sm:$0xff] %v4471_v15 }
 0x756   : > { %v4233_v51 = vpop.f32.mrf.mxu2  ;;  %v4057_v55 = vpop.f32.mrf.mxu0 }
 0x757   : > { %v4234_v5 = vadd.f32 %v4233_v51, %v4145_v16  ;;  %v4322_v19 = vpop.f32.mrf.mxu3  ;;  %v4146_v12 = vpop.f32.mrf.mxu1 }
 0x758   : > { %v4147_v40 = vadd.f32 %v4146_v12, %v4057_v55  ;;  %v719_v55 = vld [vmem:[#allocation2 + $0x168] sm:$0xff] }
 0x759   : > { %v4323_v48 = vadd.f32 %v4322_v19, %v4234_v5 }
 0x75b   : > { %v4477_v62 = vadd.f32 %v4323_v48, %v677_v56 }
 0x75d   : > { %4669 = vst [vmem:[#allocation2 + $0x2e0] sm:$0xff] %v4477_v62 }
 0x75e   : > { %v4235_v45 = vpop.f32.mrf.mxu2  ;;  %v4060_v52 = vpop.f32.mrf.mxu0 }
 0x75f   : > { %v4236_v29 = vadd.f32 %v4235_v45, %v4147_v40  ;;  %v4324_v57 = vpop.f32.mrf.mxu3  ;;  %v4149_v46 = vpop.f32.mrf.mxu1 }
 0x760   : > { %v4150_v49 = vadd.f32 %v4149_v46, %v4060_v52  ;;  %v725_v52 = vld [vmem:[#allocation2 + $0x250] sm:$0xff] }
 0x761   : > { %v4325_v53 = vadd.f32 %v4324_v57, %v4236_v29 }
 0x763   : > { %v4483_v47 = vadd.f32 %v4325_v53, %v683_v8 }
 0x765   : > { %4675 = vst [vmem:[#allocation2 + $0x470] sm:$0xff] %v4483_v47 }
 0x766   : > { %v4238_v54 = vpop.f32.mrf.mxu2  ;;  %v4062_v25 = vpop.f32.mrf.mxu0 }
 0x767   : > { %v4239_v10 = vadd.f32 %v4238_v54, %v4150_v49  ;;  %v4327_v39 = vpop.f32.mrf.mxu3  ;;  %v4151_v38 = vpop.f32.mrf.mxu1 }
 0x768   : > { %v4152_v59 = vadd.f32 %v4151_v38, %v4062_v25 }
 0x769   : > { %v4328_v23 = vadd.f32 %v4327_v39, %v4239_v10  ;;  %v731_v39 = vld [vmem:[#allocation2 + $0x1d8] sm:$0xff] }
 0x76b   : > { %v4489_v42 = vadd.f32 %v4328_v23, %v689_v1 }
 0x76d   : > { %4681 = vst [vmem:[#allocation2 + $0x518] sm:$0xff] %v4489_v42 }
 0x76e   : > { %v4240_v60 = vpop.f32.mrf.mxu2  ;;  %v4065_v26 = vpop.f32.mrf.mxu0 }
 0x76f   : > { %v4241_v31 = vadd.f32 %v4240_v60, %v4152_v59  ;;  %v4329_v2 = vpop.f32.mrf.mxu3  ;;  %v4154_v18 = vpop.f32.mrf.mxu1 }
 0x770   : > { %v4155_v27 = vadd.f32 %v4154_v18, %v4065_v26 }
 0x771   : > { %v4330_v4 = vadd.f32 %v4329_v2, %v4241_v31  ;;  %v737_v2 = vld [vmem:[#allocation2 + $0x4c0] sm:$0xff] }
 0x773   : > { %v4495_v61 = vadd.f32 %v4330_v4, %v695_v3 }
 0x775   : > { %4687 = vst [vmem:[#allocation2 + $0x70] sm:$0xff] %v4495_v61 }
 0x776   : > { %v4243_v21 = vpop.f32.mrf.mxu2  ;;  %v4067_v24 = vpop.f32.mrf.mxu0 }
 0x777   : > { %v4244_v28 = vadd.f32 %v4243_v21, %v4155_v27  ;;  %v4332_v22 = vpop.f32.mrf.mxu3  ;;  %v4156_v63 = vpop.f32.mrf.mxu1 }
 0x778   : > { %v4157_v32 = vadd.f32 %v4156_v63, %v4067_v24 }
 0x779   : > { %v4333_v37 = vadd.f32 %v4332_v22, %v4244_v28  ;;  %v743_v28 = vld [vmem:[#allocation2 + $0x90] sm:$0xff] }
 0x77b   : > { %v4501_v0 = vadd.f32 %v4333_v37, %v701_v20 }
 0x77d   : > { %4693 = vst [vmem:[#allocation2 + $0x558] sm:$0xff] %v4501_v0 }
 0x77e   : > { %v4245_v17 = vpop.f32.mrf.mxu2  ;;  %v4070_v33 = vpop.f32.mrf.mxu0 }
 0x77f   : > { %v4246_v13 = vadd.f32 %v4245_v17, %v4157_v32  ;;  %v4334_v6 = vpop.f32.mrf.mxu3  ;;  %v4159_v11 = vpop.f32.mrf.mxu1 }
 0x780   : > { %v4160_v14 = vadd.f32 %v4159_v11, %v4070_v33 }
 0x781   : > { %v4335_v9 = vadd.f32 %v4334_v6, %v4246_v13 }
 0x783   : > { %v4507_v41 = vadd.f32 %v4335_v9, %v707_v7 }
 0x785   : > { %4699 = vst [vmem:[#allocation2 + $0x380] sm:$0xff] %v4507_v41 }
 0x786   : > { %v4248_v34 = vpop.f32.mrf.mxu2  ;;  %v4072_v35 = vpop.f32.mrf.mxu0 }
 0x787   : > { %v4249_v50 = vadd.f32 %v4248_v34, %v4160_v14  ;;  %v4337_v43 = vpop.f32.mrf.mxu3  ;;  %v4161_v58 = vpop.f32.mrf.mxu1 }
 0x788   : > { %v4162_v15 = vadd.f32 %v4161_v58, %v4072_v35 }
 0x789   : > { %v4338_v36 = vadd.f32 %v4337_v43, %v4249_v50 }
 0x78b   : > { %v4513_v30 = vadd.f32 %v4338_v36, %v713_v44 }
 0x78d   : > { %4705 = vst [vmem:[#allocation2 + $0x300] sm:$0xff] %v4513_v30 }
 0x78e   : > { %v4250_v16 = vpop.f32.mrf.mxu2  ;;  %v4075_v19 = vpop.f32.mrf.mxu0 }
 0x78f   : > { %v4251_v51 = vadd.f32 %v4250_v16, %v4162_v15  ;;  %v4339_v5 = vpop.f32.mrf.mxu3  ;;  %v4164_v56 = vpop.f32.mrf.mxu1 }
 0x790   : > { %v4165_v62 = vadd.f32 %v4164_v56, %v4075_v19 }
 0x791   : > { %v4340_v12 = vadd.f32 %v4339_v5, %v4251_v51 }
 0x793   : > { %v4519_v48 = vadd.f32 %v4340_v12, %v719_v55 }
 0x795   : > { %4711 = vst [vmem:[#allocation2 + $0x168] sm:$0xff] %v4519_v48 }
 0x796   : > { %v4253_v40 = vpop.f32.mrf.mxu2  ;;  %v4077_v57 = vpop.f32.mrf.mxu0 }
 0x797   : > { %v4254_v45 = vadd.f32 %v4253_v40, %v4165_v62  ;;  %v4342_v29 = vpop.f32.mrf.mxu3  ;;  %v4166_v8 = vpop.f32.mrf.mxu1 }
 0x798   : > { %v4167_v47 = vadd.f32 %v4166_v8, %v4077_v57 }
 0x799   : > { %v4343_v46 = vadd.f32 %v4342_v29, %v4254_v45 }
 0x79b   : > { %v4525_v53 = vadd.f32 %v4343_v46, %v725_v52 }
 0x79d   : > { %4717 = vst [vmem:[#allocation2 + $0x250] sm:$0xff] %v4525_v53 }
 0x79e   : > { %v4255_v49 = vpop.f32.mrf.mxu2  ;;  %v4080_v25 = vpop.f32.mrf.mxu0 }
 0x79f   : > { %v4256_v54 = vadd.f32 %v4255_v49, %v4167_v47  ;;  %v4344_v10 = vpop.f32.mrf.mxu3  ;;  %v4169_v1 = vpop.f32.mrf.mxu1 }
 0x7a0   : > { %v4170_v42 = vadd.f32 %v4169_v1, %v4080_v25 }
 0x7a1   : > { %v4345_v38 = vadd.f32 %v4344_v10, %v4256_v54 }
 0x7a3   : > { %v4531_v23 = vadd.f32 %v4345_v38, %v731_v39 }
 0x7a5   : > { %4723 = vst [vmem:[#allocation2 + $0x1d8] sm:$0xff] %v4531_v23 }
 0x7a6   : > { %v4258_v59 = vpop.f32.mrf.mxu2  ;;  %v4082_v3 = vpop.f32.mrf.mxu0 }
 0x7a7   : > { %v4259_v60 = vadd.f32 %v4258_v59, %v4170_v42  ;;  %v4347_v31 = vpop.f32.mrf.mxu3  ;;  %v4171_v18 = vpop.f32.mrf.mxu1 }
 0x7a8   : > { %v4172_v61 = vadd.f32 %v4171_v18, %v4082_v3 }
 0x7a9   : > { %v4348_v26 = vadd.f32 %v4347_v31, %v4259_v60 }
 0x7ab   : > { %v4537_v4 = vadd.f32 %v4348_v26, %v737_v2 }
 0x7ad   : > { %4729 = vst [vmem:[#allocation2 + $0x4c0] sm:$0xff] %v4537_v4 }
 0x7ae   : > { %v4260_v27 = vpop.f32.mrf.mxu2 }
 0x7af   : > { %v4261_v21 = vadd.f32 %v4260_v27, %v4172_v61  ;;  %v4349_v22 = vpop.f32.mrf.mxu3 }
 0x7b1   : > { %v4350_v24 = vadd.f32 %v4349_v22, %v4261_v21  ;;  %4739 = sbr.rel (%p6520_p2) target bundleno = 2171 (0x87b), region = 52 }
 0x7b3   : > { %v4543_v20 = vadd.f32 %v4350_v24, %v743_v28 }
 0x7b5   : > { %4735 = vst [vmem:[#allocation2 + $0x90] sm:$0xff] %v4543_v20 }
 0x7b6   : > { %v4740_v63 = vld [vmem:[#allocation2 + $0x2b0] sm:$0xff]  ;;  %v4932_v37 = vld [vmem:[#allocation8] sm:$0x3f]  ;;  %v4742_v13 = vld [vmem:[#allocation2 + $0x4d8] sm:$0xff] }
 0x7b7   : > { %v4741_v0 = vld [vmem:[#allocation2 + $0x3b0] sm:$0xff]  ;;  %v8569_v32 = vperm.slane %v4932_v37, 0  ;;  %v8571_v17 = vperm.slane %v4932_v37, 1  ;;  %v8573_v6 = vperm.slane %v4932_v37, 2  ;;  %v4743_v33 = vld [vmem:[#allocation2 + $0x18] sm:$0xff]  ;;  %v8575_v7 = vperm.slane %v4932_v37, 3 }
 0x7b8   : > { %v4744_v11 = vld [vmem:[#allocation2 + $0x450] sm:$0xff]  ;;  %v8577_v9 = vperm.slane %v4932_v37, 4  ;;  %v8579_v41 = vperm.slane %v4932_v37, 5  ;;  %v4745_v43 = vld [vmem:[#allocation2 + $0x328] sm:$0xff]  ;;  %v4746_v44 = vld [vmem:[#allocation2 + $0x440] sm:$0xff] }
 0x7b9   : > { %v4946_v14 = vadd.f32 %v8569_v32, %v4740_v63  ;;  %v4947_v34 = vadd.f32 %v8571_v17, %v4741_v0  ;;  %v4948_v50 = vadd.f32 %v8573_v6, %v4742_v13  ;;  %v4949_v35 = vadd.f32 %v8575_v7, %v4743_v33  ;;  %v4747_v36 = vld [vmem:[#allocation2 + $0x378] sm:$0xff]  ;;  %v4748_v15 = vld [vmem:[#allocation2 + $0x108] sm:$0xff]  ;;  %v4749_v51 = vld [vmem:[#allocation2 + $0x510] sm:$0xff] }
 0x7ba   : > { %v4950_v58 = vadd.f32 %v8577_v9, %v4744_v11  ;;  %v4951_v30 = vadd.f32 %v8579_v41, %v4745_v43  ;;  %v4952_v16 = vadd.f32 %v8569_v32, %v4746_v44  ;;  %v4953_v5 = vadd.f32 %v8571_v17, %v4747_v36  ;;  %v4750_v19 = vld [vmem:[#allocation2 + $0x490] sm:$0xff]  ;;  %v4751_v56 = vld [vmem:[#allocation2 + $0x318] sm:$0xff]  ;;  %v4752_v48 = vld [vmem:[#allocation2 + $0x548] sm:$0xff] }
 0x7bb   : > { %5138 = vst [vmem:[%s7345_s24] sm:$0xff] %v4946_v14  ;;  %v4954_v55 = vadd.f32 %v8573_v6, %v4748_v15  ;;  %v4955_v12 = vadd.f32 %v8575_v7, %v4749_v51  ;;  %v4956_v62 = vadd.f32 %v8577_v9, %v4750_v19  ;;  %v4753_v40 = vld [vmem:[#allocation2 + $0x500] sm:$0xff]  ;;  %v4957_v45 = vadd.f32 %v8579_v41, %v4751_v56  ;;  %v4754_v29 = vld [vmem:[#allocation2 + $0x58] sm:$0xff]  ;;  %v4757_v47 = vld [vmem:[#allocation2 + $0x590] sm:$0xff] }
 0x7bc   : > { %5139 = vst [vmem:[%s7345_s24 + $0x8] sm:$0xff] %v4947_v34  ;;  %v4958_v57 = vadd.f32 %v8569_v32, %v4752_v48  ;;  %v4755_v52 = vld [vmem:[#allocation2 + $0x2b8] sm:$0xff]  ;;  %v4959_v8 = vadd.f32 %v8571_v17, %v4753_v40  ;;  %v4756_v46 = vld [vmem:[#allocation2 + $0x580] sm:$0xff]  ;;  %v4960_v53 = vadd.f32 %v8573_v6, %v4754_v29  ;;  %v4963_v25 = vadd.f32 %v8579_v41, %v4757_v47  ;;  %v4760_v1 = vld [vmem:[#allocation2 + $0x330] sm:$0xff] }
 0x7bd   : > { %5140 = vst [vmem:[%s7345_s24 + $0x10] sm:$0xff] %v4948_v50  ;;  %v4961_v49 = vadd.f32 %v8575_v7, %v4755_v52  ;;  %v4758_v54 = vld [vmem:[#allocation2 + $0x540] sm:$0xff]  ;;  %v4962_v10 = vadd.f32 %v8577_v9, %v4756_v46  ;;  %v4762_v59 = vld [vmem:[#allocation2 + $0x8] sm:$0xff]  ;;  %v4966_v60 = vadd.f32 %v8573_v6, %v4760_v1  ;;  %v4771_v13 = vld [vmem:[#allocation2 + $0x4d0] sm:$0xff] }
 0x7be   : > { %5141 = vst [vmem:[%s7345_s24 + $0x18] sm:$0xff] %v4949_v35  ;;  %v4759_v39 = vld [vmem:[#allocation2 + $0x3c0] sm:$0xff]  ;;  %v4964_v38 = vadd.f32 %v8569_v32, %v4758_v54  ;;  %v4763_v31 = vld [vmem:[#allocation2 + $0x188] sm:$0xff]  ;;  %v4968_v3 = vadd.f32 %v8577_v9, %v4762_v59  ;;  %v4772_v11 = vld [vmem:[#allocation2 + $0x98] sm:$0xff]  ;;  %v4977_v50 = vadd.f32 %v8571_v17, %v4771_v13 }
 0x7bf   : > { %5142 = vst [vmem:[%s7345_s24 + $0x20] sm:$0xff] %v4950_v58  ;;  %v4761_v23 = vld [vmem:[#allocation2 + $0x100] sm:$0xff]  ;;  %v4965_v42 = vadd.f32 %v8571_v17, %v4759_v39  ;;  %v4764_v26 = vld [vmem:[#allocation2 + $0x248] sm:$0xff]  ;;  %v4969_v4 = vadd.f32 %v8579_v41, %v4763_v31  ;;  %v4773_v34 = vld [vmem:[#allocation2 + $0xb0] sm:$0xff]  ;;  %v4978_v35 = vadd.f32 %v8573_v6, %v4772_v11 }
 0x7c0   : > { %5143 = vst [vmem:[%s7345_s24 + $0x28] sm:$0xff] %v4951_v30  ;;  %v4967_v2 = vadd.f32 %v8575_v7, %v4761_v23  ;;  %v4765_v18 = vld [vmem:[#allocation2 + $0xc8] sm:$0xff]  ;;  %v4970_v27 = vadd.f32 %v8569_v32, %v4764_v26  ;;  %v4767_v21 = vld [vmem:[#allocation2 + $0x520] sm:$0xff]  ;;  %v4775_v44 = vld [vmem:[#allocation2 + $0x570] sm:$0xff]  ;;  %v4979_v58 = vadd.f32 %v8575_v7, %v4773_v34 }
 0x7c1   : > { %5144 = vst [vmem:[%s7345_s24 + $0x30] sm:$0xff] %v4952_v16  ;;  %v4766_v61 = vld [vmem:[#allocation2 + $0x388] sm:$0xff]  ;;  %v4971_v28 = vadd.f32 %v8571_v17, %v4765_v18  ;;  %v4769_v20 = vld [vmem:[#allocation2 + $0x5e0] sm:$0xff]  ;;  %v4973_v63 = vadd.f32 %v8575_v7, %v4767_v21  ;;  %v4776_v36 = vld [vmem:[#allocation2 + $0x598] sm:$0xff]  ;;  %v4981_v16 = vadd.f32 %v8579_v41, %v4775_v44 }
 0x7c2   : > { %5145 = vst [vmem:[%s7345_s24 + $0x38] sm:$0xff] %v4953_v5  ;;  %v4768_v22 = vld [vmem:[#allocation2 + $0x3a8] sm:$0xff]  ;;  %v4972_v24 = vadd.f32 %v8573_v6, %v4766_v61  ;;  %v4975_v33 = vadd.f32 %v8579_v41, %v4769_v20  ;;  %v4774_v43 = vld [vmem:[#allocation2 + $0x2a0] sm:$0xff]  ;;  %v4982_v5 = vadd.f32 %v8569_v32, %v4776_v36  ;;  %v4780_v56 = vld [vmem:[#allocation2 + $0x1f8] sm:$0xff] }
 0x7c3   : > { %5146 = vst [vmem:[%s7345_s24 + $0x40] sm:$0xff] %v4954_v55  ;;  %v4770_v37 = vld [vmem:[#allocation2 + $0x488] sm:$0xff]  ;;  %v4974_v0 = vadd.f32 %v8577_v9, %v4768_v22  ;;  %v4980_v30 = vadd.f32 %v8577_v9, %v4774_v43  ;;  %v4781_v48 = vld [vmem:[#allocation2 + $0x2f0] sm:$0xff]  ;;  %v4783_v29 = vld [vmem:[#allocation2 + $0x5c0] sm:$0xff] }
 0x7c4   : > { %5147 = vst [vmem:[%s7345_s24 + $0x48] sm:$0xff] %v4955_v12  ;;  %v4976_v14 = vadd.f32 %v8569_v32, %v4770_v37  ;;  %v4777_v15 = vld [vmem:[#allocation2 + $0x5a8] sm:$0xff]  ;;  %v4784_v52 = vld [vmem:[#allocation2 + $0x338] sm:$0xff]  ;;  %v4785_v46 = vld [vmem:[#allocation2 + $0x480] sm:$0xff] }
 0x7c5   : > { %5148 = vst [vmem:[%s7345_s24 + $0x50] sm:$0xff] %v4956_v62  ;;  %v4778_v51 = vld [vmem:[#allocation2 + $0x4c8] sm:$0xff]  ;;  %v4983_v55 = vadd.f32 %v8571_v17, %v4777_v15  ;;  %v4787_v54 = vld [vmem:[#allocation2 + $0x3e0] sm:$0xff]  ;;  %v4788_v39 = vld [vmem:[#allocation2 + $0x3d8] sm:$0xff] }
 0x7c6   : > { %5149 = vst [vmem:[%s7345_s24 + $0x58] sm:$0xff] %v4957_v45  ;;  %v4779_v19 = vld [vmem:[#allocation2 + $0x5e8] sm:$0xff]  ;;  %v4984_v12 = vadd.f32 %v8573_v6, %v4778_v51  ;;  %v4986_v45 = vadd.f32 %v8577_v9, %v4780_v56  ;;  %v4789_v1 = vld [vmem:[#allocation2 + $0x4b0] sm:$0xff]  ;;  %v4791_v59 = vld [vmem:[#allocation2 + $0xf8] sm:$0xff] }
 0x7c7   : > { %5150 = vst [vmem:[%s7345_s24 + $0x60] sm:$0xff] %v4958_v57  ;;  %v4985_v62 = vadd.f32 %v8575_v7, %v4779_v19  ;;  %v4782_v40 = vld [vmem:[#allocation2 + $0x3c8] sm:$0xff]  ;;  %v4987_v57 = vadd.f32 %v8579_v41, %v4781_v48  ;;  %v4793_v26 = vld [vmem:[#allocation2 + $0x120] sm:$0xff]  ;;  %v4794_v18 = vld [vmem:[#allocation2 + $0x2f8] sm:$0xff] }
 0x7c8   : > { %5151 = vst [vmem:[%s7345_s24 + $0x68] sm:$0xff] %v4959_v8  ;;  %v4988_v8 = vadd.f32 %v8569_v32, %v4782_v40  ;;  %v4786_v47 = vld [vmem:[#allocation2 + $0x2a8] sm:$0xff]  ;;  %v4796_v21 = vld [vmem:[#allocation2 + $0x560] sm:$0xff]  ;;  %v4797_v22 = vld [vmem:[#allocation2 + $0x4f8] sm:$0xff] }
 0x7c9   : > { %5152 = vst [vmem:[%s7345_s24 + $0x70] sm:$0xff] %v4960_v53  ;;  %v4989_v53 = vadd.f32 %v8571_v17, %v4783_v29  ;;  %v4790_v23 = vld [vmem:[#allocation2 + $0x28] sm:$0xff]  ;;  %v4799_v37 = vld [vmem:[#allocation2 + $0x370] sm:$0xff]  ;;  %v4800_v13 = vld [vmem:[#allocation2 + $0x138] sm:$0xff] }
 0x7ca   : > { %5153 = vst [vmem:[%s7345_s24 + $0x78] sm:$0xff] %v4961_v49  ;;  %v4990_v49 = vadd.f32 %v8573_v6, %v4784_v52  ;;  %v4792_v31 = vld [vmem:[#allocation2 + $0x4e8] sm:$0xff]  ;;  %v4803_v43 = vld [vmem:[#allocation2 + $0x1c0] sm:$0xff]  ;;  %v4804_v44 = vld [vmem:[#allocation2 + $0x5d0] sm:$0xff] }
 0x7cb   : > { %5154 = vst [vmem:[%s7345_s24 + $0x80] sm:$0xff] %v4962_v10  ;;  %v4991_v10 = vadd.f32 %v8575_v7, %v4785_v46  ;;  %v4795_v61 = vld [vmem:[#allocation2 + $0x268] sm:$0xff]  ;;  %v4805_v36 = vld [vmem:[#allocation2 + $0x260] sm:$0xff]  ;;  %v4806_v15 = vld [vmem:[#allocation2 + $0x438] sm:$0xff] }
 0x7cc   : > { %5155 = vst [vmem:[%s7345_s24 + $0x88] sm:$0xff] %v4963_v25  ;;  %v4992_v25 = vadd.f32 %v8577_v9, %v4786_v47  ;;  %v4798_v20 = vld [vmem:[#allocation2 + $0x2e8] sm:$0xff]  ;;  %v4807_v51 = vld [vmem:[#allocation2 + $0xf0] sm:$0xff]  ;;  %v4808_v19 = vld [vmem:[#allocation2 + $0x60] sm:$0xff] }
 0x7cd   : > { %5156 = vst [vmem:[%s7345_s24 + $0x90] sm:$0xff] %v4964_v38  ;;  %v4993_v38 = vadd.f32 %v8579_v41, %v4787_v54  ;;  %v4801_v11 = vld [vmem:[#allocation2 + $0x308] sm:$0xff]  ;;  %v4809_v56 = vld [vmem:[#allocation2 + $0x200] sm:$0xff]  ;;  %v4812_v29 = vld [vmem:[#allocation2 + $0x4b8] sm:$0xff] }
 0x7ce   : > { %5157 = vst [vmem:[%s7345_s24 + $0x98] sm:$0xff] %v4965_v42  ;;  %v4994_v42 = vadd.f32 %v8569_v32, %v4788_v39  ;;  %v4802_v34 = vld [vmem:[#allocation2 + $0x528] sm:$0xff]  ;;  %v4810_v48 = vld [vmem:[#allocation2 + $0x80] sm:$0xff]  ;;  %v4813_v52 = vld [vmem:[#allocation2 + $0x310] sm:$0xff] }
 0x7cf   : > { %5158 = vst [vmem:[%s7345_s24 + $0xa0] sm:$0xff] %v4966_v60  ;;  %v4995_v60 = vadd.f32 %v8571_v17, %v4789_v1  ;;  %v4811_v40 = vld [vmem:[#allocation2 + $0x5a0] sm:$0xff]  ;;  %v4814_v46 = vld [vmem:[#allocation2 + $0x1e8] sm:$0xff]  ;;  %v4815_v47 = vld [vmem:[#allocation2 + $0x258] sm:$0xff] }
 0x7d0   : > { %5159 = vst [vmem:[%s7345_s24 + $0xa8] sm:$0xff] %v4967_v2  ;;  %v4996_v2 = vadd.f32 %v8573_v6, %v4790_v23  ;;  %v4816_v54 = vld [vmem:[#allocation2 + $0x40] sm:$0xff]  ;;  %v4818_v1 = vld [vmem:[#allocation2 + $0x198] sm:$0xff]  ;;  %v4819_v23 = vld [vmem:[#allocation2 + $0x550] sm:$0xff] }
 0x7d1   : > { %5160 = vst [vmem:[%s7345_s24 + $0xb0] sm:$0xff] %v4968_v3  ;;  %v4997_v3 = vadd.f32 %v8575_v7, %v4791_v59  ;;  %v4817_v39 = vld [vmem:[#allocation2 + $0x4e0] sm:$0xff]  ;;  %v4820_v59 = vld [vmem:[#allocation2 + $0x418] sm:$0xff] }
 0x7d2   : > { %5161 = vst [vmem:[%s7345_s24 + $0xb8] sm:$0xff] %v4969_v4  ;;  %v4998_v4 = vadd.f32 %v8577_v9, %v4792_v31  ;;  %v4821_v31 = vld [vmem:[#allocation2 + $0x5c8] sm:$0xff] }
 0x7d3   : > { %5162 = vst [vmem:[%s7345_s24 + $0xc0] sm:$0xff] %v4970_v27  ;;  %v4999_v27 = vadd.f32 %v8579_v41, %v4793_v26  ;;  %v4822_v26 = vld [vmem:[#allocation2 + $0x340] sm:$0xff] }
 0x7d4   : > { %5163 = vst [vmem:[%s7345_s24 + $0xc8] sm:$0xff] %v4971_v28  ;;  %v5000_v28 = vadd.f32 %v8569_v32, %v4794_v18  ;;  %v4823_v18 = vld [vmem:[#allocation2 + $0x360] sm:$0xff] }
 0x7d5   : > { %5164 = vst [vmem:[%s7345_s24 + $0xd0] sm:$0xff] %v4972_v24  ;;  %v5001_v24 = vadd.f32 %v8571_v17, %v4795_v61  ;;  %v4824_v61 = vld [vmem:[#allocation2 + $0x3b8] sm:$0xff] }
 0x7d6   : > { %5165 = vst [vmem:[%s7345_s24 + $0xd8] sm:$0xff] %v4973_v63  ;;  %v5002_v63 = vadd.f32 %v8573_v6, %v4796_v21  ;;  %v4825_v21 = vld [vmem:[#allocation2 + $0x530] sm:$0xff] }
 0x7d7   : > { %5166 = vst [vmem:[%s7345_s24 + $0xe0] sm:$0xff] %v4974_v0  ;;  %v5003_v0 = vadd.f32 %v8575_v7, %v4797_v22  ;;  %v4826_v22 = vld [vmem:[#allocation2 + $0x1f0] sm:$0xff] }
 0x7d8   : > { %5167 = vst [vmem:[%s7345_s24 + $0xe8] sm:$0xff] %v4975_v33  ;;  %v5004_v33 = vadd.f32 %v8577_v9, %v4798_v20  ;;  %v4827_v20 = vld [vmem:[#allocation2 + $0x3a0] sm:$0xff] }
 0x7d9   : > { %5168 = vst [vmem:[%s7345_s24 + $0xf0] sm:$0xff] %v4976_v14  ;;  %v5005_v14 = vadd.f32 %v8579_v41, %v4799_v37  ;;  %v4828_v37 = vld [vmem:[#allocation2 + $0x460] sm:$0xff] }
 0x7da   : > { %5169 = vst [vmem:[%s7345_s24 + $0xf8] sm:$0xff] %v4977_v50  ;;  %v5006_v50 = vadd.f32 %v8569_v32, %v4800_v13  ;;  %v4829_v13 = vld [vmem:[#allocation2 + $0x2c8] sm:$0xff] }
 0x7db   : > { %5170 = vst [vmem:[%s7345_s24 + $0x100] sm:$0xff] %v4978_v35  ;;  %v5007_v35 = vadd.f32 %v8571_v17, %v4801_v11  ;;  %v4830_v11 = vld [vmem:[#allocation2 + $0x1d0] sm:$0xff] }
 0x7dc   : > { %5171 = vst [vmem:[%s7345_s24 + $0x108] sm:$0xff] %v4979_v58  ;;  %v5008_v58 = vadd.f32 %v8573_v6, %v4802_v34  ;;  %v4831_v34 = vld [vmem:[#allocation2 + $0x4f0] sm:$0xff] }
 0x7dd   : > { %5172 = vst [vmem:[%s7345_s24 + $0x110] sm:$0xff] %v4980_v30  ;;  %v5009_v30 = vadd.f32 %v8575_v7, %v4803_v43  ;;  %v4832_v43 = vld [vmem:[#allocation2 + $0x50] sm:$0xff] }
 0x7de   : > { %5173 = vst [vmem:[%s7345_s24 + $0x118] sm:$0xff] %v4981_v16  ;;  %v5010_v16 = vadd.f32 %v8577_v9, %v4804_v44  ;;  %v4833_v44 = vld [vmem:[#allocation2 + $0x4a0] sm:$0xff] }
 0x7df   : > { %5174 = vst [vmem:[%s7345_s24 + $0x120] sm:$0xff] %v4982_v5  ;;  %v5011_v5 = vadd.f32 %v8579_v41, %v4805_v36  ;;  %v4834_v36 = vld [vmem:[#allocation2 + $0x468] sm:$0xff] }
 0x7e0   : > { %5175 = vst [vmem:[%s7345_s24 + $0x128] sm:$0xff] %v4983_v55  ;;  %v5012_v55 = vadd.f32 %v8569_v32, %v4806_v15  ;;  %v4835_v15 = vld [vmem:[#allocation2 + $0x278] sm:$0xff] }
 0x7e1   : > { %5176 = vst [vmem:[%s7345_s24 + $0x130] sm:$0xff] %v4984_v12  ;;  %v5013_v12 = vadd.f32 %v8571_v17, %v4807_v51  ;;  %v4836_v51 = vld [vmem:[#allocation2 + $0x458] sm:$0xff] }
 0x7e2   : > { %5177 = vst [vmem:[%s7345_s24 + $0x138] sm:$0xff] %v4985_v62  ;;  %v5014_v62 = vadd.f32 %v8573_v6, %v4808_v19  ;;  %v4837_v19 = vld [vmem:[#allocation2 + $0x498] sm:$0xff] }
 0x7e3   : > { %5178 = vst [vmem:[%s7345_s24 + $0x140] sm:$0xff] %v4986_v45  ;;  %v5015_v45 = vadd.f32 %v8575_v7, %v4809_v56  ;;  %v4838_v56 = vld [vmem:[#allocation2 + $0x400] sm:$0xff] }
 0x7e4   : > { %5179 = vst [vmem:[%s7345_s24 + $0x148] sm:$0xff] %v4987_v57  ;;  %v5016_v57 = vadd.f32 %v8577_v9, %v4810_v48  ;;  %v4839_v48 = vld [vmem:[#allocation2 + $0x5d8] sm:$0xff] }
 0x7e5   : > { %5180 = vst [vmem:[%s7345_s24 + $0x150] sm:$0xff] %v4988_v8  ;;  %v5017_v8 = vadd.f32 %v8579_v41, %v4811_v40  ;;  %v4840_v40 = vld [vmem:[#allocation2 + $0xe8] sm:$0xff] }
 0x7e6   : > { %5181 = vst [vmem:[%s7345_s24 + $0x158] sm:$0xff] %v4989_v53  ;;  %v5018_v53 = vadd.f32 %v8569_v32, %v4812_v29  ;;  %v4841_v29 = vld [vmem:[#allocation2 + $0x160] sm:$0xff] }
 0x7e7   : > { %5182 = vst [vmem:[%s7345_s24 + $0x160] sm:$0xff] %v4990_v49  ;;  %v5019_v49 = vadd.f32 %v8571_v17, %v4813_v52  ;;  %v4842_v52 = vld [vmem:[#allocation2 + $0x178] sm:$0xff] }
 0x7e8   : > { %5183 = vst [vmem:[%s7345_s24 + $0x168] sm:$0xff] %v4991_v10  ;;  %v5020_v10 = vadd.f32 %v8573_v6, %v4814_v46  ;;  %v4843_v46 = vld [vmem:[#allocation2 + $0x538] sm:$0xff] }
 0x7e9   : > { %5184 = vst [vmem:[%s7345_s24 + $0x170] sm:$0xff] %v4992_v25  ;;  %v5021_v25 = vadd.f32 %v8575_v7, %v4815_v47  ;;  %v4844_v47 = vld [vmem:[#allocation2 + $0x1e0] sm:$0xff] }
 0x7ea   : > { %5185 = vst [vmem:[%s7345_s24 + $0x178] sm:$0xff] %v4993_v38  ;;  %v5022_v38 = vadd.f32 %v8577_v9, %v4816_v54  ;;  %v4845_v54 = vld [vmem:[#allocation2 + $0x390] sm:$0xff] }
 0x7eb   : > { %5186 = vst [vmem:[%s7345_s24 + $0x180] sm:$0xff] %v4994_v42  ;;  %v5023_v42 = vadd.f32 %v8579_v41, %v4817_v39  ;;  %v4846_v39 = vld [vmem:[#allocation2 + $0x2c0] sm:$0xff] }
 0x7ec   : > { %5187 = vst [vmem:[%s7345_s24 + $0x188] sm:$0xff] %v4995_v60  ;;  %v5024_v60 = vadd.f32 %v8569_v32, %v4818_v1  ;;  %v4847_v1 = vld [vmem:[#allocation2 + $0x228] sm:$0xff] }
 0x7ed   : > { %5188 = vst [vmem:[%s7345_s24 + $0x190] sm:$0xff] %v4996_v2  ;;  %v5025_v2 = vadd.f32 %v8571_v17, %v4819_v23  ;;  %v4848_v23 = vld [vmem:[#allocation2 + $0x5b0] sm:$0xff] }
 0x7ee   : > { %5189 = vst [vmem:[%s7345_s24 + $0x198] sm:$0xff] %v4997_v3  ;;  %v5026_v3 = vadd.f32 %v8573_v6, %v4820_v59  ;;  %v4849_v59 = vld [vmem:[#allocation2 + $0xc0] sm:$0xff] }
 0x7ef   : > { %5190 = vst [vmem:[%s7345_s24 + $0x1a0] sm:$0xff] %v4998_v4  ;;  %v5027_v4 = vadd.f32 %v8575_v7, %v4821_v31  ;;  %v4850_v31 = vld [vmem:[#allocation2 + $0xd8] sm:$0xff] }
 0x7f0   : > { %5191 = vst [vmem:[%s7345_s24 + $0x1a8] sm:$0xff] %v4999_v27  ;;  %v5028_v27 = vadd.f32 %v8577_v9, %v4822_v26  ;;  %v4851_v26 = vld [vmem:[#allocation2 + $0x428] sm:$0xff] }
 0x7f1   : > { %5192 = vst [vmem:[%s7345_s24 + $0x1b0] sm:$0xff] %v5000_v28  ;;  %v5029_v28 = vadd.f32 %v8579_v41, %v4823_v18  ;;  %v4852_v18 = vld [vmem:[#allocation2 + $0x30] sm:$0xff] }
 0x7f2   : > { %5193 = vst [vmem:[%s7345_s24 + $0x1b8] sm:$0xff] %v5001_v24  ;;  %v5030_v24 = vadd.f32 %v8569_v32, %v4824_v61  ;;  %v4853_v61 = vld [vmem:[#allocation2 + $0x410] sm:$0xff] }
 0x7f3   : > { %5194 = vst [vmem:[%s7345_s24 + $0x1c0] sm:$0xff] %v5002_v63  ;;  %v5031_v63 = vadd.f32 %v8571_v17, %v4825_v21  ;;  %v4854_v21 = vld [vmem:[#allocation2 + $0x208] sm:$0xff] }
 0x7f4   : > { %5195 = vst [vmem:[%s7345_s24 + $0x1c8] sm:$0xff] %v5003_v0  ;;  %v5032_v0 = vadd.f32 %v8573_v6, %v4826_v22  ;;  %v4855_v22 = vld [vmem:[#allocation2 + $0x4a8] sm:$0xff] }
 0x7f5   : > { %5196 = vst [vmem:[%s7345_s24 + $0x1d0] sm:$0xff] %v5004_v33  ;;  %v5033_v33 = vadd.f32 %v8575_v7, %v4827_v20  ;;  %v4856_v20 = vld [vmem:[#allocation2 + $0x5b8] sm:$0xff] }
 0x7f6   : > { %5197 = vst [vmem:[%s7345_s24 + $0x1d8] sm:$0xff] %v5005_v14  ;;  %v5034_v14 = vadd.f32 %v8577_v9, %v4828_v37  ;;  %v4857_v37 = vld [vmem:[#allocation2 + $0x218] sm:$0xff] }
 0x7f7   : > { %5198 = vst [vmem:[%s7345_s24 + $0x1e0] sm:$0xff] %v5006_v50  ;;  %v5035_v50 = vadd.f32 %v8579_v41, %v4829_v13  ;;  %v4858_v13 = vld [vmem:[#allocation2 + $0x368] sm:$0xff] }
 0x7f8   : > { %5199 = vst [vmem:[%s7345_s24 + $0x1e8] sm:$0xff] %v5007_v35  ;;  %v5036_v35 = vadd.f32 %v8569_v32, %v4830_v11  ;;  %v4859_v11 = vld [vmem:[#allocation2 + $0x298] sm:$0xff] }
 0x7f9   : > { %5200 = vst [vmem:[%s7345_s24 + $0x1f0] sm:$0xff] %v5008_v58  ;;  %v5037_v58 = vadd.f32 %v8571_v17, %v4831_v34  ;;  %v4860_v34 = vld [vmem:[#allocation2 + $0x420] sm:$0xff] }
 0x7fa   : > { %5201 = vst [vmem:[%s7345_s24 + $0x1f8] sm:$0xff] %v5009_v30  ;;  %v5038_v30 = vadd.f32 %v8573_v6, %v4832_v43  ;;  %v4861_v43 = vld [vmem:[#allocation2 + $0x88] sm:$0xff] }
 0x7fb   : > { %5202 = vst [vmem:[%s7345_s24 + $0x200] sm:$0xff] %v5010_v16  ;;  %v5039_v16 = vadd.f32 %v8575_v7, %v4833_v44  ;;  %v4862_v44 = vld [vmem:[#allocation2 + $0x130] sm:$0xff] }
 0x7fc   : > { %5203 = vst [vmem:[%s7345_s24 + $0x208] sm:$0xff] %v5011_v5  ;;  %v5040_v5 = vadd.f32 %v8577_v9, %v4834_v36  ;;  %v4863_v36 = vld [vmem:[#allocation2 + $0x5f0] sm:$0xff] }
 0x7fd   : > { %5204 = vst [vmem:[%s7345_s24 + $0x210] sm:$0xff] %v5012_v55  ;;  %v5041_v55 = vadd.f32 %v8579_v41, %v4835_v15  ;;  %v4864_v15 = vld [vmem:[#allocation2 + $0x230] sm:$0xff] }
 0x7fe   : > { %5205 = vst [vmem:[%s7345_s24 + $0x218] sm:$0xff] %v5013_v12  ;;  %v5042_v12 = vadd.f32 %v8569_v32, %v4836_v51  ;;  %v4865_v51 = vld [vmem:[#allocation2 + $0x2e0] sm:$0xff] }
 0x7ff   : > { %5206 = vst [vmem:[%s7345_s24 + $0x220] sm:$0xff] %v5014_v62  ;;  %v5043_v62 = vadd.f32 %v8571_v17, %v4837_v19  ;;  %v4866_v19 = vld [vmem:[#allocation2 + $0x110] sm:$0xff] }
 0x800   : > { %5207 = vst [vmem:[%s7345_s24 + $0x228] sm:$0xff] %v5015_v45  ;;  %v5044_v45 = vadd.f32 %v8573_v6, %v4838_v56  ;;  %v4867_v56 = vld [vmem:[#allocation2 + $0xa8] sm:$0xff] }
 0x801   : > { %5208 = vst [vmem:[%s7345_s24 + $0x230] sm:$0xff] %v5016_v57  ;;  %v5045_v57 = vadd.f32 %v8575_v7, %v4839_v48  ;;  %v4868_v48 = vld [vmem:[#allocation2 + $0x190] sm:$0xff] }
 0x802   : > { %5209 = vst [vmem:[%s7345_s24 + $0x238] sm:$0xff] %v5017_v8  ;;  %v5046_v8 = vadd.f32 %v8577_v9, %v4840_v40  ;;  %v4869_v40 = vld [vmem:[#allocation2 + $0x1a8] sm:$0xff] }
 0x803   : > { %5210 = vst [vmem:[%s7345_s24 + $0x240] sm:$0xff] %v5018_v53  ;;  %v5047_v53 = vadd.f32 %v8579_v41, %v4841_v29  ;;  %v4870_v29 = vld [vmem:[#allocation2 + $0x398] sm:$0xff] }
 0x804   : > { %5211 = vst [vmem:[%s7345_s24 + $0x248] sm:$0xff] %v5019_v49  ;;  %v5048_v49 = vadd.f32 %v8569_v32, %v4842_v52  ;;  %v4871_v52 = vld [vmem:[#allocation2 + $0x470] sm:$0xff] }
 0x805   : > { %5212 = vst [vmem:[%s7345_s24 + $0x250] sm:$0xff] %v5020_v10  ;;  %v5049_v10 = vadd.f32 %v8571_v17, %v4843_v46  ;;  %v4872_v46 = vld [vmem:[#allocation2 + $0xe0] sm:$0xff] }
 0x806   : > { %5213 = vst [vmem:[%s7345_s24 + $0x258] sm:$0xff] %v5021_v25  ;;  %v5050_v25 = vadd.f32 %v8573_v6, %v4844_v47  ;;  %v4873_v47 = vld [vmem:[#allocation2 + $0xd0] sm:$0xff] }
 0x807   : > { %5214 = vst [vmem:[%s7345_s24 + $0x260] sm:$0xff] %v5022_v38  ;;  %v5051_v38 = vadd.f32 %v8575_v7, %v4845_v54  ;;  %v4874_v54 = vld [vmem:[#allocation2 + $0x38] sm:$0xff] }
 0x808   : > { %5215 = vst [vmem:[%s7345_s24 + $0x268] sm:$0xff] %v5023_v42  ;;  %v5052_v42 = vadd.f32 %v8577_v9, %v4846_v39  ;;  %v4875_v39 = vld [vmem:[#allocation2 + $0x240] sm:$0xff] }
 0x809   : > { %5216 = vst [vmem:[%s7345_s24 + $0x270] sm:$0xff] %v5024_v60  ;;  %v5053_v60 = vadd.f32 %v8579_v41, %v4847_v1  ;;  %v4876_v1 = vld [vmem:[#allocation2 + $0x280] sm:$0xff] }
 0x80a   : > { %5217 = vst [vmem:[%s7345_s24 + $0x278] sm:$0xff] %v5025_v2  ;;  %v5054_v2 = vadd.f32 %v8569_v32, %v4848_v23  ;;  %v4877_v23 = vld [vmem:[#allocation2 + $0x518] sm:$0xff] }
 0x80b   : > { %5218 = vst [vmem:[%s7345_s24 + $0x280] sm:$0xff] %v5026_v3  ;;  %v5055_v3 = vadd.f32 %v8571_v17, %v4849_v59  ;;  %v4878_v59 = vld [vmem:[#allocation2 + $0x148] sm:$0xff] }
 0x80c   : > { %5219 = vst [vmem:[%s7345_s24 + $0x288] sm:$0xff] %v5027_v4  ;;  %v5056_v4 = vadd.f32 %v8573_v6, %v4850_v31  ;;  %v4879_v31 = vld [vmem:[#allocation2 + $0x508] sm:$0xff] }
 0x80d   : > { %5220 = vst [vmem:[%s7345_s24 + $0x290] sm:$0xff] %v5028_v27  ;;  %v5057_v27 = vadd.f32 %v8575_v7, %v4851_v26  ;;  %v4880_v26 = vld [vmem:[#allocation2 + $0x3d0] sm:$0xff] }
 0x80e   : > { %5221 = vst [vmem:[%s7345_s24 + $0x298] sm:$0xff] %v5029_v28  ;;  %v5058_v28 = vadd.f32 %v8577_v9, %v4852_v18  ;;  %v4881_v18 = vld [vmem:[#allocation2 + $0x68] sm:$0xff] }
 0x80f   : > { %5222 = vst [vmem:[%s7345_s24 + $0x2a0] sm:$0xff] %v5030_v24  ;;  %v5059_v24 = vadd.f32 %v8579_v41, %v4853_v61  ;;  %v4882_v61 = vld [vmem:[#allocation2 + $0x358] sm:$0xff] }
 0x810   : > { %5223 = vst [vmem:[%s7345_s24 + $0x2a8] sm:$0xff] %v5031_v63  ;;  %v5060_v63 = vadd.f32 %v8569_v32, %v4854_v21  ;;  %v4883_v21 = vld [vmem:[#allocation2 + $0x70] sm:$0xff] }
 0x811   : > { %5224 = vst [vmem:[%s7345_s24 + $0x2b0] sm:$0xff] %v5032_v0  ;;  %v5061_v0 = vadd.f32 %v8571_v17, %v4855_v22  ;;  %v4884_v22 = vld [vmem:[#allocation2 + $0xb8] sm:$0xff] }
 0x812   : > { %5225 = vst [vmem:[%s7345_s24 + $0x2b8] sm:$0xff] %v5033_v33  ;;  %v5062_v33 = vadd.f32 %v8573_v6, %v4856_v20  ;;  %v4885_v20 = vld [vmem:[#allocation2 + $0x10] sm:$0xff] }
 0x813   : > { %5226 = vst [vmem:[%s7345_s24 + $0x2c0] sm:$0xff] %v5034_v14  ;;  %v5063_v14 = vadd.f32 %v8575_v7, %v4857_v37  ;;  %v4886_v37 = vld [vmem:[#allocation2 + $0x20] sm:$0xff] }
 0x814   : > { %5227 = vst [vmem:[%s7345_s24 + $0x2c8] sm:$0xff] %v5035_v50  ;;  %v5064_v50 = vadd.f32 %v8577_v9, %v4858_v13  ;;  %v4887_v13 = vld [vmem:[#allocation2 + $0x78] sm:$0xff] }
 0x815   : > { %5228 = vst [vmem:[%s7345_s24 + $0x2d0] sm:$0xff] %v5036_v35  ;;  %v5065_v35 = vadd.f32 %v8579_v41, %v4859_v11  ;;  %v4888_v11 = vld [vmem:[#allocation2 + $0x210] sm:$0xff] }
 0x816   : > { %5229 = vst [vmem:[%s7345_s24 + $0x2d8] sm:$0xff] %v5037_v58  ;;  %v5066_v58 = vadd.f32 %v8569_v32, %v4860_v34  ;;  %v4889_v34 = vld [vmem:[#allocation2 + $0x558] sm:$0xff] }
 0x817   : > { %5230 = vst [vmem:[%s7345_s24 + $0x2e0] sm:$0xff] %v5038_v30  ;;  %v5067_v30 = vadd.f32 %v8571_v17, %v4861_v43  ;;  %v4890_v43 = vld [vmem:[#allocation2 + $0x588] sm:$0xff] }
 0x818   : > { %5231 = vst [vmem:[%s7345_s24 + $0x2e8] sm:$0xff] %v5039_v16  ;;  %v5068_v16 = vadd.f32 %v8573_v6, %v4862_v44  ;;  %v4891_v44 = vld [vmem:[#allocation2 + $0x48] sm:$0xff] }
 0x819   : > { %5232 = vst [vmem:[%s7345_s24 + $0x2f0] sm:$0xff] %v5040_v5  ;;  %v5069_v5 = vadd.f32 %v8575_v7, %v4863_v36  ;;  %v4892_v36 = vld [vmem:[#allocation2 + $0x118] sm:$0xff] }
 0x81a   : > { %5233 = vst [vmem:[%s7345_s24 + $0x2f8] sm:$0xff] %v5041_v55  ;;  %v5070_v55 = vadd.f32 %v8577_v9, %v4864_v15  ;;  %v4893_v15 = vld [vmem:[#allocation2 + $0x478] sm:$0xff] }
 0x81b   : > { %5234 = vst [vmem:[%s7345_s24 + $0x300] sm:$0xff] %v5042_v12  ;;  %v5071_v12 = vadd.f32 %v8579_v41, %v4865_v51  ;;  %v4894_v51 = vld [vmem:[#allocation2 + $0x3f8] sm:$0xff] }
 0x81c   : > { %5235 = vst [vmem:[%s7345_s24 + $0x308] sm:$0xff] %v5043_v62  ;;  %v5072_v62 = vadd.f32 %v8569_v32, %v4866_v19  ;;  %v4895_v19 = vld [vmem:[#allocation2 + $0x380] sm:$0xff] }
 0x81d   : > { %5236 = vst [vmem:[%s7345_s24 + $0x310] sm:$0xff] %v5044_v45  ;;  %v5073_v45 = vadd.f32 %v8571_v17, %v4867_v56  ;;  %v4896_v56 = vld [vmem:[#allocation2 + $0x578] sm:$0xff] }
 0x81e   : > { %5237 = vst [vmem:[%s7345_s24 + $0x318] sm:$0xff] %v5045_v57  ;;  %v5074_v57 = vadd.f32 %v8573_v6, %v4868_v48  ;;  %v4897_v48 = vld [vmem:[#allocation2 + $0x170] sm:$0xff] }
 0x81f   : > { %5238 = vst [vmem:[%s7345_s24 + $0x320] sm:$0xff] %v5046_v8  ;;  %v5075_v8 = vadd.f32 %v8575_v7, %v4869_v40  ;;  %v4898_v40 = vld [vmem:[#allocation2 + $0x1a0] sm:$0xff] }
 0x820   : > { %5239 = vst [vmem:[%s7345_s24 + $0x328] sm:$0xff] %v5047_v53  ;;  %v5076_v53 = vadd.f32 %v8577_v9, %v4870_v29  ;;  %v4899_v29 = vld [vmem:[#allocation2 + $0x288] sm:$0xff] }
 0x821   : > { %5240 = vst [vmem:[%s7345_s24 + $0x330] sm:$0xff] %v5048_v49  ;;  %v5077_v49 = vadd.f32 %v8579_v41, %v4871_v52  ;;  %v4900_v52 = vld [vmem:[#allocation2 + $0x140] sm:$0xff] }
 0x822   : > { %5241 = vst [vmem:[%s7345_s24 + $0x338] sm:$0xff] %v5049_v10  ;;  %v5078_v10 = vadd.f32 %v8569_v32, %v4872_v46  ;;  %v4901_v46 = vld [vmem:[#allocation2 + $0x300] sm:$0xff] }
 0x823   : > { %5242 = vst [vmem:[%s7345_s24 + $0x340] sm:$0xff] %v5050_v25  ;;  %v5079_v25 = vadd.f32 %v8571_v17, %v4873_v47  ;;  %v4902_v47 = vld [vmem:[#allocation2] sm:$0xff] }
 0x824   : > { %5243 = vst [vmem:[%s7345_s24 + $0x348] sm:$0xff] %v5051_v38  ;;  %v5080_v38 = vadd.f32 %v8573_v6, %v4874_v54  ;;  %v4903_v54 = vld [vmem:[#allocation2 + $0x320] sm:$0xff] }
 0x825   : > { %5244 = vst [vmem:[%s7345_s24 + $0x350] sm:$0xff] %v5052_v42  ;;  %v5081_v42 = vadd.f32 %v8575_v7, %v4875_v39  ;;  %v4904_v39 = vld [vmem:[#allocation2 + $0x158] sm:$0xff] }
 0x826   : > { %5245 = vst [vmem:[%s7345_s24 + $0x358] sm:$0xff] %v5053_v60  ;;  %v5082_v60 = vadd.f32 %v8577_v9, %v4876_v1  ;;  %v4905_v1 = vld [vmem:[#allocation2 + $0x348] sm:$0xff] }
 0x827   : > { %5246 = vst [vmem:[%s7345_s24 + $0x360] sm:$0xff] %v5054_v2  ;;  %v5083_v2 = vadd.f32 %v8579_v41, %v4877_v23  ;;  %v4906_v23 = vld [vmem:[#allocation2 + $0x2d8] sm:$0xff] }
 0x828   : > { %5247 = vst [vmem:[%s7345_s24 + $0x368] sm:$0xff] %v5055_v3  ;;  %v5084_v3 = vadd.f32 %v8569_v32, %v4878_v59  ;;  %v4907_v59 = vld [vmem:[#allocation2 + $0x168] sm:$0xff] }
 0x829   : > { %5248 = vst [vmem:[%s7345_s24 + $0x370] sm:$0xff] %v5056_v4  ;;  %v5085_v4 = vadd.f32 %v8571_v17, %v4879_v31  ;;  %v4908_v31 = vld [vmem:[#allocation2 + $0x1c8] sm:$0xff] }
 0x82a   : > { %5249 = vst [vmem:[%s7345_s24 + $0x378] sm:$0xff] %v5057_v27  ;;  %v5086_v27 = vadd.f32 %v8573_v6, %v4880_v26  ;;  %v4909_v26 = vld [vmem:[#allocation2 + $0xa0] sm:$0xff] }
 0x82b   : > { %5250 = vst [vmem:[%s7345_s24 + $0x380] sm:$0xff] %v5058_v28  ;;  %v5087_v28 = vadd.f32 %v8575_v7, %v4881_v18  ;;  %v4910_v18 = vld [vmem:[#allocation2 + $0x408] sm:$0xff] }
 0x82c   : > { %5251 = vst [vmem:[%s7345_s24 + $0x388] sm:$0xff] %v5059_v24  ;;  %v5088_v24 = vadd.f32 %v8577_v9, %v4882_v61  ;;  %v4911_v61 = vld [vmem:[#allocation2 + $0x5f8] sm:$0xff] }
 0x82d   : > { %5252 = vst [vmem:[%s7345_s24 + $0x390] sm:$0xff] %v5060_v63  ;;  %v5089_v63 = vadd.f32 %v8579_v41, %v4883_v21  ;;  %v4912_v21 = vld [vmem:[#allocation2 + $0x270] sm:$0xff] }
 0x82e   : > { %5253 = vst [vmem:[%s7345_s24 + $0x398] sm:$0xff] %v5061_v0  ;;  %v5090_v0 = vadd.f32 %v8569_v32, %v4884_v22  ;;  %v4913_v22 = vld [vmem:[#allocation2 + $0x250] sm:$0xff] }
 0x82f   : > { %5254 = vst [vmem:[%s7345_s24 + $0x3a0] sm:$0xff] %v5062_v33  ;;  %v5091_v33 = vadd.f32 %v8571_v17, %v4885_v20  ;;  %v4914_v20 = vld [vmem:[#allocation2 + $0x2d0] sm:$0xff] }
 0x830   : > { %5255 = vst [vmem:[%s7345_s24 + $0x3a8] sm:$0xff] %v5063_v14  ;;  %v5092_v14 = vadd.f32 %v8573_v6, %v4886_v37  ;;  %v4915_v37 = vld [vmem:[#allocation2 + $0x1b8] sm:$0xff] }
 0x831   : > { %5256 = vst [vmem:[%s7345_s24 + $0x3b0] sm:$0xff] %v5064_v50  ;;  %v5093_v50 = vadd.f32 %v8575_v7, %v4887_v13  ;;  %v4916_v13 = vld [vmem:[#allocation2 + $0x150] sm:$0xff] }
 0x832   : > { %5257 = vst [vmem:[%s7345_s24 + $0x3b8] sm:$0xff] %v5065_v35  ;;  %v5094_v35 = vadd.f32 %v8577_v9, %v4888_v11  ;;  %v4917_v11 = vld [vmem:[#allocation2 + $0x1b0] sm:$0xff] }
 0x833   : > { %5258 = vst [vmem:[%s7345_s24 + $0x3c0] sm:$0xff] %v5066_v58  ;;  %v5095_v58 = vadd.f32 %v8579_v41, %v4889_v34  ;;  %v4918_v34 = vld [vmem:[#allocation2 + $0x220] sm:$0xff] }
 0x834   : > { %5259 = vst [vmem:[%s7345_s24 + $0x3c8] sm:$0xff] %v5067_v30  ;;  %v5096_v30 = vadd.f32 %v8569_v32, %v4890_v43  ;;  %v4919_v43 = vld [vmem:[#allocation2 + $0x1d8] sm:$0xff] }
 0x835   : > { %5260 = vst [vmem:[%s7345_s24 + $0x3d0] sm:$0xff] %v5068_v16  ;;  %v5097_v16 = vadd.f32 %v8571_v17, %v4891_v44  ;;  %v4920_v44 = vld [vmem:[#allocation2 + $0x3e8] sm:$0xff] }
 0x836   : > { %5261 = vst [vmem:[%s7345_s24 + $0x3d8] sm:$0xff] %v5069_v5  ;;  %v5098_v5 = vadd.f32 %v8573_v6, %v4892_v36  ;;  %v4921_v36 = vld [vmem:[#allocation2 + $0x448] sm:$0xff] }
 0x837   : > { %5262 = vst [vmem:[%s7345_s24 + $0x3e0] sm:$0xff] %v5070_v55  ;;  %v5099_v55 = vadd.f32 %v8575_v7, %v4893_v15  ;;  %v4922_v15 = vld [vmem:[#allocation2 + $0x430] sm:$0xff] }
 0x838   : > { %5263 = vst [vmem:[%s7345_s24 + $0x3e8] sm:$0xff] %v5071_v12  ;;  %v5100_v12 = vadd.f32 %v8577_v9, %v4894_v51  ;;  %v4923_v51 = vld [vmem:[#allocation2 + $0x180] sm:$0xff] }
 0x839   : > { %5264 = vst [vmem:[%s7345_s24 + $0x3f0] sm:$0xff] %v5072_v62  ;;  %v5101_v62 = vadd.f32 %v8579_v41, %v4895_v19  ;;  %v4924_v19 = vld [vmem:[#allocation2 + $0x350] sm:$0xff] }
 0x83a   : > { %5265 = vst [vmem:[%s7345_s24 + $0x3f8] sm:$0xff] %v5073_v45  ;;  %v5102_v45 = vadd.f32 %v8569_v32, %v4896_v56  ;;  %v4925_v56 = vld [vmem:[#allocation2 + $0x4c0] sm:$0xff] }
 0x83b   : > { %5266 = vst [vmem:[%s7345_s24 + $0x400] sm:$0xff] %v5074_v57  ;;  %v5103_v57 = vadd.f32 %v8571_v17, %v4897_v48  ;;  %v4926_v48 = vld [vmem:[#allocation2 + $0x128] sm:$0xff] }
 0x83c   : > { %5267 = vst [vmem:[%s7345_s24 + $0x408] sm:$0xff] %v5075_v8  ;;  %v5104_v8 = vadd.f32 %v8573_v6, %v4898_v40  ;;  %v4927_v40 = vld [vmem:[#allocation2 + $0x3f0] sm:$0xff] }
 0x83d   : > { %5268 = vst [vmem:[%s7345_s24 + $0x410] sm:$0xff] %v5076_v53  ;;  %v5105_v53 = vadd.f32 %v8575_v7, %v4899_v29  ;;  %v4928_v29 = vld [vmem:[#allocation2 + $0x238] sm:$0xff] }
 0x83e   : > { %5269 = vst [vmem:[%s7345_s24 + $0x418] sm:$0xff] %v5077_v49  ;;  %v5106_v49 = vadd.f32 %v8577_v9, %v4900_v52  ;;  %v4929_v52 = vld [vmem:[#allocation2 + $0x290] sm:$0xff] }
 0x83f   : > { %5270 = vst [vmem:[%s7345_s24 + $0x420] sm:$0xff] %v5078_v10  ;;  %v5107_v10 = vadd.f32 %v8579_v41, %v4901_v46  ;;  %v4930_v46 = vld [vmem:[#allocation2 + $0x568] sm:$0xff] }
 0x840   : > { %5271 = vst [vmem:[%s7345_s24 + $0x428] sm:$0xff] %v5079_v25  ;;  %v5108_v25 = vadd.f32 %v8569_v32, %v4902_v47  ;;  %v4931_v47 = vld [vmem:[#allocation2 + $0x90] sm:$0xff] }
 0x841   : > { %5272 = vst [vmem:[%s7345_s24 + $0x430] sm:$0xff] %v5080_v38  ;;  %v5109_v38 = vadd.f32 %v8571_v17, %v4903_v54  ;;  %v5136_v54 = vadd.f32 %v8577_v9, %v4930_v46 }
 0x842   : > { %5273 = vst [vmem:[%s7345_s24 + $0x438] sm:$0xff] %v5081_v42  ;;  %v5110_v42 = vadd.f32 %v8573_v6, %v4904_v39 }
 0x843   : > { %5274 = vst [vmem:[%s7345_s24 + $0x440] sm:$0xff] %v5082_v60  ;;  %v5111_v60 = vadd.f32 %v8575_v7, %v4905_v1 }
 0x844   : > { %5275 = vst [vmem:[%s7345_s24 + $0x448] sm:$0xff] %v5083_v2  ;;  %v5112_v2 = vadd.f32 %v8577_v9, %v4906_v23 }
 0x845   : > { %5276 = vst [vmem:[%s7345_s24 + $0x450] sm:$0xff] %v5084_v3  ;;  %v5113_v3 = vadd.f32 %v8579_v41, %v4907_v59 }
 0x846   : > { %5277 = vst [vmem:[%s7345_s24 + $0x458] sm:$0xff] %v5085_v4  ;;  %v5114_v4 = vadd.f32 %v8569_v32, %v4908_v31 }
 0x847   : > { %5278 = vst [vmem:[%s7345_s24 + $0x460] sm:$0xff] %v5086_v27  ;;  %v5115_v27 = vadd.f32 %v8571_v17, %v4909_v26 }
 0x848   : > { %5279 = vst [vmem:[%s7345_s24 + $0x468] sm:$0xff] %v5087_v28  ;;  %v5116_v28 = vadd.f32 %v8573_v6, %v4910_v18 }
 0x849   : > { %5280 = vst [vmem:[%s7345_s24 + $0x470] sm:$0xff] %v5088_v24  ;;  %v5117_v24 = vadd.f32 %v8575_v7, %v4911_v61 }
 0x84a   : > { %5281 = vst [vmem:[%s7345_s24 + $0x478] sm:$0xff] %v5089_v63  ;;  %v5118_v63 = vadd.f32 %v8577_v9, %v4912_v21 }
 0x84b   : > { %5282 = vst [vmem:[%s7345_s24 + $0x480] sm:$0xff] %v5090_v0  ;;  %v5119_v0 = vadd.f32 %v8579_v41, %v4913_v22 }
 0x84c   : > { %5283 = vst [vmem:[%s7345_s24 + $0x488] sm:$0xff] %v5091_v33  ;;  %v5120_v33 = vadd.f32 %v8569_v32, %v4914_v20 }
 0x84d   : > { %5284 = vst [vmem:[%s7345_s24 + $0x490] sm:$0xff] %v5092_v14  ;;  %v5121_v14 = vadd.f32 %v8571_v17, %v4915_v37 }
 0x84e   : > { %5285 = vst [vmem:[%s7345_s24 + $0x498] sm:$0xff] %v5093_v50  ;;  %v5122_v50 = vadd.f32 %v8573_v6, %v4916_v13 }
 0x84f   : > { %5286 = vst [vmem:[%s7345_s24 + $0x4a0] sm:$0xff] %v5094_v35  ;;  %v5123_v35 = vadd.f32 %v8575_v7, %v4917_v11 }
 0x850   : > { %5287 = vst [vmem:[%s7345_s24 + $0x4a8] sm:$0xff] %v5095_v58  ;;  %v5124_v58 = vadd.f32 %v8577_v9, %v4918_v34 }
 0x851   : > { %5288 = vst [vmem:[%s7345_s24 + $0x4b0] sm:$0xff] %v5096_v30  ;;  %v5125_v30 = vadd.f32 %v8579_v41, %v4919_v43 }
 0x852   : > { %5289 = vst [vmem:[%s7345_s24 + $0x4b8] sm:$0xff] %v5097_v16  ;;  %v5126_v16 = vadd.f32 %v8569_v32, %v4920_v44 }
 0x853   : > { %5290 = vst [vmem:[%s7345_s24 + $0x4c0] sm:$0xff] %v5098_v5  ;;  %v5127_v5 = vadd.f32 %v8571_v17, %v4921_v36 }
 0x854   : > { %5291 = vst [vmem:[%s7345_s24 + $0x4c8] sm:$0xff] %v5099_v55  ;;  %v5128_v55 = vadd.f32 %v8573_v6, %v4922_v15 }
 0x855   : > { %5292 = vst [vmem:[%s7345_s24 + $0x4d0] sm:$0xff] %v5100_v12  ;;  %v5129_v12 = vadd.f32 %v8575_v7, %v4923_v51 }
 0x856   : > { %5293 = vst [vmem:[%s7345_s24 + $0x4d8] sm:$0xff] %v5101_v62  ;;  %v5130_v62 = vadd.f32 %v8577_v9, %v4924_v19 }
 0x857   : > { %5294 = vst [vmem:[%s7345_s24 + $0x4e0] sm:$0xff] %v5102_v45  ;;  %v5131_v45 = vadd.f32 %v8579_v41, %v4925_v56 }
 0x858   : > { %5295 = vst [vmem:[%s7345_s24 + $0x4e8] sm:$0xff] %v5103_v57  ;;  %v5132_v57 = vadd.f32 %v8569_v32, %v4926_v48  ;;  %v5137_v32 = vadd.f32 %v8579_v41, %v4931_v47 }
 0x859   : > { %5296 = vst [vmem:[%s7345_s24 + $0x4f0] sm:$0xff] %v5104_v8  ;;  %v5133_v8 = vadd.f32 %v8571_v17, %v4927_v40 }
 0x85a   : > { %5297 = vst [vmem:[%s7345_s24 + $0x4f8] sm:$0xff] %v5105_v53  ;;  %v5134_v53 = vadd.f32 %v8573_v6, %v4928_v29 }
 0x85b   : > { %5298 = vst [vmem:[%s7345_s24 + $0x500] sm:$0xff] %v5106_v49  ;;  %v5135_v49 = vadd.f32 %v8575_v7, %v4929_v52 }
 0x85c   : > { %5299 = vst [vmem:[%s7345_s24 + $0x508] sm:$0xff] %v5107_v10 }
 0x85d   : > { %5300 = vst [vmem:[%s7345_s24 + $0x510] sm:$0xff] %v5108_v25 }
 0x85e   : > { %5301 = vst [vmem:[%s7345_s24 + $0x518] sm:$0xff] %v5109_v38 }
 0x85f   : > { %5302 = vst [vmem:[%s7345_s24 + $0x520] sm:$0xff] %v5110_v42 }
 0x860   : > { %5303 = vst [vmem:[%s7345_s24 + $0x528] sm:$0xff] %v5111_v60 }
 0x861   : > { %5304 = vst [vmem:[%s7345_s24 + $0x530] sm:$0xff] %v5112_v2 }
 0x862   : > { %5305 = vst [vmem:[%s7345_s24 + $0x538] sm:$0xff] %v5113_v3 }
 0x863   : > { %5306 = vst [vmem:[%s7345_s24 + $0x540] sm:$0xff] %v5114_v4 }
 0x864   : > { %5307 = vst [vmem:[%s7345_s24 + $0x548] sm:$0xff] %v5115_v27 }
 0x865   : > { %5308 = vst [vmem:[%s7345_s24 + $0x550] sm:$0xff] %v5116_v28 }
 0x866   : > { %5309 = vst [vmem:[%s7345_s24 + $0x558] sm:$0xff] %v5117_v24 }
 0x867   : > { %5310 = vst [vmem:[%s7345_s24 + $0x560] sm:$0xff] %v5118_v63 }
 0x868   : > { %5311 = vst [vmem:[%s7345_s24 + $0x568] sm:$0xff] %v5119_v0 }
 0x869   : > { %5312 = vst [vmem:[%s7345_s24 + $0x570] sm:$0xff] %v5120_v33 }
 0x86a   : > { %5313 = vst [vmem:[%s7345_s24 + $0x578] sm:$0xff] %v5121_v14 }
 0x86b   : > { %5314 = vst [vmem:[%s7345_s24 + $0x580] sm:$0xff] %v5122_v50 }
 0x86c   : > { %5315 = vst [vmem:[%s7345_s24 + $0x588] sm:$0xff] %v5123_v35 }
 0x86d   : > { %5316 = vst [vmem:[%s7345_s24 + $0x590] sm:$0xff] %v5124_v58 }
 0x86e   : > { %5317 = vst [vmem:[%s7345_s24 + $0x598] sm:$0xff] %v5125_v30 }
 0x86f   : > { %5318 = vst [vmem:[%s7345_s24 + $0x5a0] sm:$0xff] %v5126_v16 }
 0x870   : > { %5319 = vst [vmem:[%s7345_s24 + $0x5a8] sm:$0xff] %v5127_v5 }
 0x871   : > { %5320 = vst [vmem:[%s7345_s24 + $0x5b0] sm:$0xff] %v5128_v55 }
 0x872   : > { %5321 = vst [vmem:[%s7345_s24 + $0x5b8] sm:$0xff] %v5129_v12 }
 0x873   : > { %5322 = vst [vmem:[%s7345_s24 + $0x5c0] sm:$0xff] %v5130_v62 }
 0x874   : > { %5323 = vst [vmem:[%s7345_s24 + $0x5c8] sm:$0xff] %v5131_v45 }
 0x875   : > { %5324 = vst [vmem:[%s7345_s24 + $0x5d0] sm:$0xff] %v5132_v57 }
 0x876   : > { %5325 = vst [vmem:[%s7345_s24 + $0x5d8] sm:$0xff] %v5133_v8 }
 0x877   : > { %5326 = vst [vmem:[%s7345_s24 + $0x5e0] sm:$0xff] %v5134_v53 }
 0x878   : > { %5327 = vst [vmem:[%s7345_s24 + $0x5e8] sm:$0xff] %v5135_v49 }
 0x879   : > { %5328 = vst [vmem:[%s7345_s24 + $0x5f0] sm:$0xff] %v5136_v54 }
 0x87a   : > { %5329 = vst [vmem:[%s7345_s24 + $0x5f8] sm:$0xff] %v5137_v32 }
 0x87b PF: > { %s6788_s30 = smul.u32 1536, %s7122_s19  ;;  %s5346_s4 = sshll.u32 %s7345_s24, 4  ;;  %s5347_s4 = int_to_ptr.vmem [resolvable:$true] %s5346_s4 }
 0x87c   : > { %s9231_s26 = sld [smem:[#allocation45_spill]]  ;;  %s5331_s10 = scalar_lea.sflag [#allocation5], %s7322_s5 }
 0x882   : > { %s5345_s28 = scalar_lea.hbm %s9231_s26, %s6788_s30  ;;  %s7024_s19 = scalar_lea.hbm %s9231_s26, 3072 }
 0x883   : > { %s5348_s22 = sshll.u32 %s5345_s28, 4  ;;  %s5349_s22 = int_to_ptr.hbm [resolvable:$true] %s5348_s22 }
 0x884   : > { %s7018_s2 = sshra.s32 %s5349_s22, 4  ;;  %s7019_s2 = int_to_ptr.hbm [resolvable:$true] %s7018_s2 }
 0x885   : > { %s7020_s15 = scalar_lea.hbm %s7019_s2, 1536  ;;  %p7025_p10 = scmp.lt.s32.totalorder %s7019_s2, %s9231_s26 }
 0x886   : > { %p7021_p8 = scmp.ne.s32.totalorder %s7019_s2, %s7020_s15  ;;  %p7026_p0 = scmp.lt.s32.totalorder %s7024_s19, %s7020_s15 }
 0x888   : > { %p7022_p13 = pnand %p7021_p8, %p7275_p11  ;;  %p7027_p5 = por %p7026_p0, %p7025_p10 }
 0x88a   : > { %p7023_p9 = pneg %p7022_p13 }
 0x88c   : > { %p7028_p3 = pnand %p7027_p5, %p7023_p9 }
 0x88e   : > { %7031 = shalt.err (!%p7028_p3)
}
 0x88f   : > { %s7142_s5 = smov 768   ;;  %s7143_s24 = smov 48  }
 0x890   : > { %6797 = dma.vmem_to_hbm [thread:$0]  (%p7275_p11), %s5347_s4, 24576, %s5349_s22, %s5331_s10, %s7142_s5, %s7142_s5, %s7143_s24  }
 0x891 PF: > { %s9232_s23 = sld [smem:[#allocation16_spill]] }
 0x892   : > { %s9233_s27 = sld [smem:[#allocation14_spill]] }
 0x897   : > { %p6817_p7 = scmp.ge.s32.totalorder %s9232_s23, 2 }
 0x898   : > { %s5363_s6 = sand.u32 1, %s9233_s27  }
 0x899   : > { %p6811_p1 = pnand %p6817_p7, %p7249_p12  ;;  %s5364_s30 = scalar_lea.sflag [#allocation5], %s5363_s6 }
 0x89b   : > { %p6812_p4 = pneg %p6811_p1 }
 0x89d   : > { %7089 = dma.done.wait (%p6812_p4), %s5364_s30, 24576  }
 0x89e   : > { %7091 = vsyncadd (%p6812_p4), %s5364_s30, 4294942720  ;;  %s22_s22 = sadd.s32 1, %s9232_s23   ;;  %s9235_s18 = sld [smem:[#allocation15_spill]] }
 0x89f   : > { %p19_p6 = scmp.ge.s32.totalorder %s22_s22, 6   ;;  %s9236_s20 = sld [smem:[#allocation19_spill]] }
 0x8a0   : > { %s9237_s12 = smov %s7098_s13  ;;  %s9238_s13 = smov %s7102_s14 }
 0x8a1   : > { %s9239_s14 = smov %s7305_s9  ;;  %s9240_s15 = smov %s7110_s16 }
 0x8a2   : > { %s9241_s16 = smov %s7114_s17  ;;  %s9242_s17 = smov %s7315_s3 }
 0x8a3   : > { %s9243_s19 = smov %s7130_s21  ;;  %s9244_s21 = smov %s9250_s8 }
 0x8a4   :  { %21 = sbr.rel (!%p19_p6) target bundleno = 15 (0xf), region = 104 }
 0x8a9   :  { %5370 = vsyncpa [#allocation4], 1 }
 0x8aa   :  { %5372 = vsyncpa [#allocation4 + $0x1], 1 }
 0x8ab   :  { %5373 = vsyncpa [#allocation7], 1 }
 0x8ac   :  { %5375 = vsyncpa [#allocation7 + $0x1], 1 }
 0x8ad   :  { %5376 = vsyncpa [#allocation5], 1 }
 0x8ae   :  { %5378 = vsyncpa [#allocation5 + $0x1], 1 }

</bundles_post_ra>
